<compile_context>
chip_gen: v5e
topology: v5e:2x2
jax: 0.10.0
libtpu: 0.0.40
codegen_flags: <defaults>
</compile_context>

<pallas_src>
import math

import numpy as np
import jax
import jax.numpy as jnp
from jax import lax
from jax.experimental import pallas as pl
from jax.experimental.pallas import tpu as pltpu

# ----------------------------------------------------------------------------
# Configuration (mirrors HeteroSoap.__init__ / ScaledSoap defaults)
# ----------------------------------------------------------------------------
LMAX = 3
NMAX = 3
L = LMAX + 1                 # 4
NP = NMAX + 1                # 4
SPECIES = (1, 8)             # sorted(iterable(numbers))
S = len(SPECIES)             # 2
RC = 6.0                     # cutoff of the external `radial`
UNIT = RC / 3.0              # atomic_unit=None -> unit = rc / 3
ROWS = S * NP                # 8   fused (species, radial) rows
QDIM = L * L                 # 16  fused (l1, l2) harmonic rows
DIM = S * S * NP * NP * L    # 256 flattened descriptor size
ATOMS = 128                  # lane-padded atom count (multiple of 128)
GROUP = 8                    # environments per grid step (sublane-dense output)

# Yr / Yi power-spectrum tables and the sqrt-factorial normalisation nnl[m, n, l].
_one = np.ones((L, L), np.float32)
YR = (2.0 * np.tril(_one) - np.eye(L, dtype=np.float32)).astype(np.float32)
YI = (2.0 * np.triu(_one, 1)).astype(np.float32)
_a = np.array(
    [[1.0 / ((2 * l + 1) * 2 ** (2 * n + l) * math.factorial(n) * math.factorial(n + l))
      for l in range(L)] for n in range(NP)], np.float64)
NNL = np.sqrt(_a[None] * _a[:, None]).astype(np.float32)          # (NP, NP, L)


def _build_wblk():
    """Block-diagonal power-spectrum weight matrix (ROWS*QDIM, ROWS*L)."""
    w = np.zeros((QDIM, L), np.float32)
    for l1 in range(L):
        for l2 in range(L):
            q = l1 * L + l2
            w[q, l1] += YR[l1, l2]
            w[q, l2] += YI[l1, l2]
    blk = np.zeros((ROWS * QDIM, ROWS * L), np.float32)
    for j in range(ROWS):
        blk[j * QDIM:(j + 1) * QDIM, j * L:(j + 1) * L] = w
    return blk                                                     # (128, 32)


WBLK = _build_wblk()

# Selector: SEL[i, j*QDIM + q] = [i == j]  (sublane-reduce to extract c[j, q]).
SEL = np.zeros((ROWS, ROWS * QDIM), np.float32)
for _j in range(ROWS):
    SEL[_j, _j * QDIM:(_j + 1) * QDIM] = 1.0

# Pack mask: PACKMASK[i, d] = [d // (ROWS*L) == i]  (sublane -> lane pack).
PACKMASK = (np.arange(DIM)[None, :] // (ROWS * L) ==
            np.arange(ROWS)[:, None]).astype(np.float32)           # (8, 256)


# ----------------------------------------------------------------------------
# Solid harmonics d^l * Y_l^m in autoforce's triangular Re/Im layout.
# Entry (i, j): j <= i -> Re Y_i^j ,  j > i -> Im Y_j^(i+1).
# Returns a row-major list of L*L arrays, same shape as the inputs.
# ----------------------------------------------------------------------------
def _solid_harmonics(x, y, z, d2):
    Rre = [[None] * (l + 1) for l in range(L)]
    Rim = [[None] * (l + 1) for l in range(L)]
    Rre[0][0] = jnp.ones_like(d2)
    Rim[0][0] = jnp.zeros_like(d2)
    for l in range(1, L):
        c = math.sqrt((2 * l - 1) / (2 * l))
        Rre[l][l] = -c * (x * Rre[l - 1][l - 1] - y * Rim[l - 1][l - 1])
        Rim[l][l] = -c * (x * Rim[l - 1][l - 1] + y * Rre[l - 1][l - 1])
        for m in range(l):
            ca = (2 * l - 1) / math.sqrt((l + m) * (l - m))
            re = ca * z * Rre[l - 1][m]
            im = ca * z * Rim[l - 1][m]
            if m <= l - 2:
                cb = math.sqrt((l - 1 + m) * (l - 1 - m)) / math.sqrt((l + m) * (l - m))
                re = re - cb * d2 * Rre[l - 2][m]
                im = im - cb * d2 * Rim[l - 2][m]
            Rre[l][m] = re
            Rim[l][m] = im
    out = []
    for i in range(L):
        for j in range(L):
            scale = math.sqrt((2 * max(i, j) + 1) / (4.0 * math.pi))
            out.append(scale * (Rre[i][j] if j <= i else Rim[j][i + 1]))
    return out


# ----------------------------------------------------------------------------
# Pallas kernel: one grid step == GROUP environments (128 lane-padded atoms each).
# ----------------------------------------------------------------------------
def _soap_kernel(coo_ref, mask_ref, sel_ref, wblk_ref, pack_ref, out_ref,
                 fm_scr, y_scr):
    # coo_ref : (GROUP*3, ATOMS)     rows g*3+{0,1,2} = x,y,z of env g (Cartesian)
    # mask_ref: (GROUP*S, ATOMS)     rows g*S+s = species masks (0 on pad lanes/envs)
    # sel_ref : (ROWS, ROWS*QDIM)    constant selector (fetched once)
    # wblk_ref: (ROWS*QDIM, ROWS*L)  constant block-diag Yr/Yi weights (fetched once)
    # pack_ref: (ROWS, DIM)          fused pack-mask * nnl / scales (fetched once)
    # out_ref : (GROUP, DIM)         lane/sublane-dense descriptor slab
    # fm_scr  : (GROUP*ROWS, ATOMS)  species-masked radial rows (per-env slices)
    # y_scr   : (GROUP*QDIM, ATOMS)  solid-harmonic rows (per-env slices)
    inv_unit = 1.0 / UNIT
    inv_rc = 1.0 / RC
    sel = sel_ref[...]        # hoisted: 1 vreg
    wblk = wblk_ref[...]      # hoisted: matmul RHS
    pack = pack_ref[...]      # hoisted: 2 vregs

    for g in range(GROUP):
        x = coo_ref[pl.ds(3 * g + 0, 1), :] * inv_unit             # (1, ATOMS)
        y = coo_ref[pl.ds(3 * g + 1, 1), :] * inv_unit
        z = coo_ref[pl.ds(3 * g + 2, 1), :] * inv_unit
        d2 = x * x + y * y + z * z
        d = jnp.sqrt(d2)      # forward only; TODO(synk): guard sqrt(0) for grad branch
        rdist = UNIT * d
        cut = jnp.where(rdist < RC, (1.0 - rdist * inv_rc) ** 2, 0.0)
        r = jnp.exp(-0.5 * d2) * cut                               # (1, ATOMS)

        masks = [mask_ref[pl.ds(g * S + s, 1), :] for s in range(S)]

        # Species-masked radial rows f_n * mask_s straight into VMEM scratch
        # (no sublane concatenates).  Row layout: row = g*ROWS + s*NP + n.
        pw = r
        for n in range(NP):
            if n:
                pw = pw * d2                                       # r * d**(2n)
            for s in range(S):
                fm_scr[pl.ds(g * ROWS + s * NP + n, 1), :] = pw * masks[s]

        # Solid-harmonic rows (row-major (l1, l2)) into VMEM scratch.
        ylm = _solid_harmonics(x, y, z, d2)                        # 16 x (1, ATOMS)
        for q in range(QDIM):
            y_scr[pl.ds(g * QDIM + q, 1), :] = ylm[q]

        # c[(s,n), (l1,l2)] = sum_atoms fm * Y — contraction over the atom (lane)
        # axis of BOTH operands; the (16, ATOMS) operand is transposed through
        # the XLU before the MXU, negligible at 128 lanes.
        fm = fm_scr[pl.ds(g * ROWS, ROWS), :]                      # (8, 128)
        yq = y_scr[pl.ds(g * QDIM, QDIM), :]                       # (16, 128)
        c = lax.dot_general(fm, yq, (((1,), (1,)), ((), ())),
                            preferred_element_type=jnp.float32)    # (8, 16)

        # Lane-dense outer product: nnp2[i, j*16 + q] = c[i, q] * c[j, q] -> (8, 128)
        a_rep = jnp.concatenate([c] * ROWS, axis=1)                # (8, 128)
        c_flat = jnp.sum(a_rep * sel, axis=0, keepdims=True)       # (1, 128): c[j, q]
        nnp2 = a_rep * c_flat                                      # (8, 128)

        # p[(a,m), (b,n), l] -> out_sm[i, j*4 + l] via one MXU matmul.
        out_sm = lax.dot_general(nnp2, wblk, (((1,), (0,)), ((), ())),
                                 preferred_element_type=jnp.float32)  # (8, 32)

        # Pack to one lane-dense row and apply nnl / scales in the same pass:
        #   out[g, i*32 + j*4 + l] = out_sm[i, j*4+l] * (nnl/scales)[...]
        tiled = jnp.concatenate([out_sm] * ROWS, axis=1)           # (8, 256)
        out_ref[pl.ds(g, 1), :] = jnp.sum(tiled * pack, axis=0, keepdims=True)


# ----------------------------------------------------------------------------
# Host wrapper: padding, species masks, fused tables, layout fix-up.
# ----------------------------------------------------------------------------
def scaled_soap(coo, numbers, scales=None, flatten=True):
    """ScaledSoap forward (grad=False): soap(coo, numbers) / scales.

    coo:     (B, NAT, 3) float  — neighbor coordinates per environment
    numbers: (B, NAT)    int    — atomic numbers (must be in SPECIES)
    scales:  (DIM,) positive    — ScaledSoap scales (None -> ones)
    returns  (B, DIM) descriptors in (a, b, m, n, l) order (flatten=True).
    """
    coo = jnp.asarray(coo, jnp.float32)
    numbers = jnp.asarray(numbers)
    squeeze = coo.ndim == 2
    if squeeze:
        coo, numbers = coo[None], numbers[None]
    B, nat, _ = coo.shape
    assert nat <= ATOMS

    if scales is None:
        scales = jnp.ones((DIM,), jnp.float32)
    # TODO(synk): free_form/positive reparametrisation of scales is training-time
    # machinery; the forward pass only needs the positive scales themselves.
    scales = jnp.asarray(scales, jnp.float32).reshape(DIM)

    # Host-side lane padding: pad coords far outside rc, pad masks with zeros.
    pad = ATOMS - nat
    coo_t = jnp.transpose(coo, (0, 2, 1))                              # (B, 3, nat)
    pad_xyz = jnp.zeros((B, 3, pad), jnp.float32).at[:, 0, :].set(2.0 * RC)
    coo_p = jnp.concatenate([coo_t, pad_xyz], axis=-1)                 # (B, 3, ATOMS)
    mask = (numbers[:, None, :] ==
            jnp.asarray(SPECIES, numbers.dtype)[None, :, None]).astype(jnp.float32)
    mask_p = jnp.concatenate([mask, jnp.zeros((B, S, pad), jnp.float32)], axis=-1)

    # Environment padding up to a multiple of GROUP (zero masks -> zero rows).
    Bp = ((B + GROUP - 1) // GROUP) * GROUP
    if Bp != B:
        coo_p = jnp.concatenate(
            [coo_p, jnp.zeros((Bp - B, 3, ATOMS), jnp.float32)], axis=0)
        mask_p = jnp.concatenate(
            [mask_p, jnp.zeros((Bp - B, S, ATOMS), jnp.float32)], axis=0)

    coo_flat = coo_p.reshape(Bp * 3, ATOMS)
    mask_flat = mask_p.reshape(Bp * S, ATOMS)

    # Fold constant nnl normalisation, runtime 1/scales and the sublane->lane
    # pack mask into one (ROWS, DIM) table in the kernel's (a, m, b, n, l) layout.
    nnl_d = jnp.broadcast_to(jnp.asarray(NNL)[None, None], (S, S, NP, NP, L))
    tbl = (nnl_d / scales.reshape(S, S, NP, NP, L)
           ).transpose(0, 2, 1, 3, 4).reshape(DIM)
    pack_tbl = jnp.asarray(PACKMASK) * tbl[None, :]                    # (8, 256)

    sel = jnp.asarray(SEL)                                             # (8, 128)
    wblk = jnp.asarray(WBLK)                                           # (128, 32)

    out = pl.pallas_call(
        _soap_kernel,
        grid=(Bp // GROUP,),
        in_specs=[
            pl.BlockSpec((GROUP * 3, ATOMS), lambda b: (b, 0)),
            pl.BlockSpec((GROUP * S, ATOMS), lambda b: (b, 0)),
            pl.BlockSpec((ROWS, ROWS * QDIM), lambda b: (0, 0)),   # resident constants
            pl.BlockSpec((ROWS * QDIM, ROWS * L), lambda b: (0, 0)),
            pl.BlockSpec((ROWS, DIM), lambda b: (0, 0)),
        ],
        out_specs=pl.BlockSpec((GROUP, DIM), lambda b: (b, 0)),
        out_shape=jax.ShapeDtypeStruct((Bp, DIM), jnp.float32),
        scratch_shapes=[pltpu.VMEM((GROUP * ROWS, ATOMS), jnp.float32),
                        pltpu.VMEM((GROUP * QDIM, ATOMS), jnp.float32)],
        compiler_params=pltpu.CompilerParams(
            dimension_semantics=("parallel",)),           # use both TCs on v7x
    )(coo_flat, mask_flat, sel, wblk, pack_tbl)

    out = out[:B]
    # Lane layout is (a, m, b, n, l) -> descriptor order (a, b, m, n, l).
    p = out.reshape(B, S, NP, S, NP, L).transpose(0, 1, 3, 2, 4, 5)
    p = p.reshape(B, DIM) if flatten else p
    return p[0] if squeeze else p


# ----------------------------------------------------------------------------
# Pure-JAX reference mirroring the torch forward (grad=False) for validation.
# ----------------------------------------------------------------------------
def _scaled_soap_reference_single(coo, numbers, scales):
    xyz = coo / UNIT
    x, y, z = xyz[:, 0], xyz[:, 1], xyz[:, 2]
    d2 = jnp.sum(xyz ** 2, axis=-1)
    d = jnp.sqrt(d2)
    n = 2.0 * jnp.arange(NP, dtype=jnp.float32)
    rdist = UNIT * d
    cut = jnp.where(rdist < RC, (1.0 - rdist / RC) ** 2, 0.0)
    r = jnp.exp(-0.5 * d2) * cut
    f = r * d[None, :] ** n[:, None]                                  # (NP, Nat)
    Y = jnp.stack(_solid_harmonics(x, y, z, d2)).reshape(L, L, -1)    # (L, L, Nat)
    ff = f[:, None, None] * Y[None]                                   # (NP, L, L, Nat)
    c = jnp.stack([jnp.sum(ff * (numbers == num).astype(jnp.float32), axis=-1)
                   for num in SPECIES])                               # (S, NP, L, L)
    nnp = c[None, :, None] * c[:, None, :, None]                      # (S,S,NP,NP,L,L)
    p = (nnp * jnp.asarray(YR)).sum(-1) + (nnp * jnp.asarray(YI)).sum(-2)
    p = p * jnp.asarray(NNL)
    return p.reshape(-1) / scales


if __name__ == "__main__":
    key = jax.random.PRNGKey(0)
    kc, kn, ks = jax.random.split(key, 3)
    B, NAT = 8, 16
    coo = jax.random.uniform(kc, (B, NAT, 3), jnp.float32, minval=-2.5, maxval=2.5)
    numbers = jnp.where(jax.random.bernoulli(kn, 0.5, (B, NAT)),
                        jnp.int32(8), jnp.int32(1))
    # positive per-feature scales (ScaledSoap default is ones; use nontrivial ones)
    scales = 0.5 + jax.random.uniform(ks, (DIM,), jnp.float32)

    p = jax.block_until_ready(scaled_soap(coo, numbers, scales))
    assert p.shape == (B, DIM), p.shape

    p_ref = jnp.stack([_scaled_soap_reference_single(coo[b], numbers[b], scales)
                       for b in range(B)])
    p_ref = jax.block_until_ready(p_ref)

    np.testing.assert_allclose(np.asarray(p), np.asarray(p_ref),
                               rtol=2e-3, atol=1e-6)
    print("KERNEL_OK")
</pallas_src>

<mosaic_0001>
module attributes {stable_mosaic.version = 11 : i64} {
  func.func @_soap_kernel(%arg0: i32, %arg1: memref<24x128xf32, #tpu.memory_space<vmem>>, %arg2: memref<16x128xf32, #tpu.memory_space<vmem>>, %arg3: memref<8x128xf32, #tpu.memory_space<vmem>>, %arg4: memref<128x32xf32, #tpu.memory_space<vmem>>, %arg5: memref<8x256xf32, #tpu.memory_space<vmem>>, %arg6: memref<8x256xf32, #tpu.memory_space<vmem>>, %arg7: memref<64x128xf32, #tpu.memory_space<vmem>>, %arg8: memref<128x128xf32, #tpu.memory_space<vmem>>) attributes {dimension_semantics = [#tpu.dimension_semantics<parallel>], iteration_bounds = array<i64: 1>, scalar_prefetch = 0 : i64, scratch_operands = 2 : i64, tpu.core_type = #tpu.core_type<tc>, window_params = [{transform_indices = @transform_0, window_bounds = array<i64: 24, 128>}, {transform_indices = @transform_1, window_bounds = array<i64: 16, 128>}, {pipeline_mode = #tpu.pipeline_mode<synchronous>, transform_indices = @transform_2, window_bounds = array<i64: 8, 128>}, {pipeline_mode = #tpu.pipeline_mode<synchronous>, transform_indices = @transform_3, window_bounds = array<i64: 128, 32>}, {pipeline_mode = #tpu.pipeline_mode<synchronous>, transform_indices = @transform_4, window_bounds = array<i64: 8, 256>}, {transform_indices = @transform_5, window_bounds = array<i64: 8, 256>}]} {
    %c0 = arith.constant 0 : index
    %c0_0 = arith.constant 0 : index
    %0 = vector.load %arg3[%c0, %c0_0] : memref<8x128xf32, #tpu.memory_space<vmem>>, vector<8x128xf32>
    %c0_1 = arith.constant 0 : index
    %c0_2 = arith.constant 0 : index
    %1 = vector.load %arg4[%c0_1, %c0_2] : memref<128x32xf32, #tpu.memory_space<vmem>>, vector<128x32xf32>
    %c0_3 = arith.constant 0 : index
    %c0_4 = arith.constant 0 : index
    %2 = vector.load %arg5[%c0_3, %c0_4] : memref<8x256xf32, #tpu.memory_space<vmem>>, vector<8x256xf32>
    %c0_5 = arith.constant 0 : index
    %c0_6 = arith.constant 0 : index
    %3 = vector.load %arg1[%c0_5, %c0_6] : memref<24x128xf32, #tpu.memory_space<vmem>>, vector<1x128xf32>
    %cst = arith.constant 5.000000e-01 : f32
    %4 = vector.broadcast %cst : f32 to vector<1x128xf32>
    %5 = arith.mulf %3, %4 : vector<1x128xf32>
    %c1 = arith.constant 1 : index
    %c0_7 = arith.constant 0 : index
    %6 = vector.load %arg1[%c1, %c0_7] : memref<24x128xf32, #tpu.memory_space<vmem>>, vector<1x128xf32>
    %cst_8 = arith.constant 5.000000e-01 : f32
    %7 = vector.broadcast %cst_8 : f32 to vector<1x128xf32>
    %8 = arith.mulf %6, %7 : vector<1x128xf32>
    %c2 = arith.constant 2 : index
    %c0_9 = arith.constant 0 : index
    %9 = vector.load %arg1[%c2, %c0_9] : memref<24x128xf32, #tpu.memory_space<vmem>>, vector<1x128xf32>
    %cst_10 = arith.constant 5.000000e-01 : f32
    %10 = vector.broadcast %cst_10 : f32 to vector<1x128xf32>
    %11 = arith.mulf %9, %10 : vector<1x128xf32>
    %12 = arith.mulf %5, %5 : vector<1x128xf32>
    %13 = arith.mulf %8, %8 : vector<1x128xf32>
    %14 = arith.addf %12, %13 : vector<1x128xf32>
    %15 = arith.mulf %11, %11 : vector<1x128xf32>
    %16 = arith.addf %14, %15 : vector<1x128xf32>
    %17 = math.sqrt %16 : vector<1x128xf32>
    %cst_11 = arith.constant 2.000000e+00 : f32
    %18 = vector.broadcast %cst_11 : f32 to vector<1x128xf32>
    %19 = arith.mulf %18, %17 : vector<1x128xf32>
    %cst_12 = arith.constant 6.000000e+00 : f32
    %20 = vector.broadcast %cst_12 : f32 to vector<1x128xf32>
    %21 = arith.cmpf olt, %19, %20 : vector<1x128xf32>
    %cst_13 = arith.constant 0.166666672 : f32
    %22 = vector.broadcast %cst_13 : f32 to vector<1x128xf32>
    %23 = arith.mulf %19, %22 : vector<1x128xf32>
    %cst_14 = arith.constant 1.000000e+00 : f32
    %24 = vector.broadcast %cst_14 : f32 to vector<1x128xf32>
    %25 = arith.subf %24, %23 : vector<1x128xf32>
    %26 = arith.mulf %25, %25 : vector<1x128xf32>
    %cst_15 = arith.constant 0.000000e+00 : f32
    %27 = vector.broadcast %cst_15 : f32 to vector<1x128xf32>
    %28 = arith.select %21, %26, %27 : vector<1x128xi1>, vector<1x128xf32>
    %cst_16 = arith.constant -5.000000e-01 : f32
    %29 = vector.broadcast %cst_16 : f32 to vector<1x128xf32>
    %30 = arith.mulf %29, %16 : vector<1x128xf32>
    %31 = math.exp %30 : vector<1x128xf32>
    %32 = arith.mulf %31, %28 : vector<1x128xf32>
    %c0_17 = arith.constant 0 : index
    %c0_18 = arith.constant 0 : index
    %33 = vector.load %arg2[%c0_17, %c0_18] : memref<16x128xf32, #tpu.memory_space<vmem>>, vector<1x128xf32>
    %c1_19 = arith.constant 1 : index
    %c0_20 = arith.constant 0 : index
    %34 = vector.load %arg2[%c1_19, %c0_20] : memref<16x128xf32, #tpu.memory_space<vmem>>, vector<1x128xf32>
    %35 = arith.mulf %32, %33 : vector<1x128xf32>
    %c0_21 = arith.constant 0 : index
    %c0_22 = arith.constant 0 : index
    %36 = vector.load %arg7[%c0_21, %c0_22] : memref<64x128xf32, #tpu.memory_space<vmem>>, vector<1x128xf32>
    tpu.vector_store %arg7[%c0_21, %c0_22], %35 {strides = array<i32>} : memref<64x128xf32, #tpu.memory_space<vmem>>, vector<1x128xf32>,
    %37 = arith.mulf %32, %34 : vector<1x128xf32>
    %c4 = arith.constant 4 : index
    %c0_23 = arith.constant 0 : index
    %38 = vector.load %arg7[%c4, %c0_23] : memref<64x128xf32, #tpu.memory_space<vmem>>, vector<1x128xf32>
    tpu.vector_store %arg7[%c4, %c0_23], %37 {strides = array<i32>} : memref<64x128xf32, #tpu.memory_space<vmem>>, vector<1x128xf32>,
    %39 = arith.mulf %32, %16 : vector<1x128xf32>
    %40 = arith.mulf %39, %33 : vector<1x128xf32>
    %c1_24 = arith.constant 1 : index
    %c0_25 = arith.constant 0 : index
    %41 = vector.load %arg7[%c1_24, %c0_25] : memref<64x128xf32, #tpu.memory_space<vmem>>, vector<1x128xf32>
    tpu.vector_store %arg7[%c1_24, %c0_25], %40 {strides = array<i32>} : memref<64x128xf32, #tpu.memory_space<vmem>>, vector<1x128xf32>,
    %42 = arith.mulf %39, %34 : vector<1x128xf32>
    %c5 = arith.constant 5 : index
    %c0_26 = arith.constant 0 : index
    %43 = vector.load %arg7[%c5, %c0_26] : memref<64x128xf32, #tpu.memory_space<vmem>>, vector<1x128xf32>
    tpu.vector_store %arg7[%c5, %c0_26], %42 {strides = array<i32>} : memref<64x128xf32, #tpu.memory_space<vmem>>, vector<1x128xf32>,
    %44 = arith.mulf %39, %16 : vector<1x128xf32>
    %45 = arith.mulf %44, %33 : vector<1x128xf32>
    %c2_27 = arith.constant 2 : index
    %c0_28 = arith.constant 0 : index
    %46 = vector.load %arg7[%c2_27, %c0_28] : memref<64x128xf32, #tpu.memory_space<vmem>>, vector<1x128xf32>
    tpu.vector_store %arg7[%c2_27, %c0_28], %45 {strides = array<i32>} : memref<64x128xf32, #tpu.memory_space<vmem>>, vector<1x128xf32>,
    %47 = arith.mulf %44, %34 : vector<1x128xf32>
    %c6 = arith.constant 6 : index
    %c0_29 = arith.constant 0 : index
    %48 = vector.load %arg7[%c6, %c0_29] : memref<64x128xf32, #tpu.memory_space<vmem>>, vector<1x128xf32>
    tpu.vector_store %arg7[%c6, %c0_29], %47 {strides = array<i32>} : memref<64x128xf32, #tpu.memory_space<vmem>>, vector<1x128xf32>,
    %49 = arith.mulf %44, %16 : vector<1x128xf32>
    %50 = arith.mulf %49, %33 : vector<1x128xf32>
    %c3 = arith.constant 3 : index
    %c0_30 = arith.constant 0 : index
    %51 = vector.load %arg7[%c3, %c0_30] : memref<64x128xf32, #tpu.memory_space<vmem>>, vector<1x128xf32>
    tpu.vector_store %arg7[%c3, %c0_30], %50 {strides = array<i32>} : memref<64x128xf32, #tpu.memory_space<vmem>>, vector<1x128xf32>,
    %52 = arith.mulf %49, %34 : vector<1x128xf32>
    %c7 = arith.constant 7 : index
    %c0_31 = arith.constant 0 : index
    %53 = vector.load %arg7[%c7, %c0_31] : memref<64x128xf32, #tpu.memory_space<vmem>>, vector<1x128xf32>
    tpu.vector_store %arg7[%c7, %c0_31], %52 {strides = array<i32>} : memref<64x128xf32, #tpu.memory_space<vmem>>, vector<1x128xf32>,
    %cst_32 = arith.constant 1.000000e+00 : f32
    %54 = vector.broadcast %cst_32 : f32 to vector<1x128xf32>
    %cst_33 = arith.constant 0.000000e+00 : f32
    %55 = vector.broadcast %cst_33 : f32 to vector<1x128xf32>
    %56 = arith.mulf %5, %54 : vector<1x128xf32>
    %57 = arith.mulf %8, %55 : vector<1x128xf32>
    %58 = arith.subf %56, %57 : vector<1x128xf32>
    %cst_34 = arith.constant -0.707106769 : f32
    %59 = vector.broadcast %cst_34 : f32 to vector<1x128xf32>
    %60 = arith.mulf %59, %58 : vector<1x128xf32>
    %61 = arith.mulf %5, %55 : vector<1x128xf32>
    %62 = arith.mulf %8, %54 : vector<1x128xf32>
    %63 = arith.addf %61, %62 : vector<1x128xf32>
    %cst_35 = arith.constant -0.707106769 : f32
    %64 = vector.broadcast %cst_35 : f32 to vector<1x128xf32>
    %65 = arith.mulf %64, %63 : vector<1x128xf32>
    %cst_36 = arith.constant 1.000000e+00 : f32
    %66 = vector.broadcast %cst_36 : f32 to vector<1x128xf32>
    %67 = arith.mulf %66, %11 : vector<1x128xf32>
    %68 = arith.mulf %67, %54 : vector<1x128xf32>
    %69 = arith.mulf %5, %60 : vector<1x128xf32>
    %70 = arith.mulf %8, %65 : vector<1x128xf32>
    %71 = arith.subf %69, %70 : vector<1x128xf32>
    %cst_37 = arith.constant -0.866025388 : f32
    %72 = vector.broadcast %cst_37 : f32 to vector<1x128xf32>
    %73 = arith.mulf %72, %71 : vector<1x128xf32>
    %74 = arith.mulf %5, %65 : vector<1x128xf32>
    %75 = arith.mulf %8, %60 : vector<1x128xf32>
    %76 = arith.addf %74, %75 : vector<1x128xf32>
    %cst_38 = arith.constant -0.866025388 : f32
    %77 = vector.broadcast %cst_38 : f32 to vector<1x128xf32>
    %78 = arith.mulf %77, %76 : vector<1x128xf32>
    %cst_39 = arith.constant 1.500000e+00 : f32
    %79 = vector.broadcast %cst_39 : f32 to vector<1x128xf32>
    %80 = arith.mulf %79, %11 : vector<1x128xf32>
    %81 = arith.mulf %80, %68 : vector<1x128xf32>
    %cst_40 = arith.constant 5.000000e-01 : f32
    %82 = vector.broadcast %cst_40 : f32 to vector<1x128xf32>
    %83 = arith.mulf %82, %16 : vector<1x128xf32>
    %84 = arith.mulf %83, %54 : vector<1x128xf32>
    %85 = arith.subf %81, %84 : vector<1x128xf32>
    %cst_41 = arith.constant 1.73205078 : f32
    %86 = vector.broadcast %cst_41 : f32 to vector<1x128xf32>
    %87 = arith.mulf %86, %11 : vector<1x128xf32>
    %88 = arith.mulf %87, %60 : vector<1x128xf32>
    %cst_42 = arith.constant 1.73205078 : f32
    %89 = vector.broadcast %cst_42 : f32 to vector<1x128xf32>
    %90 = arith.mulf %89, %11 : vector<1x128xf32>
    %91 = arith.mulf %90, %65 : vector<1x128xf32>
    %92 = arith.mulf %5, %73 : vector<1x128xf32>
    %93 = arith.mulf %8, %78 : vector<1x128xf32>
    %94 = arith.subf %92, %93 : vector<1x128xf32>
    %cst_43 = arith.constant -0.912870943 : f32
    %95 = vector.broadcast %cst_43 : f32 to vector<1x128xf32>
    %96 = arith.mulf %95, %94 : vector<1x128xf32>
    %97 = arith.mulf %5, %78 : vector<1x128xf32>
    %98 = arith.mulf %8, %73 : vector<1x128xf32>
    %99 = arith.addf %97, %98 : vector<1x128xf32>
    %cst_44 = arith.constant -0.912870943 : f32
    %100 = vector.broadcast %cst_44 : f32 to vector<1x128xf32>
    %101 = arith.mulf %100, %99 : vector<1x128xf32>
    %cst_45 = arith.constant 1.66666663 : f32
    %102 = vector.broadcast %cst_45 : f32 to vector<1x128xf32>
    %103 = arith.mulf %102, %11 : vector<1x128xf32>
    %104 = arith.mulf %103, %85 : vector<1x128xf32>
    %cst_46 = arith.constant 0.666666686 : f32
    %105 = vector.broadcast %cst_46 : f32 to vector<1x128xf32>
    %106 = arith.mulf %105, %16 : vector<1x128xf32>
    %107 = arith.mulf %106, %68 : vector<1x128xf32>
    %108 = arith.subf %104, %107 : vector<1x128xf32>
    %cst_47 = arith.constant 1.76776695 : f32
    %109 = vector.broadcast %cst_47 : f32 to vector<1x128xf32>
    %110 = arith.mulf %109, %11 : vector<1x128xf32>
    %111 = arith.mulf %110, %88 : vector<1x128xf32>
    %cst_48 = arith.constant 1.76776695 : f32
    %112 = vector.broadcast %cst_48 : f32 to vector<1x128xf32>
    %113 = arith.mulf %112, %11 : vector<1x128xf32>
    %114 = arith.mulf %113, %91 : vector<1x128xf32>
    %cst_49 = arith.constant 0.612372457 : f32
    %115 = vector.broadcast %cst_49 : f32 to vector<1x128xf32>
    %116 = arith.mulf %115, %16 : vector<1x128xf32>
    %117 = arith.mulf %116, %60 : vector<1x128xf32>
    %118 = arith.subf %111, %117 : vector<1x128xf32>
    %cst_50 = arith.constant 0.612372457 : f32
    %119 = vector.broadcast %cst_50 : f32 to vector<1x128xf32>
    %120 = arith.mulf %119, %16 : vector<1x128xf32>
    %121 = arith.mulf %120, %65 : vector<1x128xf32>
    %122 = arith.subf %114, %121 : vector<1x128xf32>
    %cst_51 = arith.constant 2.23606801 : f32
    %123 = vector.broadcast %cst_51 : f32 to vector<1x128xf32>
    %124 = arith.mulf %123, %11 : vector<1x128xf32>
    %125 = arith.mulf %124, %73 : vector<1x128xf32>
    %cst_52 = arith.constant 2.23606801 : f32
    %126 = vector.broadcast %cst_52 : f32 to vector<1x128xf32>
    %127 = arith.mulf %126, %11 : vector<1x128xf32>
    %128 = arith.mulf %127, %78 : vector<1x128xf32>
    %cst_53 = arith.constant 0.282094806 : f32
    %129 = vector.broadcast %cst_53 : f32 to vector<1x128xf32>
    %130 = arith.mulf %129, %54 : vector<1x128xf32>
    %cst_54 = arith.constant 0.488602519 : f32
    %131 = vector.broadcast %cst_54 : f32 to vector<1x128xf32>
    %132 = arith.mulf %131, %65 : vector<1x128xf32>
    %cst_55 = arith.constant 0.63078314 : f32
    %133 = vector.broadcast %cst_55 : f32 to vector<1x128xf32>
    %134 = arith.mulf %133, %91 : vector<1x128xf32>
    %cst_56 = arith.constant 0.746352672 : f32
    %135 = vector.broadcast %cst_56 : f32 to vector<1x128xf32>
    %136 = arith.mulf %135, %122 : vector<1x128xf32>
    %cst_57 = arith.constant 0.488602519 : f32
    %137 = vector.broadcast %cst_57 : f32 to vector<1x128xf32>
    %138 = arith.mulf %137, %68 : vector<1x128xf32>
    %cst_58 = arith.constant 0.488602519 : f32
    %139 = vector.broadcast %cst_58 : f32 to vector<1x128xf32>
    %140 = arith.mulf %139, %60 : vector<1x128xf32>
    %cst_59 = arith.constant 0.63078314 : f32
    %141 = vector.broadcast %cst_59 : f32 to vector<1x128xf32>
    %142 = arith.mulf %141, %78 : vector<1x128xf32>
    %cst_60 = arith.constant 0.746352672 : f32
    %143 = vector.broadcast %cst_60 : f32 to vector<1x128xf32>
    %144 = arith.mulf %143, %128 : vector<1x128xf32>
    %cst_61 = arith.constant 0.63078314 : f32
    %145 = vector.broadcast %cst_61 : f32 to vector<1x128xf32>
    %146 = arith.mulf %145, %85 : vector<1x128xf32>
    %cst_62 = arith.constant 0.63078314 : f32
    %147 = vector.broadcast %cst_62 : f32 to vector<1x128xf32>
    %148 = arith.mulf %147, %88 : vector<1x128xf32>
    %cst_63 = arith.constant 0.63078314 : f32
    %149 = vector.broadcast %cst_63 : f32 to vector<1x128xf32>
    %150 = arith.mulf %149, %73 : vector<1x128xf32>
    %cst_64 = arith.constant 0.746352672 : f32
    %151 = vector.broadcast %cst_64 : f32 to vector<1x128xf32>
    %152 = arith.mulf %151, %101 : vector<1x128xf32>
    %cst_65 = arith.constant 0.746352672 : f32
    %153 = vector.broadcast %cst_65 : f32 to vector<1x128xf32>
    %154 = arith.mulf %153, %108 : vector<1x128xf32>
    %cst_66 = arith.constant 0.746352672 : f32
    %155 = vector.broadcast %cst_66 : f32 to vector<1x128xf32>
    %156 = arith.mulf %155, %118 : vector<1x128xf32>
    %cst_67 = arith.constant 0.746352672 : f32
    %157 = vector.broadcast %cst_67 : f32 to vector<1x128xf32>
    %158 = arith.mulf %157, %125 : vector<1x128xf32>
    %cst_68 = arith.constant 0.746352672 : f32
    %159 = vector.broadcast %cst_68 : f32 to vector<1x128xf32>
    %160 = arith.mulf %159, %96 : vector<1x128xf32>
    %c0_69 = arith.constant 0 : index
    %c0_70 = arith.constant 0 : index
    %161 = vector.load %arg8[%c0_69, %c0_70] : memref<128x128xf32, #tpu.memory_space<vmem>>, vector<1x128xf32>
    tpu.vector_store %arg8[%c0_69, %c0_70], %130 {strides = array<i32>} : memref<128x128xf32, #tpu.memory_space<vmem>>, vector<1x128xf32>,
    %c1_71 = arith.constant 1 : index
    %c0_72 = arith.constant 0 : index
    %162 = vector.load %arg8[%c1_71, %c0_72] : memref<128x128xf32, #tpu.memory_space<vmem>>, vector<1x128xf32>
    tpu.vector_store %arg8[%c1_71, %c0_72], %132 {strides = array<i32>} : memref<128x128xf32, #tpu.memory_space<vmem>>, vector<1x128xf32>,
    %c2_73 = arith.constant 2 : index
    %c0_74 = arith.constant 0 : index
    %163 = vector.load %arg8[%c2_73, %c0_74] : memref<128x128xf32, #tpu.memory_space<vmem>>, vector<1x128xf32>
    tpu.vector_store %arg8[%c2_73, %c0_74], %134 {strides = array<i32>} : memref<128x128xf32, #tpu.memory_space<vmem>>, vector<1x128xf32>,
    %c3_75 = arith.constant 3 : index
    %c0_76 = arith.constant 0 : index
    %164 = vector.load %arg8[%c3_75, %c0_76] : memref<128x128xf32, #tpu.memory_space<vmem>>, vector<1x128xf32>
    tpu.vector_store %arg8[%c3_75, %c0_76], %136 {strides = array<i32>} : memref<128x128xf32, #tpu.memory_space<vmem>>, vector<1x128xf32>,
    %c4_77 = arith.constant 4 : index
    %c0_78 = arith.constant 0 : index
    %165 = vector.load %arg8[%c4_77, %c0_78] : memref<128x128xf32, #tpu.memory_space<vmem>>, vector<1x128xf32>
    tpu.vector_store %arg8[%c4_77, %c0_78], %138 {strides = array<i32>} : memref<128x128xf32, #tpu.memory_space<vmem>>, vector<1x128xf32>,
    %c5_79 = arith.constant 5 : index
    %c0_80 = arith.constant 0 : index
    %166 = vector.load %arg8[%c5_79, %c0_80] : memref<128x128xf32, #tpu.memory_space<vmem>>, vector<1x128xf32>
    tpu.vector_store %arg8[%c5_79, %c0_80], %140 {strides = array<i32>} : memref<128x128xf32, #tpu.memory_space<vmem>>, vector<1x128xf32>,
    %c6_81 = arith.constant 6 : index
    %c0_82 = arith.constant 0 : index
    %167 = vector.load %arg8[%c6_81, %c0_82] : memref<128x128xf32, #tpu.memory_space<vmem>>, vector<1x128xf32>
    tpu.vector_store %arg8[%c6_81, %c0_82], %142 {strides = array<i32>} : memref<128x128xf32, #tpu.memory_space<vmem>>, vector<1x128xf32>,
    %c7_83 = arith.constant 7 : index
    %c0_84 = arith.constant 0 : index
    %168 = vector.load %arg8[%c7_83, %c0_84] : memref<128x128xf32, #tpu.memory_space<vmem>>, vector<1x128xf32>
    tpu.vector_store %arg8[%c7_83, %c0_84], %144 {strides = array<i32>} : memref<128x128xf32, #tpu.memory_space<vmem>>, vector<1x128xf32>,
    %c8 = arith.constant 8 : index
    %c0_85 = arith.constant 0 : index
    %169 = vector.load %arg8[%c8, %c0_85] : memref<128x128xf32, #tpu.memory_space<vmem>>, vector<1x128xf32>
    tpu.vector_store %arg8[%c8, %c0_85], %146 {strides = array<i32>} : memref<128x128xf32, #tpu.memory_space<vmem>>, vector<1x128xf32>,
    %c9 = arith.constant 9 : index
    %c0_86 = arith.constant 0 : index
    %170 = vector.load %arg8[%c9, %c0_86] : memref<128x128xf32, #tpu.memory_space<vmem>>, vector<1x128xf32>
    tpu.vector_store %arg8[%c9, %c0_86], %148 {strides = array<i32>} : memref<128x128xf32, #tpu.memory_space<vmem>>, vector<1x128xf32>,
    %c10 = arith.constant 10 : index
    %c0_87 = arith.constant 0 : index
    %171 = vector.load %arg8[%c10, %c0_87] : memref<128x128xf32, #tpu.memory_space<vmem>>, vector<1x128xf32>
    tpu.vector_store %arg8[%c10, %c0_87], %150 {strides = array<i32>} : memref<128x128xf32, #tpu.memory_space<vmem>>, vector<1x128xf32>,
    %c11 = arith.constant 11 : index
    %c0_88 = arith.constant 0 : index
    %172 = vector.load %arg8[%c11, %c0_88] : memref<128x128xf32, #tpu.memory_space<vmem>>, vector<1x128xf32>
    tpu.vector_store %arg8[%c11, %c0_88], %152 {strides = array<i32>} : memref<128x128xf32, #tpu.memory_space<vmem>>, vector<1x128xf32>,
    %c12 = arith.constant 12 : index
    %c0_89 = arith.constant 0 : index
    %173 = vector.load %arg8[%c12, %c0_89] : memref<128x128xf32, #tpu.memory_space<vmem>>, vector<1x128xf32>
    tpu.vector_store %arg8[%c12, %c0_89], %154 {strides = array<i32>} : memref<128x128xf32, #tpu.memory_space<vmem>>, vector<1x128xf32>,
    %c13 = arith.constant 13 : index
    %c0_90 = arith.constant 0 : index
    %174 = vector.load %arg8[%c13, %c0_90] : memref<128x128xf32, #tpu.memory_space<vmem>>, vector<1x128xf32>
    tpu.vector_store %arg8[%c13, %c0_90], %156 {strides = array<i32>} : memref<128x128xf32, #tpu.memory_space<vmem>>, vector<1x128xf32>,
    %c14 = arith.constant 14 : index
    %c0_91 = arith.constant 0 : index
    %175 = vector.load %arg8[%c14, %c0_91] : memref<128x128xf32, #tpu.memory_space<vmem>>, vector<1x128xf32>
    tpu.vector_store %arg8[%c14, %c0_91], %158 {strides = array<i32>} : memref<128x128xf32, #tpu.memory_space<vmem>>, vector<1x128xf32>,
    %c15 = arith.constant 15 : index
    %c0_92 = arith.constant 0 : index
    %176 = vector.load %arg8[%c15, %c0_92] : memref<128x128xf32, #tpu.memory_space<vmem>>, vector<1x128xf32>
    tpu.vector_store %arg8[%c15, %c0_92], %160 {strides = array<i32>} : memref<128x128xf32, #tpu.memory_space<vmem>>, vector<1x128xf32>,
    %c0_93 = arith.constant 0 : index
    %c0_94 = arith.constant 0 : index
    %177 = vector.load %arg7[%c0_93, %c0_94] : memref<64x128xf32, #tpu.memory_space<vmem>>, vector<8x128xf32>
    %c0_95 = arith.constant 0 : index
    %c0_96 = arith.constant 0 : index
    %178 = vector.load %arg8[%c0_95, %c0_96] : memref<128x128xf32, #tpu.memory_space<vmem>>, vector<16x128xf32>
    %cst_97 = arith.constant dense<0.000000e+00> : vector<8x16xf32>
    %179 = tpu.matmul %177, %178, %cst_97 {dimension_numbers = #tpu.dot_dimension_numbers<[1], [1], [0], [0], [0, 0, 1, 0], [], []>} : vector<8x128xf32>, vector<16x128xf32>, vector<8x16xf32> -> vector<8x16xf32>
    %180 = tpu.concatenate %179, %179, %179, %179, %179, %179, %179, %179 in 1 : vector<8x16xf32>, vector<8x16xf32>, vector<8x16xf32>, vector<8x16xf32>, vector<8x16xf32>, vector<8x16xf32>, vector<8x16xf32>, vector<8x16xf32> -> vector<8x128xf32>
    %181 = arith.mulf %180, %0 : vector<8x128xf32>
    %cst_98 = arith.constant dense<0.000000e+00> : vector<128xf32>
    %182 = vector.multi_reduction <add>, %181, %cst_98 [0] : vector<8x128xf32> to vector<128xf32>
    %183 = vector.shape_cast %182 : vector<128xf32> to vector<1x128xf32>
    %184 = vector.broadcast %183 : vector<1x128xf32> to vector<8x128xf32>
    %185 = arith.mulf %180, %184 : vector<8x128xf32>
    %cst_99 = arith.constant dense<0.000000e+00> : vector<8x32xf32>
    %186 = tpu.matmul %185, %1, %cst_99 {dimension_numbers = #tpu.dot_dimension_numbers<[1], [0], [0], [1], [0, 0, 1, 1], [], []>} : vector<8x128xf32>, vector<128x32xf32>, vector<8x32xf32> -> vector<8x32xf32>
    %187 = tpu.concatenate %186, %186, %186, %186, %186, %186, %186, %186 in 1 : vector<8x32xf32>, vector<8x32xf32>, vector<8x32xf32>, vector<8x32xf32>, vector<8x32xf32>, vector<8x32xf32>, vector<8x32xf32>, vector<8x32xf32> -> vector<8x256xf32>
    %188 = arith.mulf %187, %2 : vector<8x256xf32>
    %cst_100 = arith.constant dense<0.000000e+00> : vector<256xf32>
    %189 = vector.multi_reduction <add>, %188, %cst_100 [0] : vector<8x256xf32> to vector<256xf32>
    %190 = vector.shape_cast %189 : vector<256xf32> to vector<1x256xf32>
    %c0_101 = arith.constant 0 : index
    %c0_102 = arith.constant 0 : index
    %191 = vector.load %arg6[%c0_101, %c0_102] : memref<8x256xf32, #tpu.memory_space<vmem>>, vector<1x256xf32>
    tpu.vector_store %arg6[%c0_101, %c0_102], %190 {strides = array<i32>} : memref<8x256xf32, #tpu.memory_space<vmem>>, vector<1x256xf32>,
    %c3_103 = arith.constant 3 : index
    %c0_104 = arith.constant 0 : index
    %192 = vector.load %arg1[%c3_103, %c0_104] : memref<24x128xf32, #tpu.memory_space<vmem>>, vector<1x128xf32>
    %cst_105 = arith.constant 5.000000e-01 : f32
    %193 = vector.broadcast %cst_105 : f32 to vector<1x128xf32>
    %194 = arith.mulf %192, %193 : vector<1x128xf32>
    %c4_106 = arith.constant 4 : index
    %c0_107 = arith.constant 0 : index
    %195 = vector.load %arg1[%c4_106, %c0_107] : memref<24x128xf32, #tpu.memory_space<vmem>>, vector<1x128xf32>
    %cst_108 = arith.constant 5.000000e-01 : f32
    %196 = vector.broadcast %cst_108 : f32 to vector<1x128xf32>
    %197 = arith.mulf %195, %196 : vector<1x128xf32>
    %c5_109 = arith.constant 5 : index
    %c0_110 = arith.constant 0 : index
    %198 = vector.load %arg1[%c5_109, %c0_110] : memref<24x128xf32, #tpu.memory_space<vmem>>, vector<1x128xf32>
    %cst_111 = arith.constant 5.000000e-01 : f32
    %199 = vector.broadcast %cst_111 : f32 to vector<1x128xf32>
    %200 = arith.mulf %198, %199 : vector<1x128xf32>
    %201 = arith.mulf %194, %194 : vector<1x128xf32>
    %202 = arith.mulf %197, %197 : vector<1x128xf32>
    %203 = arith.addf %201, %202 : vector<1x128xf32>
    %204 = arith.mulf %200, %200 : vector<1x128xf32>
    %205 = arith.addf %203, %204 : vector<1x128xf32>
    %206 = math.sqrt %205 : vector<1x128xf32>
    %cst_112 = arith.constant 2.000000e+00 : f32
    %207 = vector.broadcast %cst_112 : f32 to vector<1x128xf32>
    %208 = arith.mulf %207, %206 : vector<1x128xf32>
    %cst_113 = arith.constant 6.000000e+00 : f32
    %209 = vector.broadcast %cst_113 : f32 to vector<1x128xf32>
    %210 = arith.cmpf olt, %208, %209 : vector<1x128xf32>
    %cst_114 = arith.constant 0.166666672 : f32
    %211 = vector.broadcast %cst_114 : f32 to vector<1x128xf32>
    %212 = arith.mulf %208, %211 : vector<1x128xf32>
    %cst_115 = arith.constant 1.000000e+00 : f32
    %213 = vector.broadcast %cst_115 : f32 to vector<1x128xf32>
    %214 = arith.subf %213, %212 : vector<1x128xf32>
    %215 = arith.mulf %214, %214 : vector<1x128xf32>
    %cst_116 = arith.constant 0.000000e+00 : f32
    %216 = vector.broadcast %cst_116 : f32 to vector<1x128xf32>
    %217 = arith.select %210, %215, %216 : vector<1x128xi1>, vector<1x128xf32>
    %cst_117 = arith.constant -5.000000e-01 : f32
    %218 = vector.broadcast %cst_117 : f32 to vector<1x128xf32>
    %219 = arith.mulf %218, %205 : vector<1x128xf32>
    %220 = math.exp %219 : vector<1x128xf32>
    %221 = arith.mulf %220, %217 : vector<1x128xf32>
    %c2_118 = arith.constant 2 : index
    %c0_119 = arith.constant 0 : index
    %222 = vector.load %arg2[%c2_118, %c0_119] : memref<16x128xf32, #tpu.memory_space<vmem>>, vector<1x128xf32>
    %c3_120 = arith.constant 3 : index
    %c0_121 = arith.constant 0 : index
    %223 = vector.load %arg2[%c3_120, %c0_121] : memref<16x128xf32, #tpu.memory_space<vmem>>, vector<1x128xf32>
    %224 = arith.mulf %221, %222 : vector<1x128xf32>
    %c8_122 = arith.constant 8 : index
    %c0_123 = arith.constant 0 : index
    %225 = vector.load %arg7[%c8_122, %c0_123] : memref<64x128xf32, #tpu.memory_space<vmem>>, vector<1x128xf32>
    tpu.vector_store %arg7[%c8_122, %c0_123], %224 {strides = array<i32>} : memref<64x128xf32, #tpu.memory_space<vmem>>, vector<1x128xf32>,
    %226 = arith.mulf %221, %223 : vector<1x128xf32>
    %c12_124 = arith.constant 12 : index
    %c0_125 = arith.constant 0 : index
    %227 = vector.load %arg7[%c12_124, %c0_125] : memref<64x128xf32, #tpu.memory_space<vmem>>, vector<1x128xf32>
    tpu.vector_store %arg7[%c12_124, %c0_125], %226 {strides = array<i32>} : memref<64x128xf32, #tpu.memory_space<vmem>>, vector<1x128xf32>,
    %228 = arith.mulf %221, %205 : vector<1x128xf32>
    %229 = arith.mulf %228, %222 : vector<1x128xf32>
    %c9_126 = arith.constant 9 : index
    %c0_127 = arith.constant 0 : index
    %230 = vector.load %arg7[%c9_126, %c0_127] : memref<64x128xf32, #tpu.memory_space<vmem>>, vector<1x128xf32>
    tpu.vector_store %arg7[%c9_126, %c0_127], %229 {strides = array<i32>} : memref<64x128xf32, #tpu.memory_space<vmem>>, vector<1x128xf32>,
    %231 = arith.mulf %228, %223 : vector<1x128xf32>
    %c13_128 = arith.constant 13 : index
    %c0_129 = arith.constant 0 : index
    %232 = vector.load %arg7[%c13_128, %c0_129] : memref<64x128xf32, #tpu.memory_space<vmem>>, vector<1x128xf32>
    tpu.vector_store %arg7[%c13_128, %c0_129], %231 {strides = array<i32>} : memref<64x128xf32, #tpu.memory_space<vmem>>, vector<1x128xf32>,
    %233 = arith.mulf %228, %205 : vector<1x128xf32>
    %234 = arith.mulf %233, %222 : vector<1x128xf32>
    %c10_130 = arith.constant 10 : index
    %c0_131 = arith.constant 0 : index
    %235 = vector.load %arg7[%c10_130, %c0_131] : memref<64x128xf32, #tpu.memory_space<vmem>>, vector<1x128xf32>
    tpu.vector_store %arg7[%c10_130, %c0_131], %234 {strides = array<i32>} : memref<64x128xf32, #tpu.memory_space<vmem>>, vector<1x128xf32>,
    %236 = arith.mulf %233, %223 : vector<1x128xf32>
    %c14_132 = arith.constant 14 : index
    %c0_133 = arith.constant 0 : index
    %237 = vector.load %arg7[%c14_132, %c0_133] : memref<64x128xf32, #tpu.memory_space<vmem>>, vector<1x128xf32>
    tpu.vector_store %arg7[%c14_132, %c0_133], %236 {strides = array<i32>} : memref<64x128xf32, #tpu.memory_space<vmem>>, vector<1x128xf32>,
    %238 = arith.mulf %233, %205 : vector<1x128xf32>
    %239 = arith.mulf %238, %222 : vector<1x128xf32>
    %c11_134 = arith.constant 11 : index
    %c0_135 = arith.constant 0 : index
    %240 = vector.load %arg7[%c11_134, %c0_135] : memref<64x128xf32, #tpu.memory_space<vmem>>, vector<1x128xf32>
    tpu.vector_store %arg7[%c11_134, %c0_135], %239 {strides = array<i32>} : memref<64x128xf32, #tpu.memory_space<vmem>>, vector<1x128xf32>,
    %241 = arith.mulf %238, %223 : vector<1x128xf32>
    %c15_136 = arith.constant 15 : index
    %c0_137 = arith.constant 0 : index
    %242 = vector.load %arg7[%c15_136, %c0_137] : memref<64x128xf32, #tpu.memory_space<vmem>>, vector<1x128xf32>
    tpu.vector_store %arg7[%c15_136, %c0_137], %241 {strides = array<i32>} : memref<64x128xf32, #tpu.memory_space<vmem>>, vector<1x128xf32>,
    %cst_138 = arith.constant 1.000000e+00 : f32
    %243 = vector.broadcast %cst_138 : f32 to vector<1x128xf32>
    %cst_139 = arith.constant 0.000000e+00 : f32
    %244 = vector.broadcast %cst_139 : f32 to vector<1x128xf32>
    %245 = arith.mulf %194, %243 : vector<1x128xf32>
    %246 = arith.mulf %197, %244 : vector<1x128xf32>
    %247 = arith.subf %245, %246 : vector<1x128xf32>
    %cst_140 = arith.constant -0.707106769 : f32
    %248 = vector.broadcast %cst_140 : f32 to vector<1x128xf32>
    %249 = arith.mulf %248, %247 : vector<1x128xf32>
    %250 = arith.mulf %194, %244 : vector<1x128xf32>
    %251 = arith.mulf %197, %243 : vector<1x128xf32>
    %252 = arith.addf %250, %251 : vector<1x128xf32>
    %cst_141 = arith.constant -0.707106769 : f32
    %253 = vector.broadcast %cst_141 : f32 to vector<1x128xf32>
    %254 = arith.mulf %253, %252 : vector<1x128xf32>
    %cst_142 = arith.constant 1.000000e+00 : f32
    %255 = vector.broadcast %cst_142 : f32 to vector<1x128xf32>
    %256 = arith.mulf %255, %200 : vector<1x128xf32>
    %257 = arith.mulf %256, %243 : vector<1x128xf32>
    %258 = arith.mulf %194, %249 : vector<1x128xf32>
    %259 = arith.mulf %197, %254 : vector<1x128xf32>
    %260 = arith.subf %258, %259 : vector<1x128xf32>
    %cst_143 = arith.constant -0.866025388 : f32
    %261 = vector.broadcast %cst_143 : f32 to vector<1x128xf32>
    %262 = arith.mulf %261, %260 : vector<1x128xf32>
    %263 = arith.mulf %194, %254 : vector<1x128xf32>
    %264 = arith.mulf %197, %249 : vector<1x128xf32>
    %265 = arith.addf %263, %264 : vector<1x128xf32>
    %cst_144 = arith.constant -0.866025388 : f32
    %266 = vector.broadcast %cst_144 : f32 to vector<1x128xf32>
    %267 = arith.mulf %266, %265 : vector<1x128xf32>
    %cst_145 = arith.constant 1.500000e+00 : f32
    %268 = vector.broadcast %cst_145 : f32 to vector<1x128xf32>
    %269 = arith.mulf %268, %200 : vector<1x128xf32>
    %270 = arith.mulf %269, %257 : vector<1x128xf32>
    %cst_146 = arith.constant 5.000000e-01 : f32
    %271 = vector.broadcast %cst_146 : f32 to vector<1x128xf32>
    %272 = arith.mulf %271, %205 : vector<1x128xf32>
    %273 = arith.mulf %272, %243 : vector<1x128xf32>
    %274 = arith.subf %270, %273 : vector<1x128xf32>
    %cst_147 = arith.constant 1.73205078 : f32
    %275 = vector.broadcast %cst_147 : f32 to vector<1x128xf32>
    %276 = arith.mulf %275, %200 : vector<1x128xf32>
    %277 = arith.mulf %276, %249 : vector<1x128xf32>
    %cst_148 = arith.constant 1.73205078 : f32
    %278 = vector.broadcast %cst_148 : f32 to vector<1x128xf32>
    %279 = arith.mulf %278, %200 : vector<1x128xf32>
    %280 = arith.mulf %279, %254 : vector<1x128xf32>
    %281 = arith.mulf %194, %262 : vector<1x128xf32>
    %282 = arith.mulf %197, %267 : vector<1x128xf32>
    %283 = arith.subf %281, %282 : vector<1x128xf32>
    %cst_149 = arith.constant -0.912870943 : f32
    %284 = vector.broadcast %cst_149 : f32 to vector<1x128xf32>
    %285 = arith.mulf %284, %283 : vector<1x128xf32>
    %286 = arith.mulf %194, %267 : vector<1x128xf32>
    %287 = arith.mulf %197, %262 : vector<1x128xf32>
    %288 = arith.addf %286, %287 : vector<1x128xf32>
    %cst_150 = arith.constant -0.912870943 : f32
    %289 = vector.broadcast %cst_150 : f32 to vector<1x128xf32>
    %290 = arith.mulf %289, %288 : vector<1x128xf32>
    %cst_151 = arith.constant 1.66666663 : f32
    %291 = vector.broadcast %cst_151 : f32 to vector<1x128xf32>
    %292 = arith.mulf %291, %200 : vector<1x128xf32>
    %293 = arith.mulf %292, %274 : vector<1x128xf32>
    %cst_152 = arith.constant 0.666666686 : f32
    %294 = vector.broadcast %cst_152 : f32 to vector<1x128xf32>
    %295 = arith.mulf %294, %205 : vector<1x128xf32>
    %296 = arith.mulf %295, %257 : vector<1x128xf32>
    %297 = arith.subf %293, %296 : vector<1x128xf32>
    %cst_153 = arith.constant 1.76776695 : f32
    %298 = vector.broadcast %cst_153 : f32 to vector<1x128xf32>
    %299 = arith.mulf %298, %200 : vector<1x128xf32>
    %300 = arith.mulf %299, %277 : vector<1x128xf32>
    %cst_154 = arith.constant 1.76776695 : f32
    %301 = vector.broadcast %cst_154 : f32 to vector<1x128xf32>
    %302 = arith.mulf %301, %200 : vector<1x128xf32>
    %303 = arith.mulf %302, %280 : vector<1x128xf32>
    %cst_155 = arith.constant 0.612372457 : f32
    %304 = vector.broadcast %cst_155 : f32 to vector<1x128xf32>
    %305 = arith.mulf %304, %205 : vector<1x128xf32>
    %306 = arith.mulf %305, %249 : vector<1x128xf32>
    %307 = arith.subf %300, %306 : vector<1x128xf32>
    %cst_156 = arith.constant 0.612372457 : f32
    %308 = vector.broadcast %cst_156 : f32 to vector<1x128xf32>
    %309 = arith.mulf %308, %205 : vector<1x128xf32>
    %310 = arith.mulf %309, %254 : vector<1x128xf32>
    %311 = arith.subf %303, %310 : vector<1x128xf32>
    %cst_157 = arith.constant 2.23606801 : f32
    %312 = vector.broadcast %cst_157 : f32 to vector<1x128xf32>
    %313 = arith.mulf %312, %200 : vector<1x128xf32>
    %314 = arith.mulf %313, %262 : vector<1x128xf32>
    %cst_158 = arith.constant 2.23606801 : f32
    %315 = vector.broadcast %cst_158 : f32 to vector<1x128xf32>
    %316 = arith.mulf %315, %200 : vector<1x128xf32>
    %317 = arith.mulf %316, %267 : vector<1x128xf32>
    %cst_159 = arith.constant 0.282094806 : f32
    %318 = vector.broadcast %cst_159 : f32 to vector<1x128xf32>
    %319 = arith.mulf %318, %243 : vector<1x128xf32>
    %cst_160 = arith.constant 0.488602519 : f32
    %320 = vector.broadcast %cst_160 : f32 to vector<1x128xf32>
    %321 = arith.mulf %320, %254 : vector<1x128xf32>
    %cst_161 = arith.constant 0.63078314 : f32
    %322 = vector.broadcast %cst_161 : f32 to vector<1x128xf32>
    %323 = arith.mulf %322, %280 : vector<1x128xf32>
    %cst_162 = arith.constant 0.746352672 : f32
    %324 = vector.broadcast %cst_162 : f32 to vector<1x128xf32>
    %325 = arith.mulf %324, %311 : vector<1x128xf32>
    %cst_163 = arith.constant 0.488602519 : f32
    %326 = vector.broadcast %cst_163 : f32 to vector<1x128xf32>
    %327 = arith.mulf %326, %257 : vector<1x128xf32>
    %cst_164 = arith.constant 0.488602519 : f32
    %328 = vector.broadcast %cst_164 : f32 to vector<1x128xf32>
    %329 = arith.mulf %328, %249 : vector<1x128xf32>
    %cst_165 = arith.constant 0.63078314 : f32
    %330 = vector.broadcast %cst_165 : f32 to vector<1x128xf32>
    %331 = arith.mulf %330, %267 : vector<1x128xf32>
    %cst_166 = arith.constant 0.746352672 : f32
    %332 = vector.broadcast %cst_166 : f32 to vector<1x128xf32>
    %333 = arith.mulf %332, %317 : vector<1x128xf32>
    %cst_167 = arith.constant 0.63078314 : f32
    %334 = vector.broadcast %cst_167 : f32 to vector<1x128xf32>
    %335 = arith.mulf %334, %274 : vector<1x128xf32>
    %cst_168 = arith.constant 0.63078314 : f32
    %336 = vector.broadcast %cst_168 : f32 to vector<1x128xf32>
    %337 = arith.mulf %336, %277 : vector<1x128xf32>
    %cst_169 = arith.constant 0.63078314 : f32
    %338 = vector.broadcast %cst_169 : f32 to vector<1x128xf32>
    %339 = arith.mulf %338, %262 : vector<1x128xf32>
    %cst_170 = arith.constant 0.746352672 : f32
    %340 = vector.broadcast %cst_170 : f32 to vector<1x128xf32>
    %341 = arith.mulf %340, %290 : vector<1x128xf32>
    %cst_171 = arith.constant 0.746352672 : f32
    %342 = vector.broadcast %cst_171 : f32 to vector<1x128xf32>
    %343 = arith.mulf %342, %297 : vector<1x128xf32>
    %cst_172 = arith.constant 0.746352672 : f32
    %344 = vector.broadcast %cst_172 : f32 to vector<1x128xf32>
    %345 = arith.mulf %344, %307 : vector<1x128xf32>
    %cst_173 = arith.constant 0.746352672 : f32
    %346 = vector.broadcast %cst_173 : f32 to vector<1x128xf32>
    %347 = arith.mulf %346, %314 : vector<1x128xf32>
    %cst_174 = arith.constant 0.746352672 : f32
    %348 = vector.broadcast %cst_174 : f32 to vector<1x128xf32>
    %349 = arith.mulf %348, %285 : vector<1x128xf32>
    %c16 = arith.constant 16 : index
    %c0_175 = arith.constant 0 : index
    %350 = vector.load %arg8[%c16, %c0_175] : memref<128x128xf32, #tpu.memory_space<vmem>>, vector<1x128xf32>
    tpu.vector_store %arg8[%c16, %c0_175], %319 {strides = array<i32>} : memref<128x128xf32, #tpu.memory_space<vmem>>, vector<1x128xf32>,
    %c17 = arith.constant 17 : index
    %c0_176 = arith.constant 0 : index
    %351 = vector.load %arg8[%c17, %c0_176] : memref<128x128xf32, #tpu.memory_space<vmem>>, vector<1x128xf32>
    tpu.vector_store %arg8[%c17, %c0_176], %321 {strides = array<i32>} : memref<128x128xf32, #tpu.memory_space<vmem>>, vector<1x128xf32>,
    %c18 = arith.constant 18 : index
    %c0_177 = arith.constant 0 : index
    %352 = vector.load %arg8[%c18, %c0_177] : memref<128x128xf32, #tpu.memory_space<vmem>>, vector<1x128xf32>
    tpu.vector_store %arg8[%c18, %c0_177], %323 {strides = array<i32>} : memref<128x128xf32, #tpu.memory_space<vmem>>, vector<1x128xf32>,
    %c19 = arith.constant 19 : index
    %c0_178 = arith.constant 0 : index
    %353 = vector.load %arg8[%c19, %c0_178] : memref<128x128xf32, #tpu.memory_space<vmem>>, vector<1x128xf32>
    tpu.vector_store %arg8[%c19, %c0_178], %325 {strides = array<i32>} : memref<128x128xf32, #tpu.memory_space<vmem>>, vector<1x128xf32>,
    %c20 = arith.constant 20 : index
    %c0_179 = arith.constant 0 : index
    %354 = vector.load %arg8[%c20, %c0_179] : memref<128x128xf32, #tpu.memory_space<vmem>>, vector<1x128xf32>
    tpu.vector_store %arg8[%c20, %c0_179], %327 {strides = array<i32>} : memref<128x128xf32, #tpu.memory_space<vmem>>, vector<1x128xf32>,
    %c21 = arith.constant 21 : index
    %c0_180 = arith.constant 0 : index
    %355 = vector.load %arg8[%c21, %c0_180] : memref<128x128xf32, #tpu.memory_space<vmem>>, vector<1x128xf32>
    tpu.vector_store %arg8[%c21, %c0_180], %329 {strides = array<i32>} : memref<128x128xf32, #tpu.memory_space<vmem>>, vector<1x128xf32>,
    %c22 = arith.constant 22 : index
    %c0_181 = arith.constant 0 : index
    %356 = vector.load %arg8[%c22, %c0_181] : memref<128x128xf32, #tpu.memory_space<vmem>>, vector<1x128xf32>
    tpu.vector_store %arg8[%c22, %c0_181], %331 {strides = array<i32>} : memref<128x128xf32, #tpu.memory_space<vmem>>, vector<1x128xf32>,
    %c23 = arith.constant 23 : index
    %c0_182 = arith.constant 0 : index
    %357 = vector.load %arg8[%c23, %c0_182] : memref<128x128xf32, #tpu.memory_space<vmem>>, vector<1x128xf32>
    tpu.vector_store %arg8[%c23, %c0_182], %333 {strides = array<i32>} : memref<128x128xf32, #tpu.memory_space<vmem>>, vector<1x128xf32>,
    %c24 = arith.constant 24 : index
    %c0_183 = arith.constant 0 : index
    %358 = vector.load %arg8[%c24, %c0_183] : memref<128x128xf32, #tpu.memory_space<vmem>>, vector<1x128xf32>
    tpu.vector_store %arg8[%c24, %c0_183], %335 {strides = array<i32>} : memref<128x128xf32, #tpu.memory_space<vmem>>, vector<1x128xf32>,
    %c25 = arith.constant 25 : index
    %c0_184 = arith.constant 0 : index
    %359 = vector.load %arg8[%c25, %c0_184] : memref<128x128xf32, #tpu.memory_space<vmem>>, vector<1x128xf32>
    tpu.vector_store %arg8[%c25, %c0_184], %337 {strides = array<i32>} : memref<128x128xf32, #tpu.memory_space<vmem>>, vector<1x128xf32>,
    %c26 = arith.constant 26 : index
    %c0_185 = arith.constant 0 : index
    %360 = vector.load %arg8[%c26, %c0_185] : memref<128x128xf32, #tpu.memory_space<vmem>>, vector<1x128xf32>
    tpu.vector_store %arg8[%c26, %c0_185], %339 {strides = array<i32>} : memref<128x128xf32, #tpu.memory_space<vmem>>, vector<1x128xf32>,
    %c27 = arith.constant 27 : index
    %c0_186 = arith.constant 0 : index
    %361 = vector.load %arg8[%c27, %c0_186] : memref<128x128xf32, #tpu.memory_space<vmem>>, vector<1x128xf32>
    tpu.vector_store %arg8[%c27, %c0_186], %341 {strides = array<i32>} : memref<128x128xf32, #tpu.memory_space<vmem>>, vector<1x128xf32>,
    %c28 = arith.constant 28 : index
    %c0_187 = arith.constant 0 : index
    %362 = vector.load %arg8[%c28, %c0_187] : memref<128x128xf32, #tpu.memory_space<vmem>>, vector<1x128xf32>
    tpu.vector_store %arg8[%c28, %c0_187], %343 {strides = array<i32>} : memref<128x128xf32, #tpu.memory_space<vmem>>, vector<1x128xf32>,
    %c29 = arith.constant 29 : index
    %c0_188 = arith.constant 0 : index
    %363 = vector.load %arg8[%c29, %c0_188] : memref<128x128xf32, #tpu.memory_space<vmem>>, vector<1x128xf32>
    tpu.vector_store %arg8[%c29, %c0_188], %345 {strides = array<i32>} : memref<128x128xf32, #tpu.memory_space<vmem>>, vector<1x128xf32>,
    %c30 = arith.constant 30 : index
    %c0_189 = arith.constant 0 : index
    %364 = vector.load %arg8[%c30, %c0_189] : memref<128x128xf32, #tpu.memory_space<vmem>>, vector<1x128xf32>
    tpu.vector_store %arg8[%c30, %c0_189], %347 {strides = array<i32>} : memref<128x128xf32, #tpu.memory_space<vmem>>, vector<1x128xf32>,
    %c31 = arith.constant 31 : index
    %c0_190 = arith.constant 0 : index
    %365 = vector.load %arg8[%c31, %c0_190] : memref<128x128xf32, #tpu.memory_space<vmem>>, vector<1x128xf32>
    tpu.vector_store %arg8[%c31, %c0_190], %349 {strides = array<i32>} : memref<128x128xf32, #tpu.memory_space<vmem>>, vector<1x128xf32>,
    %c8_191 = arith.constant 8 : index
    %c0_192 = arith.constant 0 : index
    %366 = vector.load %arg7[%c8_191, %c0_192] : memref<64x128xf32, #tpu.memory_space<vmem>>, vector<8x128xf32>
    %c16_193 = arith.constant 16 : index
    %c0_194 = arith.constant 0 : index
    %367 = vector.load %arg8[%c16_193, %c0_194] : memref<128x128xf32, #tpu.memory_space<vmem>>, vector<16x128xf32>
    %cst_195 = arith.constant dense<0.000000e+00> : vector<8x16xf32>
    %368 = tpu.matmul %366, %367, %cst_195 {dimension_numbers = #tpu.dot_dimension_numbers<[1], [1], [0], [0], [0, 0, 1, 0], [], []>} : vector<8x128xf32>, vector<16x128xf32>, vector<8x16xf32> -> vector<8x16xf32>
    %369 = tpu.concatenate %368, %368, %368, %368, %368, %368, %368, %368 in 1 : vector<8x16xf32>, vector<8x16xf32>, vector<8x16xf32>, vector<8x16xf32>, vector<8x16xf32>, vector<8x16xf32>, vector<8x16xf32>, vector<8x16xf32> -> vector<8x128xf32>
    %370 = arith.mulf %369, %0 : vector<8x128xf32>
    %cst_196 = arith.constant dense<0.000000e+00> : vector<128xf32>
    %371 = vector.multi_reduction <add>, %370, %cst_196 [0] : vector<8x128xf32> to vector<128xf32>
    %372 = vector.shape_cast %371 : vector<128xf32> to vector<1x128xf32>
    %373 = vector.broadcast %372 : vector<1x128xf32> to vector<8x128xf32>
    %374 = arith.mulf %369, %373 : vector<8x128xf32>
    %cst_197 = arith.constant dense<0.000000e+00> : vector<8x32xf32>
    %375 = tpu.matmul %374, %1, %cst_197 {dimension_numbers = #tpu.dot_dimension_numbers<[1], [0], [0], [1], [0, 0, 1, 1], [], []>} : vector<8x128xf32>, vector<128x32xf32>, vector<8x32xf32> -> vector<8x32xf32>
    %376 = tpu.concatenate %375, %375, %375, %375, %375, %375, %375, %375 in 1 : vector<8x32xf32>, vector<8x32xf32>, vector<8x32xf32>, vector<8x32xf32>, vector<8x32xf32>, vector<8x32xf32>, vector<8x32xf32>, vector<8x32xf32> -> vector<8x256xf32>
    %377 = arith.mulf %376, %2 : vector<8x256xf32>
    %cst_198 = arith.constant dense<0.000000e+00> : vector<256xf32>
    %378 = vector.multi_reduction <add>, %377, %cst_198 [0] : vector<8x256xf32> to vector<256xf32>
    %379 = vector.shape_cast %378 : vector<256xf32> to vector<1x256xf32>
    %c1_199 = arith.constant 1 : index
    %c0_200 = arith.constant 0 : index
    %380 = vector.load %arg6[%c1_199, %c0_200] : memref<8x256xf32, #tpu.memory_space<vmem>>, vector<1x256xf32>
    tpu.vector_store %arg6[%c1_199, %c0_200], %379 {strides = array<i32>} : memref<8x256xf32, #tpu.memory_space<vmem>>, vector<1x256xf32>,
    %c6_201 = arith.constant 6 : index
    %c0_202 = arith.constant 0 : index
    %381 = vector.load %arg1[%c6_201, %c0_202] : memref<24x128xf32, #tpu.memory_space<vmem>>, vector<1x128xf32>
    %cst_203 = arith.constant 5.000000e-01 : f32
    %382 = vector.broadcast %cst_203 : f32 to vector<1x128xf32>
    %383 = arith.mulf %381, %382 : vector<1x128xf32>
    %c7_204 = arith.constant 7 : index
    %c0_205 = arith.constant 0 : index
    %384 = vector.load %arg1[%c7_204, %c0_205] : memref<24x128xf32, #tpu.memory_space<vmem>>, vector<1x128xf32>
    %cst_206 = arith.constant 5.000000e-01 : f32
    %385 = vector.broadcast %cst_206 : f32 to vector<1x128xf32>
    %386 = arith.mulf %384, %385 : vector<1x128xf32>
    %c8_207 = arith.constant 8 : index
    %c0_208 = arith.constant 0 : index
    %387 = vector.load %arg1[%c8_207, %c0_208] : memref<24x128xf32, #tpu.memory_space<vmem>>, vector<1x128xf32>
    %cst_209 = arith.constant 5.000000e-01 : f32
    %388 = vector.broadcast %cst_209 : f32 to vector<1x128xf32>
    %389 = arith.mulf %387, %388 : vector<1x128xf32>
    %390 = arith.mulf %383, %383 : vector<1x128xf32>
    %391 = arith.mulf %386, %386 : vector<1x128xf32>
    %392 = arith.addf %390, %391 : vector<1x128xf32>
    %393 = arith.mulf %389, %389 : vector<1x128xf32>
    %394 = arith.addf %392, %393 : vector<1x128xf32>
    %395 = math.sqrt %394 : vector<1x128xf32>
    %cst_210 = arith.constant 2.000000e+00 : f32
    %396 = vector.broadcast %cst_210 : f32 to vector<1x128xf32>
    %397 = arith.mulf %396, %395 : vector<1x128xf32>
    %cst_211 = arith.constant 6.000000e+00 : f32
    %398 = vector.broadcast %cst_211 : f32 to vector<1x128xf32>
    %399 = arith.cmpf olt, %397, %398 : vector<1x128xf32>
    %cst_212 = arith.constant 0.166666672 : f32
    %400 = vector.broadcast %cst_212 : f32 to vector<1x128xf32>
    %401 = arith.mulf %397, %400 : vector<1x128xf32>
    %cst_213 = arith.constant 1.000000e+00 : f32
    %402 = vector.broadcast %cst_213 : f32 to vector<1x128xf32>
    %403 = arith.subf %402, %401 : vector<1x128xf32>
    %404 = arith.mulf %403, %403 : vector<1x128xf32>
    %cst_214 = arith.constant 0.000000e+00 : f32
    %405 = vector.broadcast %cst_214 : f32 to vector<1x128xf32>
    %406 = arith.select %399, %404, %405 : vector<1x128xi1>, vector<1x128xf32>
    %cst_215 = arith.constant -5.000000e-01 : f32
    %407 = vector.broadcast %cst_215 : f32 to vector<1x128xf32>
    %408 = arith.mulf %407, %394 : vector<1x128xf32>
    %409 = math.exp %408 : vector<1x128xf32>
    %410 = arith.mulf %409, %406 : vector<1x128xf32>
    %c4_216 = arith.constant 4 : index
    %c0_217 = arith.constant 0 : index
    %411 = vector.load %arg2[%c4_216, %c0_217] : memref<16x128xf32, #tpu.memory_space<vmem>>, vector<1x128xf32>
    %c5_218 = arith.constant 5 : index
    %c0_219 = arith.constant 0 : index
    %412 = vector.load %arg2[%c5_218, %c0_219] : memref<16x128xf32, #tpu.memory_space<vmem>>, vector<1x128xf32>
    %413 = arith.mulf %410, %411 : vector<1x128xf32>
    %c16_220 = arith.constant 16 : index
    %c0_221 = arith.constant 0 : index
    %414 = vector.load %arg7[%c16_220, %c0_221] : memref<64x128xf32, #tpu.memory_space<vmem>>, vector<1x128xf32>
    tpu.vector_store %arg7[%c16_220, %c0_221], %413 {strides = array<i32>} : memref<64x128xf32, #tpu.memory_space<vmem>>, vector<1x128xf32>,
    %415 = arith.mulf %410, %412 : vector<1x128xf32>
    %c20_222 = arith.constant 20 : index
    %c0_223 = arith.constant 0 : index
    %416 = vector.load %arg7[%c20_222, %c0_223] : memref<64x128xf32, #tpu.memory_space<vmem>>, vector<1x128xf32>
    tpu.vector_store %arg7[%c20_222, %c0_223], %415 {strides = array<i32>} : memref<64x128xf32, #tpu.memory_space<vmem>>, vector<1x128xf32>,
    %417 = arith.mulf %410, %394 : vector<1x128xf32>
    %418 = arith.mulf %417, %411 : vector<1x128xf32>
    %c17_224 = arith.constant 17 : index
    %c0_225 = arith.constant 0 : index
    %419 = vector.load %arg7[%c17_224, %c0_225] : memref<64x128xf32, #tpu.memory_space<vmem>>, vector<1x128xf32>
    tpu.vector_store %arg7[%c17_224, %c0_225], %418 {strides = array<i32>} : memref<64x128xf32, #tpu.memory_space<vmem>>, vector<1x128xf32>,
    %420 = arith.mulf %417, %412 : vector<1x128xf32>
    %c21_226 = arith.constant 21 : index
    %c0_227 = arith.constant 0 : index
    %421 = vector.load %arg7[%c21_226, %c0_227] : memref<64x128xf32, #tpu.memory_space<vmem>>, vector<1x128xf32>
    tpu.vector_store %arg7[%c21_226, %c0_227], %420 {strides = array<i32>} : memref<64x128xf32, #tpu.memory_space<vmem>>, vector<1x128xf32>,
    %422 = arith.mulf %417, %394 : vector<1x128xf32>
    %423 = arith.mulf %422, %411 : vector<1x128xf32>
    %c18_228 = arith.constant 18 : index
    %c0_229 = arith.constant 0 : index
    %424 = vector.load %arg7[%c18_228, %c0_229] : memref<64x128xf32, #tpu.memory_space<vmem>>, vector<1x128xf32>
    tpu.vector_store %arg7[%c18_228, %c0_229], %423 {strides = array<i32>} : memref<64x128xf32, #tpu.memory_space<vmem>>, vector<1x128xf32>,
    %425 = arith.mulf %422, %412 : vector<1x128xf32>
    %c22_230 = arith.constant 22 : index
    %c0_231 = arith.constant 0 : index
    %426 = vector.load %arg7[%c22_230, %c0_231] : memref<64x128xf32, #tpu.memory_space<vmem>>, vector<1x128xf32>
    tpu.vector_store %arg7[%c22_230, %c0_231], %425 {strides = array<i32>} : memref<64x128xf32, #tpu.memory_space<vmem>>, vector<1x128xf32>,
    %427 = arith.mulf %422, %394 : vector<1x128xf32>
    %428 = arith.mulf %427, %411 : vector<1x128xf32>
    %c19_232 = arith.constant 19 : index
    %c0_233 = arith.constant 0 : index
    %429 = vector.load %arg7[%c19_232, %c0_233] : memref<64x128xf32, #tpu.memory_space<vmem>>, vector<1x128xf32>
    tpu.vector_store %arg7[%c19_232, %c0_233], %428 {strides = array<i32>} : memref<64x128xf32, #tpu.memory_space<vmem>>, vector<1x128xf32>,
    %430 = arith.mulf %427, %412 : vector<1x128xf32>
    %c23_234 = arith.constant 23 : index
    %c0_235 = arith.constant 0 : index
    %431 = vector.load %arg7[%c23_234, %c0_235] : memref<64x128xf32, #tpu.memory_space<vmem>>, vector<1x128xf32>
    tpu.vector_store %arg7[%c23_234, %c0_235], %430 {strides = array<i32>} : memref<64x128xf32, #tpu.memory_space<vmem>>, vector<1x128xf32>,
    %cst_236 = arith.constant 1.000000e+00 : f32
    %432 = vector.broadcast %cst_236 : f32 to vector<1x128xf32>
    %cst_237 = arith.constant 0.000000e+00 : f32
    %433 = vector.broadcast %cst_237 : f32 to vector<1x128xf32>
    %434 = arith.mulf %383, %432 : vector<1x128xf32>
    %435 = arith.mulf %386, %433 : vector<1x128xf32>
    %436 = arith.subf %434, %435 : vector<1x128xf32>
    %cst_238 = arith.constant -0.707106769 : f32
    %437 = vector.broadcast %cst_238 : f32 to vector<1x128xf32>
    %438 = arith.mulf %437, %436 : vector<1x128xf32>
    %439 = arith.mulf %383, %433 : vector<1x128xf32>
    %440 = arith.mulf %386, %432 : vector<1x128xf32>
    %441 = arith.addf %439, %440 : vector<1x128xf32>
    %cst_239 = arith.constant -0.707106769 : f32
    %442 = vector.broadcast %cst_239 : f32 to vector<1x128xf32>
    %443 = arith.mulf %442, %441 : vector<1x128xf32>
    %cst_240 = arith.constant 1.000000e+00 : f32
    %444 = vector.broadcast %cst_240 : f32 to vector<1x128xf32>
    %445 = arith.mulf %444, %389 : vector<1x128xf32>
    %446 = arith.mulf %445, %432 : vector<1x128xf32>
    %447 = arith.mulf %383, %438 : vector<1x128xf32>
    %448 = arith.mulf %386, %443 : vector<1x128xf32>
    %449 = arith.subf %447, %448 : vector<1x128xf32>
    %cst_241 = arith.constant -0.866025388 : f32
    %450 = vector.broadcast %cst_241 : f32 to vector<1x128xf32>
    %451 = arith.mulf %450, %449 : vector<1x128xf32>
    %452 = arith.mulf %383, %443 : vector<1x128xf32>
    %453 = arith.mulf %386, %438 : vector<1x128xf32>
    %454 = arith.addf %452, %453 : vector<1x128xf32>
    %cst_242 = arith.constant -0.866025388 : f32
    %455 = vector.broadcast %cst_242 : f32 to vector<1x128xf32>
    %456 = arith.mulf %455, %454 : vector<1x128xf32>
    %cst_243 = arith.constant 1.500000e+00 : f32
    %457 = vector.broadcast %cst_243 : f32 to vector<1x128xf32>
    %458 = arith.mulf %457, %389 : vector<1x128xf32>
    %459 = arith.mulf %458, %446 : vector<1x128xf32>
    %cst_244 = arith.constant 5.000000e-01 : f32
    %460 = vector.broadcast %cst_244 : f32 to vector<1x128xf32>
    %461 = arith.mulf %460, %394 : vector<1x128xf32>
    %462 = arith.mulf %461, %432 : vector<1x128xf32>
    %463 = arith.subf %459, %462 : vector<1x128xf32>
    %cst_245 = arith.constant 1.73205078 : f32
    %464 = vector.broadcast %cst_245 : f32 to vector<1x128xf32>
    %465 = arith.mulf %464, %389 : vector<1x128xf32>
    %466 = arith.mulf %465, %438 : vector<1x128xf32>
    %cst_246 = arith.constant 1.73205078 : f32
    %467 = vector.broadcast %cst_246 : f32 to vector<1x128xf32>
    %468 = arith.mulf %467, %389 : vector<1x128xf32>
    %469 = arith.mulf %468, %443 : vector<1x128xf32>
    %470 = arith.mulf %383, %451 : vector<1x128xf32>
    %471 = arith.mulf %386, %456 : vector<1x128xf32>
    %472 = arith.subf %470, %471 : vector<1x128xf32>
    %cst_247 = arith.constant -0.912870943 : f32
    %473 = vector.broadcast %cst_247 : f32 to vector<1x128xf32>
    %474 = arith.mulf %473, %472 : vector<1x128xf32>
    %475 = arith.mulf %383, %456 : vector<1x128xf32>
    %476 = arith.mulf %386, %451 : vector<1x128xf32>
    %477 = arith.addf %475, %476 : vector<1x128xf32>
    %cst_248 = arith.constant -0.912870943 : f32
    %478 = vector.broadcast %cst_248 : f32 to vector<1x128xf32>
    %479 = arith.mulf %478, %477 : vector<1x128xf32>
    %cst_249 = arith.constant 1.66666663 : f32
    %480 = vector.broadcast %cst_249 : f32 to vector<1x128xf32>
    %481 = arith.mulf %480, %389 : vector<1x128xf32>
    %482 = arith.mulf %481, %463 : vector<1x128xf32>
    %cst_250 = arith.constant 0.666666686 : f32
    %483 = vector.broadcast %cst_250 : f32 to vector<1x128xf32>
    %484 = arith.mulf %483, %394 : vector<1x128xf32>
    %485 = arith.mulf %484, %446 : vector<1x128xf32>
    %486 = arith.subf %482, %485 : vector<1x128xf32>
    %cst_251 = arith.constant 1.76776695 : f32
    %487 = vector.broadcast %cst_251 : f32 to vector<1x128xf32>
    %488 = arith.mulf %487, %389 : vector<1x128xf32>
    %489 = arith.mulf %488, %466 : vector<1x128xf32>
    %cst_252 = arith.constant 1.76776695 : f32
    %490 = vector.broadcast %cst_252 : f32 to vector<1x128xf32>
    %491 = arith.mulf %490, %389 : vector<1x128xf32>
    %492 = arith.mulf %491, %469 : vector<1x128xf32>
    %cst_253 = arith.constant 0.612372457 : f32
    %493 = vector.broadcast %cst_253 : f32 to vector<1x128xf32>
    %494 = arith.mulf %493, %394 : vector<1x128xf32>
    %495 = arith.mulf %494, %438 : vector<1x128xf32>
    %496 = arith.subf %489, %495 : vector<1x128xf32>
    %cst_254 = arith.constant 0.612372457 : f32
    %497 = vector.broadcast %cst_254 : f32 to vector<1x128xf32>
    %498 = arith.mulf %497, %394 : vector<1x128xf32>
    %499 = arith.mulf %498, %443 : vector<1x128xf32>
    %500 = arith.subf %492, %499 : vector<1x128xf32>
    %cst_255 = arith.constant 2.23606801 : f32
    %501 = vector.broadcast %cst_255 : f32 to vector<1x128xf32>
    %502 = arith.mulf %501, %389 : vector<1x128xf32>
    %503 = arith.mulf %502, %451 : vector<1x128xf32>
    %cst_256 = arith.constant 2.23606801 : f32
    %504 = vector.broadcast %cst_256 : f32 to vector<1x128xf32>
    %505 = arith.mulf %504, %389 : vector<1x128xf32>
    %506 = arith.mulf %505, %456 : vector<1x128xf32>
    %cst_257 = arith.constant 0.282094806 : f32
    %507 = vector.broadcast %cst_257 : f32 to vector<1x128xf32>
    %508 = arith.mulf %507, %432 : vector<1x128xf32>
    %cst_258 = arith.constant 0.488602519 : f32
    %509 = vector.broadcast %cst_258 : f32 to vector<1x128xf32>
    %510 = arith.mulf %509, %443 : vector<1x128xf32>
    %cst_259 = arith.constant 0.63078314 : f32
    %511 = vector.broadcast %cst_259 : f32 to vector<1x128xf32>
    %512 = arith.mulf %511, %469 : vector<1x128xf32>
    %cst_260 = arith.constant 0.746352672 : f32
    %513 = vector.broadcast %cst_260 : f32 to vector<1x128xf32>
    %514 = arith.mulf %513, %500 : vector<1x128xf32>
    %cst_261 = arith.constant 0.488602519 : f32
    %515 = vector.broadcast %cst_261 : f32 to vector<1x128xf32>
    %516 = arith.mulf %515, %446 : vector<1x128xf32>
    %cst_262 = arith.constant 0.488602519 : f32
    %517 = vector.broadcast %cst_262 : f32 to vector<1x128xf32>
    %518 = arith.mulf %517, %438 : vector<1x128xf32>
    %cst_263 = arith.constant 0.63078314 : f32
    %519 = vector.broadcast %cst_263 : f32 to vector<1x128xf32>
    %520 = arith.mulf %519, %456 : vector<1x128xf32>
    %cst_264 = arith.constant 0.746352672 : f32
    %521 = vector.broadcast %cst_264 : f32 to vector<1x128xf32>
    %522 = arith.mulf %521, %506 : vector<1x128xf32>
    %cst_265 = arith.constant 0.63078314 : f32
    %523 = vector.broadcast %cst_265 : f32 to vector<1x128xf32>
    %524 = arith.mulf %523, %463 : vector<1x128xf32>
    %cst_266 = arith.constant 0.63078314 : f32
    %525 = vector.broadcast %cst_266 : f32 to vector<1x128xf32>
    %526 = arith.mulf %525, %466 : vector<1x128xf32>
    %cst_267 = arith.constant 0.63078314 : f32
    %527 = vector.broadcast %cst_267 : f32 to vector<1x128xf32>
    %528 = arith.mulf %527, %451 : vector<1x128xf32>
    %cst_268 = arith.constant 0.746352672 : f32
    %529 = vector.broadcast %cst_268 : f32 to vector<1x128xf32>
    %530 = arith.mulf %529, %479 : vector<1x128xf32>
    %cst_269 = arith.constant 0.746352672 : f32
    %531 = vector.broadcast %cst_269 : f32 to vector<1x128xf32>
    %532 = arith.mulf %531, %486 : vector<1x128xf32>
    %cst_270 = arith.constant 0.746352672 : f32
    %533 = vector.broadcast %cst_270 : f32 to vector<1x128xf32>
    %534 = arith.mulf %533, %496 : vector<1x128xf32>
    %cst_271 = arith.constant 0.746352672 : f32
    %535 = vector.broadcast %cst_271 : f32 to vector<1x128xf32>
    %536 = arith.mulf %535, %503 : vector<1x128xf32>
    %cst_272 = arith.constant 0.746352672 : f32
    %537 = vector.broadcast %cst_272 : f32 to vector<1x128xf32>
    %538 = arith.mulf %537, %474 : vector<1x128xf32>
    %c32 = arith.constant 32 : index
    %c0_273 = arith.constant 0 : index
    %539 = vector.load %arg8[%c32, %c0_273] : memref<128x128xf32, #tpu.memory_space<vmem>>, vector<1x128xf32>
    tpu.vector_store %arg8[%c32, %c0_273], %508 {strides = array<i32>} : memref<128x128xf32, #tpu.memory_space<vmem>>, vector<1x128xf32>,
    %c33 = arith.constant 33 : index
    %c0_274 = arith.constant 0 : index
    %540 = vector.load %arg8[%c33, %c0_274] : memref<128x128xf32, #tpu.memory_space<vmem>>, vector<1x128xf32>
    tpu.vector_store %arg8[%c33, %c0_274], %510 {strides = array<i32>} : memref<128x128xf32, #tpu.memory_space<vmem>>, vector<1x128xf32>,
    %c34 = arith.constant 34 : index
    %c0_275 = arith.constant 0 : index
    %541 = vector.load %arg8[%c34, %c0_275] : memref<128x128xf32, #tpu.memory_space<vmem>>, vector<1x128xf32>
    tpu.vector_store %arg8[%c34, %c0_275], %512 {strides = array<i32>} : memref<128x128xf32, #tpu.memory_space<vmem>>, vector<1x128xf32>,
    %c35 = arith.constant 35 : index
    %c0_276 = arith.constant 0 : index
    %542 = vector.load %arg8[%c35, %c0_276] : memref<128x128xf32, #tpu.memory_space<vmem>>, vector<1x128xf32>
    tpu.vector_store %arg8[%c35, %c0_276], %514 {strides = array<i32>} : memref<128x128xf32, #tpu.memory_space<vmem>>, vector<1x128xf32>,
    %c36 = arith.constant 36 : index
    %c0_277 = arith.constant 0 : index
    %543 = vector.load %arg8[%c36, %c0_277] : memref<128x128xf32, #tpu.memory_space<vmem>>, vector<1x128xf32>
    tpu.vector_store %arg8[%c36, %c0_277], %516 {strides = array<i32>} : memref<128x128xf32, #tpu.memory_space<vmem>>, vector<1x128xf32>,
    %c37 = arith.constant 37 : index
    %c0_278 = arith.constant 0 : index
    %544 = vector.load %arg8[%c37, %c0_278] : memref<128x128xf32, #tpu.memory_space<vmem>>, vector<1x128xf32>
    tpu.vector_store %arg8[%c37, %c0_278], %518 {strides = array<i32>} : memref<128x128xf32, #tpu.memory_space<vmem>>, vector<1x128xf32>,
    %c38 = arith.constant 38 : index
    %c0_279 = arith.constant 0 : index
    %545 = vector.load %arg8[%c38, %c0_279] : memref<128x128xf32, #tpu.memory_space<vmem>>, vector<1x128xf32>
    tpu.vector_store %arg8[%c38, %c0_279], %520 {strides = array<i32>} : memref<128x128xf32, #tpu.memory_space<vmem>>, vector<1x128xf32>,
    %c39 = arith.constant 39 : index
    %c0_280 = arith.constant 0 : index
    %546 = vector.load %arg8[%c39, %c0_280] : memref<128x128xf32, #tpu.memory_space<vmem>>, vector<1x128xf32>
    tpu.vector_store %arg8[%c39, %c0_280], %522 {strides = array<i32>} : memref<128x128xf32, #tpu.memory_space<vmem>>, vector<1x128xf32>,
    %c40 = arith.constant 40 : index
    %c0_281 = arith.constant 0 : index
    %547 = vector.load %arg8[%c40, %c0_281] : memref<128x128xf32, #tpu.memory_space<vmem>>, vector<1x128xf32>
    tpu.vector_store %arg8[%c40, %c0_281], %524 {strides = array<i32>} : memref<128x128xf32, #tpu.memory_space<vmem>>, vector<1x128xf32>,
    %c41 = arith.constant 41 : index
    %c0_282 = arith.constant 0 : index
    %548 = vector.load %arg8[%c41, %c0_282] : memref<128x128xf32, #tpu.memory_space<vmem>>, vector<1x128xf32>
    tpu.vector_store %arg8[%c41, %c0_282], %526 {strides = array<i32>} : memref<128x128xf32, #tpu.memory_space<vmem>>, vector<1x128xf32>,
    %c42 = arith.constant 42 : index
    %c0_283 = arith.constant 0 : index
    %549 = vector.load %arg8[%c42, %c0_283] : memref<128x128xf32, #tpu.memory_space<vmem>>, vector<1x128xf32>
    tpu.vector_store %arg8[%c42, %c0_283], %528 {strides = array<i32>} : memref<128x128xf32, #tpu.memory_space<vmem>>, vector<1x128xf32>,
    %c43 = arith.constant 43 : index
    %c0_284 = arith.constant 0 : index
    %550 = vector.load %arg8[%c43, %c0_284] : memref<128x128xf32, #tpu.memory_space<vmem>>, vector<1x128xf32>
    tpu.vector_store %arg8[%c43, %c0_284], %530 {strides = array<i32>} : memref<128x128xf32, #tpu.memory_space<vmem>>, vector<1x128xf32>,
    %c44 = arith.constant 44 : index
    %c0_285 = arith.constant 0 : index
    %551 = vector.load %arg8[%c44, %c0_285] : memref<128x128xf32, #tpu.memory_space<vmem>>, vector<1x128xf32>
    tpu.vector_store %arg8[%c44, %c0_285], %532 {strides = array<i32>} : memref<128x128xf32, #tpu.memory_space<vmem>>, vector<1x128xf32>,
    %c45 = arith.constant 45 : index
    %c0_286 = arith.constant 0 : index
    %552 = vector.load %arg8[%c45, %c0_286] : memref<128x128xf32, #tpu.memory_space<vmem>>, vector<1x128xf32>
    tpu.vector_store %arg8[%c45, %c0_286], %534 {strides = array<i32>} : memref<128x128xf32, #tpu.memory_space<vmem>>, vector<1x128xf32>,
    %c46 = arith.constant 46 : index
    %c0_287 = arith.constant 0 : index
    %553 = vector.load %arg8[%c46, %c0_287] : memref<128x128xf32, #tpu.memory_space<vmem>>, vector<1x128xf32>
    tpu.vector_store %arg8[%c46, %c0_287], %536 {strides = array<i32>} : memref<128x128xf32, #tpu.memory_space<vmem>>, vector<1x128xf32>,
    %c47 = arith.constant 47 : index
    %c0_288 = arith.constant 0 : index
    %554 = vector.load %arg8[%c47, %c0_288] : memref<128x128xf32, #tpu.memory_space<vmem>>, vector<1x128xf32>
    tpu.vector_store %arg8[%c47, %c0_288], %538 {strides = array<i32>} : memref<128x128xf32, #tpu.memory_space<vmem>>, vector<1x128xf32>,
    %c16_289 = arith.constant 16 : index
    %c0_290 = arith.constant 0 : index
    %555 = vector.load %arg7[%c16_289, %c0_290] : memref<64x128xf32, #tpu.memory_space<vmem>>, vector<8x128xf32>
    %c32_291 = arith.constant 32 : index
    %c0_292 = arith.constant 0 : index
    %556 = vector.load %arg8[%c32_291, %c0_292] : memref<128x128xf32, #tpu.memory_space<vmem>>, vector<16x128xf32>
    %cst_293 = arith.constant dense<0.000000e+00> : vector<8x16xf32>
    %557 = tpu.matmul %555, %556, %cst_293 {dimension_numbers = #tpu.dot_dimension_numbers<[1], [1], [0], [0], [0, 0, 1, 0], [], []>} : vector<8x128xf32>, vector<16x128xf32>, vector<8x16xf32> -> vector<8x16xf32>
    %558 = tpu.concatenate %557, %557, %557, %557, %557, %557, %557, %557 in 1 : vector<8x16xf32>, vector<8x16xf32>, vector<8x16xf32>, vector<8x16xf32>, vector<8x16xf32>, vector<8x16xf32>, vector<8x16xf32>, vector<8x16xf32> -> vector<8x128xf32>
    %559 = arith.mulf %558, %0 : vector<8x128xf32>
    %cst_294 = arith.constant dense<0.000000e+00> : vector<128xf32>
    %560 = vector.multi_reduction <add>, %559, %cst_294 [0] : vector<8x128xf32> to vector<128xf32>
    %561 = vector.shape_cast %560 : vector<128xf32> to vector<1x128xf32>
    %562 = vector.broadcast %561 : vector<1x128xf32> to vector<8x128xf32>
    %563 = arith.mulf %558, %562 : vector<8x128xf32>
    %cst_295 = arith.constant dense<0.000000e+00> : vector<8x32xf32>
    %564 = tpu.matmul %563, %1, %cst_295 {dimension_numbers = #tpu.dot_dimension_numbers<[1], [0], [0], [1], [0, 0, 1, 1], [], []>} : vector<8x128xf32>, vector<128x32xf32>, vector<8x32xf32> -> vector<8x32xf32>
    %565 = tpu.concatenate %564, %564, %564, %564, %564, %564, %564, %564 in 1 : vector<8x32xf32>, vector<8x32xf32>, vector<8x32xf32>, vector<8x32xf32>, vector<8x32xf32>, vector<8x32xf32>, vector<8x32xf32>, vector<8x32xf32> -> vector<8x256xf32>
    %566 = arith.mulf %565, %2 : vector<8x256xf32>
    %cst_296 = arith.constant dense<0.000000e+00> : vector<256xf32>
    %567 = vector.multi_reduction <add>, %566, %cst_296 [0] : vector<8x256xf32> to vector<256xf32>
    %568 = vector.shape_cast %567 : vector<256xf32> to vector<1x256xf32>
    %c2_297 = arith.constant 2 : index
    %c0_298 = arith.constant 0 : index
    %569 = vector.load %arg6[%c2_297, %c0_298] : memref<8x256xf32, #tpu.memory_space<vmem>>, vector<1x256xf32>
    tpu.vector_store %arg6[%c2_297, %c0_298], %568 {strides = array<i32>} : memref<8x256xf32, #tpu.memory_space<vmem>>, vector<1x256xf32>,
    %c9_299 = arith.constant 9 : index
    %c0_300 = arith.constant 0 : index
    %570 = vector.load %arg1[%c9_299, %c0_300] : memref<24x128xf32, #tpu.memory_space<vmem>>, vector<1x128xf32>
    %cst_301 = arith.constant 5.000000e-01 : f32
    %571 = vector.broadcast %cst_301 : f32 to vector<1x128xf32>
    %572 = arith.mulf %570, %571 : vector<1x128xf32>
    %c10_302 = arith.constant 10 : index
    %c0_303 = arith.constant 0 : index
    %573 = vector.load %arg1[%c10_302, %c0_303] : memref<24x128xf32, #tpu.memory_space<vmem>>, vector<1x128xf32>
    %cst_304 = arith.constant 5.000000e-01 : f32
    %574 = vector.broadcast %cst_304 : f32 to vector<1x128xf32>
    %575 = arith.mulf %573, %574 : vector<1x128xf32>
    %c11_305 = arith.constant 11 : index
    %c0_306 = arith.constant 0 : index
    %576 = vector.load %arg1[%c11_305, %c0_306] : memref<24x128xf32, #tpu.memory_space<vmem>>, vector<1x128xf32>
    %cst_307 = arith.constant 5.000000e-01 : f32
    %577 = vector.broadcast %cst_307 : f32 to vector<1x128xf32>
    %578 = arith.mulf %576, %577 : vector<1x128xf32>
    %579 = arith.mulf %572, %572 : vector<1x128xf32>
    %580 = arith.mulf %575, %575 : vector<1x128xf32>
    %581 = arith.addf %579, %580 : vector<1x128xf32>
    %582 = arith.mulf %578, %578 : vector<1x128xf32>
    %583 = arith.addf %581, %582 : vector<1x128xf32>
    %584 = math.sqrt %583 : vector<1x128xf32>
    %cst_308 = arith.constant 2.000000e+00 : f32
    %585 = vector.broadcast %cst_308 : f32 to vector<1x128xf32>
    %586 = arith.mulf %585, %584 : vector<1x128xf32>
    %cst_309 = arith.constant 6.000000e+00 : f32
    %587 = vector.broadcast %cst_309 : f32 to vector<1x128xf32>
    %588 = arith.cmpf olt, %586, %587 : vector<1x128xf32>
    %cst_310 = arith.constant 0.166666672 : f32
    %589 = vector.broadcast %cst_310 : f32 to vector<1x128xf32>
    %590 = arith.mulf %586, %589 : vector<1x128xf32>
    %cst_311 = arith.constant 1.000000e+00 : f32
    %591 = vector.broadcast %cst_311 : f32 to vector<1x128xf32>
    %592 = arith.subf %591, %590 : vector<1x128xf32>
    %593 = arith.mulf %592, %592 : vector<1x128xf32>
    %cst_312 = arith.constant 0.000000e+00 : f32
    %594 = vector.broadcast %cst_312 : f32 to vector<1x128xf32>
    %595 = arith.select %588, %593, %594 : vector<1x128xi1>, vector<1x128xf32>
    %cst_313 = arith.constant -5.000000e-01 : f32
    %596 = vector.broadcast %cst_313 : f32 to vector<1x128xf32>
    %597 = arith.mulf %596, %583 : vector<1x128xf32>
    %598 = math.exp %597 : vector<1x128xf32>
    %599 = arith.mulf %598, %595 : vector<1x128xf32>
    %c6_314 = arith.constant 6 : index
    %c0_315 = arith.constant 0 : index
    %600 = vector.load %arg2[%c6_314, %c0_315] : memref<16x128xf32, #tpu.memory_space<vmem>>, vector<1x128xf32>
    %c7_316 = arith.constant 7 : index
    %c0_317 = arith.constant 0 : index
    %601 = vector.load %arg2[%c7_316, %c0_317] : memref<16x128xf32, #tpu.memory_space<vmem>>, vector<1x128xf32>
    %602 = arith.mulf %599, %600 : vector<1x128xf32>
    %c24_318 = arith.constant 24 : index
    %c0_319 = arith.constant 0 : index
    %603 = vector.load %arg7[%c24_318, %c0_319] : memref<64x128xf32, #tpu.memory_space<vmem>>, vector<1x128xf32>
    tpu.vector_store %arg7[%c24_318, %c0_319], %602 {strides = array<i32>} : memref<64x128xf32, #tpu.memory_space<vmem>>, vector<1x128xf32>,
    %604 = arith.mulf %599, %601 : vector<1x128xf32>
    %c28_320 = arith.constant 28 : index
    %c0_321 = arith.constant 0 : index
    %605 = vector.load %arg7[%c28_320, %c0_321] : memref<64x128xf32, #tpu.memory_space<vmem>>, vector<1x128xf32>
    tpu.vector_store %arg7[%c28_320, %c0_321], %604 {strides = array<i32>} : memref<64x128xf32, #tpu.memory_space<vmem>>, vector<1x128xf32>,
    %606 = arith.mulf %599, %583 : vector<1x128xf32>
    %607 = arith.mulf %606, %600 : vector<1x128xf32>
    %c25_322 = arith.constant 25 : index
    %c0_323 = arith.constant 0 : index
    %608 = vector.load %arg7[%c25_322, %c0_323] : memref<64x128xf32, #tpu.memory_space<vmem>>, vector<1x128xf32>
    tpu.vector_store %arg7[%c25_322, %c0_323], %607 {strides = array<i32>} : memref<64x128xf32, #tpu.memory_space<vmem>>, vector<1x128xf32>,
    %609 = arith.mulf %606, %601 : vector<1x128xf32>
    %c29_324 = arith.constant 29 : index
    %c0_325 = arith.constant 0 : index
    %610 = vector.load %arg7[%c29_324, %c0_325] : memref<64x128xf32, #tpu.memory_space<vmem>>, vector<1x128xf32>
    tpu.vector_store %arg7[%c29_324, %c0_325], %609 {strides = array<i32>} : memref<64x128xf32, #tpu.memory_space<vmem>>, vector<1x128xf32>,
    %611 = arith.mulf %606, %583 : vector<1x128xf32>
    %612 = arith.mulf %611, %600 : vector<1x128xf32>
    %c26_326 = arith.constant 26 : index
    %c0_327 = arith.constant 0 : index
    %613 = vector.load %arg7[%c26_326, %c0_327] : memref<64x128xf32, #tpu.memory_space<vmem>>, vector<1x128xf32>
    tpu.vector_store %arg7[%c26_326, %c0_327], %612 {strides = array<i32>} : memref<64x128xf32, #tpu.memory_space<vmem>>, vector<1x128xf32>,
    %614 = arith.mulf %611, %601 : vector<1x128xf32>
    %c30_328 = arith.constant 30 : index
    %c0_329 = arith.constant 0 : index
    %615 = vector.load %arg7[%c30_328, %c0_329] : memref<64x128xf32, #tpu.memory_space<vmem>>, vector<1x128xf32>
    tpu.vector_store %arg7[%c30_328, %c0_329], %614 {strides = array<i32>} : memref<64x128xf32, #tpu.memory_space<vmem>>, vector<1x128xf32>,
    %616 = arith.mulf %611, %583 : vector<1x128xf32>
    %617 = arith.mulf %616, %600 : vector<1x128xf32>
    %c27_330 = arith.constant 27 : index
    %c0_331 = arith.constant 0 : index
    %618 = vector.load %arg7[%c27_330, %c0_331] : memref<64x128xf32, #tpu.memory_space<vmem>>, vector<1x128xf32>
    tpu.vector_store %arg7[%c27_330, %c0_331], %617 {strides = array<i32>} : memref<64x128xf32, #tpu.memory_space<vmem>>, vector<1x128xf32>,
    %619 = arith.mulf %616, %601 : vector<1x128xf32>
    %c31_332 = arith.constant 31 : index
    %c0_333 = arith.constant 0 : index
    %620 = vector.load %arg7[%c31_332, %c0_333] : memref<64x128xf32, #tpu.memory_space<vmem>>, vector<1x128xf32>
    tpu.vector_store %arg7[%c31_332, %c0_333], %619 {strides = array<i32>} : memref<64x128xf32, #tpu.memory_space<vmem>>, vector<1x128xf32>,
    %cst_334 = arith.constant 1.000000e+00 : f32
    %621 = vector.broadcast %cst_334 : f32 to vector<1x128xf32>
    %cst_335 = arith.constant 0.000000e+00 : f32
    %622 = vector.broadcast %cst_335 : f32 to vector<1x128xf32>
    %623 = arith.mulf %572, %621 : vector<1x128xf32>
    %624 = arith.mulf %575, %622 : vector<1x128xf32>
    %625 = arith.subf %623, %624 : vector<1x128xf32>
    %cst_336 = arith.constant -0.707106769 : f32
    %626 = vector.broadcast %cst_336 : f32 to vector<1x128xf32>
    %627 = arith.mulf %626, %625 : vector<1x128xf32>
    %628 = arith.mulf %572, %622 : vector<1x128xf32>
    %629 = arith.mulf %575, %621 : vector<1x128xf32>
    %630 = arith.addf %628, %629 : vector<1x128xf32>
    %cst_337 = arith.constant -0.707106769 : f32
    %631 = vector.broadcast %cst_337 : f32 to vector<1x128xf32>
    %632 = arith.mulf %631, %630 : vector<1x128xf32>
    %cst_338 = arith.constant 1.000000e+00 : f32
    %633 = vector.broadcast %cst_338 : f32 to vector<1x128xf32>
    %634 = arith.mulf %633, %578 : vector<1x128xf32>
    %635 = arith.mulf %634, %621 : vector<1x128xf32>
    %636 = arith.mulf %572, %627 : vector<1x128xf32>
    %637 = arith.mulf %575, %632 : vector<1x128xf32>
    %638 = arith.subf %636, %637 : vector<1x128xf32>
    %cst_339 = arith.constant -0.866025388 : f32
    %639 = vector.broadcast %cst_339 : f32 to vector<1x128xf32>
    %640 = arith.mulf %639, %638 : vector<1x128xf32>
    %641 = arith.mulf %572, %632 : vector<1x128xf32>
    %642 = arith.mulf %575, %627 : vector<1x128xf32>
    %643 = arith.addf %641, %642 : vector<1x128xf32>
    %cst_340 = arith.constant -0.866025388 : f32
    %644 = vector.broadcast %cst_340 : f32 to vector<1x128xf32>
    %645 = arith.mulf %644, %643 : vector<1x128xf32>
    %cst_341 = arith.constant 1.500000e+00 : f32
    %646 = vector.broadcast %cst_341 : f32 to vector<1x128xf32>
    %647 = arith.mulf %646, %578 : vector<1x128xf32>
    %648 = arith.mulf %647, %635 : vector<1x128xf32>
    %cst_342 = arith.constant 5.000000e-01 : f32
    %649 = vector.broadcast %cst_342 : f32 to vector<1x128xf32>
    %650 = arith.mulf %649, %583 : vector<1x128xf32>
    %651 = arith.mulf %650, %621 : vector<1x128xf32>
    %652 = arith.subf %648, %651 : vector<1x128xf32>
    %cst_343 = arith.constant 1.73205078 : f32
    %653 = vector.broadcast %cst_343 : f32 to vector<1x128xf32>
    %654 = arith.mulf %653, %578 : vector<1x128xf32>
    %655 = arith.mulf %654, %627 : vector<1x128xf32>
    %cst_344 = arith.constant 1.73205078 : f32
    %656 = vector.broadcast %cst_344 : f32 to vector<1x128xf32>
    %657 = arith.mulf %656, %578 : vector<1x128xf32>
    %658 = arith.mulf %657, %632 : vector<1x128xf32>
    %659 = arith.mulf %572, %640 : vector<1x128xf32>
    %660 = arith.mulf %575, %645 : vector<1x128xf32>
    %661 = arith.subf %659, %660 : vector<1x128xf32>
    %cst_345 = arith.constant -0.912870943 : f32
    %662 = vector.broadcast %cst_345 : f32 to vector<1x128xf32>
    %663 = arith.mulf %662, %661 : vector<1x128xf32>
    %664 = arith.mulf %572, %645 : vector<1x128xf32>
    %665 = arith.mulf %575, %640 : vector<1x128xf32>
    %666 = arith.addf %664, %665 : vector<1x128xf32>
    %cst_346 = arith.constant -0.912870943 : f32
    %667 = vector.broadcast %cst_346 : f32 to vector<1x128xf32>
    %668 = arith.mulf %667, %666 : vector<1x128xf32>
    %cst_347 = arith.constant 1.66666663 : f32
    %669 = vector.broadcast %cst_347 : f32 to vector<1x128xf32>
    %670 = arith.mulf %669, %578 : vector<1x128xf32>
    %671 = arith.mulf %670, %652 : vector<1x128xf32>
    %cst_348 = arith.constant 0.666666686 : f32
    %672 = vector.broadcast %cst_348 : f32 to vector<1x128xf32>
    %673 = arith.mulf %672, %583 : vector<1x128xf32>
    %674 = arith.mulf %673, %635 : vector<1x128xf32>
    %675 = arith.subf %671, %674 : vector<1x128xf32>
    %cst_349 = arith.constant 1.76776695 : f32
    %676 = vector.broadcast %cst_349 : f32 to vector<1x128xf32>
    %677 = arith.mulf %676, %578 : vector<1x128xf32>
    %678 = arith.mulf %677, %655 : vector<1x128xf32>
    %cst_350 = arith.constant 1.76776695 : f32
    %679 = vector.broadcast %cst_350 : f32 to vector<1x128xf32>
    %680 = arith.mulf %679, %578 : vector<1x128xf32>
    %681 = arith.mulf %680, %658 : vector<1x128xf32>
    %cst_351 = arith.constant 0.612372457 : f32
    %682 = vector.broadcast %cst_351 : f32 to vector<1x128xf32>
    %683 = arith.mulf %682, %583 : vector<1x128xf32>
    %684 = arith.mulf %683, %627 : vector<1x128xf32>
    %685 = arith.subf %678, %684 : vector<1x128xf32>
    %cst_352 = arith.constant 0.612372457 : f32
    %686 = vector.broadcast %cst_352 : f32 to vector<1x128xf32>
    %687 = arith.mulf %686, %583 : vector<1x128xf32>
    %688 = arith.mulf %687, %632 : vector<1x128xf32>
    %689 = arith.subf %681, %688 : vector<1x128xf32>
    %cst_353 = arith.constant 2.23606801 : f32
    %690 = vector.broadcast %cst_353 : f32 to vector<1x128xf32>
    %691 = arith.mulf %690, %578 : vector<1x128xf32>
    %692 = arith.mulf %691, %640 : vector<1x128xf32>
    %cst_354 = arith.constant 2.23606801 : f32
    %693 = vector.broadcast %cst_354 : f32 to vector<1x128xf32>
    %694 = arith.mulf %693, %578 : vector<1x128xf32>
    %695 = arith.mulf %694, %645 : vector<1x128xf32>
    %cst_355 = arith.constant 0.282094806 : f32
    %696 = vector.broadcast %cst_355 : f32 to vector<1x128xf32>
    %697 = arith.mulf %696, %621 : vector<1x128xf32>
    %cst_356 = arith.constant 0.488602519 : f32
    %698 = vector.broadcast %cst_356 : f32 to vector<1x128xf32>
    %699 = arith.mulf %698, %632 : vector<1x128xf32>
    %cst_357 = arith.constant 0.63078314 : f32
    %700 = vector.broadcast %cst_357 : f32 to vector<1x128xf32>
    %701 = arith.mulf %700, %658 : vector<1x128xf32>
    %cst_358 = arith.constant 0.746352672 : f32
    %702 = vector.broadcast %cst_358 : f32 to vector<1x128xf32>
    %703 = arith.mulf %702, %689 : vector<1x128xf32>
    %cst_359 = arith.constant 0.488602519 : f32
    %704 = vector.broadcast %cst_359 : f32 to vector<1x128xf32>
    %705 = arith.mulf %704, %635 : vector<1x128xf32>
    %cst_360 = arith.constant 0.488602519 : f32
    %706 = vector.broadcast %cst_360 : f32 to vector<1x128xf32>
    %707 = arith.mulf %706, %627 : vector<1x128xf32>
    %cst_361 = arith.constant 0.63078314 : f32
    %708 = vector.broadcast %cst_361 : f32 to vector<1x128xf32>
    %709 = arith.mulf %708, %645 : vector<1x128xf32>
    %cst_362 = arith.constant 0.746352672 : f32
    %710 = vector.broadcast %cst_362 : f32 to vector<1x128xf32>
    %711 = arith.mulf %710, %695 : vector<1x128xf32>
    %cst_363 = arith.constant 0.63078314 : f32
    %712 = vector.broadcast %cst_363 : f32 to vector<1x128xf32>
    %713 = arith.mulf %712, %652 : vector<1x128xf32>
    %cst_364 = arith.constant 0.63078314 : f32
    %714 = vector.broadcast %cst_364 : f32 to vector<1x128xf32>
    %715 = arith.mulf %714, %655 : vector<1x128xf32>
    %cst_365 = arith.constant 0.63078314 : f32
    %716 = vector.broadcast %cst_365 : f32 to vector<1x128xf32>
    %717 = arith.mulf %716, %640 : vector<1x128xf32>
    %cst_366 = arith.constant 0.746352672 : f32
    %718 = vector.broadcast %cst_366 : f32 to vector<1x128xf32>
    %719 = arith.mulf %718, %668 : vector<1x128xf32>
    %cst_367 = arith.constant 0.746352672 : f32
    %720 = vector.broadcast %cst_367 : f32 to vector<1x128xf32>
    %721 = arith.mulf %720, %675 : vector<1x128xf32>
    %cst_368 = arith.constant 0.746352672 : f32
    %722 = vector.broadcast %cst_368 : f32 to vector<1x128xf32>
    %723 = arith.mulf %722, %685 : vector<1x128xf32>
    %cst_369 = arith.constant 0.746352672 : f32
    %724 = vector.broadcast %cst_369 : f32 to vector<1x128xf32>
    %725 = arith.mulf %724, %692 : vector<1x128xf32>
    %cst_370 = arith.constant 0.746352672 : f32
    %726 = vector.broadcast %cst_370 : f32 to vector<1x128xf32>
    %727 = arith.mulf %726, %663 : vector<1x128xf32>
    %c48 = arith.constant 48 : index
    %c0_371 = arith.constant 0 : index
    %728 = vector.load %arg8[%c48, %c0_371] : memref<128x128xf32, #tpu.memory_space<vmem>>, vector<1x128xf32>
    tpu.vector_store %arg8[%c48, %c0_371], %697 {strides = array<i32>} : memref<128x128xf32, #tpu.memory_space<vmem>>, vector<1x128xf32>,
    %c49 = arith.constant 49 : index
    %c0_372 = arith.constant 0 : index
    %729 = vector.load %arg8[%c49, %c0_372] : memref<128x128xf32, #tpu.memory_space<vmem>>, vector<1x128xf32>
    tpu.vector_store %arg8[%c49, %c0_372], %699 {strides = array<i32>} : memref<128x128xf32, #tpu.memory_space<vmem>>, vector<1x128xf32>,
    %c50 = arith.constant 50 : index
    %c0_373 = arith.constant 0 : index
    %730 = vector.load %arg8[%c50, %c0_373] : memref<128x128xf32, #tpu.memory_space<vmem>>, vector<1x128xf32>
    tpu.vector_store %arg8[%c50, %c0_373], %701 {strides = array<i32>} : memref<128x128xf32, #tpu.memory_space<vmem>>, vector<1x128xf32>,
    %c51 = arith.constant 51 : index
    %c0_374 = arith.constant 0 : index
    %731 = vector.load %arg8[%c51, %c0_374] : memref<128x128xf32, #tpu.memory_space<vmem>>, vector<1x128xf32>
    tpu.vector_store %arg8[%c51, %c0_374], %703 {strides = array<i32>} : memref<128x128xf32, #tpu.memory_space<vmem>>, vector<1x128xf32>,
    %c52 = arith.constant 52 : index
    %c0_375 = arith.constant 0 : index
    %732 = vector.load %arg8[%c52, %c0_375] : memref<128x128xf32, #tpu.memory_space<vmem>>, vector<1x128xf32>
    tpu.vector_store %arg8[%c52, %c0_375], %705 {strides = array<i32>} : memref<128x128xf32, #tpu.memory_space<vmem>>, vector<1x128xf32>,
    %c53 = arith.constant 53 : index
    %c0_376 = arith.constant 0 : index
    %733 = vector.load %arg8[%c53, %c0_376] : memref<128x128xf32, #tpu.memory_space<vmem>>, vector<1x128xf32>
    tpu.vector_store %arg8[%c53, %c0_376], %707 {strides = array<i32>} : memref<128x128xf32, #tpu.memory_space<vmem>>, vector<1x128xf32>,
    %c54 = arith.constant 54 : index
    %c0_377 = arith.constant 0 : index
    %734 = vector.load %arg8[%c54, %c0_377] : memref<128x128xf32, #tpu.memory_space<vmem>>, vector<1x128xf32>
    tpu.vector_store %arg8[%c54, %c0_377], %709 {strides = array<i32>} : memref<128x128xf32, #tpu.memory_space<vmem>>, vector<1x128xf32>,
    %c55 = arith.constant 55 : index
    %c0_378 = arith.constant 0 : index
    %735 = vector.load %arg8[%c55, %c0_378] : memref<128x128xf32, #tpu.memory_space<vmem>>, vector<1x128xf32>
    tpu.vector_store %arg8[%c55, %c0_378], %711 {strides = array<i32>} : memref<128x128xf32, #tpu.memory_space<vmem>>, vector<1x128xf32>,
    %c56 = arith.constant 56 : index
    %c0_379 = arith.constant 0 : index
    %736 = vector.load %arg8[%c56, %c0_379] : memref<128x128xf32, #tpu.memory_space<vmem>>, vector<1x128xf32>
    tpu.vector_store %arg8[%c56, %c0_379], %713 {strides = array<i32>} : memref<128x128xf32, #tpu.memory_space<vmem>>, vector<1x128xf32>,
    %c57 = arith.constant 57 : index
    %c0_380 = arith.constant 0 : index
    %737 = vector.load %arg8[%c57, %c0_380] : memref<128x128xf32, #tpu.memory_space<vmem>>, vector<1x128xf32>
    tpu.vector_store %arg8[%c57, %c0_380], %715 {strides = array<i32>} : memref<128x128xf32, #tpu.memory_space<vmem>>, vector<1x128xf32>,
    %c58 = arith.constant 58 : index
    %c0_381 = arith.constant 0 : index
    %738 = vector.load %arg8[%c58, %c0_381] : memref<128x128xf32, #tpu.memory_space<vmem>>, vector<1x128xf32>
    tpu.vector_store %arg8[%c58, %c0_381], %717 {strides = array<i32>} : memref<128x128xf32, #tpu.memory_space<vmem>>, vector<1x128xf32>,
    %c59 = arith.constant 59 : index
    %c0_382 = arith.constant 0 : index
    %739 = vector.load %arg8[%c59, %c0_382] : memref<128x128xf32, #tpu.memory_space<vmem>>, vector<1x128xf32>
    tpu.vector_store %arg8[%c59, %c0_382], %719 {strides = array<i32>} : memref<128x128xf32, #tpu.memory_space<vmem>>, vector<1x128xf32>,
    %c60 = arith.constant 60 : index
    %c0_383 = arith.constant 0 : index
    %740 = vector.load %arg8[%c60, %c0_383] : memref<128x128xf32, #tpu.memory_space<vmem>>, vector<1x128xf32>
    tpu.vector_store %arg8[%c60, %c0_383], %721 {strides = array<i32>} : memref<128x128xf32, #tpu.memory_space<vmem>>, vector<1x128xf32>,
    %c61 = arith.constant 61 : index
    %c0_384 = arith.constant 0 : index
    %741 = vector.load %arg8[%c61, %c0_384] : memref<128x128xf32, #tpu.memory_space<vmem>>, vector<1x128xf32>
    tpu.vector_store %arg8[%c61, %c0_384], %723 {strides = array<i32>} : memref<128x128xf32, #tpu.memory_space<vmem>>, vector<1x128xf32>,
    %c62 = arith.constant 62 : index
    %c0_385 = arith.constant 0 : index
    %742 = vector.load %arg8[%c62, %c0_385] : memref<128x128xf32, #tpu.memory_space<vmem>>, vector<1x128xf32>
    tpu.vector_store %arg8[%c62, %c0_385], %725 {strides = array<i32>} : memref<128x128xf32, #tpu.memory_space<vmem>>, vector<1x128xf32>,
    %c63 = arith.constant 63 : index
    %c0_386 = arith.constant 0 : index
    %743 = vector.load %arg8[%c63, %c0_386] : memref<128x128xf32, #tpu.memory_space<vmem>>, vector<1x128xf32>
    tpu.vector_store %arg8[%c63, %c0_386], %727 {strides = array<i32>} : memref<128x128xf32, #tpu.memory_space<vmem>>, vector<1x128xf32>,
    %c24_387 = arith.constant 24 : index
    %c0_388 = arith.constant 0 : index
    %744 = vector.load %arg7[%c24_387, %c0_388] : memref<64x128xf32, #tpu.memory_space<vmem>>, vector<8x128xf32>
    %c48_389 = arith.constant 48 : index
    %c0_390 = arith.constant 0 : index
    %745 = vector.load %arg8[%c48_389, %c0_390] : memref<128x128xf32, #tpu.memory_space<vmem>>, vector<16x128xf32>
    %cst_391 = arith.constant dense<0.000000e+00> : vector<8x16xf32>
    %746 = tpu.matmul %744, %745, %cst_391 {dimension_numbers = #tpu.dot_dimension_numbers<[1], [1], [0], [0], [0, 0, 1, 0], [], []>} : vector<8x128xf32>, vector<16x128xf32>, vector<8x16xf32> -> vector<8x16xf32>
    %747 = tpu.concatenate %746, %746, %746, %746, %746, %746, %746, %746 in 1 : vector<8x16xf32>, vector<8x16xf32>, vector<8x16xf32>, vector<8x16xf32>, vector<8x16xf32>, vector<8x16xf32>, vector<8x16xf32>, vector<8x16xf32> -> vector<8x128xf32>
    %748 = arith.mulf %747, %0 : vector<8x128xf32>
    %cst_392 = arith.constant dense<0.000000e+00> : vector<128xf32>
    %749 = vector.multi_reduction <add>, %748, %cst_392 [0] : vector<8x128xf32> to vector<128xf32>
    %750 = vector.shape_cast %749 : vector<128xf32> to vector<1x128xf32>
    %751 = vector.broadcast %750 : vector<1x128xf32> to vector<8x128xf32>
    %752 = arith.mulf %747, %751 : vector<8x128xf32>
    %cst_393 = arith.constant dense<0.000000e+00> : vector<8x32xf32>
    %753 = tpu.matmul %752, %1, %cst_393 {dimension_numbers = #tpu.dot_dimension_numbers<[1], [0], [0], [1], [0, 0, 1, 1], [], []>} : vector<8x128xf32>, vector<128x32xf32>, vector<8x32xf32> -> vector<8x32xf32>
    %754 = tpu.concatenate %753, %753, %753, %753, %753, %753, %753, %753 in 1 : vector<8x32xf32>, vector<8x32xf32>, vector<8x32xf32>, vector<8x32xf32>, vector<8x32xf32>, vector<8x32xf32>, vector<8x32xf32>, vector<8x32xf32> -> vector<8x256xf32>
    %755 = arith.mulf %754, %2 : vector<8x256xf32>
    %cst_394 = arith.constant dense<0.000000e+00> : vector<256xf32>
    %756 = vector.multi_reduction <add>, %755, %cst_394 [0] : vector<8x256xf32> to vector<256xf32>
    %757 = vector.shape_cast %756 : vector<256xf32> to vector<1x256xf32>
    %c3_395 = arith.constant 3 : index
    %c0_396 = arith.constant 0 : index
    %758 = vector.load %arg6[%c3_395, %c0_396] : memref<8x256xf32, #tpu.memory_space<vmem>>, vector<1x256xf32>
    tpu.vector_store %arg6[%c3_395, %c0_396], %757 {strides = array<i32>} : memref<8x256xf32, #tpu.memory_space<vmem>>, vector<1x256xf32>,
    %c12_397 = arith.constant 12 : index
    %c0_398 = arith.constant 0 : index
    %759 = vector.load %arg1[%c12_397, %c0_398] : memref<24x128xf32, #tpu.memory_space<vmem>>, vector<1x128xf32>
    %cst_399 = arith.constant 5.000000e-01 : f32
    %760 = vector.broadcast %cst_399 : f32 to vector<1x128xf32>
    %761 = arith.mulf %759, %760 : vector<1x128xf32>
    %c13_400 = arith.constant 13 : index
    %c0_401 = arith.constant 0 : index
    %762 = vector.load %arg1[%c13_400, %c0_401] : memref<24x128xf32, #tpu.memory_space<vmem>>, vector<1x128xf32>
    %cst_402 = arith.constant 5.000000e-01 : f32
    %763 = vector.broadcast %cst_402 : f32 to vector<1x128xf32>
    %764 = arith.mulf %762, %763 : vector<1x128xf32>
    %c14_403 = arith.constant 14 : index
    %c0_404 = arith.constant 0 : index
    %765 = vector.load %arg1[%c14_403, %c0_404] : memref<24x128xf32, #tpu.memory_space<vmem>>, vector<1x128xf32>
    %cst_405 = arith.constant 5.000000e-01 : f32
    %766 = vector.broadcast %cst_405 : f32 to vector<1x128xf32>
    %767 = arith.mulf %765, %766 : vector<1x128xf32>
    %768 = arith.mulf %761, %761 : vector<1x128xf32>
    %769 = arith.mulf %764, %764 : vector<1x128xf32>
    %770 = arith.addf %768, %769 : vector<1x128xf32>
    %771 = arith.mulf %767, %767 : vector<1x128xf32>
    %772 = arith.addf %770, %771 : vector<1x128xf32>
    %773 = math.sqrt %772 : vector<1x128xf32>
    %cst_406 = arith.constant 2.000000e+00 : f32
    %774 = vector.broadcast %cst_406 : f32 to vector<1x128xf32>
    %775 = arith.mulf %774, %773 : vector<1x128xf32>
    %cst_407 = arith.constant 6.000000e+00 : f32
    %776 = vector.broadcast %cst_407 : f32 to vector<1x128xf32>
    %777 = arith.cmpf olt, %775, %776 : vector<1x128xf32>
    %cst_408 = arith.constant 0.166666672 : f32
    %778 = vector.broadcast %cst_408 : f32 to vector<1x128xf32>
    %779 = arith.mulf %775, %778 : vector<1x128xf32>
    %cst_409 = arith.constant 1.000000e+00 : f32
    %780 = vector.broadcast %cst_409 : f32 to vector<1x128xf32>
    %781 = arith.subf %780, %779 : vector<1x128xf32>
    %782 = arith.mulf %781, %781 : vector<1x128xf32>
    %cst_410 = arith.constant 0.000000e+00 : f32
    %783 = vector.broadcast %cst_410 : f32 to vector<1x128xf32>
    %784 = arith.select %777, %782, %783 : vector<1x128xi1>, vector<1x128xf32>
    %cst_411 = arith.constant -5.000000e-01 : f32
    %785 = vector.broadcast %cst_411 : f32 to vector<1x128xf32>
    %786 = arith.mulf %785, %772 : vector<1x128xf32>
    %787 = math.exp %786 : vector<1x128xf32>
    %788 = arith.mulf %787, %784 : vector<1x128xf32>
    %c8_412 = arith.constant 8 : index
    %c0_413 = arith.constant 0 : index
    %789 = vector.load %arg2[%c8_412, %c0_413] : memref<16x128xf32, #tpu.memory_space<vmem>>, vector<1x128xf32>
    %c9_414 = arith.constant 9 : index
    %c0_415 = arith.constant 0 : index
    %790 = vector.load %arg2[%c9_414, %c0_415] : memref<16x128xf32, #tpu.memory_space<vmem>>, vector<1x128xf32>
    %791 = arith.mulf %788, %789 : vector<1x128xf32>
    %c32_416 = arith.constant 32 : index
    %c0_417 = arith.constant 0 : index
    %792 = vector.load %arg7[%c32_416, %c0_417] : memref<64x128xf32, #tpu.memory_space<vmem>>, vector<1x128xf32>
    tpu.vector_store %arg7[%c32_416, %c0_417], %791 {strides = array<i32>} : memref<64x128xf32, #tpu.memory_space<vmem>>, vector<1x128xf32>,
    %793 = arith.mulf %788, %790 : vector<1x128xf32>
    %c36_418 = arith.constant 36 : index
    %c0_419 = arith.constant 0 : index
    %794 = vector.load %arg7[%c36_418, %c0_419] : memref<64x128xf32, #tpu.memory_space<vmem>>, vector<1x128xf32>
    tpu.vector_store %arg7[%c36_418, %c0_419], %793 {strides = array<i32>} : memref<64x128xf32, #tpu.memory_space<vmem>>, vector<1x128xf32>,
    %795 = arith.mulf %788, %772 : vector<1x128xf32>
    %796 = arith.mulf %795, %789 : vector<1x128xf32>
    %c33_420 = arith.constant 33 : index
    %c0_421 = arith.constant 0 : index
    %797 = vector.load %arg7[%c33_420, %c0_421] : memref<64x128xf32, #tpu.memory_space<vmem>>, vector<1x128xf32>
    tpu.vector_store %arg7[%c33_420, %c0_421], %796 {strides = array<i32>} : memref<64x128xf32, #tpu.memory_space<vmem>>, vector<1x128xf32>,
    %798 = arith.mulf %795, %790 : vector<1x128xf32>
    %c37_422 = arith.constant 37 : index
    %c0_423 = arith.constant 0 : index
    %799 = vector.load %arg7[%c37_422, %c0_423] : memref<64x128xf32, #tpu.memory_space<vmem>>, vector<1x128xf32>
    tpu.vector_store %arg7[%c37_422, %c0_423], %798 {strides = array<i32>} : memref<64x128xf32, #tpu.memory_space<vmem>>, vector<1x128xf32>,
    %800 = arith.mulf %795, %772 : vector<1x128xf32>
    %801 = arith.mulf %800, %789 : vector<1x128xf32>
    %c34_424 = arith.constant 34 : index
    %c0_425 = arith.constant 0 : index
    %802 = vector.load %arg7[%c34_424, %c0_425] : memref<64x128xf32, #tpu.memory_space<vmem>>, vector<1x128xf32>
    tpu.vector_store %arg7[%c34_424, %c0_425], %801 {strides = array<i32>} : memref<64x128xf32, #tpu.memory_space<vmem>>, vector<1x128xf32>,
    %803 = arith.mulf %800, %790 : vector<1x128xf32>
    %c38_426 = arith.constant 38 : index
    %c0_427 = arith.constant 0 : index
    %804 = vector.load %arg7[%c38_426, %c0_427] : memref<64x128xf32, #tpu.memory_space<vmem>>, vector<1x128xf32>
    tpu.vector_store %arg7[%c38_426, %c0_427], %803 {strides = array<i32>} : memref<64x128xf32, #tpu.memory_space<vmem>>, vector<1x128xf32>,
    %805 = arith.mulf %800, %772 : vector<1x128xf32>
    %806 = arith.mulf %805, %789 : vector<1x128xf32>
    %c35_428 = arith.constant 35 : index
    %c0_429 = arith.constant 0 : index
    %807 = vector.load %arg7[%c35_428, %c0_429] : memref<64x128xf32, #tpu.memory_space<vmem>>, vector<1x128xf32>
    tpu.vector_store %arg7[%c35_428, %c0_429], %806 {strides = array<i32>} : memref<64x128xf32, #tpu.memory_space<vmem>>, vector<1x128xf32>,
    %808 = arith.mulf %805, %790 : vector<1x128xf32>
    %c39_430 = arith.constant 39 : index
    %c0_431 = arith.constant 0 : index
    %809 = vector.load %arg7[%c39_430, %c0_431] : memref<64x128xf32, #tpu.memory_space<vmem>>, vector<1x128xf32>
    tpu.vector_store %arg7[%c39_430, %c0_431], %808 {strides = array<i32>} : memref<64x128xf32, #tpu.memory_space<vmem>>, vector<1x128xf32>,
    %cst_432 = arith.constant 1.000000e+00 : f32
    %810 = vector.broadcast %cst_432 : f32 to vector<1x128xf32>
    %cst_433 = arith.constant 0.000000e+00 : f32
    %811 = vector.broadcast %cst_433 : f32 to vector<1x128xf32>
    %812 = arith.mulf %761, %810 : vector<1x128xf32>
    %813 = arith.mulf %764, %811 : vector<1x128xf32>
    %814 = arith.subf %812, %813 : vector<1x128xf32>
    %cst_434 = arith.constant -0.707106769 : f32
    %815 = vector.broadcast %cst_434 : f32 to vector<1x128xf32>
    %816 = arith.mulf %815, %814 : vector<1x128xf32>
    %817 = arith.mulf %761, %811 : vector<1x128xf32>
    %818 = arith.mulf %764, %810 : vector<1x128xf32>
    %819 = arith.addf %817, %818 : vector<1x128xf32>
    %cst_435 = arith.constant -0.707106769 : f32
    %820 = vector.broadcast %cst_435 : f32 to vector<1x128xf32>
    %821 = arith.mulf %820, %819 : vector<1x128xf32>
    %cst_436 = arith.constant 1.000000e+00 : f32
    %822 = vector.broadcast %cst_436 : f32 to vector<1x128xf32>
    %823 = arith.mulf %822, %767 : vector<1x128xf32>
    %824 = arith.mulf %823, %810 : vector<1x128xf32>
    %825 = arith.mulf %761, %816 : vector<1x128xf32>
    %826 = arith.mulf %764, %821 : vector<1x128xf32>
    %827 = arith.subf %825, %826 : vector<1x128xf32>
    %cst_437 = arith.constant -0.866025388 : f32
    %828 = vector.broadcast %cst_437 : f32 to vector<1x128xf32>
    %829 = arith.mulf %828, %827 : vector<1x128xf32>
    %830 = arith.mulf %761, %821 : vector<1x128xf32>
    %831 = arith.mulf %764, %816 : vector<1x128xf32>
    %832 = arith.addf %830, %831 : vector<1x128xf32>
    %cst_438 = arith.constant -0.866025388 : f32
    %833 = vector.broadcast %cst_438 : f32 to vector<1x128xf32>
    %834 = arith.mulf %833, %832 : vector<1x128xf32>
    %cst_439 = arith.constant 1.500000e+00 : f32
    %835 = vector.broadcast %cst_439 : f32 to vector<1x128xf32>
    %836 = arith.mulf %835, %767 : vector<1x128xf32>
    %837 = arith.mulf %836, %824 : vector<1x128xf32>
    %cst_440 = arith.constant 5.000000e-01 : f32
    %838 = vector.broadcast %cst_440 : f32 to vector<1x128xf32>
    %839 = arith.mulf %838, %772 : vector<1x128xf32>
    %840 = arith.mulf %839, %810 : vector<1x128xf32>
    %841 = arith.subf %837, %840 : vector<1x128xf32>
    %cst_441 = arith.constant 1.73205078 : f32
    %842 = vector.broadcast %cst_441 : f32 to vector<1x128xf32>
    %843 = arith.mulf %842, %767 : vector<1x128xf32>
    %844 = arith.mulf %843, %816 : vector<1x128xf32>
    %cst_442 = arith.constant 1.73205078 : f32
    %845 = vector.broadcast %cst_442 : f32 to vector<1x128xf32>
    %846 = arith.mulf %845, %767 : vector<1x128xf32>
    %847 = arith.mulf %846, %821 : vector<1x128xf32>
    %848 = arith.mulf %761, %829 : vector<1x128xf32>
    %849 = arith.mulf %764, %834 : vector<1x128xf32>
    %850 = arith.subf %848, %849 : vector<1x128xf32>
    %cst_443 = arith.constant -0.912870943 : f32
    %851 = vector.broadcast %cst_443 : f32 to vector<1x128xf32>
    %852 = arith.mulf %851, %850 : vector<1x128xf32>
    %853 = arith.mulf %761, %834 : vector<1x128xf32>
    %854 = arith.mulf %764, %829 : vector<1x128xf32>
    %855 = arith.addf %853, %854 : vector<1x128xf32>
    %cst_444 = arith.constant -0.912870943 : f32
    %856 = vector.broadcast %cst_444 : f32 to vector<1x128xf32>
    %857 = arith.mulf %856, %855 : vector<1x128xf32>
    %cst_445 = arith.constant 1.66666663 : f32
    %858 = vector.broadcast %cst_445 : f32 to vector<1x128xf32>
    %859 = arith.mulf %858, %767 : vector<1x128xf32>
    %860 = arith.mulf %859, %841 : vector<1x128xf32>
    %cst_446 = arith.constant 0.666666686 : f32
    %861 = vector.broadcast %cst_446 : f32 to vector<1x128xf32>
    %862 = arith.mulf %861, %772 : vector<1x128xf32>
    %863 = arith.mulf %862, %824 : vector<1x128xf32>
    %864 = arith.subf %860, %863 : vector<1x128xf32>
    %cst_447 = arith.constant 1.76776695 : f32
    %865 = vector.broadcast %cst_447 : f32 to vector<1x128xf32>
    %866 = arith.mulf %865, %767 : vector<1x128xf32>
    %867 = arith.mulf %866, %844 : vector<1x128xf32>
    %cst_448 = arith.constant 1.76776695 : f32
    %868 = vector.broadcast %cst_448 : f32 to vector<1x128xf32>
    %869 = arith.mulf %868, %767 : vector<1x128xf32>
    %870 = arith.mulf %869, %847 : vector<1x128xf32>
    %cst_449 = arith.constant 0.612372457 : f32
    %871 = vector.broadcast %cst_449 : f32 to vector<1x128xf32>
    %872 = arith.mulf %871, %772 : vector<1x128xf32>
    %873 = arith.mulf %872, %816 : vector<1x128xf32>
    %874 = arith.subf %867, %873 : vector<1x128xf32>
    %cst_450 = arith.constant 0.612372457 : f32
    %875 = vector.broadcast %cst_450 : f32 to vector<1x128xf32>
    %876 = arith.mulf %875, %772 : vector<1x128xf32>
    %877 = arith.mulf %876, %821 : vector<1x128xf32>
    %878 = arith.subf %870, %877 : vector<1x128xf32>
    %cst_451 = arith.constant 2.23606801 : f32
    %879 = vector.broadcast %cst_451 : f32 to vector<1x128xf32>
    %880 = arith.mulf %879, %767 : vector<1x128xf32>
    %881 = arith.mulf %880, %829 : vector<1x128xf32>
    %cst_452 = arith.constant 2.23606801 : f32
    %882 = vector.broadcast %cst_452 : f32 to vector<1x128xf32>
    %883 = arith.mulf %882, %767 : vector<1x128xf32>
    %884 = arith.mulf %883, %834 : vector<1x128xf32>
    %cst_453 = arith.constant 0.282094806 : f32
    %885 = vector.broadcast %cst_453 : f32 to vector<1x128xf32>
    %886 = arith.mulf %885, %810 : vector<1x128xf32>
    %cst_454 = arith.constant 0.488602519 : f32
    %887 = vector.broadcast %cst_454 : f32 to vector<1x128xf32>
    %888 = arith.mulf %887, %821 : vector<1x128xf32>
    %cst_455 = arith.constant 0.63078314 : f32
    %889 = vector.broadcast %cst_455 : f32 to vector<1x128xf32>
    %890 = arith.mulf %889, %847 : vector<1x128xf32>
    %cst_456 = arith.constant 0.746352672 : f32
    %891 = vector.broadcast %cst_456 : f32 to vector<1x128xf32>
    %892 = arith.mulf %891, %878 : vector<1x128xf32>
    %cst_457 = arith.constant 0.488602519 : f32
    %893 = vector.broadcast %cst_457 : f32 to vector<1x128xf32>
    %894 = arith.mulf %893, %824 : vector<1x128xf32>
    %cst_458 = arith.constant 0.488602519 : f32
    %895 = vector.broadcast %cst_458 : f32 to vector<1x128xf32>
    %896 = arith.mulf %895, %816 : vector<1x128xf32>
    %cst_459 = arith.constant 0.63078314 : f32
    %897 = vector.broadcast %cst_459 : f32 to vector<1x128xf32>
    %898 = arith.mulf %897, %834 : vector<1x128xf32>
    %cst_460 = arith.constant 0.746352672 : f32
    %899 = vector.broadcast %cst_460 : f32 to vector<1x128xf32>
    %900 = arith.mulf %899, %884 : vector<1x128xf32>
    %cst_461 = arith.constant 0.63078314 : f32
    %901 = vector.broadcast %cst_461 : f32 to vector<1x128xf32>
    %902 = arith.mulf %901, %841 : vector<1x128xf32>
    %cst_462 = arith.constant 0.63078314 : f32
    %903 = vector.broadcast %cst_462 : f32 to vector<1x128xf32>
    %904 = arith.mulf %903, %844 : vector<1x128xf32>
    %cst_463 = arith.constant 0.63078314 : f32
    %905 = vector.broadcast %cst_463 : f32 to vector<1x128xf32>
    %906 = arith.mulf %905, %829 : vector<1x128xf32>
    %cst_464 = arith.constant 0.746352672 : f32
    %907 = vector.broadcast %cst_464 : f32 to vector<1x128xf32>
    %908 = arith.mulf %907, %857 : vector<1x128xf32>
    %cst_465 = arith.constant 0.746352672 : f32
    %909 = vector.broadcast %cst_465 : f32 to vector<1x128xf32>
    %910 = arith.mulf %909, %864 : vector<1x128xf32>
    %cst_466 = arith.constant 0.746352672 : f32
    %911 = vector.broadcast %cst_466 : f32 to vector<1x128xf32>
    %912 = arith.mulf %911, %874 : vector<1x128xf32>
    %cst_467 = arith.constant 0.746352672 : f32
    %913 = vector.broadcast %cst_467 : f32 to vector<1x128xf32>
    %914 = arith.mulf %913, %881 : vector<1x128xf32>
    %cst_468 = arith.constant 0.746352672 : f32
    %915 = vector.broadcast %cst_468 : f32 to vector<1x128xf32>
    %916 = arith.mulf %915, %852 : vector<1x128xf32>
    %c64 = arith.constant 64 : index
    %c0_469 = arith.constant 0 : index
    %917 = vector.load %arg8[%c64, %c0_469] : memref<128x128xf32, #tpu.memory_space<vmem>>, vector<1x128xf32>
    tpu.vector_store %arg8[%c64, %c0_469], %886 {strides = array<i32>} : memref<128x128xf32, #tpu.memory_space<vmem>>, vector<1x128xf32>,
    %c65 = arith.constant 65 : index
    %c0_470 = arith.constant 0 : index
    %918 = vector.load %arg8[%c65, %c0_470] : memref<128x128xf32, #tpu.memory_space<vmem>>, vector<1x128xf32>
    tpu.vector_store %arg8[%c65, %c0_470], %888 {strides = array<i32>} : memref<128x128xf32, #tpu.memory_space<vmem>>, vector<1x128xf32>,
    %c66 = arith.constant 66 : index
    %c0_471 = arith.constant 0 : index
    %919 = vector.load %arg8[%c66, %c0_471] : memref<128x128xf32, #tpu.memory_space<vmem>>, vector<1x128xf32>
    tpu.vector_store %arg8[%c66, %c0_471], %890 {strides = array<i32>} : memref<128x128xf32, #tpu.memory_space<vmem>>, vector<1x128xf32>,
    %c67 = arith.constant 67 : index
    %c0_472 = arith.constant 0 : index
    %920 = vector.load %arg8[%c67, %c0_472] : memref<128x128xf32, #tpu.memory_space<vmem>>, vector<1x128xf32>
    tpu.vector_store %arg8[%c67, %c0_472], %892 {strides = array<i32>} : memref<128x128xf32, #tpu.memory_space<vmem>>, vector<1x128xf32>,
    %c68 = arith.constant 68 : index
    %c0_473 = arith.constant 0 : index
    %921 = vector.load %arg8[%c68, %c0_473] : memref<128x128xf32, #tpu.memory_space<vmem>>, vector<1x128xf32>
    tpu.vector_store %arg8[%c68, %c0_473], %894 {strides = array<i32>} : memref<128x128xf32, #tpu.memory_space<vmem>>, vector<1x128xf32>,
    %c69 = arith.constant 69 : index
    %c0_474 = arith.constant 0 : index
    %922 = vector.load %arg8[%c69, %c0_474] : memref<128x128xf32, #tpu.memory_space<vmem>>, vector<1x128xf32>
    tpu.vector_store %arg8[%c69, %c0_474], %896 {strides = array<i32>} : memref<128x128xf32, #tpu.memory_space<vmem>>, vector<1x128xf32>,
    %c70 = arith.constant 70 : index
    %c0_475 = arith.constant 0 : index
    %923 = vector.load %arg8[%c70, %c0_475] : memref<128x128xf32, #tpu.memory_space<vmem>>, vector<1x128xf32>
    tpu.vector_store %arg8[%c70, %c0_475], %898 {strides = array<i32>} : memref<128x128xf32, #tpu.memory_space<vmem>>, vector<1x128xf32>,
    %c71 = arith.constant 71 : index
    %c0_476 = arith.constant 0 : index
    %924 = vector.load %arg8[%c71, %c0_476] : memref<128x128xf32, #tpu.memory_space<vmem>>, vector<1x128xf32>
    tpu.vector_store %arg8[%c71, %c0_476], %900 {strides = array<i32>} : memref<128x128xf32, #tpu.memory_space<vmem>>, vector<1x128xf32>,
    %c72 = arith.constant 72 : index
    %c0_477 = arith.constant 0 : index
    %925 = vector.load %arg8[%c72, %c0_477] : memref<128x128xf32, #tpu.memory_space<vmem>>, vector<1x128xf32>
    tpu.vector_store %arg8[%c72, %c0_477], %902 {strides = array<i32>} : memref<128x128xf32, #tpu.memory_space<vmem>>, vector<1x128xf32>,
    %c73 = arith.constant 73 : index
    %c0_478 = arith.constant 0 : index
    %926 = vector.load %arg8[%c73, %c0_478] : memref<128x128xf32, #tpu.memory_space<vmem>>, vector<1x128xf32>
    tpu.vector_store %arg8[%c73, %c0_478], %904 {strides = array<i32>} : memref<128x128xf32, #tpu.memory_space<vmem>>, vector<1x128xf32>,
    %c74 = arith.constant 74 : index
    %c0_479 = arith.constant 0 : index
    %927 = vector.load %arg8[%c74, %c0_479] : memref<128x128xf32, #tpu.memory_space<vmem>>, vector<1x128xf32>
    tpu.vector_store %arg8[%c74, %c0_479], %906 {strides = array<i32>} : memref<128x128xf32, #tpu.memory_space<vmem>>, vector<1x128xf32>,
    %c75 = arith.constant 75 : index
    %c0_480 = arith.constant 0 : index
    %928 = vector.load %arg8[%c75, %c0_480] : memref<128x128xf32, #tpu.memory_space<vmem>>, vector<1x128xf32>
    tpu.vector_store %arg8[%c75, %c0_480], %908 {strides = array<i32>} : memref<128x128xf32, #tpu.memory_space<vmem>>, vector<1x128xf32>,
    %c76 = arith.constant 76 : index
    %c0_481 = arith.constant 0 : index
    %929 = vector.load %arg8[%c76, %c0_481] : memref<128x128xf32, #tpu.memory_space<vmem>>, vector<1x128xf32>
    tpu.vector_store %arg8[%c76, %c0_481], %910 {strides = array<i32>} : memref<128x128xf32, #tpu.memory_space<vmem>>, vector<1x128xf32>,
    %c77 = arith.constant 77 : index
    %c0_482 = arith.constant 0 : index
    %930 = vector.load %arg8[%c77, %c0_482] : memref<128x128xf32, #tpu.memory_space<vmem>>, vector<1x128xf32>
    tpu.vector_store %arg8[%c77, %c0_482], %912 {strides = array<i32>} : memref<128x128xf32, #tpu.memory_space<vmem>>, vector<1x128xf32>,
    %c78 = arith.constant 78 : index
    %c0_483 = arith.constant 0 : index
    %931 = vector.load %arg8[%c78, %c0_483] : memref<128x128xf32, #tpu.memory_space<vmem>>, vector<1x128xf32>
    tpu.vector_store %arg8[%c78, %c0_483], %914 {strides = array<i32>} : memref<128x128xf32, #tpu.memory_space<vmem>>, vector<1x128xf32>,
    %c79 = arith.constant 79 : index
    %c0_484 = arith.constant 0 : index
    %932 = vector.load %arg8[%c79, %c0_484] : memref<128x128xf32, #tpu.memory_space<vmem>>, vector<1x128xf32>
    tpu.vector_store %arg8[%c79, %c0_484], %916 {strides = array<i32>} : memref<128x128xf32, #tpu.memory_space<vmem>>, vector<1x128xf32>,
    %c32_485 = arith.constant 32 : index
    %c0_486 = arith.constant 0 : index
    %933 = vector.load %arg7[%c32_485, %c0_486] : memref<64x128xf32, #tpu.memory_space<vmem>>, vector<8x128xf32>
    %c64_487 = arith.constant 64 : index
    %c0_488 = arith.constant 0 : index
    %934 = vector.load %arg8[%c64_487, %c0_488] : memref<128x128xf32, #tpu.memory_space<vmem>>, vector<16x128xf32>
    %cst_489 = arith.constant dense<0.000000e+00> : vector<8x16xf32>
    %935 = tpu.matmul %933, %934, %cst_489 {dimension_numbers = #tpu.dot_dimension_numbers<[1], [1], [0], [0], [0, 0, 1, 0], [], []>} : vector<8x128xf32>, vector<16x128xf32>, vector<8x16xf32> -> vector<8x16xf32>
    %936 = tpu.concatenate %935, %935, %935, %935, %935, %935, %935, %935 in 1 : vector<8x16xf32>, vector<8x16xf32>, vector<8x16xf32>, vector<8x16xf32>, vector<8x16xf32>, vector<8x16xf32>, vector<8x16xf32>, vector<8x16xf32> -> vector<8x128xf32>
    %937 = arith.mulf %936, %0 : vector<8x128xf32>
    %cst_490 = arith.constant dense<0.000000e+00> : vector<128xf32>
    %938 = vector.multi_reduction <add>, %937, %cst_490 [0] : vector<8x128xf32> to vector<128xf32>
    %939 = vector.shape_cast %938 : vector<128xf32> to vector<1x128xf32>
    %940 = vector.broadcast %939 : vector<1x128xf32> to vector<8x128xf32>
    %941 = arith.mulf %936, %940 : vector<8x128xf32>
    %cst_491 = arith.constant dense<0.000000e+00> : vector<8x32xf32>
    %942 = tpu.matmul %941, %1, %cst_491 {dimension_numbers = #tpu.dot_dimension_numbers<[1], [0], [0], [1], [0, 0, 1, 1], [], []>} : vector<8x128xf32>, vector<128x32xf32>, vector<8x32xf32> -> vector<8x32xf32>
    %943 = tpu.concatenate %942, %942, %942, %942, %942, %942, %942, %942 in 1 : vector<8x32xf32>, vector<8x32xf32>, vector<8x32xf32>, vector<8x32xf32>, vector<8x32xf32>, vector<8x32xf32>, vector<8x32xf32>, vector<8x32xf32> -> vector<8x256xf32>
    %944 = arith.mulf %943, %2 : vector<8x256xf32>
    %cst_492 = arith.constant dense<0.000000e+00> : vector<256xf32>
    %945 = vector.multi_reduction <add>, %944, %cst_492 [0] : vector<8x256xf32> to vector<256xf32>
    %946 = vector.shape_cast %945 : vector<256xf32> to vector<1x256xf32>
    %c4_493 = arith.constant 4 : index
    %c0_494 = arith.constant 0 : index
    %947 = vector.load %arg6[%c4_493, %c0_494] : memref<8x256xf32, #tpu.memory_space<vmem>>, vector<1x256xf32>
    tpu.vector_store %arg6[%c4_493, %c0_494], %946 {strides = array<i32>} : memref<8x256xf32, #tpu.memory_space<vmem>>, vector<1x256xf32>,
    %c15_495 = arith.constant 15 : index
    %c0_496 = arith.constant 0 : index
    %948 = vector.load %arg1[%c15_495, %c0_496] : memref<24x128xf32, #tpu.memory_space<vmem>>, vector<1x128xf32>
    %cst_497 = arith.constant 5.000000e-01 : f32
    %949 = vector.broadcast %cst_497 : f32 to vector<1x128xf32>
    %950 = arith.mulf %948, %949 : vector<1x128xf32>
    %c16_498 = arith.constant 16 : index
    %c0_499 = arith.constant 0 : index
    %951 = vector.load %arg1[%c16_498, %c0_499] : memref<24x128xf32, #tpu.memory_space<vmem>>, vector<1x128xf32>
    %cst_500 = arith.constant 5.000000e-01 : f32
    %952 = vector.broadcast %cst_500 : f32 to vector<1x128xf32>
    %953 = arith.mulf %951, %952 : vector<1x128xf32>
    %c17_501 = arith.constant 17 : index
    %c0_502 = arith.constant 0 : index
    %954 = vector.load %arg1[%c17_501, %c0_502] : memref<24x128xf32, #tpu.memory_space<vmem>>, vector<1x128xf32>
    %cst_503 = arith.constant 5.000000e-01 : f32
    %955 = vector.broadcast %cst_503 : f32 to vector<1x128xf32>
    %956 = arith.mulf %954, %955 : vector<1x128xf32>
    %957 = arith.mulf %950, %950 : vector<1x128xf32>
    %958 = arith.mulf %953, %953 : vector<1x128xf32>
    %959 = arith.addf %957, %958 : vector<1x128xf32>
    %960 = arith.mulf %956, %956 : vector<1x128xf32>
    %961 = arith.addf %959, %960 : vector<1x128xf32>
    %962 = math.sqrt %961 : vector<1x128xf32>
    %cst_504 = arith.constant 2.000000e+00 : f32
    %963 = vector.broadcast %cst_504 : f32 to vector<1x128xf32>
    %964 = arith.mulf %963, %962 : vector<1x128xf32>
    %cst_505 = arith.constant 6.000000e+00 : f32
    %965 = vector.broadcast %cst_505 : f32 to vector<1x128xf32>
    %966 = arith.cmpf olt, %964, %965 : vector<1x128xf32>
    %cst_506 = arith.constant 0.166666672 : f32
    %967 = vector.broadcast %cst_506 : f32 to vector<1x128xf32>
    %968 = arith.mulf %964, %967 : vector<1x128xf32>
    %cst_507 = arith.constant 1.000000e+00 : f32
    %969 = vector.broadcast %cst_507 : f32 to vector<1x128xf32>
    %970 = arith.subf %969, %968 : vector<1x128xf32>
    %971 = arith.mulf %970, %970 : vector<1x128xf32>
    %cst_508 = arith.constant 0.000000e+00 : f32
    %972 = vector.broadcast %cst_508 : f32 to vector<1x128xf32>
    %973 = arith.select %966, %971, %972 : vector<1x128xi1>, vector<1x128xf32>
    %cst_509 = arith.constant -5.000000e-01 : f32
    %974 = vector.broadcast %cst_509 : f32 to vector<1x128xf32>
    %975 = arith.mulf %974, %961 : vector<1x128xf32>
    %976 = math.exp %975 : vector<1x128xf32>
    %977 = arith.mulf %976, %973 : vector<1x128xf32>
    %c10_510 = arith.constant 10 : index
    %c0_511 = arith.constant 0 : index
    %978 = vector.load %arg2[%c10_510, %c0_511] : memref<16x128xf32, #tpu.memory_space<vmem>>, vector<1x128xf32>
    %c11_512 = arith.constant 11 : index
    %c0_513 = arith.constant 0 : index
    %979 = vector.load %arg2[%c11_512, %c0_513] : memref<16x128xf32, #tpu.memory_space<vmem>>, vector<1x128xf32>
    %980 = arith.mulf %977, %978 : vector<1x128xf32>
    %c40_514 = arith.constant 40 : index
    %c0_515 = arith.constant 0 : index
    %981 = vector.load %arg7[%c40_514, %c0_515] : memref<64x128xf32, #tpu.memory_space<vmem>>, vector<1x128xf32>
    tpu.vector_store %arg7[%c40_514, %c0_515], %980 {strides = array<i32>} : memref<64x128xf32, #tpu.memory_space<vmem>>, vector<1x128xf32>,
    %982 = arith.mulf %977, %979 : vector<1x128xf32>
    %c44_516 = arith.constant 44 : index
    %c0_517 = arith.constant 0 : index
    %983 = vector.load %arg7[%c44_516, %c0_517] : memref<64x128xf32, #tpu.memory_space<vmem>>, vector<1x128xf32>
    tpu.vector_store %arg7[%c44_516, %c0_517], %982 {strides = array<i32>} : memref<64x128xf32, #tpu.memory_space<vmem>>, vector<1x128xf32>,
    %984 = arith.mulf %977, %961 : vector<1x128xf32>
    %985 = arith.mulf %984, %978 : vector<1x128xf32>
    %c41_518 = arith.constant 41 : index
    %c0_519 = arith.constant 0 : index
    %986 = vector.load %arg7[%c41_518, %c0_519] : memref<64x128xf32, #tpu.memory_space<vmem>>, vector<1x128xf32>
    tpu.vector_store %arg7[%c41_518, %c0_519], %985 {strides = array<i32>} : memref<64x128xf32, #tpu.memory_space<vmem>>, vector<1x128xf32>,
    %987 = arith.mulf %984, %979 : vector<1x128xf32>
    %c45_520 = arith.constant 45 : index
    %c0_521 = arith.constant 0 : index
    %988 = vector.load %arg7[%c45_520, %c0_521] : memref<64x128xf32, #tpu.memory_space<vmem>>, vector<1x128xf32>
    tpu.vector_store %arg7[%c45_520, %c0_521], %987 {strides = array<i32>} : memref<64x128xf32, #tpu.memory_space<vmem>>, vector<1x128xf32>,
    %989 = arith.mulf %984, %961 : vector<1x128xf32>
    %990 = arith.mulf %989, %978 : vector<1x128xf32>
    %c42_522 = arith.constant 42 : index
    %c0_523 = arith.constant 0 : index
    %991 = vector.load %arg7[%c42_522, %c0_523] : memref<64x128xf32, #tpu.memory_space<vmem>>, vector<1x128xf32>
    tpu.vector_store %arg7[%c42_522, %c0_523], %990 {strides = array<i32>} : memref<64x128xf32, #tpu.memory_space<vmem>>, vector<1x128xf32>,
    %992 = arith.mulf %989, %979 : vector<1x128xf32>
    %c46_524 = arith.constant 46 : index
    %c0_525 = arith.constant 0 : index
    %993 = vector.load %arg7[%c46_524, %c0_525] : memref<64x128xf32, #tpu.memory_space<vmem>>, vector<1x128xf32>
    tpu.vector_store %arg7[%c46_524, %c0_525], %992 {strides = array<i32>} : memref<64x128xf32, #tpu.memory_space<vmem>>, vector<1x128xf32>,
    %994 = arith.mulf %989, %961 : vector<1x128xf32>
    %995 = arith.mulf %994, %978 : vector<1x128xf32>
    %c43_526 = arith.constant 43 : index
    %c0_527 = arith.constant 0 : index
    %996 = vector.load %arg7[%c43_526, %c0_527] : memref<64x128xf32, #tpu.memory_space<vmem>>, vector<1x128xf32>
    tpu.vector_store %arg7[%c43_526, %c0_527], %995 {strides = array<i32>} : memref<64x128xf32, #tpu.memory_space<vmem>>, vector<1x128xf32>,
    %997 = arith.mulf %994, %979 : vector<1x128xf32>
    %c47_528 = arith.constant 47 : index
    %c0_529 = arith.constant 0 : index
    %998 = vector.load %arg7[%c47_528, %c0_529] : memref<64x128xf32, #tpu.memory_space<vmem>>, vector<1x128xf32>
    tpu.vector_store %arg7[%c47_528, %c0_529], %997 {strides = array<i32>} : memref<64x128xf32, #tpu.memory_space<vmem>>, vector<1x128xf32>,
    %cst_530 = arith.constant 1.000000e+00 : f32
    %999 = vector.broadcast %cst_530 : f32 to vector<1x128xf32>
    %cst_531 = arith.constant 0.000000e+00 : f32
    %1000 = vector.broadcast %cst_531 : f32 to vector<1x128xf32>
    %1001 = arith.mulf %950, %999 : vector<1x128xf32>
    %1002 = arith.mulf %953, %1000 : vector<1x128xf32>
    %1003 = arith.subf %1001, %1002 : vector<1x128xf32>
    %cst_532 = arith.constant -0.707106769 : f32
    %1004 = vector.broadcast %cst_532 : f32 to vector<1x128xf32>
    %1005 = arith.mulf %1004, %1003 : vector<1x128xf32>
    %1006 = arith.mulf %950, %1000 : vector<1x128xf32>
    %1007 = arith.mulf %953, %999 : vector<1x128xf32>
    %1008 = arith.addf %1006, %1007 : vector<1x128xf32>
    %cst_533 = arith.constant -0.707106769 : f32
    %1009 = vector.broadcast %cst_533 : f32 to vector<1x128xf32>
    %1010 = arith.mulf %1009, %1008 : vector<1x128xf32>
    %cst_534 = arith.constant 1.000000e+00 : f32
    %1011 = vector.broadcast %cst_534 : f32 to vector<1x128xf32>
    %1012 = arith.mulf %1011, %956 : vector<1x128xf32>
    %1013 = arith.mulf %1012, %999 : vector<1x128xf32>
    %1014 = arith.mulf %950, %1005 : vector<1x128xf32>
    %1015 = arith.mulf %953, %1010 : vector<1x128xf32>
    %1016 = arith.subf %1014, %1015 : vector<1x128xf32>
    %cst_535 = arith.constant -0.866025388 : f32
    %1017 = vector.broadcast %cst_535 : f32 to vector<1x128xf32>
    %1018 = arith.mulf %1017, %1016 : vector<1x128xf32>
    %1019 = arith.mulf %950, %1010 : vector<1x128xf32>
    %1020 = arith.mulf %953, %1005 : vector<1x128xf32>
    %1021 = arith.addf %1019, %1020 : vector<1x128xf32>
    %cst_536 = arith.constant -0.866025388 : f32
    %1022 = vector.broadcast %cst_536 : f32 to vector<1x128xf32>
    %1023 = arith.mulf %1022, %1021 : vector<1x128xf32>
    %cst_537 = arith.constant 1.500000e+00 : f32
    %1024 = vector.broadcast %cst_537 : f32 to vector<1x128xf32>
    %1025 = arith.mulf %1024, %956 : vector<1x128xf32>
    %1026 = arith.mulf %1025, %1013 : vector<1x128xf32>
    %cst_538 = arith.constant 5.000000e-01 : f32
    %1027 = vector.broadcast %cst_538 : f32 to vector<1x128xf32>
    %1028 = arith.mulf %1027, %961 : vector<1x128xf32>
    %1029 = arith.mulf %1028, %999 : vector<1x128xf32>
    %1030 = arith.subf %1026, %1029 : vector<1x128xf32>
    %cst_539 = arith.constant 1.73205078 : f32
    %1031 = vector.broadcast %cst_539 : f32 to vector<1x128xf32>
    %1032 = arith.mulf %1031, %956 : vector<1x128xf32>
    %1033 = arith.mulf %1032, %1005 : vector<1x128xf32>
    %cst_540 = arith.constant 1.73205078 : f32
    %1034 = vector.broadcast %cst_540 : f32 to vector<1x128xf32>
    %1035 = arith.mulf %1034, %956 : vector<1x128xf32>
    %1036 = arith.mulf %1035, %1010 : vector<1x128xf32>
    %1037 = arith.mulf %950, %1018 : vector<1x128xf32>
    %1038 = arith.mulf %953, %1023 : vector<1x128xf32>
    %1039 = arith.subf %1037, %1038 : vector<1x128xf32>
    %cst_541 = arith.constant -0.912870943 : f32
    %1040 = vector.broadcast %cst_541 : f32 to vector<1x128xf32>
    %1041 = arith.mulf %1040, %1039 : vector<1x128xf32>
    %1042 = arith.mulf %950, %1023 : vector<1x128xf32>
    %1043 = arith.mulf %953, %1018 : vector<1x128xf32>
    %1044 = arith.addf %1042, %1043 : vector<1x128xf32>
    %cst_542 = arith.constant -0.912870943 : f32
    %1045 = vector.broadcast %cst_542 : f32 to vector<1x128xf32>
    %1046 = arith.mulf %1045, %1044 : vector<1x128xf32>
    %cst_543 = arith.constant 1.66666663 : f32
    %1047 = vector.broadcast %cst_543 : f32 to vector<1x128xf32>
    %1048 = arith.mulf %1047, %956 : vector<1x128xf32>
    %1049 = arith.mulf %1048, %1030 : vector<1x128xf32>
    %cst_544 = arith.constant 0.666666686 : f32
    %1050 = vector.broadcast %cst_544 : f32 to vector<1x128xf32>
    %1051 = arith.mulf %1050, %961 : vector<1x128xf32>
    %1052 = arith.mulf %1051, %1013 : vector<1x128xf32>
    %1053 = arith.subf %1049, %1052 : vector<1x128xf32>
    %cst_545 = arith.constant 1.76776695 : f32
    %1054 = vector.broadcast %cst_545 : f32 to vector<1x128xf32>
    %1055 = arith.mulf %1054, %956 : vector<1x128xf32>
    %1056 = arith.mulf %1055, %1033 : vector<1x128xf32>
    %cst_546 = arith.constant 1.76776695 : f32
    %1057 = vector.broadcast %cst_546 : f32 to vector<1x128xf32>
    %1058 = arith.mulf %1057, %956 : vector<1x128xf32>
    %1059 = arith.mulf %1058, %1036 : vector<1x128xf32>
    %cst_547 = arith.constant 0.612372457 : f32
    %1060 = vector.broadcast %cst_547 : f32 to vector<1x128xf32>
    %1061 = arith.mulf %1060, %961 : vector<1x128xf32>
    %1062 = arith.mulf %1061, %1005 : vector<1x128xf32>
    %1063 = arith.subf %1056, %1062 : vector<1x128xf32>
    %cst_548 = arith.constant 0.612372457 : f32
    %1064 = vector.broadcast %cst_548 : f32 to vector<1x128xf32>
    %1065 = arith.mulf %1064, %961 : vector<1x128xf32>
    %1066 = arith.mulf %1065, %1010 : vector<1x128xf32>
    %1067 = arith.subf %1059, %1066 : vector<1x128xf32>
    %cst_549 = arith.constant 2.23606801 : f32
    %1068 = vector.broadcast %cst_549 : f32 to vector<1x128xf32>
    %1069 = arith.mulf %1068, %956 : vector<1x128xf32>
    %1070 = arith.mulf %1069, %1018 : vector<1x128xf32>
    %cst_550 = arith.constant 2.23606801 : f32
    %1071 = vector.broadcast %cst_550 : f32 to vector<1x128xf32>
    %1072 = arith.mulf %1071, %956 : vector<1x128xf32>
    %1073 = arith.mulf %1072, %1023 : vector<1x128xf32>
    %cst_551 = arith.constant 0.282094806 : f32
    %1074 = vector.broadcast %cst_551 : f32 to vector<1x128xf32>
    %1075 = arith.mulf %1074, %999 : vector<1x128xf32>
    %cst_552 = arith.constant 0.488602519 : f32
    %1076 = vector.broadcast %cst_552 : f32 to vector<1x128xf32>
    %1077 = arith.mulf %1076, %1010 : vector<1x128xf32>
    %cst_553 = arith.constant 0.63078314 : f32
    %1078 = vector.broadcast %cst_553 : f32 to vector<1x128xf32>
    %1079 = arith.mulf %1078, %1036 : vector<1x128xf32>
    %cst_554 = arith.constant 0.746352672 : f32
    %1080 = vector.broadcast %cst_554 : f32 to vector<1x128xf32>
    %1081 = arith.mulf %1080, %1067 : vector<1x128xf32>
    %cst_555 = arith.constant 0.488602519 : f32
    %1082 = vector.broadcast %cst_555 : f32 to vector<1x128xf32>
    %1083 = arith.mulf %1082, %1013 : vector<1x128xf32>
    %cst_556 = arith.constant 0.488602519 : f32
    %1084 = vector.broadcast %cst_556 : f32 to vector<1x128xf32>
    %1085 = arith.mulf %1084, %1005 : vector<1x128xf32>
    %cst_557 = arith.constant 0.63078314 : f32
    %1086 = vector.broadcast %cst_557 : f32 to vector<1x128xf32>
    %1087 = arith.mulf %1086, %1023 : vector<1x128xf32>
    %cst_558 = arith.constant 0.746352672 : f32
    %1088 = vector.broadcast %cst_558 : f32 to vector<1x128xf32>
    %1089 = arith.mulf %1088, %1073 : vector<1x128xf32>
    %cst_559 = arith.constant 0.63078314 : f32
    %1090 = vector.broadcast %cst_559 : f32 to vector<1x128xf32>
    %1091 = arith.mulf %1090, %1030 : vector<1x128xf32>
    %cst_560 = arith.constant 0.63078314 : f32
    %1092 = vector.broadcast %cst_560 : f32 to vector<1x128xf32>
    %1093 = arith.mulf %1092, %1033 : vector<1x128xf32>
    %cst_561 = arith.constant 0.63078314 : f32
    %1094 = vector.broadcast %cst_561 : f32 to vector<1x128xf32>
    %1095 = arith.mulf %1094, %1018 : vector<1x128xf32>
    %cst_562 = arith.constant 0.746352672 : f32
    %1096 = vector.broadcast %cst_562 : f32 to vector<1x128xf32>
    %1097 = arith.mulf %1096, %1046 : vector<1x128xf32>
    %cst_563 = arith.constant 0.746352672 : f32
    %1098 = vector.broadcast %cst_563 : f32 to vector<1x128xf32>
    %1099 = arith.mulf %1098, %1053 : vector<1x128xf32>
    %cst_564 = arith.constant 0.746352672 : f32
    %1100 = vector.broadcast %cst_564 : f32 to vector<1x128xf32>
    %1101 = arith.mulf %1100, %1063 : vector<1x128xf32>
    %cst_565 = arith.constant 0.746352672 : f32
    %1102 = vector.broadcast %cst_565 : f32 to vector<1x128xf32>
    %1103 = arith.mulf %1102, %1070 : vector<1x128xf32>
    %cst_566 = arith.constant 0.746352672 : f32
    %1104 = vector.broadcast %cst_566 : f32 to vector<1x128xf32>
    %1105 = arith.mulf %1104, %1041 : vector<1x128xf32>
    %c80 = arith.constant 80 : index
    %c0_567 = arith.constant 0 : index
    %1106 = vector.load %arg8[%c80, %c0_567] : memref<128x128xf32, #tpu.memory_space<vmem>>, vector<1x128xf32>
    tpu.vector_store %arg8[%c80, %c0_567], %1075 {strides = array<i32>} : memref<128x128xf32, #tpu.memory_space<vmem>>, vector<1x128xf32>,
    %c81 = arith.constant 81 : index
    %c0_568 = arith.constant 0 : index
    %1107 = vector.load %arg8[%c81, %c0_568] : memref<128x128xf32, #tpu.memory_space<vmem>>, vector<1x128xf32>
    tpu.vector_store %arg8[%c81, %c0_568], %1077 {strides = array<i32>} : memref<128x128xf32, #tpu.memory_space<vmem>>, vector<1x128xf32>,
    %c82 = arith.constant 82 : index
    %c0_569 = arith.constant 0 : index
    %1108 = vector.load %arg8[%c82, %c0_569] : memref<128x128xf32, #tpu.memory_space<vmem>>, vector<1x128xf32>
    tpu.vector_store %arg8[%c82, %c0_569], %1079 {strides = array<i32>} : memref<128x128xf32, #tpu.memory_space<vmem>>, vector<1x128xf32>,
    %c83 = arith.constant 83 : index
    %c0_570 = arith.constant 0 : index
    %1109 = vector.load %arg8[%c83, %c0_570] : memref<128x128xf32, #tpu.memory_space<vmem>>, vector<1x128xf32>
    tpu.vector_store %arg8[%c83, %c0_570], %1081 {strides = array<i32>} : memref<128x128xf32, #tpu.memory_space<vmem>>, vector<1x128xf32>,
    %c84 = arith.constant 84 : index
    %c0_571 = arith.constant 0 : index
    %1110 = vector.load %arg8[%c84, %c0_571] : memref<128x128xf32, #tpu.memory_space<vmem>>, vector<1x128xf32>
    tpu.vector_store %arg8[%c84, %c0_571], %1083 {strides = array<i32>} : memref<128x128xf32, #tpu.memory_space<vmem>>, vector<1x128xf32>,
    %c85 = arith.constant 85 : index
    %c0_572 = arith.constant 0 : index
    %1111 = vector.load %arg8[%c85, %c0_572] : memref<128x128xf32, #tpu.memory_space<vmem>>, vector<1x128xf32>
    tpu.vector_store %arg8[%c85, %c0_572], %1085 {strides = array<i32>} : memref<128x128xf32, #tpu.memory_space<vmem>>, vector<1x128xf32>,
    %c86 = arith.constant 86 : index
    %c0_573 = arith.constant 0 : index
    %1112 = vector.load %arg8[%c86, %c0_573] : memref<128x128xf32, #tpu.memory_space<vmem>>, vector<1x128xf32>
    tpu.vector_store %arg8[%c86, %c0_573], %1087 {strides = array<i32>} : memref<128x128xf32, #tpu.memory_space<vmem>>, vector<1x128xf32>,
    %c87 = arith.constant 87 : index
    %c0_574 = arith.constant 0 : index
    %1113 = vector.load %arg8[%c87, %c0_574] : memref<128x128xf32, #tpu.memory_space<vmem>>, vector<1x128xf32>
    tpu.vector_store %arg8[%c87, %c0_574], %1089 {strides = array<i32>} : memref<128x128xf32, #tpu.memory_space<vmem>>, vector<1x128xf32>,
    %c88 = arith.constant 88 : index
    %c0_575 = arith.constant 0 : index
    %1114 = vector.load %arg8[%c88, %c0_575] : memref<128x128xf32, #tpu.memory_space<vmem>>, vector<1x128xf32>
    tpu.vector_store %arg8[%c88, %c0_575], %1091 {strides = array<i32>} : memref<128x128xf32, #tpu.memory_space<vmem>>, vector<1x128xf32>,
    %c89 = arith.constant 89 : index
    %c0_576 = arith.constant 0 : index
    %1115 = vector.load %arg8[%c89, %c0_576] : memref<128x128xf32, #tpu.memory_space<vmem>>, vector<1x128xf32>
    tpu.vector_store %arg8[%c89, %c0_576], %1093 {strides = array<i32>} : memref<128x128xf32, #tpu.memory_space<vmem>>, vector<1x128xf32>,
    %c90 = arith.constant 90 : index
    %c0_577 = arith.constant 0 : index
    %1116 = vector.load %arg8[%c90, %c0_577] : memref<128x128xf32, #tpu.memory_space<vmem>>, vector<1x128xf32>
    tpu.vector_store %arg8[%c90, %c0_577], %1095 {strides = array<i32>} : memref<128x128xf32, #tpu.memory_space<vmem>>, vector<1x128xf32>,
    %c91 = arith.constant 91 : index
    %c0_578 = arith.constant 0 : index
    %1117 = vector.load %arg8[%c91, %c0_578] : memref<128x128xf32, #tpu.memory_space<vmem>>, vector<1x128xf32>
    tpu.vector_store %arg8[%c91, %c0_578], %1097 {strides = array<i32>} : memref<128x128xf32, #tpu.memory_space<vmem>>, vector<1x128xf32>,
    %c92 = arith.constant 92 : index
    %c0_579 = arith.constant 0 : index
    %1118 = vector.load %arg8[%c92, %c0_579] : memref<128x128xf32, #tpu.memory_space<vmem>>, vector<1x128xf32>
    tpu.vector_store %arg8[%c92, %c0_579], %1099 {strides = array<i32>} : memref<128x128xf32, #tpu.memory_space<vmem>>, vector<1x128xf32>,
    %c93 = arith.constant 93 : index
    %c0_580 = arith.constant 0 : index
    %1119 = vector.load %arg8[%c93, %c0_580] : memref<128x128xf32, #tpu.memory_space<vmem>>, vector<1x128xf32>
    tpu.vector_store %arg8[%c93, %c0_580], %1101 {strides = array<i32>} : memref<128x128xf32, #tpu.memory_space<vmem>>, vector<1x128xf32>,
    %c94 = arith.constant 94 : index
    %c0_581 = arith.constant 0 : index
    %1120 = vector.load %arg8[%c94, %c0_581] : memref<128x128xf32, #tpu.memory_space<vmem>>, vector<1x128xf32>
    tpu.vector_store %arg8[%c94, %c0_581], %1103 {strides = array<i32>} : memref<128x128xf32, #tpu.memory_space<vmem>>, vector<1x128xf32>,
    %c95 = arith.constant 95 : index
    %c0_582 = arith.constant 0 : index
    %1121 = vector.load %arg8[%c95, %c0_582] : memref<128x128xf32, #tpu.memory_space<vmem>>, vector<1x128xf32>
    tpu.vector_store %arg8[%c95, %c0_582], %1105 {strides = array<i32>} : memref<128x128xf32, #tpu.memory_space<vmem>>, vector<1x128xf32>,
    %c40_583 = arith.constant 40 : index
    %c0_584 = arith.constant 0 : index
    %1122 = vector.load %arg7[%c40_583, %c0_584] : memref<64x128xf32, #tpu.memory_space<vmem>>, vector<8x128xf32>
    %c80_585 = arith.constant 80 : index
    %c0_586 = arith.constant 0 : index
    %1123 = vector.load %arg8[%c80_585, %c0_586] : memref<128x128xf32, #tpu.memory_space<vmem>>, vector<16x128xf32>
    %cst_587 = arith.constant dense<0.000000e+00> : vector<8x16xf32>
    %1124 = tpu.matmul %1122, %1123, %cst_587 {dimension_numbers = #tpu.dot_dimension_numbers<[1], [1], [0], [0], [0, 0, 1, 0], [], []>} : vector<8x128xf32>, vector<16x128xf32>, vector<8x16xf32> -> vector<8x16xf32>
    %1125 = tpu.concatenate %1124, %1124, %1124, %1124, %1124, %1124, %1124, %1124 in 1 : vector<8x16xf32>, vector<8x16xf32>, vector<8x16xf32>, vector<8x16xf32>, vector<8x16xf32>, vector<8x16xf32>, vector<8x16xf32>, vector<8x16xf32> -> vector<8x128xf32>
    %1126 = arith.mulf %1125, %0 : vector<8x128xf32>
    %cst_588 = arith.constant dense<0.000000e+00> : vector<128xf32>
    %1127 = vector.multi_reduction <add>, %1126, %cst_588 [0] : vector<8x128xf32> to vector<128xf32>
    %1128 = vector.shape_cast %1127 : vector<128xf32> to vector<1x128xf32>
    %1129 = vector.broadcast %1128 : vector<1x128xf32> to vector<8x128xf32>
    %1130 = arith.mulf %1125, %1129 : vector<8x128xf32>
    %cst_589 = arith.constant dense<0.000000e+00> : vector<8x32xf32>
    %1131 = tpu.matmul %1130, %1, %cst_589 {dimension_numbers = #tpu.dot_dimension_numbers<[1], [0], [0], [1], [0, 0, 1, 1], [], []>} : vector<8x128xf32>, vector<128x32xf32>, vector<8x32xf32> -> vector<8x32xf32>
    %1132 = tpu.concatenate %1131, %1131, %1131, %1131, %1131, %1131, %1131, %1131 in 1 : vector<8x32xf32>, vector<8x32xf32>, vector<8x32xf32>, vector<8x32xf32>, vector<8x32xf32>, vector<8x32xf32>, vector<8x32xf32>, vector<8x32xf32> -> vector<8x256xf32>
    %1133 = arith.mulf %1132, %2 : vector<8x256xf32>
    %cst_590 = arith.constant dense<0.000000e+00> : vector<256xf32>
    %1134 = vector.multi_reduction <add>, %1133, %cst_590 [0] : vector<8x256xf32> to vector<256xf32>
    %1135 = vector.shape_cast %1134 : vector<256xf32> to vector<1x256xf32>
    %c5_591 = arith.constant 5 : index
    %c0_592 = arith.constant 0 : index
    %1136 = vector.load %arg6[%c5_591, %c0_592] : memref<8x256xf32, #tpu.memory_space<vmem>>, vector<1x256xf32>
    tpu.vector_store %arg6[%c5_591, %c0_592], %1135 {strides = array<i32>} : memref<8x256xf32, #tpu.memory_space<vmem>>, vector<1x256xf32>,
    %c18_593 = arith.constant 18 : index
    %c0_594 = arith.constant 0 : index
    %1137 = vector.load %arg1[%c18_593, %c0_594] : memref<24x128xf32, #tpu.memory_space<vmem>>, vector<1x128xf32>
    %cst_595 = arith.constant 5.000000e-01 : f32
    %1138 = vector.broadcast %cst_595 : f32 to vector<1x128xf32>
    %1139 = arith.mulf %1137, %1138 : vector<1x128xf32>
    %c19_596 = arith.constant 19 : index
    %c0_597 = arith.constant 0 : index
    %1140 = vector.load %arg1[%c19_596, %c0_597] : memref<24x128xf32, #tpu.memory_space<vmem>>, vector<1x128xf32>
    %cst_598 = arith.constant 5.000000e-01 : f32
    %1141 = vector.broadcast %cst_598 : f32 to vector<1x128xf32>
    %1142 = arith.mulf %1140, %1141 : vector<1x128xf32>
    %c20_599 = arith.constant 20 : index
    %c0_600 = arith.constant 0 : index
    %1143 = vector.load %arg1[%c20_599, %c0_600] : memref<24x128xf32, #tpu.memory_space<vmem>>, vector<1x128xf32>
    %cst_601 = arith.constant 5.000000e-01 : f32
    %1144 = vector.broadcast %cst_601 : f32 to vector<1x128xf32>
    %1145 = arith.mulf %1143, %1144 : vector<1x128xf32>
    %1146 = arith.mulf %1139, %1139 : vector<1x128xf32>
    %1147 = arith.mulf %1142, %1142 : vector<1x128xf32>
    %1148 = arith.addf %1146, %1147 : vector<1x128xf32>
    %1149 = arith.mulf %1145, %1145 : vector<1x128xf32>
    %1150 = arith.addf %1148, %1149 : vector<1x128xf32>
    %1151 = math.sqrt %1150 : vector<1x128xf32>
    %cst_602 = arith.constant 2.000000e+00 : f32
    %1152 = vector.broadcast %cst_602 : f32 to vector<1x128xf32>
    %1153 = arith.mulf %1152, %1151 : vector<1x128xf32>
    %cst_603 = arith.constant 6.000000e+00 : f32
    %1154 = vector.broadcast %cst_603 : f32 to vector<1x128xf32>
    %1155 = arith.cmpf olt, %1153, %1154 : vector<1x128xf32>
    %cst_604 = arith.constant 0.166666672 : f32
    %1156 = vector.broadcast %cst_604 : f32 to vector<1x128xf32>
    %1157 = arith.mulf %1153, %1156 : vector<1x128xf32>
    %cst_605 = arith.constant 1.000000e+00 : f32
    %1158 = vector.broadcast %cst_605 : f32 to vector<1x128xf32>
    %1159 = arith.subf %1158, %1157 : vector<1x128xf32>
    %1160 = arith.mulf %1159, %1159 : vector<1x128xf32>
    %cst_606 = arith.constant 0.000000e+00 : f32
    %1161 = vector.broadcast %cst_606 : f32 to vector<1x128xf32>
    %1162 = arith.select %1155, %1160, %1161 : vector<1x128xi1>, vector<1x128xf32>
    %cst_607 = arith.constant -5.000000e-01 : f32
    %1163 = vector.broadcast %cst_607 : f32 to vector<1x128xf32>
    %1164 = arith.mulf %1163, %1150 : vector<1x128xf32>
    %1165 = math.exp %1164 : vector<1x128xf32>
    %1166 = arith.mulf %1165, %1162 : vector<1x128xf32>
    %c12_608 = arith.constant 12 : index
    %c0_609 = arith.constant 0 : index
    %1167 = vector.load %arg2[%c12_608, %c0_609] : memref<16x128xf32, #tpu.memory_space<vmem>>, vector<1x128xf32>
    %c13_610 = arith.constant 13 : index
    %c0_611 = arith.constant 0 : index
    %1168 = vector.load %arg2[%c13_610, %c0_611] : memref<16x128xf32, #tpu.memory_space<vmem>>, vector<1x128xf32>
    %1169 = arith.mulf %1166, %1167 : vector<1x128xf32>
    %c48_612 = arith.constant 48 : index
    %c0_613 = arith.constant 0 : index
    %1170 = vector.load %arg7[%c48_612, %c0_613] : memref<64x128xf32, #tpu.memory_space<vmem>>, vector<1x128xf32>
    tpu.vector_store %arg7[%c48_612, %c0_613], %1169 {strides = array<i32>} : memref<64x128xf32, #tpu.memory_space<vmem>>, vector<1x128xf32>,
    %1171 = arith.mulf %1166, %1168 : vector<1x128xf32>
    %c52_614 = arith.constant 52 : index
    %c0_615 = arith.constant 0 : index
    %1172 = vector.load %arg7[%c52_614, %c0_615] : memref<64x128xf32, #tpu.memory_space<vmem>>, vector<1x128xf32>
    tpu.vector_store %arg7[%c52_614, %c0_615], %1171 {strides = array<i32>} : memref<64x128xf32, #tpu.memory_space<vmem>>, vector<1x128xf32>,
    %1173 = arith.mulf %1166, %1150 : vector<1x128xf32>
    %1174 = arith.mulf %1173, %1167 : vector<1x128xf32>
    %c49_616 = arith.constant 49 : index
    %c0_617 = arith.constant 0 : index
    %1175 = vector.load %arg7[%c49_616, %c0_617] : memref<64x128xf32, #tpu.memory_space<vmem>>, vector<1x128xf32>
    tpu.vector_store %arg7[%c49_616, %c0_617], %1174 {strides = array<i32>} : memref<64x128xf32, #tpu.memory_space<vmem>>, vector<1x128xf32>,
    %1176 = arith.mulf %1173, %1168 : vector<1x128xf32>
    %c53_618 = arith.constant 53 : index
    %c0_619 = arith.constant 0 : index
    %1177 = vector.load %arg7[%c53_618, %c0_619] : memref<64x128xf32, #tpu.memory_space<vmem>>, vector<1x128xf32>
    tpu.vector_store %arg7[%c53_618, %c0_619], %1176 {strides = array<i32>} : memref<64x128xf32, #tpu.memory_space<vmem>>, vector<1x128xf32>,
    %1178 = arith.mulf %1173, %1150 : vector<1x128xf32>
    %1179 = arith.mulf %1178, %1167 : vector<1x128xf32>
    %c50_620 = arith.constant 50 : index
    %c0_621 = arith.constant 0 : index
    %1180 = vector.load %arg7[%c50_620, %c0_621] : memref<64x128xf32, #tpu.memory_space<vmem>>, vector<1x128xf32>
    tpu.vector_store %arg7[%c50_620, %c0_621], %1179 {strides = array<i32>} : memref<64x128xf32, #tpu.memory_space<vmem>>, vector<1x128xf32>,
    %1181 = arith.mulf %1178, %1168 : vector<1x128xf32>
    %c54_622 = arith.constant 54 : index
    %c0_623 = arith.constant 0 : index
    %1182 = vector.load %arg7[%c54_622, %c0_623] : memref<64x128xf32, #tpu.memory_space<vmem>>, vector<1x128xf32>
    tpu.vector_store %arg7[%c54_622, %c0_623], %1181 {strides = array<i32>} : memref<64x128xf32, #tpu.memory_space<vmem>>, vector<1x128xf32>,
    %1183 = arith.mulf %1178, %1150 : vector<1x128xf32>
    %1184 = arith.mulf %1183, %1167 : vector<1x128xf32>
    %c51_624 = arith.constant 51 : index
    %c0_625 = arith.constant 0 : index
    %1185 = vector.load %arg7[%c51_624, %c0_625] : memref<64x128xf32, #tpu.memory_space<vmem>>, vector<1x128xf32>
    tpu.vector_store %arg7[%c51_624, %c0_625], %1184 {strides = array<i32>} : memref<64x128xf32, #tpu.memory_space<vmem>>, vector<1x128xf32>,
    %1186 = arith.mulf %1183, %1168 : vector<1x128xf32>
    %c55_626 = arith.constant 55 : index
    %c0_627 = arith.constant 0 : index
    %1187 = vector.load %arg7[%c55_626, %c0_627] : memref<64x128xf32, #tpu.memory_space<vmem>>, vector<1x128xf32>
    tpu.vector_store %arg7[%c55_626, %c0_627], %1186 {strides = array<i32>} : memref<64x128xf32, #tpu.memory_space<vmem>>, vector<1x128xf32>,
    %cst_628 = arith.constant 1.000000e+00 : f32
    %1188 = vector.broadcast %cst_628 : f32 to vector<1x128xf32>
    %cst_629 = arith.constant 0.000000e+00 : f32
    %1189 = vector.broadcast %cst_629 : f32 to vector<1x128xf32>
    %1190 = arith.mulf %1139, %1188 : vector<1x128xf32>
    %1191 = arith.mulf %1142, %1189 : vector<1x128xf32>
    %1192 = arith.subf %1190, %1191 : vector<1x128xf32>
    %cst_630 = arith.constant -0.707106769 : f32
    %1193 = vector.broadcast %cst_630 : f32 to vector<1x128xf32>
    %1194 = arith.mulf %1193, %1192 : vector<1x128xf32>
    %1195 = arith.mulf %1139, %1189 : vector<1x128xf32>
    %1196 = arith.mulf %1142, %1188 : vector<1x128xf32>
    %1197 = arith.addf %1195, %1196 : vector<1x128xf32>
    %cst_631 = arith.constant -0.707106769 : f32
    %1198 = vector.broadcast %cst_631 : f32 to vector<1x128xf32>
    %1199 = arith.mulf %1198, %1197 : vector<1x128xf32>
    %cst_632 = arith.constant 1.000000e+00 : f32
    %1200 = vector.broadcast %cst_632 : f32 to vector<1x128xf32>
    %1201 = arith.mulf %1200, %1145 : vector<1x128xf32>
    %1202 = arith.mulf %1201, %1188 : vector<1x128xf32>
    %1203 = arith.mulf %1139, %1194 : vector<1x128xf32>
    %1204 = arith.mulf %1142, %1199 : vector<1x128xf32>
    %1205 = arith.subf %1203, %1204 : vector<1x128xf32>
    %cst_633 = arith.constant -0.866025388 : f32
    %1206 = vector.broadcast %cst_633 : f32 to vector<1x128xf32>
    %1207 = arith.mulf %1206, %1205 : vector<1x128xf32>
    %1208 = arith.mulf %1139, %1199 : vector<1x128xf32>
    %1209 = arith.mulf %1142, %1194 : vector<1x128xf32>
    %1210 = arith.addf %1208, %1209 : vector<1x128xf32>
    %cst_634 = arith.constant -0.866025388 : f32
    %1211 = vector.broadcast %cst_634 : f32 to vector<1x128xf32>
    %1212 = arith.mulf %1211, %1210 : vector<1x128xf32>
    %cst_635 = arith.constant 1.500000e+00 : f32
    %1213 = vector.broadcast %cst_635 : f32 to vector<1x128xf32>
    %1214 = arith.mulf %1213, %1145 : vector<1x128xf32>
    %1215 = arith.mulf %1214, %1202 : vector<1x128xf32>
    %cst_636 = arith.constant 5.000000e-01 : f32
    %1216 = vector.broadcast %cst_636 : f32 to vector<1x128xf32>
    %1217 = arith.mulf %1216, %1150 : vector<1x128xf32>
    %1218 = arith.mulf %1217, %1188 : vector<1x128xf32>
    %1219 = arith.subf %1215, %1218 : vector<1x128xf32>
    %cst_637 = arith.constant 1.73205078 : f32
    %1220 = vector.broadcast %cst_637 : f32 to vector<1x128xf32>
    %1221 = arith.mulf %1220, %1145 : vector<1x128xf32>
    %1222 = arith.mulf %1221, %1194 : vector<1x128xf32>
    %cst_638 = arith.constant 1.73205078 : f32
    %1223 = vector.broadcast %cst_638 : f32 to vector<1x128xf32>
    %1224 = arith.mulf %1223, %1145 : vector<1x128xf32>
    %1225 = arith.mulf %1224, %1199 : vector<1x128xf32>
    %1226 = arith.mulf %1139, %1207 : vector<1x128xf32>
    %1227 = arith.mulf %1142, %1212 : vector<1x128xf32>
    %1228 = arith.subf %1226, %1227 : vector<1x128xf32>
    %cst_639 = arith.constant -0.912870943 : f32
    %1229 = vector.broadcast %cst_639 : f32 to vector<1x128xf32>
    %1230 = arith.mulf %1229, %1228 : vector<1x128xf32>
    %1231 = arith.mulf %1139, %1212 : vector<1x128xf32>
    %1232 = arith.mulf %1142, %1207 : vector<1x128xf32>
    %1233 = arith.addf %1231, %1232 : vector<1x128xf32>
    %cst_640 = arith.constant -0.912870943 : f32
    %1234 = vector.broadcast %cst_640 : f32 to vector<1x128xf32>
    %1235 = arith.mulf %1234, %1233 : vector<1x128xf32>
    %cst_641 = arith.constant 1.66666663 : f32
    %1236 = vector.broadcast %cst_641 : f32 to vector<1x128xf32>
    %1237 = arith.mulf %1236, %1145 : vector<1x128xf32>
    %1238 = arith.mulf %1237, %1219 : vector<1x128xf32>
    %cst_642 = arith.constant 0.666666686 : f32
    %1239 = vector.broadcast %cst_642 : f32 to vector<1x128xf32>
    %1240 = arith.mulf %1239, %1150 : vector<1x128xf32>
    %1241 = arith.mulf %1240, %1202 : vector<1x128xf32>
    %1242 = arith.subf %1238, %1241 : vector<1x128xf32>
    %cst_643 = arith.constant 1.76776695 : f32
    %1243 = vector.broadcast %cst_643 : f32 to vector<1x128xf32>
    %1244 = arith.mulf %1243, %1145 : vector<1x128xf32>
    %1245 = arith.mulf %1244, %1222 : vector<1x128xf32>
    %cst_644 = arith.constant 1.76776695 : f32
    %1246 = vector.broadcast %cst_644 : f32 to vector<1x128xf32>
    %1247 = arith.mulf %1246, %1145 : vector<1x128xf32>
    %1248 = arith.mulf %1247, %1225 : vector<1x128xf32>
    %cst_645 = arith.constant 0.612372457 : f32
    %1249 = vector.broadcast %cst_645 : f32 to vector<1x128xf32>
    %1250 = arith.mulf %1249, %1150 : vector<1x128xf32>
    %1251 = arith.mulf %1250, %1194 : vector<1x128xf32>
    %1252 = arith.subf %1245, %1251 : vector<1x128xf32>
    %cst_646 = arith.constant 0.612372457 : f32
    %1253 = vector.broadcast %cst_646 : f32 to vector<1x128xf32>
    %1254 = arith.mulf %1253, %1150 : vector<1x128xf32>
    %1255 = arith.mulf %1254, %1199 : vector<1x128xf32>
    %1256 = arith.subf %1248, %1255 : vector<1x128xf32>
    %cst_647 = arith.constant 2.23606801 : f32
    %1257 = vector.broadcast %cst_647 : f32 to vector<1x128xf32>
    %1258 = arith.mulf %1257, %1145 : vector<1x128xf32>
    %1259 = arith.mulf %1258, %1207 : vector<1x128xf32>
    %cst_648 = arith.constant 2.23606801 : f32
    %1260 = vector.broadcast %cst_648 : f32 to vector<1x128xf32>
    %1261 = arith.mulf %1260, %1145 : vector<1x128xf32>
    %1262 = arith.mulf %1261, %1212 : vector<1x128xf32>
    %cst_649 = arith.constant 0.282094806 : f32
    %1263 = vector.broadcast %cst_649 : f32 to vector<1x128xf32>
    %1264 = arith.mulf %1263, %1188 : vector<1x128xf32>
    %cst_650 = arith.constant 0.488602519 : f32
    %1265 = vector.broadcast %cst_650 : f32 to vector<1x128xf32>
    %1266 = arith.mulf %1265, %1199 : vector<1x128xf32>
    %cst_651 = arith.constant 0.63078314 : f32
    %1267 = vector.broadcast %cst_651 : f32 to vector<1x128xf32>
    %1268 = arith.mulf %1267, %1225 : vector<1x128xf32>
    %cst_652 = arith.constant 0.746352672 : f32
    %1269 = vector.broadcast %cst_652 : f32 to vector<1x128xf32>
    %1270 = arith.mulf %1269, %1256 : vector<1x128xf32>
    %cst_653 = arith.constant 0.488602519 : f32
    %1271 = vector.broadcast %cst_653 : f32 to vector<1x128xf32>
    %1272 = arith.mulf %1271, %1202 : vector<1x128xf32>
    %cst_654 = arith.constant 0.488602519 : f32
    %1273 = vector.broadcast %cst_654 : f32 to vector<1x128xf32>
    %1274 = arith.mulf %1273, %1194 : vector<1x128xf32>
    %cst_655 = arith.constant 0.63078314 : f32
    %1275 = vector.broadcast %cst_655 : f32 to vector<1x128xf32>
    %1276 = arith.mulf %1275, %1212 : vector<1x128xf32>
    %cst_656 = arith.constant 0.746352672 : f32
    %1277 = vector.broadcast %cst_656 : f32 to vector<1x128xf32>
    %1278 = arith.mulf %1277, %1262 : vector<1x128xf32>
    %cst_657 = arith.constant 0.63078314 : f32
    %1279 = vector.broadcast %cst_657 : f32 to vector<1x128xf32>
    %1280 = arith.mulf %1279, %1219 : vector<1x128xf32>
    %cst_658 = arith.constant 0.63078314 : f32
    %1281 = vector.broadcast %cst_658 : f32 to vector<1x128xf32>
    %1282 = arith.mulf %1281, %1222 : vector<1x128xf32>
    %cst_659 = arith.constant 0.63078314 : f32
    %1283 = vector.broadcast %cst_659 : f32 to vector<1x128xf32>
    %1284 = arith.mulf %1283, %1207 : vector<1x128xf32>
    %cst_660 = arith.constant 0.746352672 : f32
    %1285 = vector.broadcast %cst_660 : f32 to vector<1x128xf32>
    %1286 = arith.mulf %1285, %1235 : vector<1x128xf32>
    %cst_661 = arith.constant 0.746352672 : f32
    %1287 = vector.broadcast %cst_661 : f32 to vector<1x128xf32>
    %1288 = arith.mulf %1287, %1242 : vector<1x128xf32>
    %cst_662 = arith.constant 0.746352672 : f32
    %1289 = vector.broadcast %cst_662 : f32 to vector<1x128xf32>
    %1290 = arith.mulf %1289, %1252 : vector<1x128xf32>
    %cst_663 = arith.constant 0.746352672 : f32
    %1291 = vector.broadcast %cst_663 : f32 to vector<1x128xf32>
    %1292 = arith.mulf %1291, %1259 : vector<1x128xf32>
    %cst_664 = arith.constant 0.746352672 : f32
    %1293 = vector.broadcast %cst_664 : f32 to vector<1x128xf32>
    %1294 = arith.mulf %1293, %1230 : vector<1x128xf32>
    %c96 = arith.constant 96 : index
    %c0_665 = arith.constant 0 : index
    %1295 = vector.load %arg8[%c96, %c0_665] : memref<128x128xf32, #tpu.memory_space<vmem>>, vector<1x128xf32>
    tpu.vector_store %arg8[%c96, %c0_665], %1264 {strides = array<i32>} : memref<128x128xf32, #tpu.memory_space<vmem>>, vector<1x128xf32>,
    %c97 = arith.constant 97 : index
    %c0_666 = arith.constant 0 : index
    %1296 = vector.load %arg8[%c97, %c0_666] : memref<128x128xf32, #tpu.memory_space<vmem>>, vector<1x128xf32>
    tpu.vector_store %arg8[%c97, %c0_666], %1266 {strides = array<i32>} : memref<128x128xf32, #tpu.memory_space<vmem>>, vector<1x128xf32>,
    %c98 = arith.constant 98 : index
    %c0_667 = arith.constant 0 : index
    %1297 = vector.load %arg8[%c98, %c0_667] : memref<128x128xf32, #tpu.memory_space<vmem>>, vector<1x128xf32>
    tpu.vector_store %arg8[%c98, %c0_667], %1268 {strides = array<i32>} : memref<128x128xf32, #tpu.memory_space<vmem>>, vector<1x128xf32>,
    %c99 = arith.constant 99 : index
    %c0_668 = arith.constant 0 : index
    %1298 = vector.load %arg8[%c99, %c0_668] : memref<128x128xf32, #tpu.memory_space<vmem>>, vector<1x128xf32>
    tpu.vector_store %arg8[%c99, %c0_668], %1270 {strides = array<i32>} : memref<128x128xf32, #tpu.memory_space<vmem>>, vector<1x128xf32>,
    %c100 = arith.constant 100 : index
    %c0_669 = arith.constant 0 : index
    %1299 = vector.load %arg8[%c100, %c0_669] : memref<128x128xf32, #tpu.memory_space<vmem>>, vector<1x128xf32>
    tpu.vector_store %arg8[%c100, %c0_669], %1272 {strides = array<i32>} : memref<128x128xf32, #tpu.memory_space<vmem>>, vector<1x128xf32>,
    %c101 = arith.constant 101 : index
    %c0_670 = arith.constant 0 : index
    %1300 = vector.load %arg8[%c101, %c0_670] : memref<128x128xf32, #tpu.memory_space<vmem>>, vector<1x128xf32>
    tpu.vector_store %arg8[%c101, %c0_670], %1274 {strides = array<i32>} : memref<128x128xf32, #tpu.memory_space<vmem>>, vector<1x128xf32>,
    %c102 = arith.constant 102 : index
    %c0_671 = arith.constant 0 : index
    %1301 = vector.load %arg8[%c102, %c0_671] : memref<128x128xf32, #tpu.memory_space<vmem>>, vector<1x128xf32>
    tpu.vector_store %arg8[%c102, %c0_671], %1276 {strides = array<i32>} : memref<128x128xf32, #tpu.memory_space<vmem>>, vector<1x128xf32>,
    %c103 = arith.constant 103 : index
    %c0_672 = arith.constant 0 : index
    %1302 = vector.load %arg8[%c103, %c0_672] : memref<128x128xf32, #tpu.memory_space<vmem>>, vector<1x128xf32>
    tpu.vector_store %arg8[%c103, %c0_672], %1278 {strides = array<i32>} : memref<128x128xf32, #tpu.memory_space<vmem>>, vector<1x128xf32>,
    %c104 = arith.constant 104 : index
    %c0_673 = arith.constant 0 : index
    %1303 = vector.load %arg8[%c104, %c0_673] : memref<128x128xf32, #tpu.memory_space<vmem>>, vector<1x128xf32>
    tpu.vector_store %arg8[%c104, %c0_673], %1280 {strides = array<i32>} : memref<128x128xf32, #tpu.memory_space<vmem>>, vector<1x128xf32>,
    %c105 = arith.constant 105 : index
    %c0_674 = arith.constant 0 : index
    %1304 = vector.load %arg8[%c105, %c0_674] : memref<128x128xf32, #tpu.memory_space<vmem>>, vector<1x128xf32>
    tpu.vector_store %arg8[%c105, %c0_674], %1282 {strides = array<i32>} : memref<128x128xf32, #tpu.memory_space<vmem>>, vector<1x128xf32>,
    %c106 = arith.constant 106 : index
    %c0_675 = arith.constant 0 : index
    %1305 = vector.load %arg8[%c106, %c0_675] : memref<128x128xf32, #tpu.memory_space<vmem>>, vector<1x128xf32>
    tpu.vector_store %arg8[%c106, %c0_675], %1284 {strides = array<i32>} : memref<128x128xf32, #tpu.memory_space<vmem>>, vector<1x128xf32>,
    %c107 = arith.constant 107 : index
    %c0_676 = arith.constant 0 : index
    %1306 = vector.load %arg8[%c107, %c0_676] : memref<128x128xf32, #tpu.memory_space<vmem>>, vector<1x128xf32>
    tpu.vector_store %arg8[%c107, %c0_676], %1286 {strides = array<i32>} : memref<128x128xf32, #tpu.memory_space<vmem>>, vector<1x128xf32>,
    %c108 = arith.constant 108 : index
    %c0_677 = arith.constant 0 : index
    %1307 = vector.load %arg8[%c108, %c0_677] : memref<128x128xf32, #tpu.memory_space<vmem>>, vector<1x128xf32>
    tpu.vector_store %arg8[%c108, %c0_677], %1288 {strides = array<i32>} : memref<128x128xf32, #tpu.memory_space<vmem>>, vector<1x128xf32>,
    %c109 = arith.constant 109 : index
    %c0_678 = arith.constant 0 : index
    %1308 = vector.load %arg8[%c109, %c0_678] : memref<128x128xf32, #tpu.memory_space<vmem>>, vector<1x128xf32>
    tpu.vector_store %arg8[%c109, %c0_678], %1290 {strides = array<i32>} : memref<128x128xf32, #tpu.memory_space<vmem>>, vector<1x128xf32>,
    %c110 = arith.constant 110 : index
    %c0_679 = arith.constant 0 : index
    %1309 = vector.load %arg8[%c110, %c0_679] : memref<128x128xf32, #tpu.memory_space<vmem>>, vector<1x128xf32>
    tpu.vector_store %arg8[%c110, %c0_679], %1292 {strides = array<i32>} : memref<128x128xf32, #tpu.memory_space<vmem>>, vector<1x128xf32>,
    %c111 = arith.constant 111 : index
    %c0_680 = arith.constant 0 : index
    %1310 = vector.load %arg8[%c111, %c0_680] : memref<128x128xf32, #tpu.memory_space<vmem>>, vector<1x128xf32>
    tpu.vector_store %arg8[%c111, %c0_680], %1294 {strides = array<i32>} : memref<128x128xf32, #tpu.memory_space<vmem>>, vector<1x128xf32>,
    %c48_681 = arith.constant 48 : index
    %c0_682 = arith.constant 0 : index
    %1311 = vector.load %arg7[%c48_681, %c0_682] : memref<64x128xf32, #tpu.memory_space<vmem>>, vector<8x128xf32>
    %c96_683 = arith.constant 96 : index
    %c0_684 = arith.constant 0 : index
    %1312 = vector.load %arg8[%c96_683, %c0_684] : memref<128x128xf32, #tpu.memory_space<vmem>>, vector<16x128xf32>
    %cst_685 = arith.constant dense<0.000000e+00> : vector<8x16xf32>
    %1313 = tpu.matmul %1311, %1312, %cst_685 {dimension_numbers = #tpu.dot_dimension_numbers<[1], [1], [0], [0], [0, 0, 1, 0], [], []>} : vector<8x128xf32>, vector<16x128xf32>, vector<8x16xf32> -> vector<8x16xf32>
    %1314 = tpu.concatenate %1313, %1313, %1313, %1313, %1313, %1313, %1313, %1313 in 1 : vector<8x16xf32>, vector<8x16xf32>, vector<8x16xf32>, vector<8x16xf32>, vector<8x16xf32>, vector<8x16xf32>, vector<8x16xf32>, vector<8x16xf32> -> vector<8x128xf32>
    %1315 = arith.mulf %1314, %0 : vector<8x128xf32>
    %cst_686 = arith.constant dense<0.000000e+00> : vector<128xf32>
    %1316 = vector.multi_reduction <add>, %1315, %cst_686 [0] : vector<8x128xf32> to vector<128xf32>
    %1317 = vector.shape_cast %1316 : vector<128xf32> to vector<1x128xf32>
    %1318 = vector.broadcast %1317 : vector<1x128xf32> to vector<8x128xf32>
    %1319 = arith.mulf %1314, %1318 : vector<8x128xf32>
    %cst_687 = arith.constant dense<0.000000e+00> : vector<8x32xf32>
    %1320 = tpu.matmul %1319, %1, %cst_687 {dimension_numbers = #tpu.dot_dimension_numbers<[1], [0], [0], [1], [0, 0, 1, 1], [], []>} : vector<8x128xf32>, vector<128x32xf32>, vector<8x32xf32> -> vector<8x32xf32>
    %1321 = tpu.concatenate %1320, %1320, %1320, %1320, %1320, %1320, %1320, %1320 in 1 : vector<8x32xf32>, vector<8x32xf32>, vector<8x32xf32>, vector<8x32xf32>, vector<8x32xf32>, vector<8x32xf32>, vector<8x32xf32>, vector<8x32xf32> -> vector<8x256xf32>
    %1322 = arith.mulf %1321, %2 : vector<8x256xf32>
    %cst_688 = arith.constant dense<0.000000e+00> : vector<256xf32>
    %1323 = vector.multi_reduction <add>, %1322, %cst_688 [0] : vector<8x256xf32> to vector<256xf32>
    %1324 = vector.shape_cast %1323 : vector<256xf32> to vector<1x256xf32>
    %c6_689 = arith.constant 6 : index
    %c0_690 = arith.constant 0 : index
    %1325 = vector.load %arg6[%c6_689, %c0_690] : memref<8x256xf32, #tpu.memory_space<vmem>>, vector<1x256xf32>
    tpu.vector_store %arg6[%c6_689, %c0_690], %1324 {strides = array<i32>} : memref<8x256xf32, #tpu.memory_space<vmem>>, vector<1x256xf32>,
    %c21_691 = arith.constant 21 : index
    %c0_692 = arith.constant 0 : index
    %1326 = vector.load %arg1[%c21_691, %c0_692] : memref<24x128xf32, #tpu.memory_space<vmem>>, vector<1x128xf32>
    %cst_693 = arith.constant 5.000000e-01 : f32
    %1327 = vector.broadcast %cst_693 : f32 to vector<1x128xf32>
    %1328 = arith.mulf %1326, %1327 : vector<1x128xf32>
    %c22_694 = arith.constant 22 : index
    %c0_695 = arith.constant 0 : index
    %1329 = vector.load %arg1[%c22_694, %c0_695] : memref<24x128xf32, #tpu.memory_space<vmem>>, vector<1x128xf32>
    %cst_696 = arith.constant 5.000000e-01 : f32
    %1330 = vector.broadcast %cst_696 : f32 to vector<1x128xf32>
    %1331 = arith.mulf %1329, %1330 : vector<1x128xf32>
    %c23_697 = arith.constant 23 : index
    %c0_698 = arith.constant 0 : index
    %1332 = vector.load %arg1[%c23_697, %c0_698] : memref<24x128xf32, #tpu.memory_space<vmem>>, vector<1x128xf32>
    %cst_699 = arith.constant 5.000000e-01 : f32
    %1333 = vector.broadcast %cst_699 : f32 to vector<1x128xf32>
    %1334 = arith.mulf %1332, %1333 : vector<1x128xf32>
    %1335 = arith.mulf %1328, %1328 : vector<1x128xf32>
    %1336 = arith.mulf %1331, %1331 : vector<1x128xf32>
    %1337 = arith.addf %1335, %1336 : vector<1x128xf32>
    %1338 = arith.mulf %1334, %1334 : vector<1x128xf32>
    %1339 = arith.addf %1337, %1338 : vector<1x128xf32>
    %1340 = math.sqrt %1339 : vector<1x128xf32>
    %cst_700 = arith.constant 2.000000e+00 : f32
    %1341 = vector.broadcast %cst_700 : f32 to vector<1x128xf32>
    %1342 = arith.mulf %1341, %1340 : vector<1x128xf32>
    %cst_701 = arith.constant 6.000000e+00 : f32
    %1343 = vector.broadcast %cst_701 : f32 to vector<1x128xf32>
    %1344 = arith.cmpf olt, %1342, %1343 : vector<1x128xf32>
    %cst_702 = arith.constant 0.166666672 : f32
    %1345 = vector.broadcast %cst_702 : f32 to vector<1x128xf32>
    %1346 = arith.mulf %1342, %1345 : vector<1x128xf32>
    %cst_703 = arith.constant 1.000000e+00 : f32
    %1347 = vector.broadcast %cst_703 : f32 to vector<1x128xf32>
    %1348 = arith.subf %1347, %1346 : vector<1x128xf32>
    %1349 = arith.mulf %1348, %1348 : vector<1x128xf32>
    %cst_704 = arith.constant 0.000000e+00 : f32
    %1350 = vector.broadcast %cst_704 : f32 to vector<1x128xf32>
    %1351 = arith.select %1344, %1349, %1350 : vector<1x128xi1>, vector<1x128xf32>
    %cst_705 = arith.constant -5.000000e-01 : f32
    %1352 = vector.broadcast %cst_705 : f32 to vector<1x128xf32>
    %1353 = arith.mulf %1352, %1339 : vector<1x128xf32>
    %1354 = math.exp %1353 : vector<1x128xf32>
    %1355 = arith.mulf %1354, %1351 : vector<1x128xf32>
    %c14_706 = arith.constant 14 : index
    %c0_707 = arith.constant 0 : index
    %1356 = vector.load %arg2[%c14_706, %c0_707] : memref<16x128xf32, #tpu.memory_space<vmem>>, vector<1x128xf32>
    %c15_708 = arith.constant 15 : index
    %c0_709 = arith.constant 0 : index
    %1357 = vector.load %arg2[%c15_708, %c0_709] : memref<16x128xf32, #tpu.memory_space<vmem>>, vector<1x128xf32>
    %1358 = arith.mulf %1355, %1356 : vector<1x128xf32>
    %c56_710 = arith.constant 56 : index
    %c0_711 = arith.constant 0 : index
    %1359 = vector.load %arg7[%c56_710, %c0_711] : memref<64x128xf32, #tpu.memory_space<vmem>>, vector<1x128xf32>
    tpu.vector_store %arg7[%c56_710, %c0_711], %1358 {strides = array<i32>} : memref<64x128xf32, #tpu.memory_space<vmem>>, vector<1x128xf32>,
    %1360 = arith.mulf %1355, %1357 : vector<1x128xf32>
    %c60_712 = arith.constant 60 : index
    %c0_713 = arith.constant 0 : index
    %1361 = vector.load %arg7[%c60_712, %c0_713] : memref<64x128xf32, #tpu.memory_space<vmem>>, vector<1x128xf32>
    tpu.vector_store %arg7[%c60_712, %c0_713], %1360 {strides = array<i32>} : memref<64x128xf32, #tpu.memory_space<vmem>>, vector<1x128xf32>,
    %1362 = arith.mulf %1355, %1339 : vector<1x128xf32>
    %1363 = arith.mulf %1362, %1356 : vector<1x128xf32>
    %c57_714 = arith.constant 57 : index
    %c0_715 = arith.constant 0 : index
    %1364 = vector.load %arg7[%c57_714, %c0_715] : memref<64x128xf32, #tpu.memory_space<vmem>>, vector<1x128xf32>
    tpu.vector_store %arg7[%c57_714, %c0_715], %1363 {strides = array<i32>} : memref<64x128xf32, #tpu.memory_space<vmem>>, vector<1x128xf32>,
    %1365 = arith.mulf %1362, %1357 : vector<1x128xf32>
    %c61_716 = arith.constant 61 : index
    %c0_717 = arith.constant 0 : index
    %1366 = vector.load %arg7[%c61_716, %c0_717] : memref<64x128xf32, #tpu.memory_space<vmem>>, vector<1x128xf32>
    tpu.vector_store %arg7[%c61_716, %c0_717], %1365 {strides = array<i32>} : memref<64x128xf32, #tpu.memory_space<vmem>>, vector<1x128xf32>,
    %1367 = arith.mulf %1362, %1339 : vector<1x128xf32>
    %1368 = arith.mulf %1367, %1356 : vector<1x128xf32>
    %c58_718 = arith.constant 58 : index
    %c0_719 = arith.constant 0 : index
    %1369 = vector.load %arg7[%c58_718, %c0_719] : memref<64x128xf32, #tpu.memory_space<vmem>>, vector<1x128xf32>
    tpu.vector_store %arg7[%c58_718, %c0_719], %1368 {strides = array<i32>} : memref<64x128xf32, #tpu.memory_space<vmem>>, vector<1x128xf32>,
    %1370 = arith.mulf %1367, %1357 : vector<1x128xf32>
    %c62_720 = arith.constant 62 : index
    %c0_721 = arith.constant 0 : index
    %1371 = vector.load %arg7[%c62_720, %c0_721] : memref<64x128xf32, #tpu.memory_space<vmem>>, vector<1x128xf32>
    tpu.vector_store %arg7[%c62_720, %c0_721], %1370 {strides = array<i32>} : memref<64x128xf32, #tpu.memory_space<vmem>>, vector<1x128xf32>,
    %1372 = arith.mulf %1367, %1339 : vector<1x128xf32>
    %1373 = arith.mulf %1372, %1356 : vector<1x128xf32>
    %c59_722 = arith.constant 59 : index
    %c0_723 = arith.constant 0 : index
    %1374 = vector.load %arg7[%c59_722, %c0_723] : memref<64x128xf32, #tpu.memory_space<vmem>>, vector<1x128xf32>
    tpu.vector_store %arg7[%c59_722, %c0_723], %1373 {strides = array<i32>} : memref<64x128xf32, #tpu.memory_space<vmem>>, vector<1x128xf32>,
    %1375 = arith.mulf %1372, %1357 : vector<1x128xf32>
    %c63_724 = arith.constant 63 : index
    %c0_725 = arith.constant 0 : index
    %1376 = vector.load %arg7[%c63_724, %c0_725] : memref<64x128xf32, #tpu.memory_space<vmem>>, vector<1x128xf32>
    tpu.vector_store %arg7[%c63_724, %c0_725], %1375 {strides = array<i32>} : memref<64x128xf32, #tpu.memory_space<vmem>>, vector<1x128xf32>,
    %cst_726 = arith.constant 1.000000e+00 : f32
    %1377 = vector.broadcast %cst_726 : f32 to vector<1x128xf32>
    %cst_727 = arith.constant 0.000000e+00 : f32
    %1378 = vector.broadcast %cst_727 : f32 to vector<1x128xf32>
    %1379 = arith.mulf %1328, %1377 : vector<1x128xf32>
    %1380 = arith.mulf %1331, %1378 : vector<1x128xf32>
    %1381 = arith.subf %1379, %1380 : vector<1x128xf32>
    %cst_728 = arith.constant -0.707106769 : f32
    %1382 = vector.broadcast %cst_728 : f32 to vector<1x128xf32>
    %1383 = arith.mulf %1382, %1381 : vector<1x128xf32>
    %1384 = arith.mulf %1328, %1378 : vector<1x128xf32>
    %1385 = arith.mulf %1331, %1377 : vector<1x128xf32>
    %1386 = arith.addf %1384, %1385 : vector<1x128xf32>
    %cst_729 = arith.constant -0.707106769 : f32
    %1387 = vector.broadcast %cst_729 : f32 to vector<1x128xf32>
    %1388 = arith.mulf %1387, %1386 : vector<1x128xf32>
    %cst_730 = arith.constant 1.000000e+00 : f32
    %1389 = vector.broadcast %cst_730 : f32 to vector<1x128xf32>
    %1390 = arith.mulf %1389, %1334 : vector<1x128xf32>
    %1391 = arith.mulf %1390, %1377 : vector<1x128xf32>
    %1392 = arith.mulf %1328, %1383 : vector<1x128xf32>
    %1393 = arith.mulf %1331, %1388 : vector<1x128xf32>
    %1394 = arith.subf %1392, %1393 : vector<1x128xf32>
    %cst_731 = arith.constant -0.866025388 : f32
    %1395 = vector.broadcast %cst_731 : f32 to vector<1x128xf32>
    %1396 = arith.mulf %1395, %1394 : vector<1x128xf32>
    %1397 = arith.mulf %1328, %1388 : vector<1x128xf32>
    %1398 = arith.mulf %1331, %1383 : vector<1x128xf32>
    %1399 = arith.addf %1397, %1398 : vector<1x128xf32>
    %cst_732 = arith.constant -0.866025388 : f32
    %1400 = vector.broadcast %cst_732 : f32 to vector<1x128xf32>
    %1401 = arith.mulf %1400, %1399 : vector<1x128xf32>
    %cst_733 = arith.constant 1.500000e+00 : f32
    %1402 = vector.broadcast %cst_733 : f32 to vector<1x128xf32>
    %1403 = arith.mulf %1402, %1334 : vector<1x128xf32>
    %1404 = arith.mulf %1403, %1391 : vector<1x128xf32>
    %cst_734 = arith.constant 5.000000e-01 : f32
    %1405 = vector.broadcast %cst_734 : f32 to vector<1x128xf32>
    %1406 = arith.mulf %1405, %1339 : vector<1x128xf32>
    %1407 = arith.mulf %1406, %1377 : vector<1x128xf32>
    %1408 = arith.subf %1404, %1407 : vector<1x128xf32>
    %cst_735 = arith.constant 1.73205078 : f32
    %1409 = vector.broadcast %cst_735 : f32 to vector<1x128xf32>
    %1410 = arith.mulf %1409, %1334 : vector<1x128xf32>
    %1411 = arith.mulf %1410, %1383 : vector<1x128xf32>
    %cst_736 = arith.constant 1.73205078 : f32
    %1412 = vector.broadcast %cst_736 : f32 to vector<1x128xf32>
    %1413 = arith.mulf %1412, %1334 : vector<1x128xf32>
    %1414 = arith.mulf %1413, %1388 : vector<1x128xf32>
    %1415 = arith.mulf %1328, %1396 : vector<1x128xf32>
    %1416 = arith.mulf %1331, %1401 : vector<1x128xf32>
    %1417 = arith.subf %1415, %1416 : vector<1x128xf32>
    %cst_737 = arith.constant -0.912870943 : f32
    %1418 = vector.broadcast %cst_737 : f32 to vector<1x128xf32>
    %1419 = arith.mulf %1418, %1417 : vector<1x128xf32>
    %1420 = arith.mulf %1328, %1401 : vector<1x128xf32>
    %1421 = arith.mulf %1331, %1396 : vector<1x128xf32>
    %1422 = arith.addf %1420, %1421 : vector<1x128xf32>
    %cst_738 = arith.constant -0.912870943 : f32
    %1423 = vector.broadcast %cst_738 : f32 to vector<1x128xf32>
    %1424 = arith.mulf %1423, %1422 : vector<1x128xf32>
    %cst_739 = arith.constant 1.66666663 : f32
    %1425 = vector.broadcast %cst_739 : f32 to vector<1x128xf32>
    %1426 = arith.mulf %1425, %1334 : vector<1x128xf32>
    %1427 = arith.mulf %1426, %1408 : vector<1x128xf32>
    %cst_740 = arith.constant 0.666666686 : f32
    %1428 = vector.broadcast %cst_740 : f32 to vector<1x128xf32>
    %1429 = arith.mulf %1428, %1339 : vector<1x128xf32>
    %1430 = arith.mulf %1429, %1391 : vector<1x128xf32>
    %1431 = arith.subf %1427, %1430 : vector<1x128xf32>
    %cst_741 = arith.constant 1.76776695 : f32
    %1432 = vector.broadcast %cst_741 : f32 to vector<1x128xf32>
    %1433 = arith.mulf %1432, %1334 : vector<1x128xf32>
    %1434 = arith.mulf %1433, %1411 : vector<1x128xf32>
    %cst_742 = arith.constant 1.76776695 : f32
    %1435 = vector.broadcast %cst_742 : f32 to vector<1x128xf32>
    %1436 = arith.mulf %1435, %1334 : vector<1x128xf32>
    %1437 = arith.mulf %1436, %1414 : vector<1x128xf32>
    %cst_743 = arith.constant 0.612372457 : f32
    %1438 = vector.broadcast %cst_743 : f32 to vector<1x128xf32>
    %1439 = arith.mulf %1438, %1339 : vector<1x128xf32>
    %1440 = arith.mulf %1439, %1383 : vector<1x128xf32>
    %1441 = arith.subf %1434, %1440 : vector<1x128xf32>
    %cst_744 = arith.constant 0.612372457 : f32
    %1442 = vector.broadcast %cst_744 : f32 to vector<1x128xf32>
    %1443 = arith.mulf %1442, %1339 : vector<1x128xf32>
    %1444 = arith.mulf %1443, %1388 : vector<1x128xf32>
    %1445 = arith.subf %1437, %1444 : vector<1x128xf32>
    %cst_745 = arith.constant 2.23606801 : f32
    %1446 = vector.broadcast %cst_745 : f32 to vector<1x128xf32>
    %1447 = arith.mulf %1446, %1334 : vector<1x128xf32>
    %1448 = arith.mulf %1447, %1396 : vector<1x128xf32>
    %cst_746 = arith.constant 2.23606801 : f32
    %1449 = vector.broadcast %cst_746 : f32 to vector<1x128xf32>
    %1450 = arith.mulf %1449, %1334 : vector<1x128xf32>
    %1451 = arith.mulf %1450, %1401 : vector<1x128xf32>
    %cst_747 = arith.constant 0.282094806 : f32
    %1452 = vector.broadcast %cst_747 : f32 to vector<1x128xf32>
    %1453 = arith.mulf %1452, %1377 : vector<1x128xf32>
    %cst_748 = arith.constant 0.488602519 : f32
    %1454 = vector.broadcast %cst_748 : f32 to vector<1x128xf32>
    %1455 = arith.mulf %1454, %1388 : vector<1x128xf32>
    %cst_749 = arith.constant 0.63078314 : f32
    %1456 = vector.broadcast %cst_749 : f32 to vector<1x128xf32>
    %1457 = arith.mulf %1456, %1414 : vector<1x128xf32>
    %cst_750 = arith.constant 0.746352672 : f32
    %1458 = vector.broadcast %cst_750 : f32 to vector<1x128xf32>
    %1459 = arith.mulf %1458, %1445 : vector<1x128xf32>
    %cst_751 = arith.constant 0.488602519 : f32
    %1460 = vector.broadcast %cst_751 : f32 to vector<1x128xf32>
    %1461 = arith.mulf %1460, %1391 : vector<1x128xf32>
    %cst_752 = arith.constant 0.488602519 : f32
    %1462 = vector.broadcast %cst_752 : f32 to vector<1x128xf32>
    %1463 = arith.mulf %1462, %1383 : vector<1x128xf32>
    %cst_753 = arith.constant 0.63078314 : f32
    %1464 = vector.broadcast %cst_753 : f32 to vector<1x128xf32>
    %1465 = arith.mulf %1464, %1401 : vector<1x128xf32>
    %cst_754 = arith.constant 0.746352672 : f32
    %1466 = vector.broadcast %cst_754 : f32 to vector<1x128xf32>
    %1467 = arith.mulf %1466, %1451 : vector<1x128xf32>
    %cst_755 = arith.constant 0.63078314 : f32
    %1468 = vector.broadcast %cst_755 : f32 to vector<1x128xf32>
    %1469 = arith.mulf %1468, %1408 : vector<1x128xf32>
    %cst_756 = arith.constant 0.63078314 : f32
    %1470 = vector.broadcast %cst_756 : f32 to vector<1x128xf32>
    %1471 = arith.mulf %1470, %1411 : vector<1x128xf32>
    %cst_757 = arith.constant 0.63078314 : f32
    %1472 = vector.broadcast %cst_757 : f32 to vector<1x128xf32>
    %1473 = arith.mulf %1472, %1396 : vector<1x128xf32>
    %cst_758 = arith.constant 0.746352672 : f32
    %1474 = vector.broadcast %cst_758 : f32 to vector<1x128xf32>
    %1475 = arith.mulf %1474, %1424 : vector<1x128xf32>
    %cst_759 = arith.constant 0.746352672 : f32
    %1476 = vector.broadcast %cst_759 : f32 to vector<1x128xf32>
    %1477 = arith.mulf %1476, %1431 : vector<1x128xf32>
    %cst_760 = arith.constant 0.746352672 : f32
    %1478 = vector.broadcast %cst_760 : f32 to vector<1x128xf32>
    %1479 = arith.mulf %1478, %1441 : vector<1x128xf32>
    %cst_761 = arith.constant 0.746352672 : f32
    %1480 = vector.broadcast %cst_761 : f32 to vector<1x128xf32>
    %1481 = arith.mulf %1480, %1448 : vector<1x128xf32>
    %cst_762 = arith.constant 0.746352672 : f32
    %1482 = vector.broadcast %cst_762 : f32 to vector<1x128xf32>
    %1483 = arith.mulf %1482, %1419 : vector<1x128xf32>
    %c112 = arith.constant 112 : index
    %c0_763 = arith.constant 0 : index
    %1484 = vector.load %arg8[%c112, %c0_763] : memref<128x128xf32, #tpu.memory_space<vmem>>, vector<1x128xf32>
    tpu.vector_store %arg8[%c112, %c0_763], %1453 {strides = array<i32>} : memref<128x128xf32, #tpu.memory_space<vmem>>, vector<1x128xf32>,
    %c113 = arith.constant 113 : index
    %c0_764 = arith.constant 0 : index
    %1485 = vector.load %arg8[%c113, %c0_764] : memref<128x128xf32, #tpu.memory_space<vmem>>, vector<1x128xf32>
    tpu.vector_store %arg8[%c113, %c0_764], %1455 {strides = array<i32>} : memref<128x128xf32, #tpu.memory_space<vmem>>, vector<1x128xf32>,
    %c114 = arith.constant 114 : index
    %c0_765 = arith.constant 0 : index
    %1486 = vector.load %arg8[%c114, %c0_765] : memref<128x128xf32, #tpu.memory_space<vmem>>, vector<1x128xf32>
    tpu.vector_store %arg8[%c114, %c0_765], %1457 {strides = array<i32>} : memref<128x128xf32, #tpu.memory_space<vmem>>, vector<1x128xf32>,
    %c115 = arith.constant 115 : index
    %c0_766 = arith.constant 0 : index
    %1487 = vector.load %arg8[%c115, %c0_766] : memref<128x128xf32, #tpu.memory_space<vmem>>, vector<1x128xf32>
    tpu.vector_store %arg8[%c115, %c0_766], %1459 {strides = array<i32>} : memref<128x128xf32, #tpu.memory_space<vmem>>, vector<1x128xf32>,
    %c116 = arith.constant 116 : index
    %c0_767 = arith.constant 0 : index
    %1488 = vector.load %arg8[%c116, %c0_767] : memref<128x128xf32, #tpu.memory_space<vmem>>, vector<1x128xf32>
    tpu.vector_store %arg8[%c116, %c0_767], %1461 {strides = array<i32>} : memref<128x128xf32, #tpu.memory_space<vmem>>, vector<1x128xf32>,
    %c117 = arith.constant 117 : index
    %c0_768 = arith.constant 0 : index
    %1489 = vector.load %arg8[%c117, %c0_768] : memref<128x128xf32, #tpu.memory_space<vmem>>, vector<1x128xf32>
    tpu.vector_store %arg8[%c117, %c0_768], %1463 {strides = array<i32>} : memref<128x128xf32, #tpu.memory_space<vmem>>, vector<1x128xf32>,
    %c118 = arith.constant 118 : index
    %c0_769 = arith.constant 0 : index
    %1490 = vector.load %arg8[%c118, %c0_769] : memref<128x128xf32, #tpu.memory_space<vmem>>, vector<1x128xf32>
    tpu.vector_store %arg8[%c118, %c0_769], %1465 {strides = array<i32>} : memref<128x128xf32, #tpu.memory_space<vmem>>, vector<1x128xf32>,
    %c119 = arith.constant 119 : index
    %c0_770 = arith.constant 0 : index
    %1491 = vector.load %arg8[%c119, %c0_770] : memref<128x128xf32, #tpu.memory_space<vmem>>, vector<1x128xf32>
    tpu.vector_store %arg8[%c119, %c0_770], %1467 {strides = array<i32>} : memref<128x128xf32, #tpu.memory_space<vmem>>, vector<1x128xf32>,
    %c120 = arith.constant 120 : index
    %c0_771 = arith.constant 0 : index
    %1492 = vector.load %arg8[%c120, %c0_771] : memref<128x128xf32, #tpu.memory_space<vmem>>, vector<1x128xf32>
    tpu.vector_store %arg8[%c120, %c0_771], %1469 {strides = array<i32>} : memref<128x128xf32, #tpu.memory_space<vmem>>, vector<1x128xf32>,
    %c121 = arith.constant 121 : index
    %c0_772 = arith.constant 0 : index
    %1493 = vector.load %arg8[%c121, %c0_772] : memref<128x128xf32, #tpu.memory_space<vmem>>, vector<1x128xf32>
    tpu.vector_store %arg8[%c121, %c0_772], %1471 {strides = array<i32>} : memref<128x128xf32, #tpu.memory_space<vmem>>, vector<1x128xf32>,
    %c122 = arith.constant 122 : index
    %c0_773 = arith.constant 0 : index
    %1494 = vector.load %arg8[%c122, %c0_773] : memref<128x128xf32, #tpu.memory_space<vmem>>, vector<1x128xf32>
    tpu.vector_store %arg8[%c122, %c0_773], %1473 {strides = array<i32>} : memref<128x128xf32, #tpu.memory_space<vmem>>, vector<1x128xf32>,
    %c123 = arith.constant 123 : index
    %c0_774 = arith.constant 0 : index
    %1495 = vector.load %arg8[%c123, %c0_774] : memref<128x128xf32, #tpu.memory_space<vmem>>, vector<1x128xf32>
    tpu.vector_store %arg8[%c123, %c0_774], %1475 {strides = array<i32>} : memref<128x128xf32, #tpu.memory_space<vmem>>, vector<1x128xf32>,
    %c124 = arith.constant 124 : index
    %c0_775 = arith.constant 0 : index
    %1496 = vector.load %arg8[%c124, %c0_775] : memref<128x128xf32, #tpu.memory_space<vmem>>, vector<1x128xf32>
    tpu.vector_store %arg8[%c124, %c0_775], %1477 {strides = array<i32>} : memref<128x128xf32, #tpu.memory_space<vmem>>, vector<1x128xf32>,
    %c125 = arith.constant 125 : index
    %c0_776 = arith.constant 0 : index
    %1497 = vector.load %arg8[%c125, %c0_776] : memref<128x128xf32, #tpu.memory_space<vmem>>, vector<1x128xf32>
    tpu.vector_store %arg8[%c125, %c0_776], %1479 {strides = array<i32>} : memref<128x128xf32, #tpu.memory_space<vmem>>, vector<1x128xf32>,
    %c126 = arith.constant 126 : index
    %c0_777 = arith.constant 0 : index
    %1498 = vector.load %arg8[%c126, %c0_777] : memref<128x128xf32, #tpu.memory_space<vmem>>, vector<1x128xf32>
    tpu.vector_store %arg8[%c126, %c0_777], %1481 {strides = array<i32>} : memref<128x128xf32, #tpu.memory_space<vmem>>, vector<1x128xf32>,
    %c127 = arith.constant 127 : index
    %c0_778 = arith.constant 0 : index
    %1499 = vector.load %arg8[%c127, %c0_778] : memref<128x128xf32, #tpu.memory_space<vmem>>, vector<1x128xf32>
    tpu.vector_store %arg8[%c127, %c0_778], %1483 {strides = array<i32>} : memref<128x128xf32, #tpu.memory_space<vmem>>, vector<1x128xf32>,
    %c56_779 = arith.constant 56 : index
    %c0_780 = arith.constant 0 : index
    %1500 = vector.load %arg7[%c56_779, %c0_780] : memref<64x128xf32, #tpu.memory_space<vmem>>, vector<8x128xf32>
    %c112_781 = arith.constant 112 : index
    %c0_782 = arith.constant 0 : index
    %1501 = vector.load %arg8[%c112_781, %c0_782] : memref<128x128xf32, #tpu.memory_space<vmem>>, vector<16x128xf32>
    %cst_783 = arith.constant dense<0.000000e+00> : vector<8x16xf32>
    %1502 = tpu.matmul %1500, %1501, %cst_783 {dimension_numbers = #tpu.dot_dimension_numbers<[1], [1], [0], [0], [0, 0, 1, 0], [], []>} : vector<8x128xf32>, vector<16x128xf32>, vector<8x16xf32> -> vector<8x16xf32>
    %1503 = tpu.concatenate %1502, %1502, %1502, %1502, %1502, %1502, %1502, %1502 in 1 : vector<8x16xf32>, vector<8x16xf32>, vector<8x16xf32>, vector<8x16xf32>, vector<8x16xf32>, vector<8x16xf32>, vector<8x16xf32>, vector<8x16xf32> -> vector<8x128xf32>
    %1504 = arith.mulf %1503, %0 : vector<8x128xf32>
    %cst_784 = arith.constant dense<0.000000e+00> : vector<128xf32>
    %1505 = vector.multi_reduction <add>, %1504, %cst_784 [0] : vector<8x128xf32> to vector<128xf32>
    %1506 = vector.shape_cast %1505 : vector<128xf32> to vector<1x128xf32>
    %1507 = vector.broadcast %1506 : vector<1x128xf32> to vector<8x128xf32>
    %1508 = arith.mulf %1503, %1507 : vector<8x128xf32>
    %cst_785 = arith.constant dense<0.000000e+00> : vector<8x32xf32>
    %1509 = tpu.matmul %1508, %1, %cst_785 {dimension_numbers = #tpu.dot_dimension_numbers<[1], [0], [0], [1], [0, 0, 1, 1], [], []>} : vector<8x128xf32>, vector<128x32xf32>, vector<8x32xf32> -> vector<8x32xf32>
    %1510 = tpu.concatenate %1509, %1509, %1509, %1509, %1509, %1509, %1509, %1509 in 1 : vector<8x32xf32>, vector<8x32xf32>, vector<8x32xf32>, vector<8x32xf32>, vector<8x32xf32>, vector<8x32xf32>, vector<8x32xf32>, vector<8x32xf32> -> vector<8x256xf32>
    %1511 = arith.mulf %1510, %2 : vector<8x256xf32>
    %cst_786 = arith.constant dense<0.000000e+00> : vector<256xf32>
    %1512 = vector.multi_reduction <add>, %1511, %cst_786 [0] : vector<8x256xf32> to vector<256xf32>
    %1513 = vector.shape_cast %1512 : vector<256xf32> to vector<1x256xf32>
    %c7_787 = arith.constant 7 : index
    %c0_788 = arith.constant 0 : index
    %1514 = vector.load %arg6[%c7_787, %c0_788] : memref<8x256xf32, #tpu.memory_space<vmem>>, vector<1x256xf32>
    tpu.vector_store %arg6[%c7_787, %c0_788], %1513 {strides = array<i32>} : memref<8x256xf32, #tpu.memory_space<vmem>>, vector<1x256xf32>,
    return
  }
  func.func @transform_0(%arg0: i32) -> (i32, i32) {
    %c0_i32 = arith.constant 0 : i32
    %c0_i32_0 = arith.constant 0 : i32
    return %arg0, %c0_i32 : i32, i32
  }
  func.func @transform_1(%arg0: i32) -> (i32, i32) {
    %c0_i32 = arith.constant 0 : i32
    %c0_i32_0 = arith.constant 0 : i32
    return %arg0, %c0_i32 : i32, i32
  }
  func.func @transform_2(%arg0: i32) -> (i32, i32) {
    %c0_i32 = arith.constant 0 : i32
    %c0_i32_0 = arith.constant 0 : i32
    %c0_i32_1 = arith.constant 0 : i32
    return %c0_i32, %c0_i32_0 : i32, i32
  }
  func.func @transform_3(%arg0: i32) -> (i32, i32) {
    %c0_i32 = arith.constant 0 : i32
    %c0_i32_0 = arith.constant 0 : i32
    %c0_i32_1 = arith.constant 0 : i32
    return %c0_i32, %c0_i32_0 : i32, i32
  }
  func.func @transform_4(%arg0: i32) -> (i32, i32) {
    %c0_i32 = arith.constant 0 : i32
    %c0_i32_0 = arith.constant 0 : i32
    %c0_i32_1 = arith.constant 0 : i32
    return %c0_i32, %c0_i32_0 : i32, i32
  }
  func.func @transform_5(%arg0: i32) -> (i32, i32) {
    %c0_i32 = arith.constant 0 : i32
    %c0_i32_0 = arith.constant 0 : i32
    return %arg0, %c0_i32 : i32, i32
  }
}

</mosaic_0001>

<bundles_post_ra>
// kernel: tpu_custom_call.1
= control target key start
LH: loop header
LB: loop body
LE: loop exit
PB: predicated region body
PF: predicated region fallthrough
CT: control target
= control target key end

     0   :  { %v2111_v6 = vmov 0.2820948   ;;  %s3427_s0 = inlined_call_operand.vmem [shape: f32[24,128], index: 0, kind: input, shape index: {}]   ;;  %s3428_s1 = inlined_call_operand.vmem [shape: f32[16,128], index: 1, kind: input, shape index: {}]   ;;  %s3429_s2 = inlined_call_operand.vmem [shape: f32[8,128], index: 2, kind: input, shape index: {}]   ;;  %s3430_s3 = inlined_call_operand.vmem [shape: f32[128,32], index: 3, kind: input, shape index: {}]   ;;  %s3431_s4 = inlined_call_operand.vmem [shape: f32[8,256], index: 4, kind: input, shape index: {}]   ;;  %s3432_s5 = inlined_call_operand.hbm [shape: f32[8,256], index: 5, kind: output, shape index: {}]  }
   0x1   :  { %v40_v0 = vld [vmem:[%s3427_s0] sm:$0x1]  ;;  %v42_v1 = vld [vmem:[%s3427_s0 + $0x1] sm:$0x1]  ;;  %v44_v2 = vld [vmem:[%s3427_s0 + $0x2] sm:$0x1] }
   0x2   :  { %v2159_v3 = vmul.f32 0.5, %v40_v0  ;;  %v2161_v4 = vmul.f32 0.5, %v42_v1  ;;  %v45_v5 = vmul.f32 0.5, %v44_v2  ;;  %154 = vst [vmem:[#allocation3] sm:$0x1] %v2111_v6 }
   0x3   :  { %v296_v7 = vld [vmem:[%s3427_s0 + $0x3] sm:$0x1]  ;;  %v298_v8 = vld [vmem:[%s3427_s0 + $0x4] sm:$0x1]  ;;  %410 = vst [vmem:[#allocation3 + $0x10] sm:$0x1] %v2111_v6 }
   0x4   :  { %v46_v9 = vmul.f32 %v2159_v3, %v2159_v3  ;;  %v47_v10 = vmul.f32 %v2161_v4, %v2161_v4  ;;  %v49_v11 = vmul.f32 %v45_v5, %v45_v5  ;;  %v94_v12 = vmul.f32 0.0, %v2161_v4  ;;  %v300_v13 = vld [vmem:[%s3427_s0 + $0x5] sm:$0x1]  ;;  %655 = vst [vmem:[#allocation3 + $0x20] sm:$0x1] %v2111_v6 }
   0x5   :  { %v97_v14 = vmul.f32 0.0, %v2159_v3  ;;  %v108_v15 = vmul.f32 1.5, %v45_v5  ;;  %v112_v16 = vmul.f32 1.7320508, %v45_v5  ;;  %v123_v17 = vmul.f32 1.6666666, %v45_v5 }
   0x6   :  { %v48_v18 = vadd.f32 %v47_v10, %v46_v9  ;;  %v95_v19 = vsub.f32 %v2159_v3, %v94_v12  ;;  %v128_v20 = vmul.f32 1.767767, %v45_v5  ;;  %v136_v21 = vmul.f32 2.236068, %v45_v5  ;;  %900 = vst [vmem:[#allocation3 + $0x30] sm:$0x1] %v2111_v6 }
   0x7   :  { %v98_v22 = vadd.f32 %v97_v14, %v2161_v4  ;;  %v109_v23 = vmul.f32 %v108_v15, %v45_v5  ;;  %v142_v24 = vmul.f32 0.48860252, %v45_v5  ;;  %v2180_v25 = vmul.f32 0.5, %v296_v7  ;;  %1145 = vst [vmem:[#allocation3 + $0x40] sm:$0x1] %v2111_v6 }
   0x8   :  { %v2182_v26 = vadd.f32 %v49_v11, %v48_v18  ;;  %v96_v27 = vmul.f32 -0.70710677, %v95_v19  ;;  %v2184_v28 = vmul.f32 0.5, %v298_v8  ;;  %v2186_v29 = vmul.f32 0.5, %v300_v13 }
   0x9   :  { %v99_v30 = vmul.f32 -0.70710677, %v98_v22  ;;  %158 = vst [vmem:[#allocation3 + $0x4] sm:$0x1] %v142_v24 }
   0xa   :  { %10 = vsyncpa [#allocation5], 0  ;;  %v100_v31 = vmul.f32 %v96_v27, %v2159_v3  ;;  %v105_v32 = vmul.f32 %v96_v27, %v2161_v4  ;;  %v110_v33 = vmul.f32 0.5, %v2182_v26  ;;  %v113_v34 = vmul.f32 %v112_v16, %v96_v27  ;;  %1390 = vst [vmem:[#allocation3 + $0x50] sm:$0x1] %v2111_v6  ;;  %s2112_s13 = smov 80  }
   0xb   :  { %v101_v35 = vmul.f32 %v99_v30, %v2161_v4  ;;  %v104_v36 = vmul.f32 %v99_v30, %v2159_v3  ;;  %v125_v37 = vmul.f32 0.6666667, %v2182_v26  ;;  %v131_v38 = vmul.f32 0.61237246, %v2182_v26  ;;  %1635 = vst [vmem:[#allocation3 + $0x60] sm:$0x1] %v2111_v6 }
   0xc   :  { %v111_v39 = vsub.f32 %v109_v23, %v110_v33  ;;  %v129_v40 = vmul.f32 %v128_v20, %v113_v34  ;;  %v147_v41 = vmul.f32 0.63078314, %v113_v34  ;;  %v114_v42 = vmul.f32 %v112_v16, %v99_v30  ;;  %1880 = vst [vmem:[#allocation3 + $0x70] sm:$0x1] %v2111_v6  ;;  %s2113_s14 = smov 48   ;;  %s2114_s15 = smov 16  }
   0xd   :  { %v102_v43 = vsub.f32 %v100_v31, %v101_v35  ;;  %v106_v44 = vadd.f32 %v105_v32, %v104_v36  ;;  %v126_v45 = vmul.f32 %v125_v37, %v45_v5  ;;  %v132_v46 = vmul.f32 %v131_v38, %v96_v27  ;;  %s2115_s16 = smov 96   ;;  %s2116_s17 = smov 64  }
   0xe   :  { %v124_v47 = vmul.f32 %v123_v17, %v111_v39  ;;  %v146_v48 = vmul.f32 0.63078314, %v111_v39  ;;  %163 = vst [vmem:[#allocation3 + $0x9] sm:$0x1] %v147_v41  ;;  %v130_v49 = vmul.f32 %v128_v20, %v114_v42  ;;  %v134_v50 = vmul.f32 %v131_v38, %v99_v30  ;;  %s2117_s18 = smov 32   ;;  %s2118_s19 = smov 112  }
   0xf   :  { %v103_v51 = vmul.f32 -0.8660254, %v102_v43  ;;  %v107_v52 = vmul.f32 -0.8660254, %v106_v44  ;;  %v133_v53 = vsub.f32 %v129_v40, %v132_v46  ;;  %v139_v54 = vmul.f32 0.48860252, %v99_v30 }
  0x10   :  { %v127_v55 = vsub.f32 %v124_v47, %v126_v45  ;;  %162 = vst [vmem:[#allocation3 + $0x8] sm:$0x1] %v146_v48  ;;  %v135_v56 = vsub.f32 %v130_v49, %v134_v50  ;;  %v140_v57 = vmul.f32 0.63078314, %v114_v42  ;;  %v302_v58 = vmul.f32 %v2180_v25, %v2180_v25 }
  0x11   :  { %v115_v59 = vmul.f32 %v103_v51, %v2159_v3  ;;  %v116_v60 = vmul.f32 %v107_v52, %v2161_v4  ;;  %v119_v61 = vmul.f32 %v107_v52, %v2159_v3  ;;  %v120_v62 = vmul.f32 %v103_v51, %v2161_v4  ;;  %155 = vst [vmem:[#allocation3 + $0x1] sm:$0x1] %v139_v54 }
  0x12   :  { %v137_v63 = vmul.f32 %v136_v21, %v103_v51  ;;  %v148_v0 = vmul.f32 0.63078314, %v103_v51  ;;  %v150_v1 = vmul.f32 0.7463527, %v127_v55  ;;  %v151_v2 = vmul.f32 0.7463527, %v133_v53 }
  0x13   :  { %v117_v5 = vsub.f32 %v115_v59, %v116_v60  ;;  %v121_v6 = vadd.f32 %v120_v62, %v119_v61  ;;  %v138_v7 = vmul.f32 %v136_v21, %v107_v52  ;;  %156 = vst [vmem:[#allocation3 + $0x2] sm:$0x1] %v140_v57  ;;  %v141_v9 = vmul.f32 0.7463527, %v135_v56 }
  0x14   :  { %v152_v8 = vmul.f32 0.7463527, %v137_v63  ;;  %164 = vst [vmem:[#allocation3 + $0xa] sm:$0x1] %v148_v0  ;;  %2036 = vrsqrt.f32 %v2182_v26  ;;  %v303_v10 = vmul.f32 %v2184_v28, %v2184_v28  ;;  %v305_v4 = vmul.f32 %v2186_v29, %v2186_v29 }
  0x15   :  { %v118_v3 = vmul.f32 -0.91287094, %v117_v5  ;;  %v122_v11 = vmul.f32 -0.91287094, %v121_v6  ;;  %166 = vst [vmem:[#allocation3 + $0xc] sm:$0x1] %v150_v1 }
  0x16   :  { %167 = vst [vmem:[#allocation3 + $0xd] sm:$0x1] %v151_v2  ;;  %v143_v12 = vmul.f32 0.48860252, %v96_v27  ;;  %v144_v13 = vmul.f32 0.63078314, %v107_v52  ;;  %v304_v14 = vadd.f32 %v303_v10, %v302_v58 }
  0x17   :  { %v149_v15 = vmul.f32 0.7463527, %v122_v11  ;;  %v153_v16 = vmul.f32 0.7463527, %v118_v3  ;;  %168 = vst [vmem:[#allocation3 + $0xe] sm:$0x1] %v152_v8 }
  0x18   :  { %v145_v17 = vmul.f32 0.7463527, %v138_v7  ;;  %157 = vst [vmem:[#allocation3 + $0x3] sm:$0x1] %v141_v9  ;;  %v69_v18 = vmul.f32 -0.5, %v2182_v26  ;;  %v2207_v19 = vadd.f32 %v305_v4, %v304_v14  ;;  %v350_v20 = vmul.f32 0.0, %v2184_v28 }
  0x19   :  { %165 = vst [vmem:[#allocation3 + $0xb] sm:$0x1] %v149_v15  ;;  %v353_v21 = vmul.f32 0.0, %v2180_v25  ;;  %v364_v22 = vmul.f32 1.5, %v2186_v29  ;;  %v61_v24 = vand.u32 2147483648, %v2182_v26  ;;  %vm58_vm0 = vcmp.eq.f32.partialorder %v2182_v26, inf }
  0x1a   :  { %v2037_v23 = vpop.eup %2036  ;;  %169 = vst [vmem:[#allocation3 + $0xf] sm:$0x1] %v153_v16  ;;  %v2213_v27 = vmul.f32 1.442695, %v69_v18  ;;  %v366_v30 = vmul.f32 0.5, %v2207_v19  ;;  %v351_v32 = vsub.f32 %v2180_v25, %v350_v20  ;;  %vm60_vm1 = vcmp.eq.f32.partialorder %v2182_v26, 0.0 }
  0x1b   :  { %159 = vst [vmem:[#allocation3 + $0x5] sm:$0x1] %v143_v12  ;;  %v52_v31 = vmul.f32 %v2037_v23, %v2182_v26  ;;  %v354_v33 = vadd.f32 %v353_v21, %v2184_v28  ;;  %v365_v34 = vmul.f32 %v364_v22, %v2186_v29  ;;  %v368_v35 = vmul.f32 1.7320508, %v2186_v29 }
  0x1c   :  { %160 = vst [vmem:[#allocation3 + $0x6] sm:$0x1] %v144_v13  ;;  %v379_v36 = vmul.f32 1.6666666, %v2186_v29  ;;  %v2224_v38 = vmul.f32 -0.70710677, %v351_v32  ;;  %2038 = vrsqrt.f32 %v2207_v19 }
  0x1d   :  { %161 = vst [vmem:[#allocation3 + $0x7] sm:$0x1] %v145_v17  ;;  %v53_v37 = vmul.f32 %v2037_v23, %v52_v31  ;;  %v2226_v39 = vmul.f32 -0.70710677, %v354_v33  ;;  %v367_v40 = vsub.f32 %v365_v34, %v366_v30  ;;  %v381_v41 = vmul.f32 0.6666667, %v2207_v19 }
  0x1e   :  { %v384_v42 = vmul.f32 1.767767, %v2186_v29  ;;  %v387_v43 = vmul.f32 0.61237246, %v2207_v19  ;;  %v356_v45 = vmul.f32 %v2224_v38, %v2180_v25  ;;  %v361_v48 = vmul.f32 %v2224_v38, %v2184_v28 }
  0x1f   :  { %v54_v44 = vmul.f32 0.5, %v53_v37  ;;  %v357_v46 = vmul.f32 %v2226_v39, %v2184_v28  ;;  %v360_v47 = vmul.f32 %v2226_v39, %v2180_v25  ;;  %v369_v49 = vmul.f32 %v368_v35, %v2224_v38 }
  0x20   :  { %v380_v50 = vmul.f32 %v379_v36, %v367_v40  ;;  %v382_v51 = vmul.f32 %v381_v41, %v2186_v29  ;;  %v388_v55 = vmul.f32 %v387_v43, %v2224_v38  ;;  %v2244_v56 = vmul.f32 2.236068, %v2186_v29 }
  0x21   :  { %v172_v52 = vld [vmem:[#allocation3 + $0x8] sm:$0xff]  ;;  %v55_v53 = vsub.f32 1.5, %v54_v44  ;;  %v358_v54 = vsub.f32 %v356_v45, %v357_v46  ;;  %v362_v57 = vadd.f32 %v361_v48, %v360_v47  ;;  %v385_v59 = vmul.f32 %v384_v42, %v369_v49 }
  0x22   :  { %187 = vmatpush.xpose.msra.mxu2 %v172_v52  ;;  %v383_v58 = vsub.f32 %v380_v50, %v382_v51  ;;  %v402_v60 = vmul.f32 0.63078314, %v367_v40  ;;  %v403_v63 = vmul.f32 0.63078314, %v369_v49  ;;  %v370_v0 = vmul.f32 %v368_v35, %v2226_v39  ;;  %v2039_v1 = vpop.eup %2038 }
  0x23   :  { %v56_v61 = vmul.f32 %v2037_v23, %v55_v53  ;;  %v359_v62 = vmul.f32 -0.8660254, %v358_v54  ;;  %v2247_v5 = vmul.f32 -0.8660254, %v362_v57  ;;  %v389_v6 = vsub.f32 %v385_v59, %v388_v55 }
  0x24   :  { %v171_v2 = vld [vmem:[#allocation3] sm:$0xff]  ;;  %v406_v7 = vmul.f32 0.7463527, %v383_v58  ;;  %v390_v8 = vmul.f32 %v387_v43, %v2226_v39  ;;  %418 = vst [vmem:[#allocation3 + $0x18] sm:$0x1] %v402_v60  ;;  %v386_v17 = vmul.f32 %v384_v42, %v370_v0  ;;  %2040 = vpow2.f32 %v2213_v27 }
  0x25   :  { %v57_v9 = vmul.f32 %v56_v61, %v2182_v26  ;;  %v371_v10 = vmul.f32 %v359_v62, %v2180_v25  ;;  %v376_v3 = vmul.f32 %v359_v62, %v2184_v28  ;;  %v393_v11 = vmul.f32 %v2244_v56, %v359_v62  ;;  %419 = vst [vmem:[#allocation3 + $0x19] sm:$0x1] %v403_v63  ;;  %v73_v42 = vld [vmem:[%s3428_s1] sm:$0x1] }
  0x26   :  { %188 = vmatpush.xpose.msra.mxu2 %v171_v2  ;;  %v372_v4 = vmul.f32 %v2247_v5, %v2184_v28  ;;  %v375_v12 = vmul.f32 %v2247_v5, %v2180_v25  ;;  %v404_v13 = vmul.f32 0.63078314, %v359_v62  ;;  %v407_v14 = vmul.f32 0.7463527, %v389_v6  ;;  %422 = vst [vmem:[#allocation3 + $0x1c] sm:$0x1] %v406_v7 }
  0x27   :  { %v59_v15 = vsel %vm58_vm0, %v2182_v26, %v57_v9  ;;  %v408_v16 = vmul.f32 0.7463527, %v393_v11  ;;  %v308_v25 = vmul.f32 %v2039_v1, %v2207_v19  ;;  %v391_v30 = vsub.f32 %v386_v17, %v390_v8  ;;  %v329_v11 = vld [vmem:[%s3428_s1 + $0x2] sm:$0x1] }
  0x28   :  { %v62_v18 = vsel %vm60_vm1, %v61_v24, %v59_v15  ;;  %v373_v20 = vsub.f32 %v371_v10, %v372_v4  ;;  %v377_v28 = vadd.f32 %v376_v3, %v375_v12  ;;  %420 = vst [vmem:[#allocation3 + $0x1a] sm:$0x1] %v404_v13  ;;  %v395_v35 = vmul.f32 0.48860252, %v2226_v39  ;;  %v74_v39 = vld [vmem:[%s3428_s1 + $0x1] sm:$0x1] }
  0x29   :  { %v63_v21 = vmul.f32 2.0, %v62_v18  ;;  %423 = vst [vmem:[#allocation3 + $0x1d] sm:$0x1] %v407_v14  ;;  %v309_v32 = vmul.f32 %v2039_v1, %v308_v25  ;;  %v396_v36 = vmul.f32 0.63078314, %v370_v0  ;;  %v325_v45 = vmul.f32 -0.5, %v2207_v19 }
  0x2a   :  { %v374_v22 = vmul.f32 -0.91287094, %v373_v20  ;;  %v378_v23 = vmul.f32 -0.91287094, %v377_v28  ;;  %424 = vst [vmem:[#allocation3 + $0x1e] sm:$0x1] %v408_v16  ;;  %v2041_v27 = vpop.eup %2040  ;;  %v394_v55 = vmul.f32 %v2244_v56, %v2247_v5 }
  0x2b   :  { %v65_v31 = vmul.f32 0.16666667, %v63_v21  ;;  %v310_v37 = vmul.f32 0.5, %v309_v32  ;;  %vm64_vm2 = vcmp.lt.f32.partialorder %v63_v21, 6.0  ;;  %v397_v40 = vmul.f32 0.7463527, %v391_v30 }
  0x2c   :  { %v405_v33 = vmul.f32 0.7463527, %v378_v23  ;;  %v409_v34 = vmul.f32 0.7463527, %v374_v22  ;;  %v398_v43 = vmul.f32 0.48860252, %v2186_v29 }
  0x2d   :  { %v66_v24 = vsub.f32 1.0, %v65_v31  ;;  %v311_v44 = vsub.f32 1.5, %v310_v37  ;;  %v399_v46 = vmul.f32 0.48860252, %v2224_v38  ;;  %411 = vst [vmem:[#allocation3 + $0x11] sm:$0x1] %v395_v35 }
  0x2e   :  { %421 = vst [vmem:[#allocation3 + $0x1b] sm:$0x1] %v405_v33  ;;  %v400_v48 = vmul.f32 0.63078314, %v2247_v5  ;;  %vm314_vm3 = vcmp.eq.f32.partialorder %v2207_v19, inf  ;;  %v317_v29 = vand.u32 2147483648, %v2207_v19 }
  0x2f   :  { %v67_v41 = vmul.f32 %v66_v24, %v66_v24  ;;  %425 = vst [vmem:[#allocation3 + $0x1f] sm:$0x1] %v409_v34  ;;  %v312_v49 = vmul.f32 %v2039_v1, %v311_v44  ;;  %vm316_vm4 = vcmp.eq.f32.partialorder %v2207_v19, 0.0  ;;  %v326_v52 = vmul.f32 1.442695, %v325_v45  ;;  %v2350_v44 = vld [vmem:[%s3430_s3 + $0x78] sm:$0xff] }
  0x30   :  { %412 = vst [vmem:[#allocation3 + $0x12] sm:$0x1] %v396_v36  ;;  %v401_v7 = vmul.f32 0.7463527, %v394_v55  ;;  %v1033_v33 = vld [vmem:[%s3427_s0 + $0xd] sm:$0x1]  ;;  %486 = vmatpush.msra.mxu3 %v2350_v44  ;;  %237 = vmatpush.msra.mxu1 %v2350_v44 }
  0x31   :  { %v68_v47 = vsel %vm64_vm2, %v67_v41, 0.0  ;;  %413 = vst [vmem:[#allocation3 + $0x13] sm:$0x1] %v397_v40  ;;  %v313_v51 = vmul.f32 %v312_v49, %v2207_v19  ;;  %2042 = vpow2.f32 %v326_v52  ;;  %v2331_v35 = vmul.f32 0.5, %v1033_v33  ;;  %v1035_v24 = vld [vmem:[%s3427_s0 + $0xe] sm:$0x1] }
  0x32   :  { %v72_v50 = vmul.f32 %v2041_v27, %v68_v47  ;;  %414 = vst [vmem:[#allocation3 + $0x14] sm:$0x1] %v398_v43  ;;  %v2336_v36 = vmul.f32 0.5, %v1035_v24  ;;  %v2355_v45 = vld [vmem:[%s3430_s3 + $0x70] sm:$0xff]  ;;  %vm217_vm9 = vcmask 261120   ;;  %vm215_vm10 = vcmask 130048  }
  0x33   :  { %415 = vst [vmem:[#allocation3 + $0x15] sm:$0x1] %v399_v46  ;;  %v315_v57 = vsel %vm314_vm3, %v2207_v19, %v313_v51  ;;  %v1038_v40 = vmul.f32 %v2331_v35, %v2331_v35  ;;  %v2363_v46 = vld [vmem:[%s3430_s3 + $0x68] sm:$0xff]  ;;  %487 = vmatpush.msra.mxu3 %v2355_v45  ;;  %238 = vmatpush.msra.mxu1 %v2355_v45  ;;  %v1085_v49 = vmul.f32 0.0, %v2331_v35  ;;  %v2393_v55 = vld [vmem:[%s3430_s3 + $0x50] sm:$0xff]  ;;  %vm219_vm11 = vcmask 392192  }
  0x34   :  { %v75_v53 = vmul.f32 %v73_v42, %v72_v50  ;;  %v77_v38 = vmul.f32 %v74_v39, %v72_v50  ;;  %v79_v54 = vmul.f32 %v72_v50, %v2182_v26  ;;  %416 = vst [vmem:[#allocation3 + $0x16] sm:$0x1] %v400_v48  ;;  %v318_v62 = vsel %vm316_vm4, %v317_v29, %v315_v57  ;;  %v2376_v50 = vld [vmem:[%s3430_s3 + $0x60] sm:$0xff] }
  0x35   :  { %v319_v63 = vmul.f32 2.0, %v318_v62  ;;  %417 = vst [vmem:[#allocation3 + $0x17] sm:$0x1] %v401_v7  ;;  %v1040_v41 = vmul.f32 %v2336_v36, %v2336_v36  ;;  %488 = vmatpush.msra.mxu3 %v2363_v46  ;;  %239 = vmatpush.msra.mxu1 %v2363_v46  ;;  %v1127_v33 = vmul.f32 2.236068, %v2336_v36  ;;  %vm221_vm12 = vcmask 523264  }
  0x36   :  { %76 = vst [vmem:[#allocation2] sm:$0x1] %v75_v53  ;;  %v80_v58 = vmul.f32 %v79_v54, %v73_v42  ;;  %v82_v59 = vmul.f32 %v79_v54, %v74_v39  ;;  %v84_v60 = vmul.f32 %v79_v54, %v2182_v26  ;;  %v428_v61 = vld [vmem:[#allocation3 + $0x18] sm:$0xff]  ;;  %vm223_vm13 = vcmask 654336  }
  0x37   :  { %78 = vst [vmem:[#allocation2 + $0x4] sm:$0x1] %v77_v38  ;;  %443 = vmatpush.xpose.msrb.mxu2 %v428_v61  ;;  %v321_v56 = vmul.f32 0.16666667, %v319_v63  ;;  %vm320_vm5 = vcmp.lt.f32.partialorder %v319_v63, 6.0  ;;  %v2043_v9 = vpop.eup %2042  ;;  %489 = vmatpush.msra.mxu3 %v2376_v50  ;;  %v2385_v53 = vld [vmem:[%s3430_s3 + $0x58] sm:$0xff] }
  0x38   :  { %81 = vst [vmem:[#allocation2 + $0x1] sm:$0x1] %v80_v58  ;;  %v85_v0 = vmul.f32 %v84_v60, %v73_v42  ;;  %v87_v1 = vmul.f32 %v84_v60, %v74_v39  ;;  %v89_v2 = vmul.f32 %v84_v60, %v2182_v26  ;;  %v330_v26 = vld [vmem:[%s3428_s1 + $0x3] sm:$0x1]  ;;  %240 = vmatpush.msra.mxu1 %v2376_v50  ;;  %v2401_v58 = vld [vmem:[%s3430_s3 + $0x48] sm:$0xff]  ;;  %vm225_vm14 = vcmask 785408  }
  0x39   :  { %83 = vst [vmem:[#allocation2 + $0x5] sm:$0x1] %v82_v59  ;;  %v322_v8 = vsub.f32 1.0, %v321_v56  ;;  %490 = vmatpush.msra.mxu3 %v2385_v53  ;;  %vm227_vm15 = vcmask 916480  }
  0x3a   :  { %86 = vst [vmem:[#allocation2 + $0x2] sm:$0x1] %v85_v0  ;;  %v90_v5 = vmul.f32 %v89_v2, %v73_v42  ;;  %v92_v6 = vmul.f32 %v89_v2, %v74_v39  ;;  %241 = vmatpush.msra.mxu1 %v2385_v53  ;;  %v2425_v2 = vld [vmem:[%s3430_s3 + $0x40] sm:$0xff] }
  0x3b   :  { %88 = vst [vmem:[#allocation2 + $0x6] sm:$0x1] %v87_v1  ;;  %v323_v10 = vmul.f32 %v322_v8, %v322_v8  ;;  %491 = vmatpush.msra.mxu3 %v2393_v55  ;;  %v1099_v1 = vmul.f32 1.5, %v2336_v36  ;;  %v1103_v8 = vmul.f32 1.7320508, %v2336_v36 }
  0x3c   :  { %91 = vst [vmem:[#allocation2 + $0x3] sm:$0x1] %v90_v5  ;;  %v427_v20 = vld [vmem:[#allocation3 + $0x10] sm:$0xff]  ;;  %242 = vmatpush.msra.mxu1 %v2393_v55 }
  0x3d   :  { %93 = vst [vmem:[#allocation2 + $0x7] sm:$0x1] %v92_v6  ;;  %v324_v3 = vsel %vm320_vm5, %v323_v10, 0.0  ;;  %444 = vmatpush.xpose.msrb.mxu2 %v427_v20  ;;  %492 = vmatpush.msra.mxu3 %v2401_v58  ;;  %v1100_v6 = vmul.f32 %v1099_v1, %v2336_v36  ;;  %v2438_v10 = vld [vmem:[%s3430_s3 + $0x38] sm:$0xff] }
  0x3e   :  { %v328_v4 = vmul.f32 %v2043_v9, %v324_v3  ;;  %243 = vmatpush.msra.mxu1 %v2401_v58 }
  0x3f   :  { %493 = vmatpush.msra.mxu3 %v2425_v2 }
  0x40   :  { %v331_v12 = vmul.f32 %v329_v11, %v328_v4  ;;  %v333_v13 = vmul.f32 %v330_v26, %v328_v4  ;;  %v335_v14 = vmul.f32 %v328_v4, %v2207_v19  ;;  %244 = vmatpush.msra.mxu1 %v2425_v2 }
  0x41   :  { %494 = vmatpush.msra.mxu3 %v2438_v10 }
  0x42   :  { %332 = vst [vmem:[#allocation2 + $0x8] sm:$0x1] %v331_v12  ;;  %v336_v16 = vmul.f32 %v335_v14, %v329_v11  ;;  %v338_v17 = vmul.f32 %v335_v14, %v330_v26  ;;  %v340_v18 = vmul.f32 %v335_v14, %v2207_v19  ;;  %v1114_v14 = vmul.f32 1.6666666, %v2336_v36  ;;  %245 = vmatpush.msra.mxu1 %v2438_v10 }
  0x43   :  { %334 = vst [vmem:[#allocation2 + $0xc] sm:$0x1] %v333_v13 }
  0x44   :  { %v170_v15 = vld [vmem:[#allocation2] sm:$0xff]  ;;  %337 = vst [vmem:[#allocation2 + $0x9] sm:$0x1] %v336_v16  ;;  %v341_v28 = vmul.f32 %v340_v18, %v329_v11  ;;  %v343_v21 = vmul.f32 %v340_v18, %v330_v26  ;;  %v345_v25 = vmul.f32 %v340_v18, %v2207_v19  ;;  %v1031_v19 = vld [vmem:[%s3427_s0 + $0xc] sm:$0x1]  ;;  %v2455_v16 = vld [vmem:[%s3430_s3 + $0x30] sm:$0xff] }
  0x45   :  { %189 = vmatmul.f32.vlgmr.msra.gmra.mxu2 %v170_v15  ;;  %339 = vst [vmem:[#allocation2 + $0xd] sm:$0x1] %v338_v17  ;;  %v2329_v34 = vmul.f32 0.5, %v1031_v19  ;;  %495 = vmatpush.msra.mxu3 %v2455_v16 }
  0x46   :  { %342 = vst [vmem:[#allocation2 + $0xa] sm:$0x1] %v341_v28  ;;  %v346_v22 = vmul.f32 %v345_v25, %v329_v11  ;;  %v348_v23 = vmul.f32 %v345_v25, %v330_v26  ;;  %731 = vmatpush.msra.mxu2 %v2350_v44  ;;  %246 = vmatpush.msra.mxu1 %v2455_v16 }
  0x47   :  { %344 = vst [vmem:[#allocation2 + $0xe] sm:$0x1] %v343_v21  ;;  %v1037_v37 = vmul.f32 %v2329_v34, %v2329_v34  ;;  %v1088_v29 = vmul.f32 0.0, %v2329_v34  ;;  %v1086_v52 = vsub.f32 %v2329_v34, %v1085_v49 }
  0x48   :  { %347 = vst [vmem:[#allocation2 + $0xb] sm:$0x1] %v346_v22  ;;  %732 = vmatpush.msra.mxu2 %v2355_v45  ;;  %v1119_v22 = vmul.f32 1.767767, %v2336_v36 }
  0x49   :  { %349 = vst [vmem:[#allocation2 + $0xf] sm:$0x1] %v348_v23  ;;  %v1039_v27 = vadd.f32 %v1038_v40, %v1037_v37  ;;  %v1089_v38 = vadd.f32 %v1088_v29, %v2331_v35  ;;  %v2395_v57 = vmul.f32 -0.70710677, %v1086_v52  ;;  %v2482_v40 = vld [vmem:[%s3430_s3 + $0x20] sm:$0xff] }
  0x4a   :  { %733 = vmatpush.msra.mxu2 %v2363_v46 }
  0x4b   :  { %v2344_v42 = vadd.f32 %v1040_v41, %v1039_v27  ;;  %v2403_v59 = vmul.f32 -0.70710677, %v1089_v38  ;;  %v1091_v60 = vmul.f32 %v2395_v57, %v2329_v34  ;;  %v1096_v61 = vmul.f32 %v2395_v57, %v2331_v35 }
  0x4c   :  { %734 = vmatpush.msra.mxu2 %v2376_v50  ;;  %v1104_v13 = vmul.f32 %v1103_v8, %v2395_v57 }
  0x4d   :  { %2044 = vrsqrt.f32 %v2344_v42  ;;  %v1092_v62 = vmul.f32 %v2403_v59, %v2331_v35  ;;  %v1095_v63 = vmul.f32 %v2403_v59, %v2329_v34  ;;  %vm1049_vm6 = vcmp.eq.f32.partialorder %v2344_v42, inf }
  0x4e   :  { %735 = vmatpush.msra.mxu2 %v2385_v53  ;;  %vm1051_vm7 = vcmp.eq.f32.partialorder %v2344_v42, 0.0  ;;  %v1101_v7 = vmul.f32 0.5, %v2344_v42  ;;  %v1052_v9 = vand.u32 2147483648, %v2344_v42  ;;  %v1060_v4 = vmul.f32 -0.5, %v2344_v42 }
  0x4f   :  { %v1093_v56 = vsub.f32 %v1091_v60, %v1092_v62  ;;  %v1097_v5 = vadd.f32 %v1096_v61, %v1095_v63  ;;  %v1116_v15 = vmul.f32 0.6666667, %v2344_v42  ;;  %v1122_v23 = vmul.f32 0.61237246, %v2344_v42  ;;  %v2506_v63 = vld [vmem:[%s3430_s3 + $0x8] sm:$0xff] }
  0x50   :  { %v426_v30 = vld [vmem:[#allocation2 + $0x8] sm:$0xff]  ;;  %736 = vmatpush.msra.mxu2 %v2393_v55  ;;  %v1102_v12 = vsub.f32 %v1100_v6, %v1101_v7  ;;  %v1105_v37 = vmul.f32 %v1103_v8, %v2403_v59  ;;  %v1061_v29 = vmul.f32 1.442695, %v1060_v4  ;;  %v1138_v52 = vmul.f32 0.63078314, %v1104_v13 }
  0x51   :  { %445 = vmatmul.f32.vlgmr.msrb.gmra.mxu2 %v426_v30  ;;  %v1094_v3 = vmul.f32 -0.8660254, %v1093_v56  ;;  %v2440_v11 = vmul.f32 -0.8660254, %v1097_v5  ;;  %v1117_v25 = vmul.f32 %v1116_v15, %v2336_v36  ;;  %v2472_v30 = vld [vmem:[%s3430_s3 + $0x28] sm:$0xff]  ;;  %v1123_v24 = vmul.f32 %v1122_v23, %v2395_v57  ;;  %v2514_v5 = vld [vmem:[%s3430_s3] sm:$0xff] }
  0x52   :  { %737 = vmatpush.msra.mxu2 %v2401_v58  ;;  %v1115_v21 = vmul.f32 %v1114_v14, %v1102_v12  ;;  %496 = vmatpush.msra.mxu3 %v2472_v30  ;;  %v1137_v49 = vmul.f32 0.63078314, %v1102_v12  ;;  %v1125_v60 = vmul.f32 %v1122_v23, %v2403_v59  ;;  %1154 = vst [vmem:[#allocation3 + $0x49] sm:$0x1] %v1138_v52  ;;  %2046 = vpow2.f32 %v1061_v29  ;;  %v543_v29 = vld [vmem:[%s3427_s0 + $0x7] sm:$0x1] }
  0x53   :  { %v2045_v43 = vpop.eup %2044  ;;  %v1106_v17 = vmul.f32 %v1094_v3, %v2329_v34  ;;  %v1107_v18 = vmul.f32 %v2440_v11, %v2331_v35  ;;  %v1110_v20 = vmul.f32 %v2440_v11, %v2329_v34  ;;  %v1111_v28 = vmul.f32 %v1094_v3, %v2331_v35  ;;  %247 = vmatpush.msra.mxu1 %v2472_v30 }
  0x54   :  { %v1043_v39 = vmul.f32 %v2045_v43, %v2344_v42  ;;  %738 = vmatpush.msra.mxu2 %v2425_v2  ;;  %v1120_v35 = vmul.f32 %v1119_v22, %v1104_v13  ;;  %v1118_v41 = vsub.f32 %v1115_v21, %v1117_v25  ;;  %497 = vmatpush.msra.mxu3 %v2482_v40  ;;  %v1139_v38 = vmul.f32 0.63078314, %v1094_v3 }
  0x55   :  { %v1112_v19 = vadd.f32 %v1111_v28, %v1110_v20  ;;  %v1108_v34 = vsub.f32 %v1106_v17, %v1107_v18  ;;  %248 = vmatpush.msra.mxu1 %v2482_v40  ;;  %1153 = vst [vmem:[#allocation3 + $0x48] sm:$0x1] %v1137_v49  ;;  %v1129_v12 = vmul.f32 %v1127_v33, %v2440_v11  ;;  %v1131_v13 = vmul.f32 0.63078314, %v1105_v37 }
  0x56   :  { %v1044_v47 = vmul.f32 %v2045_v43, %v1043_v39  ;;  %739 = vmatpush.msra.mxu2 %v2438_v10  ;;  %v2492_v39 = vld [vmem:[%s3430_s3 + $0x18] sm:$0xff]  ;;  %1155 = vst [vmem:[#allocation3 + $0x4a] sm:$0x1] %v1139_v38  ;;  %v1134_v18 = vmul.f32 0.48860252, %v2395_v57  ;;  %v2554_v38 = vmul.f32 0.5, %v543_v29 }
  0x57   :  { %v1113_v27 = vmul.f32 -0.91287094, %v1112_v19  ;;  %498 = vmatpush.msra.mxu3 %v2492_v39  ;;  %v1109_v61 = vmul.f32 -0.91287094, %v1108_v34  ;;  %249 = vmatpush.msra.mxu1 %v2492_v39  ;;  %v1135_v20 = vmul.f32 0.63078314, %v2440_v11 }
  0x58   :  { %v1045_v48 = vmul.f32 0.5, %v1044_v47  ;;  %740 = vmatpush.msra.mxu2 %v2455_v16  ;;  %v1124_v47 = vsub.f32 %v1120_v35, %v1123_v24  ;;  %v2047_v17 = vpop.eup %2046  ;;  %v1136_v25 = vmul.f32 0.7463527, %v1129_v12  ;;  %1147 = vst [vmem:[#allocation3 + $0x42] sm:$0x1] %v1131_v13 }
  0x59   :  { %v1140_v62 = vmul.f32 0.7463527, %v1113_v27  ;;  %v1144_v8 = vmul.f32 0.7463527, %v1109_v61  ;;  %v1065_v57 = vld [vmem:[%s3428_s1 + $0x9] sm:$0x1] }
  0x5a   :  { %v1046_v51 = vsub.f32 1.5, %v1045_v48  ;;  %741 = vmatpush.msra.mxu2 %v2472_v30  ;;  %v1128_v48 = vmul.f32 %v1127_v33, %v1094_v3  ;;  %v1142_v56 = vmul.f32 0.7463527, %v1124_v47  ;;  %1150 = vst [vmem:[#allocation3 + $0x45] sm:$0x1] %v1134_v18 }
  0x5b   :  { %1156 = vst [vmem:[#allocation3 + $0x4b] sm:$0x1] %v1140_v62 }
  0x5c   :  { %v1047_v54 = vmul.f32 %v2045_v43, %v1046_v51  ;;  %v2497_v51 = vld [vmem:[%s3430_s3 + $0x10] sm:$0xff]  ;;  %742 = vmatpush.msra.mxu2 %v2482_v40  ;;  %v1143_v6 = vmul.f32 0.7463527, %v1128_v48  ;;  %1158 = vst [vmem:[#allocation3 + $0x4d] sm:$0x1] %v1142_v56 }
  0x5d   :  { %499 = vmatpush.msra.mxu3 %v2497_v51  ;;  %250 = vmatpush.msra.mxu1 %v2497_v51  ;;  %1160 = vst [vmem:[#allocation3 + $0x4f] sm:$0x1] %v1144_v8 }
  0x5e   :  { %v1048_v0 = vmul.f32 %v1047_v54, %v2344_v42  ;;  %v1121_v54 = vmul.f32 %v1119_v22, %v1105_v37  ;;  %743 = vmatpush.msra.mxu2 %v2492_v39  ;;  %1159 = vst [vmem:[#allocation3 + $0x4e] sm:$0x1] %v1143_v6  ;;  %v1064_v22 = vld [vmem:[%s3428_s1 + $0x8] sm:$0x1] }
  0x5f   :  { %500 = vmatpush.msra.mxu3 %v2506_v63  ;;  %251 = vmatpush.msra.mxu1 %v2506_v63  ;;  %1151 = vst [vmem:[#allocation3 + $0x46] sm:$0x1] %v1135_v20 }
  0x60   :  { %v1050_v26 = vsel %vm1049_vm6, %v2344_v42, %v1048_v0  ;;  %v1141_v0 = vmul.f32 0.7463527, %v1118_v41  ;;  %v1126_v7 = vsub.f32 %v1121_v54, %v1125_v60  ;;  %744 = vmatpush.msra.mxu2 %v2497_v51  ;;  %1152 = vst [vmem:[#allocation3 + $0x47] sm:$0x1] %v1136_v25  ;;  %v545_v54 = vld [vmem:[%s3427_s0 + $0x8] sm:$0x1] }
  0x61   :  { %v1053_v43 = vsel %vm1051_vm7, %v1052_v9, %v1050_v26  ;;  %v1130_v26 = vmul.f32 0.48860252, %v2403_v59  ;;  %501 = vmatpush.msra.mxu3 %v2514_v5  ;;  %252 = vmatpush.msra.mxu1 %v2514_v5  ;;  %v1133_v59 = vmul.f32 0.48860252, %v2336_v36  ;;  %v2561_v61 = vmul.f32 0.5, %v545_v54 }
  0x62   :  { %v1054_v1 = vmul.f32 2.0, %v1053_v43  ;;  %1157 = vst [vmem:[#allocation3 + $0x4c] sm:$0x1] %v1141_v0  ;;  %745 = vmatpush.msra.mxu2 %v2506_v63  ;;  %v1132_v14 = vmul.f32 0.7463527, %v1126_v7  ;;  %v548_v7 = vmul.f32 %v2554_v38, %v2554_v38 }
  0x63   :  { %1146 = vst [vmem:[#allocation3 + $0x41] sm:$0x1] %v1130_v26  ;;  %v595_v26 = vmul.f32 0.0, %v2554_v38  ;;  %v609_v12 = vmul.f32 1.5, %v2561_v61 }
  0x64   :  { %v1056_v4 = vmul.f32 0.16666667, %v1054_v1  ;;  %746 = vmatpush.msra.mxu2 %v2514_v5  ;;  %vm1055_vm8 = vcmp.lt.f32.partialorder %v1054_v1, 6.0  ;;  %1148 = vst [vmem:[#allocation3 + $0x43] sm:$0x1] %v1132_v14 }
  0x65   :  { %1149 = vst [vmem:[#allocation3 + $0x44] sm:$0x1] %v1133_v59 }
  0x66   :  { %v1057_v15 = vsub.f32 1.0, %v1056_v4  ;;  %1466 = vmatpush.msrb.mxu2 %v2350_v44 }
  0x68   :  { %v1058_v28 = vmul.f32 %v1057_v15, %v1057_v15  ;;  %1467 = vmatpush.msrb.mxu2 %v2355_v45 }
  0x69   :  { %v1163_v41 = vld [vmem:[#allocation3 + $0x48] sm:$0xff] }
  0x6a   :  { %v1059_v36 = vsel %vm1055_vm8, %v1058_v28, 0.0  ;;  %1468 = vmatpush.msrb.mxu2 %v2363_v46  ;;  %1178 = vmatpush.xpose.msrb.mxu3 %v1163_v41 }
  0x6b   :  { %v1063_v11 = vmul.f32 %v2047_v17, %v1059_v36  ;;  %v613_v36 = vmul.f32 1.7320508, %v2561_v61 }
  0x6c   :  { %1469 = vmatpush.msrb.mxu2 %v2376_v50  ;;  %v1162_v18 = vld [vmem:[#allocation3 + $0x40] sm:$0xff] }
  0x6d   :  { %v1066_v34 = vmul.f32 %v1064_v22, %v1063_v11  ;;  %v1068_v35 = vmul.f32 %v1065_v57, %v1063_v11  ;;  %v1070_v24 = vmul.f32 %v1063_v11, %v2344_v42 }
  0x6e   :  { %1470 = vmatpush.msrb.mxu2 %v2385_v53  ;;  %1179 = vmatpush.xpose.msrb.mxu3 %v1162_v18 }
  0x6f   :  { %1067 = vst [vmem:[#allocation2 + $0x20] sm:$0x1] %v1066_v34  ;;  %v1071_v47 = vmul.f32 %v1070_v24, %v1064_v22  ;;  %v1073_v48 = vmul.f32 %v1070_v24, %v1065_v57  ;;  %v1075_v52 = vmul.f32 %v1070_v24, %v2344_v42 }
  0x70   :  { %1069 = vst [vmem:[#allocation2 + $0x24] sm:$0x1] %v1068_v35  ;;  %1471 = vmatpush.msrb.mxu2 %v2393_v55 }
  0x71   :  { %1072 = vst [vmem:[#allocation2 + $0x21] sm:$0x1] %v1071_v47  ;;  %v1076_v1 = vmul.f32 %v1075_v52, %v1064_v22  ;;  %v1078_v56 = vmul.f32 %v1075_v52, %v1065_v57  ;;  %v1080_v6 = vmul.f32 %v1075_v52, %v2344_v42 }
  0x72   :  { %1074 = vst [vmem:[#allocation2 + $0x25] sm:$0x1] %v1073_v48  ;;  %1472 = vmatpush.msrb.mxu2 %v2401_v58 }
  0x73   :  { %1077 = vst [vmem:[#allocation2 + $0x22] sm:$0x1] %v1076_v1  ;;  %v1081_v14 = vmul.f32 %v1080_v6, %v1064_v22  ;;  %v1083_v15 = vmul.f32 %v1080_v6, %v1065_v57  ;;  %v624_v57 = vmul.f32 1.6666666, %v2561_v61 }
  0x74   :  { %1079 = vst [vmem:[#allocation2 + $0x26] sm:$0x1] %v1078_v56  ;;  %1473 = vmatpush.msrb.mxu2 %v2425_v2 }
  0x75   :  { %1082 = vst [vmem:[#allocation2 + $0x23] sm:$0x1] %v1081_v14 }
  0x76   :  { %1084 = vst [vmem:[#allocation2 + $0x27] sm:$0x1] %v1083_v15  ;;  %1474 = vmatpush.msrb.mxu2 %v2438_v10 }
  0x78   :  { %1475 = vmatpush.msrb.mxu2 %v2455_v16 }
  0x7a   :  { %1476 = vmatpush.msrb.mxu2 %v2472_v30 }
  0x7c   :  { %1477 = vmatpush.msrb.mxu2 %v2482_v40 }
  0x7e   :  { %1478 = vmatpush.msrb.mxu2 %v2492_v39 }
  0x80   :  { %1479 = vmatpush.msrb.mxu2 %v2497_v51 }
  0x82   :  { %1480 = vmatpush.msrb.mxu2 %v2506_v63 }
  0x84   :  { %1481 = vmatpush.msrb.mxu2 %v2514_v5 }
  0xc8   :  { %v2297_v31 = vpop.f32.mrf.mxu2 }
  0xd4   :  { %v2299_v32 = vpop.f32.mrf.mxu2 }
  0xd5   :  { %462 = vrot.lane.b32.xlu2 %v2299_v32, %s2112_s13  ;;  %456 = vrot.lane.b32.xlu1 %v2299_v32, %s2113_s14 }
  0xd6   :  { %450 = vrot.lane.b32.xlu0 %v2299_v32, %s2114_s15 }
  0xdd   :  { %465 = vrot.lane.b32.xlu2 %v2299_v32, %s2115_s16  ;;  %459 = vrot.lane.b32.xlu1 %v2299_v32, %s2116_s17 }
  0xde   :  { %453 = vrot.lane.b32.xlu0 %v2299_v32, %s2117_s18 }
  0xe5   :  { %194 = vrot.lane.b32.xlu2 %v2297_v31, %s2114_s15  ;;  %197 = vrot.lane.b32.xlu1 %v2297_v31, %s2117_s18 }
  0xe6   :  { %468 = vrot.lane.b32.xlu0 %v2299_v32, %s2118_s19 }
  0xed   :  { %203 = vrot.lane.b32.xlu2 %v2297_v31, %s2116_s17 }
  0xee   :  { %200 = vrot.lane.b32.xlu0 %v2297_v31, %s2113_s14 }
 0x12f   :  { %v463_v21 = vpop.permute.xlu2 %462 }
 0x137   :  { %v466_v8 = vpop.permute.xlu2 %465 }
 0x147   :  { %v457_v9 = vpop.permute.xlu1 %456 }
 0x148   :  { %v451_v3 = vpop.permute.xlu0 %450 }
 0x149   :  { %v471_v23 = vsel %vm215_vm10, %v2299_v32, %v451_v3  ;;  %v541_v32 = vld [vmem:[%s3427_s0 + $0x6] sm:$0x1]  ;;  %v550_v3 = vmul.f32 %v2561_v61, %v2561_v61 }
 0x14a   :  { %v2548_v49 = vmul.f32 0.5, %v541_v32 }
 0x14c   :  { %v547_v62 = vmul.f32 %v2548_v49, %v2548_v49  ;;  %v598_v0 = vmul.f32 0.0, %v2548_v49  ;;  %v596_v20 = vsub.f32 %v2548_v49, %v595_v26 }
 0x14e   :  { %v599_v4 = vadd.f32 %v598_v0, %v2554_v38  ;;  %v549_v59 = vadd.f32 %v548_v7, %v547_v62  ;;  %v2592_v11 = vmul.f32 -0.70710677, %v596_v20 }
 0x14f   :  { %v460_v37 = vpop.permute.xlu1 %459 }
 0x150   :  { %v454_v19 = vpop.permute.xlu0 %453  ;;  %v2583_v28 = vmul.f32 -0.70710677, %v599_v4  ;;  %v2588_v22 = vadd.f32 %v550_v3, %v549_v59  ;;  %v606_v41 = vmul.f32 %v2592_v11, %v2554_v38  ;;  %v614_v32 = vmul.f32 %v613_v36, %v2592_v11 }
 0x151   :  { %v472_v33 = vsel %vm217_vm9, %v471_v23, %v454_v19 }
 0x152   :  { %v473_v27 = vsel %vm219_vm11, %v472_v33, %v457_v9  ;;  %v21_v9 = vld [vmem:[%s3429_s2] sm:$0xff]  ;;  %v602_v23 = vmul.f32 %v2583_v28, %v2554_v38  ;;  %v605_v19 = vmul.f32 %v2583_v28, %v2548_v49  ;;  %v629_v33 = vmul.f32 1.767767, %v2561_v61 }
 0x153   :  { %v474_v43 = vsel %vm221_vm12, %v473_v27, %v460_v37  ;;  %v611_v35 = vmul.f32 0.5, %v2588_v22  ;;  %v626_v24 = vmul.f32 0.6666667, %v2588_v22  ;;  %v632_v37 = vmul.f32 0.61237246, %v2588_v22 }
 0x154   :  { %v475_v60 = vsel %vm223_vm13, %v474_v43, %v463_v21  ;;  %v610_v21 = vmul.f32 %v609_v12, %v2561_v61  ;;  %v601_v27 = vmul.f32 %v2592_v11, %v2548_v49  ;;  %v637_v43 = vmul.f32 2.236068, %v2561_v61 }
 0x155   :  { %v476_v42 = vsel %vm225_vm14, %v475_v60, %v466_v8  ;;  %v627_v29 = vmul.f32 %v626_v24, %v2561_v61  ;;  %v633_v52 = vmul.f32 %v632_v37, %v2592_v11  ;;  %v607_v60 = vadd.f32 %v606_v41, %v605_v19 }
 0x156   :  { %v612_v48 = vsub.f32 %v610_v21, %v611_v35  ;;  %v603_v54 = vsub.f32 %v601_v27, %v602_v23  ;;  %v630_v62 = vmul.f32 %v629_v33, %v614_v32  ;;  %v648_v0 = vmul.f32 0.63078314, %v614_v32 }
 0x157   :  { %v615_v7 = vmul.f32 %v613_v36, %v2583_v28  ;;  %2048 = vrsqrt.f32 %v2588_v22  ;;  %v640_v24 = vmul.f32 0.48860252, %v2583_v28  ;;  %vm559_vm0 = vcmp.eq.f32.partialorder %v2588_v22, inf }
 0x158   :  { %v469_v13 = vpop.permute.xlu0 %468  ;;  %v625_v56 = vmul.f32 %v624_v57, %v612_v48  ;;  %v647_v6 = vmul.f32 0.63078314, %v612_v48  ;;  %v604_v8 = vmul.f32 -0.8660254, %v603_v54  ;;  %v634_v3 = vsub.f32 %v630_v62, %v633_v52  ;;  %664 = vst [vmem:[#allocation3 + $0x29] sm:$0x1] %v648_v0 }
 0x159   :  { %v2580_v17 = vsel %vm227_vm15, %v476_v42, %v469_v13  ;;  %v631_v12 = vmul.f32 %v629_v33, %v615_v7  ;;  %v635_v42 = vmul.f32 %v632_v37, %v2583_v28  ;;  %v641_v41 = vmul.f32 0.63078314, %v615_v7  ;;  %656 = vst [vmem:[#allocation3 + $0x21] sm:$0x1] %v640_v24  ;;  %v1161_v54 = vld [vmem:[#allocation2 + $0x20] sm:$0xff] }
 0x15a   :  { %v478_v25 = vmul.f32 %v2580_v17, %v21_v9  ;;  %v608_v9 = vmul.f32 -0.8660254, %v607_v60  ;;  %v628_v4 = vsub.f32 %v625_v56, %v627_v29  ;;  %663 = vst [vmem:[#allocation3 + $0x28] sm:$0x1] %v647_v6  ;;  %v616_v13 = vmul.f32 %v604_v8, %v2548_v49 }
 0x15b   :  { %v621_v59 = vmul.f32 %v604_v8, %v2554_v38  ;;  %v638_v20 = vmul.f32 %v637_v43, %v604_v8  ;;  %v649_v21 = vmul.f32 0.63078314, %v604_v8  ;;  %v652_v23 = vmul.f32 0.7463527, %v634_v3  ;;  %657 = vst [vmem:[#allocation3 + $0x22] sm:$0x1] %v641_v41 }
 0x15c   :  { %v479_v34 = vrot.slane %v478_v25, 4  ;;  %v617_v14 = vmul.f32 %v608_v9, %v2554_v38  ;;  %v620_v15 = vmul.f32 %v608_v9, %v2548_v49  ;;  %v636_v49 = vsub.f32 %v631_v12, %v635_v42  ;;  %v786_v8 = vld [vmem:[%s3427_s0 + $0x9] sm:$0x1]  ;;  %v790_v3 = vld [vmem:[%s3427_s0 + $0xb] sm:$0x1] }
 0x15d   :  { %v653_v33 = vmul.f32 0.7463527, %v638_v20  ;;  %665 = vst [vmem:[#allocation3 + $0x2a] sm:$0x1] %v649_v21  ;;  %v639_v32 = vmul.f32 %v637_v43, %v608_v9  ;;  %v2049_v48 = vpop.eup %2048  ;;  %v644_v28 = vmul.f32 0.48860252, %v2592_v11 }
 0x15e   :  { %v480_v47 = vadd.f32 %v479_v34, %v478_v25  ;;  %v651_v25 = vmul.f32 0.7463527, %v628_v4  ;;  %v618_v36 = vsub.f32 %v616_v13, %v617_v14  ;;  %v622_v57 = vadd.f32 %v621_v59, %v620_v15  ;;  %668 = vst [vmem:[#allocation3 + $0x2d] sm:$0x1] %v652_v23 }
 0x15f   :  { %669 = vst [vmem:[#allocation3 + $0x2e] sm:$0x1] %v653_v33  ;;  %v645_v29 = vmul.f32 0.63078314, %v608_v9  ;;  %v553_v52 = vmul.f32 %v2049_v48, %v2588_v22  ;;  %v646_v43 = vmul.f32 0.7463527, %v639_v32 }
 0x160   :  { %v481_v1 = vrot.slane %v480_v47, 2  ;;  %v619_v34 = vmul.f32 -0.91287094, %v618_v36  ;;  %v623_v35 = vmul.f32 -0.91287094, %v622_v57  ;;  %v570_v11 = vmul.f32 -0.5, %v2588_v22 }
 0x161   :  { %667 = vst [vmem:[#allocation3 + $0x2c] sm:$0x1] %v651_v25  ;;  %v554_v60 = vmul.f32 %v2049_v48, %v553_v52  ;;  %vm561_vm1 = vcmp.eq.f32.partialorder %v2588_v22, 0.0  ;;  %v562_v6 = vand.u32 2147483648, %v2588_v22  ;;  %v788_v9 = vld [vmem:[%s3427_s0 + $0xa] sm:$0x1] }
 0x162   :  { %v482_v26 = vadd.f32 %v481_v1, %v480_v47  ;;  %v650_v37 = vmul.f32 0.7463527, %v623_v35  ;;  %v654_v27 = vmul.f32 0.7463527, %v619_v34  ;;  %v642_v47 = vmul.f32 0.7463527, %v636_v49 }
 0x163   :  { %660 = vst [vmem:[#allocation3 + $0x25] sm:$0x1] %v644_v28  ;;  %v571_v56 = vmul.f32 1.442695, %v570_v11  ;;  %v2654_v4 = vmul.f32 0.5, %v788_v9  ;;  %v791_v12 = vmul.f32 0.5, %v790_v3 }
 0x164   :  { %v483_v18 = vrot.slane %v482_v26, 1  ;;  %666 = vst [vmem:[#allocation3 + $0x2b] sm:$0x1] %v650_v37  ;;  %v574_v11 = vld [vmem:[%s3428_s1 + $0x4] sm:$0x1] }
 0x165   :  { %670 = vst [vmem:[#allocation3 + $0x2f] sm:$0x1] %v654_v27  ;;  %2050 = vpow2.f32 %v571_v56  ;;  %v793_v59 = vmul.f32 %v2654_v4, %v2654_v4  ;;  %v840_v21 = vmul.f32 0.0, %v2654_v4  ;;  %v854_v36 = vmul.f32 1.5, %v791_v12 }
 0x166   :  { %v484_v19 = vadd.f32 %v483_v18, %v482_v26  ;;  %658 = vst [vmem:[#allocation3 + $0x23] sm:$0x1] %v642_v47  ;;  %v2652_v26 = vmul.f32 0.5, %v786_v8  ;;  %v795_v18 = vmul.f32 %v791_v12, %v791_v12  ;;  %v858_v35 = vmul.f32 1.7320508, %v791_v12 }
 0x167   :  { %661 = vst [vmem:[#allocation3 + $0x26] sm:$0x1] %v645_v29  ;;  %v888_v49 = vmul.f32 0.48860252, %v791_v12  ;;  %v855_v41 = vmul.f32 %v854_v36, %v791_v12  ;;  %v882_v9 = vmul.f32 2.236068, %v791_v12 }
 0x168   :  { %v485_v38 = vmul.f32 %v484_v19, %v2580_v17  ;;  %v643_v17 = vmul.f32 0.48860252, %v2561_v61  ;;  %v555_v61 = vmul.f32 0.5, %v554_v60  ;;  %662 = vst [vmem:[#allocation3 + $0x27] sm:$0x1] %v646_v43  ;;  %v792_v15 = vmul.f32 %v2652_v26, %v2652_v26 }
 0x169   :  { %v843_v25 = vmul.f32 0.0, %v2652_v26  ;;  %v841_v19 = vsub.f32 %v2652_v26, %v840_v21  ;;  %904 = vst [vmem:[#allocation3 + $0x34] sm:$0x1] %v888_v49  ;;  %v869_v43 = vmul.f32 1.6666666, %v791_v12 }
 0x16a   :  { %502 = vmatmul.f32.vlgmr.msra.gmra.mxu3 %v485_v38  ;;  %659 = vst [vmem:[#allocation3 + $0x24] sm:$0x1] %v643_v17  ;;  %v556_v0 = vsub.f32 1.5, %v555_v61  ;;  %v794_v57 = vadd.f32 %v793_v59, %v792_v15  ;;  %v874_v60 = vmul.f32 1.767767, %v791_v12 }
 0x16b   :  { %1221 = vmatpush.msra.mxu3 %v2350_v44  ;;  %v844_v33 = vadd.f32 %v843_v25, %v2654_v4  ;;  %v2051_v38 = vpop.eup %2050  ;;  %v2670_v37 = vmul.f32 -0.70710677, %v841_v19 }
 0x16c   :  { %v673_v62 = vld [vmem:[#allocation3 + $0x28] sm:$0xff]  ;;  %v557_v1 = vmul.f32 %v2049_v48, %v556_v0  ;;  %v2668_v34 = vadd.f32 %v795_v18, %v794_v57 }
 0x16d   :  { %1222 = vmatpush.msra.mxu3 %v2355_v45  ;;  %688 = vmatpush.xpose.msra.mxu0 %v673_v62  ;;  %v2672_v27 = vmul.f32 -0.70710677, %v844_v33  ;;  %v846_v28 = vmul.f32 %v2670_v37, %v2652_v26  ;;  %v575_v62 = vld [vmem:[%s3428_s1 + $0x5] sm:$0x1]  ;;  %v859_v56 = vmul.f32 %v858_v35, %v2670_v37 }
 0x16e   :  { %v558_v7 = vmul.f32 %v557_v1, %v2588_v22  ;;  %v856_v32 = vmul.f32 0.5, %v2668_v34  ;;  %v871_v47 = vmul.f32 0.6666667, %v2668_v34  ;;  %v877_v17 = vmul.f32 0.61237246, %v2668_v34 }
 0x16f   :  { %1223 = vmatpush.msra.mxu3 %v2363_v46  ;;  %v847_v29 = vmul.f32 %v2672_v27, %v2654_v4  ;;  %v850_v52 = vmul.f32 %v2672_v27, %v2652_v26  ;;  %v875_v36 = vmul.f32 %v874_v60, %v859_v56  ;;  %2052 = vrsqrt.f32 %v2668_v34 }
 0x170   :  { %v560_v13 = vsel %vm559_vm0, %v2588_v22, %v558_v7  ;;  %v857_v1 = vsub.f32 %v855_v41, %v856_v32  ;;  %v872_v8 = vmul.f32 %v871_v47, %v791_v12  ;;  %vm804_vm3 = vcmp.eq.f32.partialorder %v2668_v34, inf }
 0x171   :  { %1224 = vmatpush.msra.mxu3 %v2376_v50  ;;  %v672_v42 = vld [vmem:[#allocation3 + $0x20] sm:$0xff]  ;;  %v563_v14 = vsel %vm561_vm1, %v562_v6, %v560_v13  ;;  %v848_v0 = vsub.f32 %v846_v28, %v847_v29  ;;  %vm806_vm4 = vcmp.eq.f32.partialorder %v2668_v34, 0.0 }
 0x172   :  { %1180 = vmatmul.f32.vlgmr.msrb.gmra.mxu3 %v1161_v54  ;;  %689 = vmatpush.xpose.msra.mxu0 %v672_v42  ;;  %v564_v20 = vmul.f32 2.0, %v563_v14  ;;  %v851_v54 = vmul.f32 %v2670_v37, %v2654_v4  ;;  %v878_v42 = vmul.f32 %v877_v17, %v2670_v37  ;;  %v892_v13 = vmul.f32 0.63078314, %v857_v1 }
 0x173   :  { %1225 = vmatpush.msra.mxu3 %v2385_v53  ;;  %v849_v3 = vmul.f32 -0.8660254, %v848_v0  ;;  %v860_v14 = vmul.f32 %v858_v35, %v2672_v27  ;;  %v870_v12 = vmul.f32 %v869_v43, %v857_v1 }
 0x174   :  { %v566_v23 = vmul.f32 0.16666667, %v564_v20  ;;  %vm565_vm2 = vcmp.lt.f32.partialorder %v564_v20, 6.0  ;;  %v852_v7 = vadd.f32 %v851_v54, %v850_v52  ;;  %908 = vst [vmem:[#allocation3 + $0x38] sm:$0x1] %v892_v13  ;;  %v879_v52 = vsub.f32 %v875_v36, %v878_v42 }
 0x175   :  { %1226 = vmatpush.msra.mxu3 %v2393_v55  ;;  %v861_v21 = vmul.f32 %v849_v3, %v2652_v26  ;;  %v866_v25 = vmul.f32 %v849_v3, %v2654_v4  ;;  %v873_v47 = vsub.f32 %v870_v12, %v872_v8  ;;  %v876_v28 = vmul.f32 %v874_v60, %v860_v14 }
 0x176   :  { %v567_v24 = vsub.f32 1.0, %v566_v23  ;;  %v853_v20 = vmul.f32 -0.8660254, %v852_v7  ;;  %v894_v43 = vmul.f32 0.63078314, %v849_v3 }
 0x177   :  { %1227 = vmatpush.msra.mxu3 %v2401_v58  ;;  %v896_v1 = vmul.f32 0.7463527, %v873_v47  ;;  %v897_v60 = vmul.f32 0.7463527, %v879_v52  ;;  %v885_v7 = vmul.f32 0.48860252, %v2672_v27 }
 0x178   :  { %v568_v48 = vmul.f32 %v567_v24, %v567_v24  ;;  %v862_v33 = vmul.f32 %v853_v20, %v2654_v4  ;;  %v865_v35 = vmul.f32 %v853_v20, %v2652_v26  ;;  %v883_v26 = vmul.f32 %v882_v9, %v849_v3  ;;  %910 = vst [vmem:[#allocation3 + $0x3a] sm:$0x1] %v894_v43  ;;  %v820_v47 = vld [vmem:[%s3428_s1 + $0x7] sm:$0x1] }
 0x179   :  { %1228 = vmatpush.msra.mxu3 %v2425_v2  ;;  %912 = vst [vmem:[#allocation3 + $0x3c] sm:$0x1] %v896_v1  ;;  %v886_v8 = vmul.f32 0.63078314, %v860_v14  ;;  %v2782_v1 = vld [vmem:[%s3430_s3 + $0x48] sm:$0xff] }
 0x17a   :  { %v569_v61 = vsel %vm565_vm2, %v568_v48, 0.0  ;;  %v863_v41 = vsub.f32 %v861_v21, %v862_v33  ;;  %v867_v32 = vadd.f32 %v866_v25, %v865_v35  ;;  %v893_v48 = vmul.f32 0.63078314, %v859_v56  ;;  %913 = vst [vmem:[#allocation3 + $0x3d] sm:$0x1] %v897_v60 }
 0x17b   :  { %1229 = vmatpush.msra.mxu3 %v2438_v10  ;;  %v573_v6 = vmul.f32 %v2051_v38, %v569_v61  ;;  %v880_v61 = vmul.f32 %v877_v17, %v2672_v27  ;;  %v898_v56 = vmul.f32 0.7463527, %v883_v26  ;;  %v884_v17 = vmul.f32 %v882_v9, %v853_v20  ;;  %901 = vst [vmem:[#allocation3 + $0x31] sm:$0x1] %v885_v7 }
 0x17c   :  { %v868_v54 = vmul.f32 -0.91287094, %v867_v32  ;;  %909 = vst [vmem:[#allocation3 + $0x39] sm:$0x1] %v893_v48  ;;  %v815_v9 = vmul.f32 -0.5, %v2668_v34 }
 0x17d   :  { %1230 = vmatpush.msra.mxu3 %v2455_v16  ;;  %v576_v15 = vmul.f32 %v574_v11, %v573_v6  ;;  %v578_v59 = vmul.f32 %v575_v62, %v573_v6  ;;  %v580_v18 = vmul.f32 %v573_v6, %v2588_v22  ;;  %v2053_v6 = vpop.eup %2052  ;;  %914 = vst [vmem:[#allocation3 + $0x3e] sm:$0x1] %v898_v56  ;;  %v891_v21 = vmul.f32 0.7463527, %v884_v17  ;;  %v819_v32 = vld [vmem:[%s3428_s1 + $0x6] sm:$0x1] }
 0x17e   :  { %v895_v0 = vmul.f32 0.7463527, %v868_v54  ;;  %v798_v3 = vmul.f32 %v2053_v6, %v2668_v34  ;;  %902 = vst [vmem:[#allocation3 + $0x32] sm:$0x1] %v886_v8  ;;  %v816_v36 = vmul.f32 1.442695, %v815_v9 }
 0x17f   :  { %1231 = vmatpush.msra.mxu3 %v2472_v30  ;;  %577 = vst [vmem:[#allocation2 + $0x10] sm:$0x1] %v576_v15  ;;  %v581_v57 = vmul.f32 %v580_v18, %v574_v11  ;;  %v583_v23 = vmul.f32 %v580_v18, %v575_v62  ;;  %v585_v19 = vmul.f32 %v580_v18, %v2588_v22  ;;  %v889_v15 = vmul.f32 0.48860252, %v2670_v37  ;;  %v1766_v17 = vld [vmem:[%s3427_s0 + $0x15] sm:$0x1] }
 0x180   :  { %579 = vst [vmem:[#allocation2 + $0x14] sm:$0x1] %v578_v59  ;;  %v799_v59 = vmul.f32 %v2053_v6, %v798_v3  ;;  %v890_v18 = vmul.f32 0.63078314, %v853_v20  ;;  %v807_v37 = vand.u32 2147483648, %v2668_v34  ;;  %2054 = vpow2.f32 %v816_v36 }
 0x181   :  { %1232 = vmatpush.msra.mxu3 %v2482_v40  ;;  %582 = vst [vmem:[#allocation2 + $0x11] sm:$0x1] %v581_v57  ;;  %v586_v49 = vmul.f32 %v585_v19, %v574_v11  ;;  %v588_v38 = vmul.f32 %v585_v19, %v575_v62  ;;  %v590_v24 = vmul.f32 %v585_v19, %v2588_v22  ;;  %v864_v22 = vmul.f32 -0.91287094, %v863_v41  ;;  %v1768_v8 = vld [vmem:[%s3427_s0 + $0x16] sm:$0x1] }
 0x182   :  { %584 = vst [vmem:[#allocation2 + $0x15] sm:$0x1] %v583_v23  ;;  %v800_v25 = vmul.f32 0.5, %v799_v59  ;;  %v1770_v59 = vld [vmem:[%s3427_s0 + $0x17] sm:$0x1] }
 0x183   :  { %1233 = vmatpush.msra.mxu3 %v2492_v39  ;;  %587 = vst [vmem:[#allocation2 + $0x12] sm:$0x1] %v586_v49  ;;  %v591_v4 = vmul.f32 %v590_v24, %v574_v11  ;;  %v593_v29 = vmul.f32 %v590_v24, %v575_v62  ;;  %v881_v11 = vsub.f32 %v876_v28, %v880_v61  ;;  %v899_v62 = vmul.f32 0.7463527, %v864_v22  ;;  %v2764_v61 = vld [vmem:[%s3430_s3 + $0x60] sm:$0xff]  ;;  %v2770_v22 = vld [vmem:[%s3430_s3 + $0x58] sm:$0xff] }
 0x184   :  { %589 = vst [vmem:[#allocation2 + $0x16] sm:$0x1] %v588_v38  ;;  %v801_v27 = vsub.f32 1.5, %v800_v25  ;;  %v2888_v25 = vmul.f32 0.5, %v1770_v59 }
 0x185   :  { %1234 = vmatpush.msra.mxu3 %v2497_v51  ;;  %592 = vst [vmem:[#allocation2 + $0x13] sm:$0x1] %v591_v4  ;;  %v887_v42 = vmul.f32 0.7463527, %v881_v11 }
 0x186   :  { %594 = vst [vmem:[#allocation2 + $0x17] sm:$0x1] %v593_v29  ;;  %v802_v14 = vmul.f32 %v2053_v6, %v801_v27  ;;  %v2055_v38 = vpop.eup %2054 }
 0x187   :  { %1235 = vmatpush.msra.mxu3 %v2506_v63  ;;  %911 = vst [vmem:[#allocation3 + $0x3b] sm:$0x1] %v895_v0  ;;  %v2776_v0 = vld [vmem:[%s3430_s3 + $0x50] sm:$0xff] }
 0x188   :  { %915 = vst [vmem:[#allocation3 + $0x3f] sm:$0x1] %v899_v62  ;;  %v803_v20 = vmul.f32 %v802_v14, %v2668_v34 }
 0x189   :  { %1236 = vmatpush.msra.mxu3 %v2514_v5  ;;  %903 = vst [vmem:[#allocation3 + $0x33] sm:$0x1] %v887_v42  ;;  %v2880_v42 = vmul.f32 0.5, %v1766_v17 }
 0x18a   :  { %905 = vst [vmem:[#allocation3 + $0x35] sm:$0x1] %v889_v15  ;;  %v805_v57 = vsel %vm804_vm3, %v2668_v34, %v803_v20 }
 0x18b   :  { %906 = vst [vmem:[#allocation3 + $0x36] sm:$0x1] %v890_v18  ;;  %v808_v23 = vsel %vm806_vm4, %v807_v37, %v805_v57  ;;  %v195_v18 = vpop.permute.xlu2 %194  ;;  %v1772_v27 = vmul.f32 %v2880_v42, %v2880_v42  ;;  %v1775_v57 = vmul.f32 %v2888_v25, %v2888_v25 }
 0x18c   :  { %907 = vst [vmem:[#allocation3 + $0x37] sm:$0x1] %v891_v21  ;;  %v809_v19 = vmul.f32 2.0, %v808_v23 }
 0x18d   :  { %v671_v13 = vld [vmem:[#allocation2 + $0x10] sm:$0xff] }
 0x18e   :  { %690 = vmatmul.f32.vlgmr.msra.gmra.mxu0 %v671_v13  ;;  %v811_v35 = vmul.f32 0.16666667, %v809_v19  ;;  %vm810_vm5 = vcmp.lt.f32.partialorder %v809_v19, 6.0  ;;  %v2882_v13 = vmul.f32 0.5, %v1768_v8 }
 0x18f   :  { %v918_v12 = vld [vmem:[#allocation3 + $0x38] sm:$0xff] }
 0x190   :  { %933 = vmatpush.xpose.msrb.mxu0 %v918_v12  ;;  %v812_v49 = vsub.f32 1.0, %v811_v35  ;;  %v1773_v9 = vmul.f32 %v2882_v13, %v2882_v13  ;;  %v2900_v35 = vpop.permute.xlu0 %200 }
 0x192   :  { %v813_v24 = vmul.f32 %v812_v49, %v812_v49  ;;  %v1774_v36 = vadd.f32 %v1773_v9, %v1772_v27  ;;  %v198_v49 = vpop.permute.xlu1 %197 }
 0x193   :  { %v917_v33 = vld [vmem:[#allocation3 + $0x30] sm:$0xff] }
 0x194   :  { %934 = vmatpush.xpose.msrb.mxu0 %v917_v33  ;;  %v814_v41 = vsel %vm810_vm5, %v813_v24, 0.0 }
 0x195   :  { %v818_v48 = vmul.f32 %v2055_v38, %v814_v41 }
 0x197   :  { %v823_v28 = vmul.f32 %v820_v47, %v818_v48 }
 0x198   :  { %976 = vmatpush.msra.mxu0 %v2350_v44  ;;  %v821_v44 = vmul.f32 %v819_v32, %v818_v48 }
 0x199   :  { %824 = vst [vmem:[#allocation2 + $0x1c] sm:$0x1] %v823_v28 }
 0x19a   :  { %977 = vmatpush.msra.mxu0 %v2355_v45  ;;  %v825_v45 = vmul.f32 %v818_v48, %v2668_v34  ;;  %822 = vst [vmem:[#allocation2 + $0x18] sm:$0x1] %v821_v44  ;;  %v2913_v44 = vadd.f32 %v1775_v57, %v1774_v36 }
 0x19c   :  { %978 = vmatpush.msra.mxu0 %v2363_v46  ;;  %v826_v46 = vmul.f32 %v825_v45, %v819_v32  ;;  %v828_v4 = vmul.f32 %v825_v45, %v820_v47  ;;  %v830_v29 = vmul.f32 %v825_v45, %v2668_v34  ;;  %vm1784_vm0 = vcmp.eq.f32.partialorder %v2913_v44, inf }
 0x19d   :  { %vm1786_vm1 = vcmp.eq.f32.partialorder %v2913_v44, 0.0 }
 0x19e   :  { %979 = vmatpush.msra.mxu0 %v2376_v50  ;;  %827 = vst [vmem:[#allocation2 + $0x19] sm:$0x1] %v826_v46  ;;  %v831_v52 = vmul.f32 %v830_v29, %v819_v32  ;;  %v833_v26 = vmul.f32 %v830_v29, %v820_v47  ;;  %v835_v54 = vmul.f32 %v830_v29, %v2668_v34  ;;  %v2758_v34 = vld [vmem:[%s3430_s3 + $0x68] sm:$0xff] }
 0x19f   :  { %829 = vst [vmem:[#allocation2 + $0x1d] sm:$0x1] %v828_v4 }
 0x1a0   :  { %980 = vmatpush.msra.mxu0 %v2385_v53  ;;  %832 = vst [vmem:[#allocation2 + $0x1a] sm:$0x1] %v831_v52  ;;  %v836_v50 = vmul.f32 %v835_v54, %v819_v32  ;;  %v838_v43 = vmul.f32 %v835_v54, %v820_v47  ;;  %v216_v32 = vsel %vm215_vm10, %v2297_v31, %v195_v18  ;;  %v2909_v47 = vpop.permute.xlu2 %203 }
 0x1a1   :  { %834 = vst [vmem:[#allocation2 + $0x1e] sm:$0x1] %v833_v26  ;;  %v2924_v4 = vsel %vm217_vm9, %v216_v32, %v198_v49 }
 0x1a2   :  { %981 = vmatpush.msra.mxu0 %v2393_v55  ;;  %837 = vst [vmem:[#allocation2 + $0x1b] sm:$0x1] %v836_v50  ;;  %v2746_v55 = vld [vmem:[%s3430_s3 + $0x78] sm:$0xff] }
 0x1a3   :  { %839 = vst [vmem:[#allocation2 + $0x1f] sm:$0x1] %v838_v43 }
 0x1a4   :  { %982 = vmatpush.msra.mxu0 %v2401_v58  ;;  %v2752_v58 = vld [vmem:[%s3430_s3 + $0x70] sm:$0xff] }
 0x1a6   :  { %983 = vmatpush.msra.mxu0 %v2425_v2 }
 0x1a8   :  { %984 = vmatpush.msra.mxu0 %v2438_v10 }
 0x1aa   :  { %985 = vmatpush.msra.mxu0 %v2455_v16  ;;  %v916_v53 = vld [vmem:[#allocation2 + $0x18] sm:$0xff] }
 0x1ab   :  { %935 = vmatmul.f32.vlgmr.msrb.gmra.mxu0 %v916_v53 }
 0x1ac   :  { %986 = vmatpush.msra.mxu0 %v2472_v30 }
 0x1ae   :  { %987 = vmatpush.msra.mxu0 %v2482_v40 }
 0x1b0   :  { %988 = vmatpush.msra.mxu0 %v2492_v39 }
 0x1b2   :  { %989 = vmatpush.msra.mxu0 %v2497_v51 }
 0x1b4   :  { %990 = vmatpush.msra.mxu0 %v2506_v63 }
 0x1b6   :  { %991 = vmatpush.msra.mxu0 %v2514_v5 }
 0x1b8   :  { %1711 = vmatpush.msrb.mxu0 %v2746_v55 }
 0x1ba   :  { %1712 = vmatpush.msrb.mxu0 %v2752_v58 }
 0x1bc   :  { %1713 = vmatpush.msrb.mxu0 %v2758_v34 }
 0x1be   :  { %1714 = vmatpush.msrb.mxu0 %v2764_v61 }
 0x1c0   :  { %1715 = vmatpush.msrb.mxu0 %v2770_v22 }
 0x1c2   :  { %1716 = vmatpush.msrb.mxu0 %v2776_v0 }
 0x1c4   :  { %1717 = vmatpush.msrb.mxu0 %v2782_v1 }
 0x1c6   :  { %1718 = vmatpush.msrb.mxu0 %v2425_v2 }
 0x1c8   :  { %1719 = vmatpush.msrb.mxu0 %v2438_v10 }
 0x1ca   :  { %1720 = vmatpush.msrb.mxu0 %v2455_v16  ;;  %v1521_v16 = vld [vmem:[%s3427_s0 + $0x12] sm:$0x1] }
 0x1cc   :  { %1721 = vmatpush.msrb.mxu0 %v2472_v30  ;;  %v1523_v30 = vld [vmem:[%s3427_s0 + $0x13] sm:$0x1] }
 0x1ce   :  { %1722 = vmatpush.msrb.mxu0 %v2482_v40  ;;  %v2854_v40 = vmul.f32 0.5, %v1521_v16 }
 0x1d0   :  { %1723 = vmatpush.msrb.mxu0 %v2492_v39  ;;  %v2856_v39 = vmul.f32 0.5, %v1523_v30  ;;  %v1578_v37 = vmul.f32 0.0, %v2854_v40  ;;  %v2933_v30 = vmul.f32 0.0, %v2882_v13 }
 0x1d2   :  { %1724 = vmatpush.msrb.mxu0 %v2497_v51  ;;  %v1525_v51 = vld [vmem:[%s3427_s0 + $0x14] sm:$0x1]  ;;  %v1528_v11 = vmul.f32 %v2856_v39, %v2856_v39  ;;  %v1575_v12 = vmul.f32 0.0, %v2856_v39  ;;  %v1579_v19 = vadd.f32 %v1578_v37, %v2856_v39 }
 0x1d4   :  { %1725 = vmatpush.msrb.mxu0 %v2506_v63  ;;  %v2861_v63 = vmul.f32 0.5, %v1525_v51  ;;  %v1576_v23 = vsub.f32 %v2854_v40, %v1575_v12  ;;  %v2904_v24 = vmul.f32 -0.70710677, %v1579_v19 }
 0x1d6   :  { %1726 = vmatpush.msrb.mxu0 %v2514_v5  ;;  %v1527_v5 = vmul.f32 %v2854_v40, %v2854_v40  ;;  %v1530_v6 = vmul.f32 %v2861_v63, %v2861_v63  ;;  %v2902_v38 = vmul.f32 -0.70710677, %v1576_v23  ;;  %v1582_v45 = vmul.f32 %v2904_v24, %v2856_v39 }
 0x1d7   :  { %v1585_v46 = vmul.f32 %v2904_v24, %v2854_v40  ;;  %v1589_v50 = vmul.f32 1.5, %v2861_v63  ;;  %v1593_v17 = vmul.f32 1.7320508, %v2861_v63  ;;  %v1609_v19 = vmul.f32 1.767767, %v2861_v63 }
 0x1d8   :  { %v1529_v62 = vadd.f32 %v1528_v11, %v1527_v5  ;;  %v1581_v28 = vmul.f32 %v2902_v38, %v2854_v40 }
 0x1d9   :  { %v1590_v11 = vmul.f32 %v1589_v50, %v2861_v63  ;;  %v1594_v12 = vmul.f32 %v1593_v17, %v2902_v38 }
 0x1da   :  { %v2871_v7 = vadd.f32 %v1530_v6, %v1529_v62  ;;  %v1583_v26 = vsub.f32 %v1581_v28, %v1582_v45  ;;  %v1617_v28 = vmul.f32 2.236068, %v2861_v63 }
 0x1db   :  { %v1628_v50 = vmul.f32 0.63078314, %v1594_v12 }
 0x1dc   :  { %2056 = vrsqrt.f32 %v2871_v7  ;;  %vm1539_vm6 = vcmp.eq.f32.partialorder %v2871_v7, inf  ;;  %v1542_v48 = vand.u32 2147483648, %v2871_v7  ;;  %vm1541_vm7 = vcmp.eq.f32.partialorder %v2871_v7, 0.0 }
 0x1dd   :  { %v1550_v52 = vmul.f32 -0.5, %v2871_v7  ;;  %2058 = vrsqrt.f32 %v2913_v44  ;;  %v1584_v51 = vmul.f32 -0.8660254, %v1583_v26  ;;  %v1591_v62 = vmul.f32 0.5, %v2871_v7  ;;  %1644 = vst [vmem:[#allocation3 + $0x69] sm:$0x1] %v1628_v50 }
 0x1de   :  { %v1606_v23 = vmul.f32 0.6666667, %v2871_v7 }
 0x1df   :  { %v1551_v16 = vmul.f32 1.442695, %v1550_v52  ;;  %v1592_v59 = vsub.f32 %v1590_v11, %v1591_v62  ;;  %v1596_v18 = vmul.f32 %v1584_v51, %v2854_v40  ;;  %v1601_v37 = vmul.f32 %v1584_v51, %v2856_v39 }
 0x1e0   :  { %v1618_v26 = vmul.f32 %v1617_v28, %v1584_v51  ;;  %v1629_v11 = vmul.f32 0.63078314, %v1584_v51  ;;  %v220_v51 = vsel %vm219_vm11, %v2924_v4, %v2900_v35 }
 0x1e1   :  { %2060 = vpow2.f32 %v1551_v16 }
 0x1e2   :  { %v2057_v3 = vpop.eup %2056  ;;  %1645 = vst [vmem:[#allocation3 + $0x6a] sm:$0x1] %v1629_v11 }
 0x1e3   :  { %v1533_v15 = vmul.f32 %v2057_v3, %v2871_v7 }
 0x1e5   :  { %v1534_v21 = vmul.f32 %v2057_v3, %v1533_v15 }
 0x1e7   :  { %v1535_v14 = vmul.f32 0.5, %v1534_v21 }
 0x1e9   :  { %v1536_v20 = vsub.f32 1.5, %v1535_v14 }
 0x1eb   :  { %v1537_v33 = vmul.f32 %v2057_v3, %v1536_v20  ;;  %v2943_v3 = vmul.f32 0.0, %v2880_v42  ;;  %v1604_v20 = vmul.f32 1.6666666, %v2861_v63 }
 0x1ed   :  { %v2794_v60 = vpop.f32.mrf.mxu3  ;;  %v1538_v41 = vmul.f32 %v1537_v33, %v2871_v7  ;;  %v2958_v33 = vpop.eup %2058  ;;  %v1824_v4 = vadd.f32 %v2943_v3, %v2882_v13  ;;  %v1555_v3 = vld [vmem:[%s3428_s1 + $0xd] sm:$0x1] }
 0x1ee   :  { %v2061_v45 = vpop.eup %2060 }
 0x1ef   :  { %v1540_v29 = vsel %vm1539_vm6, %v2871_v7, %v1538_v41  ;;  %v1605_v41 = vmul.f32 %v1604_v20, %v1592_v59  ;;  %v1620_v20 = vmul.f32 0.48860252, %v2904_v24 }
 0x1f0   :  { %v1543_v43 = vsel %vm1541_vm7, %v1542_v48, %v1540_v29  ;;  %v1610_v48 = vmul.f32 %v1609_v19, %v1594_v12  ;;  %v1595_v29 = vmul.f32 %v1593_v17, %v2904_v24 }
 0x1f1   :  { %v2930_v53 = vmul.f32 2.0, %v1543_v43  ;;  %1636 = vst [vmem:[#allocation3 + $0x61] sm:$0x1] %v1620_v20 }
 0x1f3   :  { %v1546_v8 = vmul.f32 0.16666667, %v2930_v53  ;;  %vm1545_vm8 = vcmp.lt.f32.partialorder %v2930_v53, 6.0  ;;  %v2995_v53 = vmul.f32 %v2958_v33, %v2913_v44 }
 0x1f5   :  { %v2796_v56 = vpop.f32.mrf.mxu3 }
 0x1f6   :  { %1191 = vrot.lane.b32.xlu0 %v2796_v56, %s2113_s14  ;;  %1188 = vrot.lane.b32.xlu2 %v2796_v56, %s2117_s18 }
 0x1f7   :  { %1185 = vrot.lane.b32.xlu1 %v2796_v56, %s2114_s15 }
 0x1fe   :  { %1197 = vrot.lane.b32.xlu0 %v2796_v56, %s2112_s13  ;;  %1200 = vrot.lane.b32.xlu2 %v2796_v56, %s2115_s16 }
 0x1ff   :  { %1194 = vrot.lane.b32.xlu1 %v2796_v56, %s2116_s17 }
 0x206   :  { %206 = vrot.lane.b32.xlu0 %v2297_v31, %s2112_s13  ;;  %212 = vrot.lane.b32.xlu2 %v2297_v31, %s2118_s19 }
 0x207   :  { %1203 = vrot.lane.b32.xlu1 %v2796_v56, %s2118_s19 }
 0x20b   :  { %v2818_v2 = vpop.f32.mrf.mxu0 }
 0x20e   :  { %695 = vrot.lane.b32.xlu0 %v2818_v2, %s2114_s15  ;;  %701 = vrot.lane.b32.xlu2 %v2818_v2, %s2113_s14 }
 0x20f   :  { %209 = vrot.lane.b32.xlu1 %v2297_v31, %s2115_s16  ;;  %v1586_v31 = vmul.f32 %v2902_v38, %v2856_v39 }
 0x211   :  { %v1587_v54 = vadd.f32 %v1586_v31, %v1585_v46 }
 0x213   :  { %v2936_v5 = vmul.f32 -0.8660254, %v1587_v54  ;;  %v1627_v54 = vmul.f32 0.63078314, %v1592_v59  ;;  %v1547_v59 = vsub.f32 1.0, %v1546_v8 }
 0x215   :  { %v1597_v21 = vmul.f32 %v2936_v5, %v2856_v39  ;;  %v1600_v27 = vmul.f32 %v2936_v5, %v2854_v40  ;;  %v1607_v39 = vmul.f32 %v1606_v23, %v2861_v63  ;;  %1643 = vst [vmem:[#allocation3 + $0x68] sm:$0x1] %v1627_v54  ;;  %v1624_v23 = vmul.f32 0.48860252, %v2902_v38 }
 0x216   :  { %704 = vrot.lane.b32.xlu0 %v2818_v2, %s2116_s17  ;;  %710 = vrot.lane.b32.xlu2 %v2818_v2, %s2115_s16  ;;  %v1625_v35 = vmul.f32 0.63078314, %v2936_v5 }
 0x217   :  { %698 = vrot.lane.b32.xlu1 %v2818_v2, %s2117_s18  ;;  %v1598_v57 = vsub.f32 %v1596_v18, %v1597_v21  ;;  %v1602_v49 = vadd.f32 %v1601_v37, %v1600_v27  ;;  %v1608_v52 = vsub.f32 %v1605_v41, %v1607_v39  ;;  %v1633_v21 = vmul.f32 0.7463527, %v1618_v26  ;;  %1640 = vst [vmem:[#allocation3 + $0x65] sm:$0x1] %v1624_v23 }
 0x218   :  { %v1611_v27 = vmul.f32 %v1609_v19, %v1595_v29  ;;  %v1619_v37 = vmul.f32 %v1617_v28, %v2936_v5  ;;  %v1548_v19 = vmul.f32 %v1547_v59, %v1547_v59  ;;  %v1554_v5 = vld [vmem:[%s3428_s1 + $0xc] sm:$0x1]  ;;  %1641 = vst [vmem:[#allocation3 + $0x66] sm:$0x1] %v1625_v35  ;;  %v1851_v35 = vmul.f32 0.6666667, %v2913_v44 }
 0x219   :  { %v1599_v32 = vmul.f32 -0.91287094, %v1598_v57  ;;  %v1603_v46 = vmul.f32 -0.91287094, %v1602_v49  ;;  %v1631_v18 = vmul.f32 0.7463527, %v1608_v52 }
 0x21a   :  { %v1623_v57 = vmul.f32 0.48860252, %v2861_v63  ;;  %v1549_v63 = vsel %vm1545_vm8, %v1548_v19, 0.0  ;;  %1649 = vst [vmem:[#allocation3 + $0x6e] sm:$0x1] %v1633_v21 }
 0x21b   :  { %v1630_v62 = vmul.f32 0.7463527, %v1603_v46  ;;  %1647 = vst [vmem:[#allocation3 + $0x6c] sm:$0x1] %v1631_v18 }
 0x21c   :  { %1639 = vst [vmem:[#allocation3 + $0x64] sm:$0x1] %v1623_v57 }
 0x21d   :  { %1646 = vst [vmem:[#allocation3 + $0x6b] sm:$0x1] %v1630_v62 }
 0x21e   :  { %713 = vrot.lane.b32.xlu0 %v2818_v2, %s2118_s19 }
 0x21f   :  { %707 = vrot.lane.b32.xlu1 %v2818_v2, %s2112_s13 }
 0x228   :  { %v2834_v10 = vpop.f32.mrf.mxu0 }
 0x229   :  { %940 = vrot.lane.b32.xlu1 %v2834_v10, %s2114_s15  ;;  %946 = vrot.lane.b32.xlu0 %v2834_v10, %s2113_s14 }
 0x22a   :  { %943 = vrot.lane.b32.xlu2 %v2834_v10, %s2117_s18 }
 0x231   :  { %952 = vrot.lane.b32.xlu1 %v2834_v10, %s2112_s13  ;;  %955 = vrot.lane.b32.xlu0 %v2834_v10, %s2115_s16 }
 0x232   :  { %949 = vrot.lane.b32.xlu2 %v2834_v10, %s2116_s17 }
 0x23a   :  { %958 = vrot.lane.b32.xlu2 %v2834_v10, %s2118_s19 }
 0x250   :  { %v1189_v9 = vpop.permute.xlu2 %1188 }
 0x258   :  { %v1201_v41 = vpop.permute.xlu2 %1200 }
 0x268   :  { %v1192_v6 = vpop.permute.xlu0 %1191 }
 0x269   :  { %v1186_v15 = vpop.permute.xlu1 %1185 }
 0x26a   :  { %v1206_v14 = vsel %vm215_vm10, %v2796_v56, %v1186_v15  ;;  %v1612_v56 = vmul.f32 0.61237246, %v2871_v7 }
 0x26b   :  { %v1207_v36 = vsel %vm217_vm9, %v1206_v14, %v1189_v9 }
 0x26c   :  { %v1208_v40 = vsel %vm219_vm11, %v1207_v36, %v1192_v6  ;;  %v1613_v31 = vmul.f32 %v1612_v56, %v2902_v38  ;;  %v1634_v6 = vmul.f32 0.7463527, %v1599_v32  ;;  %v1615_v9 = vmul.f32 %v1612_v56, %v2904_v24 }
 0x26d   :  { %v1621_v36 = vmul.f32 0.63078314, %v1595_v29  ;;  %v1626_v24 = vmul.f32 0.7463527, %v1619_v37  ;;  %v1834_v38 = vmul.f32 1.5, %v2888_v25  ;;  %v1553_v56 = vmul.f32 %v2061_v45, %v1549_v63 }
 0x26e   :  { %v1614_v16 = vsub.f32 %v1610_v48, %v1613_v31  ;;  %v1616_v12 = vsub.f32 %v1611_v27, %v1615_v9  ;;  %1650 = vst [vmem:[#allocation3 + $0x6f] sm:$0x1] %v1634_v6  ;;  %v1836_v27 = vmul.f32 0.5, %v2913_v44  ;;  %v1838_v9 = vmul.f32 1.7320508, %v2888_v25 }
 0x26f   :  { %v1835_v28 = vmul.f32 %v1834_v38, %v2888_v25  ;;  %v1556_v31 = vmul.f32 %v1554_v5, %v1553_v56  ;;  %v1558_v29 = vmul.f32 %v1555_v3, %v1553_v56  ;;  %v1560_v52 = vmul.f32 %v1553_v56, %v2871_v7  ;;  %1637 = vst [vmem:[#allocation3 + $0x62] sm:$0x1] %v1621_v36  ;;  %v213_v56 = vpop.permute.xlu2 %212 }
 0x270   :  { %v1198_v43 = vpop.permute.xlu0 %1197  ;;  %v1632_v14 = vmul.f32 0.7463527, %v1614_v16  ;;  %v1622_v49 = vmul.f32 0.7463527, %v1616_v12  ;;  %v3017_v16 = vld [vmem:[%s3429_s2] sm:$0xff] }
 0x271   :  { %v1195_v15 = vpop.permute.xlu1 %1194  ;;  %v1561_v62 = vmul.f32 %v1560_v52, %v1554_v5  ;;  %v1563_v6 = vmul.f32 %v1560_v52, %v1555_v3  ;;  %v1837_v20 = vsub.f32 %v1835_v28, %v1836_v27  ;;  %1642 = vst [vmem:[#allocation3 + $0x67] sm:$0x1] %v1626_v24  ;;  %v1854_v24 = vmul.f32 1.767767, %v2888_v25 }
 0x272   :  { %v1209_v17 = vsel %vm221_vm12, %v1208_v40, %v1195_v15  ;;  %v1821_v40 = vsub.f32 %v2880_v42, %v2933_v30  ;;  %1648 = vst [vmem:[#allocation3 + $0x6d] sm:$0x1] %v1632_v14  ;;  %v222_v30 = vsel %vm221_vm12, %v220_v51, %v2909_v47  ;;  %v3000_v47 = vmul.f32 -0.70710677, %v1824_v4 }
 0x273   :  { %v1210_v8 = vsel %vm223_vm13, %v1209_v17, %v1198_v43  ;;  %1638 = vst [vmem:[#allocation3 + $0x63] sm:$0x1] %v1622_v49  ;;  %v1565_v15 = vmul.f32 %v1560_v52, %v2871_v7  ;;  %v1849_v49 = vmul.f32 1.6666666, %v2888_v25 }
 0x274   :  { %v1211_v39 = vsel %vm225_vm14, %v1210_v8, %v1201_v41  ;;  %v2998_v48 = vmul.f32 -0.70710677, %v1821_v40  ;;  %v1827_v50 = vmul.f32 %v3000_v47, %v2882_v13  ;;  %v1830_v43 = vmul.f32 %v3000_v47, %v2880_v42  ;;  %1557 = vst [vmem:[#allocation2 + $0x30] sm:$0x1] %v1556_v31 }
 0x275   :  { %v1566_v14 = vmul.f32 %v1565_v15, %v1554_v5  ;;  %v1568_v37 = vmul.f32 %v1565_v15, %v1555_v3  ;;  %v1570_v59 = vmul.f32 %v1565_v15, %v2871_v7  ;;  %1559 = vst [vmem:[#allocation2 + $0x34] sm:$0x1] %v1558_v29  ;;  %v1850_v41 = vmul.f32 %v1849_v49, %v1837_v20 }
 0x276   :  { %v1826_v54 = vmul.f32 %v2998_v48, %v2880_v42  ;;  %v1831_v21 = vmul.f32 %v2998_v48, %v2882_v13  ;;  %v1839_v36 = vmul.f32 %v1838_v9, %v2998_v48  ;;  %1562 = vst [vmem:[#allocation2 + $0x31] sm:$0x1] %v1561_v62  ;;  %v1857_v29 = vmul.f32 0.61237246, %v2913_v44 }
 0x277   :  { %v1571_v40 = vmul.f32 %v1570_v59, %v1554_v5  ;;  %v1573_v8 = vmul.f32 %v1570_v59, %v1555_v3  ;;  %1564 = vst [vmem:[#allocation2 + $0x35] sm:$0x1] %v1563_v6  ;;  %v1872_v59 = vmul.f32 0.63078314, %v1837_v20  ;;  %v1278_v20 = vld [vmem:[%s3427_s0 + $0x10] sm:$0x1] }
 0x278   :  { %v207_v32 = vpop.permute.xlu0 %206  ;;  %v1828_v18 = vsub.f32 %v1826_v54, %v1827_v50  ;;  %v1832_v12 = vadd.f32 %v1831_v21, %v1830_v43  ;;  %v1855_v31 = vmul.f32 %v1854_v24, %v1839_v36  ;;  %1567 = vst [vmem:[#allocation2 + $0x32] sm:$0x1] %v1566_v14  ;;  %v1862_v50 = vmul.f32 2.236068, %v2888_v25 }
 0x279   :  { %v224_v45 = vsel %vm223_vm13, %v222_v30, %v207_v32  ;;  %v1204_v46 = vpop.permute.xlu1 %1203  ;;  %v1653_v19 = vld [vmem:[#allocation3 + $0x68] sm:$0xff]  ;;  %v1840_v30 = vmul.f32 %v1838_v9, %v3000_v47  ;;  %1569 = vst [vmem:[#allocation2 + $0x36] sm:$0x1] %v1568_v37  ;;  %v1779_v43 = vmul.f32 %v2958_v33, %v2995_v53 }
 0x27a   :  { %v3006_v26 = vsel %vm227_vm15, %v1211_v39, %v1204_v46  ;;  %v1829_v51 = vmul.f32 -0.8660254, %v1828_v18  ;;  %1668 = vmatpush.xpose.msrb.mxu1 %v1653_v19  ;;  %v3029_v23 = vmul.f32 -0.8660254, %v1832_v12  ;;  %v1852_v39 = vmul.f32 %v1851_v35, %v2888_v25  ;;  %v1652_v62 = vld [vmem:[#allocation3 + $0x60] sm:$0xff] }
 0x27b   :  { %v1213_v11 = vmul.f32 %v3017_v16, %v3006_v26  ;;  %1572 = vst [vmem:[#allocation2 + $0x33] sm:$0x1] %v1571_v40  ;;  %v1856_v15 = vmul.f32 %v1854_v24, %v1840_v30  ;;  %v1860_v18 = vmul.f32 %v1857_v29, %v3000_v47  ;;  %v1873_v12 = vmul.f32 0.63078314, %v1839_v36 }
 0x27c   :  { %v1841_v4 = vmul.f32 %v1829_v51, %v2880_v42  ;;  %v1846_v7 = vmul.f32 %v1829_v51, %v2882_v13  ;;  %v1842_v3 = vmul.f32 %v3029_v23, %v2882_v13  ;;  %v1845_v32 = vmul.f32 %v3029_v23, %v2880_v42  ;;  %1574 = vst [vmem:[#allocation2 + $0x37] sm:$0x1] %v1573_v8  ;;  %v1276_v8 = vld [vmem:[%s3427_s0 + $0xf] sm:$0x1] }
 0x27d   :  { %v1214_v17 = vrot.slane %v1213_v11, 4  ;;  %v1858_v42 = vmul.f32 %v1857_v29, %v2998_v48  ;;  %v1853_v6 = vsub.f32 %v1850_v41, %v1852_v39  ;;  %v1874_v53 = vmul.f32 0.63078314, %v1829_v51  ;;  %1888 = vst [vmem:[#allocation3 + $0x78] sm:$0x1] %v1872_v59 }
 0x27e   :  { %v1843_v52 = vsub.f32 %v1841_v4, %v1842_v3  ;;  %v1847_v54 = vadd.f32 %v1846_v7, %v1845_v32  ;;  %1669 = vmatpush.xpose.msrb.mxu1 %v1652_v62  ;;  %v1780_v19 = vmul.f32 0.5, %v1779_v43  ;;  %v1861_v7 = vsub.f32 %v1856_v15, %v1860_v18  ;;  %1889 = vst [vmem:[#allocation3 + $0x79] sm:$0x1] %v1873_v12 }
 0x27f   :  { %v1215_v57 = vadd.f32 %v1214_v17, %v1213_v11  ;;  %v1859_v9 = vsub.f32 %v1855_v31, %v1858_v42  ;;  %v1863_v17 = vmul.f32 %v1862_v50, %v1829_v51  ;;  %v1876_v4 = vmul.f32 0.7463527, %v1853_v6  ;;  %1890 = vst [vmem:[#allocation3 + $0x7a] sm:$0x1] %v1874_v53 }
 0x280   :  { %v1848_v27 = vmul.f32 -0.91287094, %v1847_v54  ;;  %v1844_v37 = vmul.f32 -0.91287094, %v1843_v52  ;;  %v1865_v51 = vmul.f32 0.48860252, %v3000_v47  ;;  %v1864_v3 = vmul.f32 %v1862_v50, %v3029_v23 }
 0x281   :  { %v1216_v63 = vrot.slane %v1215_v57, 2  ;;  %v210_v38 = vpop.permute.xlu1 %209  ;;  %v1877_v35 = vmul.f32 0.7463527, %v1859_v9  ;;  %v1866_v41 = vmul.f32 0.63078314, %v1840_v30  ;;  %v1781_v39 = vsub.f32 1.5, %v1780_v19 }
 0x282   :  { %v226_v5 = vsel %vm225_vm14, %v224_v45, %v210_v38  ;;  %v1875_v40 = vmul.f32 0.7463527, %v1848_v27  ;;  %v1280_v38 = vld [vmem:[%s3427_s0 + $0x11] sm:$0x1]  ;;  %v1867_v24 = vmul.f32 0.7463527, %v1861_v7 }
 0x283   :  { %v1217_v28 = vadd.f32 %v1216_v63, %v1215_v57  ;;  %v3043_v46 = vsel %vm227_vm15, %v226_v5, %v213_v56  ;;  %v1878_v63 = vmul.f32 0.7463527, %v1863_v17  ;;  %v1868_v5 = vmul.f32 0.48860252, %v2888_v25  ;;  %1892 = vst [vmem:[#allocation3 + $0x7c] sm:$0x1] %v1876_v4 }
 0x284   :  { %v229_v45 = vmul.f32 %v3017_v16, %v3043_v46  ;;  %1891 = vst [vmem:[#allocation3 + $0x7b] sm:$0x1] %v1875_v40  ;;  %v1869_v32 = vmul.f32 0.48860252, %v2998_v48  ;;  %v3069_v31 = vmul.f32 0.5, %v1276_v8  ;;  %v3071_v30 = vmul.f32 0.5, %v1278_v20 }
 0x285   :  { %v1218_v13 = vrot.slane %v1217_v28, 1  ;;  %1893 = vst [vmem:[#allocation3 + $0x7d] sm:$0x1] %v1877_v35  ;;  %v1782_v29 = vmul.f32 %v2958_v33, %v1781_v39  ;;  %v1787_v25 = vand.u32 2147483648, %v2913_v44  ;;  %v1871_v6 = vmul.f32 0.7463527, %v1864_v3 }
 0x286   :  { %v230_v11 = vrot.slane %v229_v45, 4  ;;  %1894 = vst [vmem:[#allocation3 + $0x7e] sm:$0x1] %v1878_v63  ;;  %v1282_v54 = vmul.f32 %v3069_v31, %v3069_v31  ;;  %v1330_v50 = vmul.f32 0.0, %v3071_v30  ;;  %v1333_v43 = vmul.f32 0.0, %v3069_v31 }
 0x287   :  { %v1219_v21 = vadd.f32 %v1218_v13, %v1217_v28  ;;  %v1795_v28 = vmul.f32 -0.5, %v2913_v44  ;;  %v1283_v13 = vmul.f32 %v3071_v30, %v3071_v30  ;;  %1881 = vst [vmem:[#allocation3 + $0x71] sm:$0x1] %v1865_v51  ;;  %v1783_v42 = vmul.f32 %v1782_v29, %v2913_v44 }
 0x288   :  { %v231_v14 = vadd.f32 %v230_v11, %v229_v45  ;;  %v3076_v45 = vmul.f32 0.5, %v1280_v38  ;;  %1882 = vst [vmem:[#allocation3 + $0x72] sm:$0x1] %v1866_v41  ;;  %v1331_v18 = vsub.f32 %v3069_v31, %v1330_v50 }
 0x289   :  { %v1220_v57 = vmul.f32 %v1219_v21, %v3006_v26  ;;  %v1879_v26 = vmul.f32 0.7463527, %v1844_v37  ;;  %v1796_v52 = vmul.f32 1.442695, %v1795_v28  ;;  %v1284_v11 = vadd.f32 %v1283_v13, %v1282_v54  ;;  %1883 = vst [vmem:[#allocation3 + $0x73] sm:$0x1] %v1867_v24 }
 0x28a   :  { %v232_v49 = vrot.slane %v231_v14, 2  ;;  %v1285_v33 = vmul.f32 %v3076_v45, %v3076_v45  ;;  %v1344_v62 = vmul.f32 1.5, %v3076_v45  ;;  %v1785_v15 = vsel %vm1784_vm0, %v2913_v44, %v1783_v42  ;;  %1884 = vst [vmem:[#allocation3 + $0x74] sm:$0x1] %v1868_v5  ;;  %v1799_v24 = vld [vmem:[%s3428_s1 + $0xe] sm:$0x1] }
 0x28b   :  { %1237 = vmatmul.f32.vlgmr.msra.gmra.mxu3 %v1220_v57  ;;  %1895 = vst [vmem:[#allocation3 + $0x7f] sm:$0x1] %v1879_v26  ;;  %v1334_v21 = vadd.f32 %v1333_v43, %v3071_v30  ;;  %v1788_v27 = vsel %vm1786_vm1, %v1787_v25, %v1785_v15  ;;  %2062 = vpow2.f32 %v1796_v52  ;;  %v1651_v57 = vld [vmem:[#allocation2 + $0x30] sm:$0xff]  ;;  %v1359_v35 = vmul.f32 1.6666666, %v3076_v45 }
 0x28c   :  { %v233_v36 = vadd.f32 %v232_v49, %v231_v14  ;;  %v3097_v9 = vadd.f32 %v1285_v33, %v1284_v11  ;;  %1885 = vst [vmem:[#allocation3 + $0x75] sm:$0x1] %v1869_v32  ;;  %v1789_v17 = vmul.f32 2.0, %v1788_v27  ;;  %v3100_v14 = vmul.f32 -0.70710677, %v1331_v18 }
 0x28d   :  { %v1345_v37 = vmul.f32 %v1344_v62, %v3076_v45  ;;  %v3103_v59 = vmul.f32 -0.70710677, %v1334_v21  ;;  %1887 = vst [vmem:[#allocation3 + $0x77] sm:$0x1] %v1871_v6  ;;  %v1800_v28 = vld [vmem:[%s3428_s1 + $0xf] sm:$0x1] }
 0x28e   :  { %v234_v56 = vrot.slane %v233_v36, 1  ;;  %v1346_v12 = vmul.f32 0.5, %v3097_v9  ;;  %v1791_v19 = vmul.f32 0.16666667, %v1789_v17  ;;  %v1336_v49 = vmul.f32 %v3100_v14, %v3069_v31 }
 0x28f   :  { %v1341_v40 = vmul.f32 %v3100_v14, %v3071_v30  ;;  %v1337_v4 = vmul.f32 %v3103_v59, %v3071_v30  ;;  %v1340_v7 = vmul.f32 %v3103_v59, %v3069_v31  ;;  %vm1790_vm2 = vcmp.lt.f32.partialorder %v1789_v17, 6.0 }
 0x290   :  { %v235_v47 = vadd.f32 %v234_v56, %v233_v36  ;;  %v1792_v63 = vsub.f32 1.0, %v1791_v19  ;;  %v1347_v8 = vsub.f32 %v1345_v37, %v1346_v12  ;;  %v1364_v36 = vmul.f32 1.767767, %v3076_v45 }
 0x291   :  { %v1338_v26 = vsub.f32 %v1336_v49, %v1337_v4  ;;  %v1342_v51 = vadd.f32 %v1341_v40, %v1340_v7  ;;  %v2063_v38 = vpop.eup %2062  ;;  %v1361_v56 = vmul.f32 0.6666667, %v3097_v9  ;;  %v1367_v5 = vmul.f32 0.61237246, %v3097_v9 }
 0x292   :  { %v236_v48 = vmul.f32 %v235_v47, %v3043_v46  ;;  %v1870_v46 = vmul.f32 0.63078314, %v3029_v23  ;;  %v1348_v23 = vmul.f32 1.7320508, %v3076_v45  ;;  %v1898_v53 = vld [vmem:[#allocation3 + $0x78] sm:$0xff]  ;;  %v1793_v41 = vmul.f32 %v1792_v63, %v1792_v63 }
 0x293   :  { %v1339_v3 = vmul.f32 -0.8660254, %v1338_v26  ;;  %v3122_v32 = vmul.f32 -0.8660254, %v1342_v51  ;;  %v1382_v39 = vmul.f32 0.63078314, %v1347_v8  ;;  %2064 = vrsqrt.f32 %v3097_v9 }
 0x294   :  { %253 = vmatmul.f32.vlgmr.msra.gmra.mxu1 %v236_v48  ;;  %1886 = vst [vmem:[#allocation3 + $0x76] sm:$0x1] %v1870_v46  ;;  %v1349_v20 = vmul.f32 %v1348_v23, %v3100_v14  ;;  %v1794_v47 = vsel %vm1790_vm2, %v1793_v41, 0.0  ;;  %v1360_v29 = vmul.f32 %v1359_v35, %v1347_v8  ;;  %v1362_v43 = vmul.f32 %v1361_v56, %v3076_v45 }
 0x295   :  { %1913 = vmatpush.xpose.msra.mxu1 %v1898_v53  ;;  %v1798_v54 = vmul.f32 %v2063_v38, %v1794_v47  ;;  %v1351_v13 = vmul.f32 %v1339_v3, %v3069_v31  ;;  %v1352_v42 = vmul.f32 %v3122_v32, %v3071_v30  ;;  %v1355_v33 = vmul.f32 %v3122_v32, %v3069_v31 }
 0x296   :  { %v1365_v25 = vmul.f32 %v1364_v36, %v1349_v20  ;;  %v1383_v48 = vmul.f32 0.63078314, %v1349_v20  ;;  %1398 = vst [vmem:[#allocation3 + $0x58] sm:$0x1] %v1382_v39  ;;  %v1356_v50 = vmul.f32 %v1339_v3, %v3071_v30  ;;  %v1368_v46 = vmul.f32 %v1367_v5, %v3100_v14 }
 0x297   :  { %v1384_v11 = vmul.f32 0.63078314, %v1339_v3  ;;  %v1801_v62 = vmul.f32 %v1799_v24, %v1798_v54  ;;  %v1803_v6 = vmul.f32 %v1800_v28, %v1798_v54  ;;  %v1805_v15 = vmul.f32 %v1798_v54, %v2913_v44  ;;  %v699_v54 = vpop.permute.xlu1 %698 }
 0x298   :  { %1399 = vst [vmem:[#allocation3 + $0x59] sm:$0x1] %v1383_v48  ;;  %v1353_v18 = vsub.f32 %v1351_v13, %v1352_v42  ;;  %v1357_v21 = vadd.f32 %v1356_v50, %v1355_v33  ;;  %v1372_v31 = vmul.f32 2.236068, %v3076_v45  ;;  %v1350_v27 = vmul.f32 %v1348_v23, %v3103_v59  ;;  %v2077_v13 = vld [vmem:[%s3430_s3 + $0x38] sm:$0xff] }
 0x299   :  { %1400 = vst [vmem:[#allocation3 + $0x5a] sm:$0x1] %v1384_v11  ;;  %v2065_v30 = vpop.eup %2064  ;;  %v1806_v17 = vmul.f32 %v1805_v15, %v1799_v24  ;;  %v1808_v37 = vmul.f32 %v1805_v15, %v1800_v28  ;;  %v1810_v12 = vmul.f32 %v1805_v15, %v2913_v44  ;;  %v1363_v53 = vsub.f32 %v1360_v29, %v1362_v43  ;;  %v2080_v15 = vld [vmem:[%s3430_s3 + $0x20] sm:$0xff] }
 0x29a   :  { %1802 = vst [vmem:[#allocation2 + $0x38] sm:$0x1] %v1801_v62  ;;  %v1369_v19 = vsub.f32 %v1365_v25, %v1368_v46  ;;  %v1373_v23 = vmul.f32 %v1372_v31, %v1339_v3  ;;  %v1366_v4 = vmul.f32 %v1364_v36, %v1350_v27  ;;  %v1370_v7 = vmul.f32 %v1367_v5, %v3103_v59  ;;  %v702_v25 = vpop.permute.xlu2 %701  ;;  %v2079_v46 = vld [vmem:[%s3430_s3 + $0x28] sm:$0xff] }
 0x29b   :  { %v1897_v52 = vld [vmem:[#allocation3 + $0x70] sm:$0xff]  ;;  %1804 = vst [vmem:[#allocation2 + $0x3c] sm:$0x1] %v1803_v6  ;;  %v1813_v49 = vmul.f32 %v1810_v12, %v1800_v28  ;;  %v1815_v40 = vmul.f32 %v1810_v12, %v2913_v44  ;;  %v1288_v35 = vmul.f32 %v2065_v30, %v3097_v9  ;;  %v1354_v8 = vmul.f32 -0.91287094, %v1353_v18 }
 0x29c   :  { %1670 = vmatmul.f32.vlgmr.msrb.gmra.mxu1 %v1651_v57  ;;  %v1358_v57 = vmul.f32 -0.91287094, %v1357_v21  ;;  %1807 = vst [vmem:[#allocation2 + $0x39] sm:$0x1] %v1806_v17  ;;  %v1386_v26 = vmul.f32 0.7463527, %v1363_v53  ;;  %v1371_v36 = vsub.f32 %v1366_v4, %v1370_v7 }
 0x29d   :  { %1914 = vmatpush.xpose.msra.mxu1 %v1897_v52  ;;  %1809 = vst [vmem:[#allocation2 + $0x3d] sm:$0x1] %v1808_v37  ;;  %v1818_v63 = vmul.f32 %v1815_v40, %v1800_v28  ;;  %v1289_v51 = vmul.f32 %v2065_v30, %v1288_v35  ;;  %v1387_v44 = vmul.f32 0.7463527, %v1369_v19  ;;  %v1389_v41 = vmul.f32 0.7463527, %v1354_v8 }
 0x29e   :  { %v1385_v20 = vmul.f32 0.7463527, %v1358_v57  ;;  %1814 = vst [vmem:[#allocation2 + $0x3e] sm:$0x1] %v1813_v49  ;;  %v1376_v5 = vmul.f32 0.63078314, %v1350_v27 }
 0x29f   :  { %1819 = vst [vmem:[#allocation2 + $0x3f] sm:$0x1] %v1818_v63  ;;  %v1290_v38 = vmul.f32 0.5, %v1289_v51  ;;  %v1377_v3 = vmul.f32 0.7463527, %v1371_v36  ;;  %vm1294_vm3 = vcmp.eq.f32.partialorder %v3097_v9, inf }
 0x2a0   :  { %1401 = vst [vmem:[#allocation3 + $0x5b] sm:$0x1] %v1385_v20  ;;  %v1378_v39 = vmul.f32 0.48860252, %v3076_v45  ;;  %v2076_v28 = vld [vmem:[%s3430_s3 + $0x40] sm:$0xff]  ;;  %vm1296_vm4 = vcmp.eq.f32.partialorder %v3097_v9, 0.0  ;;  %v696_v45 = vpop.permute.xlu0 %695 }
 0x2a1   :  { %1956 = vmatpush.msrb.mxu1 %v2746_v55  ;;  %v1811_v55 = vmul.f32 %v1810_v12, %v1799_v24  ;;  %1402 = vst [vmem:[#allocation3 + $0x5c] sm:$0x1] %v1386_v26  ;;  %v1291_v56 = vsub.f32 1.5, %v1290_v38  ;;  %v716_v52 = vsel %vm215_vm10, %v2818_v2, %v696_v45  ;;  %v2078_v2 = vld [vmem:[%s3430_s3 + $0x30] sm:$0xff]  ;;  %v2081_v17 = vld [vmem:[%s3430_s3 + $0x18] sm:$0xff]  ;;  %v2083_v4 = vld [vmem:[%s3430_s3 + $0x8] sm:$0xff] }
 0x2a2   :  { %1403 = vst [vmem:[#allocation3 + $0x5d] sm:$0x1] %v1387_v44  ;;  %v717_v50 = vsel %vm217_vm9, %v716_v52, %v699_v54  ;;  %v2082_v53 = vld [vmem:[%s3430_s3 + $0x10] sm:$0xff]  ;;  %v1310_v49 = vld [vmem:[%s3428_s1 + $0xb] sm:$0x1]  ;;  %v2084_v8 = vld [vmem:[%s3430_s3] sm:$0xff] }
 0x2a3   :  { %1957 = vmatpush.msrb.mxu1 %v2752_v58  ;;  %1812 = vst [vmem:[#allocation2 + $0x3a] sm:$0x1] %v1811_v55  ;;  %v1816_v58 = vmul.f32 %v1815_v40, %v1799_v24  ;;  %v1375_v24 = vmul.f32 0.48860252, %v3103_v59  ;;  %v1292_v47 = vmul.f32 %v2065_v30, %v1291_v56  ;;  %v1297_v59 = vand.u32 2147483648, %v3097_v9  ;;  %v708_v30 = vpop.permute.xlu1 %707 }
 0x2a4   :  { %1405 = vst [vmem:[#allocation3 + $0x5f] sm:$0x1] %v1389_v41  ;;  %v718_v6 = vsel %vm219_vm11, %v717_v50, %v702_v25  ;;  %v1309_v55 = vld [vmem:[%s3428_s1 + $0xa] sm:$0x1] }
 0x2a5   :  { %1958 = vmatpush.msrb.mxu1 %v2758_v34  ;;  %1817 = vst [vmem:[#allocation2 + $0x3b] sm:$0x1] %v1816_v58  ;;  %v1388_v34 = vmul.f32 0.7463527, %v1373_v23 }
 0x2a6   :  { %1391 = vst [vmem:[#allocation3 + $0x51] sm:$0x1] %v1375_v24 }
 0x2a7   :  { %1959 = vmatpush.msrb.mxu1 %v2764_v61  ;;  %v1305_v61 = vmul.f32 -0.5, %v3097_v9  ;;  %1404 = vst [vmem:[#allocation3 + $0x5e] sm:$0x1] %v1388_v34 }
 0x2a8   :  { %1392 = vst [vmem:[#allocation3 + $0x52] sm:$0x1] %v1376_v5  ;;  %v705_v21 = vpop.permute.xlu0 %704 }
 0x2a9   :  { %1960 = vmatpush.msrb.mxu1 %v2770_v22  ;;  %v1374_v22 = vmul.f32 %v1372_v31, %v3122_v32  ;;  %v1306_v29 = vmul.f32 1.442695, %v1305_v61  ;;  %1393 = vst [vmem:[#allocation3 + $0x53] sm:$0x1] %v1377_v3  ;;  %v711_v31 = vpop.permute.xlu2 %710  ;;  %v719_v27 = vsel %vm221_vm12, %v718_v6, %v705_v21 }
 0x2aa   :  { %1394 = vst [vmem:[#allocation3 + $0x54] sm:$0x1] %v1378_v39  ;;  %v720_v57 = vsel %vm223_vm13, %v719_v27, %v708_v30 }
 0x2ab   :  { %1961 = vmatpush.msrb.mxu1 %v2776_v0  ;;  %v1379_v0 = vmul.f32 0.48860252, %v3100_v14  ;;  %v1380_v14 = vmul.f32 0.63078314, %v3122_v32  ;;  %v1381_v42 = vmul.f32 0.7463527, %v1374_v22  ;;  %2066 = vpow2.f32 %v1306_v29  ;;  %v941_v38 = vpop.permute.xlu1 %940 }
 0x2ac   :  { %v1896_v48 = vld [vmem:[#allocation2 + $0x38] sm:$0xff]  ;;  %v721_v7 = vsel %vm225_vm14, %v720_v57, %v711_v31  ;;  %v961_v5 = vsel %vm215_vm10, %v2834_v10, %v941_v38 }
 0x2ad   :  { %1962 = vmatpush.msrb.mxu1 %v2782_v1  ;;  %v1293_v1 = vmul.f32 %v1292_v47, %v3097_v9  ;;  %1395 = vst [vmem:[#allocation3 + $0x55] sm:$0x1] %v1379_v0 }
 0x2ae   :  { %1915 = vmatmul.f32.vlgmr.msra.gmra.mxu1 %v1896_v48  ;;  %1396 = vst [vmem:[#allocation3 + $0x56] sm:$0x1] %v1380_v14  ;;  %v1408_v11 = vld [vmem:[#allocation3 + $0x58] sm:$0xff] }
 0x2af   :  { %1963 = vmatpush.msrb.mxu1 %v2076_v28  ;;  %v1295_v33 = vsel %vm1294_vm3, %v3097_v9, %v1293_v1  ;;  %1397 = vst [vmem:[#allocation3 + $0x57] sm:$0x1] %v1381_v42  ;;  %1423 = vmatpush.xpose.msrb.mxu3 %v1408_v11 }
 0x2b0   :  { %v1298_v32 = vsel %vm1296_vm4, %v1297_v59, %v1295_v33  ;;  %v714_v20 = vpop.permute.xlu0 %713 }
 0x2b1   :  { %1964 = vmatpush.msrb.mxu1 %v2077_v13  ;;  %v1299_v43 = vmul.f32 2.0, %v1298_v32  ;;  %v2067_v37 = vpop.eup %2066  ;;  %v944_v26 = vpop.permute.xlu2 %943  ;;  %v722_v36 = vsel %vm227_vm15, %v721_v7, %v714_v20 }
 0x2b2   :  { %v723_v41 = vmul.f32 %v3017_v16, %v722_v36  ;;  %v962_v0 = vsel %vm217_vm9, %v961_v5, %v944_v26 }
 0x2b3   :  { %1965 = vmatpush.msrb.mxu1 %v2078_v2  ;;  %v1301_v62 = vmul.f32 0.16666667, %v1299_v43  ;;  %vm1300_vm5 = vcmp.lt.f32.partialorder %v1299_v43, 6.0  ;;  %v953_v10 = vpop.permute.xlu1 %952 }
 0x2b4   :  { %v724_v22 = vrot.slane %v723_v41, 4 }
 0x2b5   :  { %1966 = vmatpush.msrb.mxu1 %v2079_v46  ;;  %v1302_v18 = vsub.f32 1.0, %v1301_v62 }
 0x2b6   :  { %v1407_v40 = vld [vmem:[#allocation3 + $0x50] sm:$0xff]  ;;  %v725_v47 = vadd.f32 %v724_v22, %v723_v41 }
 0x2b7   :  { %1967 = vmatpush.msrb.mxu1 %v2080_v15  ;;  %v1303_v12 = vmul.f32 %v1302_v18, %v1302_v18  ;;  %1424 = vmatpush.xpose.msrb.mxu3 %v1407_v40 }
 0x2b8   :  { %v726_v59 = vrot.slane %v725_v47, 2  ;;  %v947_v28 = vpop.permute.xlu0 %946 }
 0x2b9   :  { %1968 = vmatpush.msrb.mxu1 %v2081_v17  ;;  %v1304_v19 = vsel %vm1300_vm5, %v1303_v12, 0.0  ;;  %v950_v1 = vpop.permute.xlu2 %949  ;;  %v963_v29 = vsel %vm219_vm11, %v962_v0, %v947_v28 }
 0x2ba   :  { %v1308_v23 = vmul.f32 %v2067_v37, %v1304_v19  ;;  %v964_v45 = vsel %vm221_vm12, %v963_v29, %v950_v1 }
 0x2bb   :  { %1969 = vmatpush.msrb.mxu1 %v2082_v53  ;;  %v965_v14 = vsel %vm223_vm13, %v964_v45, %v953_v10 }
 0x2bc   :  { %v1311_v35 = vmul.f32 %v1309_v55, %v1308_v23  ;;  %v1313_v58 = vmul.f32 %v1310_v49, %v1308_v23  ;;  %v1315_v63 = vmul.f32 %v1308_v23, %v3097_v9 }
 0x2bd   :  { %1970 = vmatpush.msrb.mxu1 %v2083_v4 }
 0x2be   :  { %1312 = vst [vmem:[#allocation2 + $0x28] sm:$0x1] %v1311_v35  ;;  %v1316_v51 = vmul.f32 %v1315_v63, %v1309_v55  ;;  %v1318_v44 = vmul.f32 %v1315_v63, %v1310_v49  ;;  %v1320_v34 = vmul.f32 %v1315_v63, %v3097_v9 }
 0x2bf   :  { %1971 = vmatpush.msrb.mxu1 %v2084_v8  ;;  %1314 = vst [vmem:[#allocation2 + $0x2c] sm:$0x1] %v1313_v58 }
 0x2c0   :  { %1317 = vst [vmem:[#allocation2 + $0x29] sm:$0x1] %v1316_v51  ;;  %v1321_v24 = vmul.f32 %v1320_v34, %v1309_v55  ;;  %v1323_v56 = vmul.f32 %v1320_v34, %v1310_v49  ;;  %v1325_v61 = vmul.f32 %v1320_v34, %v3097_v9  ;;  %v727_v9 = vadd.f32 %v726_v59, %v725_v47  ;;  %v956_v13 = vpop.permute.xlu0 %955 }
 0x2c1   :  { %1319 = vst [vmem:[#allocation2 + $0x2d] sm:$0x1] %v1318_v44  ;;  %v959_v42 = vpop.permute.xlu2 %958  ;;  %v966_v33 = vsel %vm225_vm14, %v965_v14, %v956_v13 }
 0x2c2   :  { %1322 = vst [vmem:[#allocation2 + $0x2a] sm:$0x1] %v1321_v24  ;;  %v1326_v3 = vmul.f32 %v1325_v61, %v1309_v55  ;;  %v1328_v39 = vmul.f32 %v1325_v61, %v1310_v49  ;;  %v728_v25 = vrot.slane %v727_v9, 1  ;;  %v967_v32 = vsel %vm227_vm15, %v966_v33, %v959_v42 }
 0x2c3   :  { %1324 = vst [vmem:[#allocation2 + $0x2e] sm:$0x1] %v1323_v56  ;;  %v968_v50 = vmul.f32 %v3017_v16, %v967_v32 }
 0x2c4   :  { %1327 = vst [vmem:[#allocation2 + $0x2b] sm:$0x1] %v1326_v3  ;;  %v729_v48 = vadd.f32 %v728_v25, %v727_v9 }
 0x2c5   :  { %1329 = vst [vmem:[#allocation2 + $0x2f] sm:$0x1] %v1328_v39  ;;  %v969_v2 = vrot.slane %v968_v50, 4 }
 0x2c6   :  { %v730_v54 = vmul.f32 %v729_v48, %v722_v36 }
 0x2c7   :  { %v970_v43 = vadd.f32 %v969_v2, %v968_v50 }
 0x2c8   :  { %747 = vmatmul.f32.vlgmr.msra.gmra.mxu2 %v730_v54 }
 0x2c9   :  { %v971_v46 = vrot.slane %v970_v43, 2 }
 0x2cb   :  { %v972_v11 = vadd.f32 %v971_v46, %v970_v43 }
 0x2cc   :  { %v1406_v52 = vld [vmem:[#allocation2 + $0x28] sm:$0xff] }
 0x2cd   :  { %1425 = vmatmul.f32.vlgmr.msrb.gmra.mxu3 %v1406_v52  ;;  %v973_v62 = vrot.slane %v972_v11, 1 }
 0x2cf   :  { %v974_v6 = vadd.f32 %v973_v62, %v972_v11 }
 0x2d1   :  { %v975_v15 = vmul.f32 %v974_v6, %v967_v32 }
 0x2d3   :  { %992 = vmatmul.f32.vlgmr.msra.gmra.mxu0 %v975_v15 }
 0x30e   :  { %v3232_v27 = vpop.f32.mrf.mxu3 }
 0x311   :  { %v3219_v18 = vpop.f32.mrf.mxu1 }
 0x319   :  { %v1671_v21 = vpop.f32.mrf.mxu1 }
 0x31a   :  { %1678 = vrot.lane.b32.xlu2 %v1671_v21, %s2117_s18  ;;  %1675 = vrot.lane.b32.xlu0 %v1671_v21, %s2114_s15 }
 0x32b   :  { %v1916_v31 = vpop.f32.mrf.mxu1 }
 0x32c   :  { %1926 = vrot.lane.b32.xlu2 %v1916_v31, %s2113_s14  ;;  %1923 = vrot.lane.b32.xlu0 %v1916_v31, %s2117_s18 }
 0x32d   :  { %1920 = vrot.lane.b32.xlu1 %v1916_v31, %s2114_s15 }
 0x334   :  { %1687 = vrot.lane.b32.xlu2 %v1671_v21, %s2112_s13  ;;  %1684 = vrot.lane.b32.xlu0 %v1671_v21, %s2116_s17 }
 0x335   :  { %1681 = vrot.lane.b32.xlu1 %v1671_v21, %s2113_s14 }
 0x33c   :  { %1932 = vrot.lane.b32.xlu0 %v1916_v31, %s2112_s13 }
 0x33d   :  { %1929 = vrot.lane.b32.xlu1 %v1916_v31, %s2116_s17 }
 0x345   :  { %1690 = vrot.lane.b32.xlu1 %v1671_v21, %s2115_s16 }
 0x34b   :  { %v3248_v17 = vpop.f32.mrf.mxu2 }
 0x350   :  { %v1426_v30 = vpop.f32.mrf.mxu3  ;;  %v3256_v37 = vpop.f32.mrf.mxu0 }
 0x351   :  { %1436 = vrot.lane.b32.xlu2 %v1426_v30, %s2113_s14  ;;  %1433 = vrot.lane.b32.xlu0 %v1426_v30, %s2117_s18 }
 0x352   :  { %1430 = vrot.lane.b32.xlu1 %v1426_v30, %s2114_s15 }
 0x359   :  { %1448 = vrot.lane.b32.xlu2 %v1426_v30, %s2118_s19  ;;  %1442 = vrot.lane.b32.xlu0 %v1426_v30, %s2112_s13 }
 0x35a   :  { %1439 = vrot.lane.b32.xlu1 %v1426_v30, %s2116_s17 }
 0x361   :  { %1935 = vrot.lane.b32.xlu2 %v1916_v31, %s2115_s16  ;;  %1693 = vrot.lane.b32.xlu0 %v1671_v21, %s2118_s19 }
 0x362   :  { %1445 = vrot.lane.b32.xlu1 %v1426_v30, %s2115_s16 }
 0x369   :  { %258 = vrot.lane.b32.xlu2 %v3219_v18, %s2117_s18  ;;  %261 = vrot.lane.b32.xlu0 %v3219_v18, %s2116_s17 }
 0x36a   :  { %1938 = vrot.lane.b32.xlu1 %v1916_v31, %s2118_s19 }
 0x371   :  { %507 = vrot.lane.b32.xlu2 %v2794_v60, %s2117_s18  ;;  %752 = vrot.lane.b32.xlu0 %v3248_v17, %s2117_s18 }
 0x372   :  { %264 = vrot.lane.b32.xlu1 %v3219_v18, %s2115_s16 }
 0x374   :  { %v1679_v53 = vpop.permute.xlu2 %1678 }
 0x379   :  { %1242 = vrot.lane.b32.xlu2 %v3232_v27, %s2117_s18  ;;  %510 = vrot.lane.b32.xlu0 %v2794_v60, %s2116_s17 }
 0x37a   :  { %997 = vrot.lane.b32.xlu1 %v3256_v37, %s2117_s18 }
 0x381   :  { %1245 = vrot.lane.b32.xlu0 %v3232_v27, %s2116_s17 }
 0x386   :  { %v1927_v49 = vpop.permute.xlu2 %1926 }
 0x38c   :  { %v1676_v12 = vpop.permute.xlu0 %1675 }
 0x38d   :  { %v1696_v20 = vsel %vm215_vm10, %v1671_v21, %v1676_v12 }
 0x38e   :  { %v1688_v4 = vpop.permute.xlu2 %1687  ;;  %v1697_v51 = vsel %vm217_vm9, %v1696_v20, %v1679_v53 }
 0x39e   :  { %v1924_v19 = vpop.permute.xlu0 %1923 }
 0x39f   :  { %v1921_v57 = vpop.permute.xlu1 %1920 }
 0x3a0   :  { %v1941_v24 = vsel %vm215_vm10, %v1916_v31, %v1921_v57 }
 0x3a1   :  { %v1942_v22 = vsel %vm217_vm9, %v1941_v24, %v1924_v19 }
 0x3a2   :  { %v1943_v1 = vsel %vm219_vm11, %v1942_v22, %v1927_v49  ;;  %v3295_v49 = vld [vmem:[%s3431_s4] sm:$0xff] }
 0x3a6   :  { %v1685_v40 = vpop.permute.xlu0 %1684 }
 0x3a7   :  { %v1682_v55 = vpop.permute.xlu1 %1681 }
 0x3a8   :  { %v1698_v36 = vsel %vm219_vm11, %v1697_v51, %v1682_v55 }
 0x3a9   :  { %v1699_v56 = vsel %vm221_vm12, %v1698_v36, %v1685_v40 }
 0x3aa   :  { %v1700_v3 = vsel %vm223_vm13, %v1699_v56, %v1688_v4 }
 0x3ab   :  { %v1437_v58 = vpop.permute.xlu2 %1436 }
 0x3ae   :  { %v1933_v7 = vpop.permute.xlu0 %1932 }
 0x3af   :  { %v1930_v23 = vpop.permute.xlu1 %1929 }
 0x3b0   :  { %v1944_v10 = vsel %vm221_vm12, %v1943_v1, %v1930_v23 }
 0x3b1   :  { %v1945_v52 = vsel %vm223_vm13, %v1944_v10, %v1933_v7 }
 0x3b3   :  { %v1449_v34 = vpop.permute.xlu2 %1448 }
 0x3b7   :  { %v1691_v35 = vpop.permute.xlu1 %1690 }
 0x3b8   :  { %v1701_v39 = vsel %vm225_vm14, %v1700_v3, %v1691_v35 }
 0x3bb   :  { %v1936_v45 = vpop.permute.xlu2 %1935 }
 0x3bc   :  { %v1946_v32 = vsel %vm225_vm14, %v1945_v52, %v1936_v45 }
 0x3c3   :  { %v1434_v63 = vpop.permute.xlu0 %1433  ;;  %v259_v15 = vpop.permute.xlu2 %258 }
 0x3c4   :  { %v1431_v8 = vpop.permute.xlu1 %1430  ;;  %v267_v53 = vsel %vm217_vm9, %v3219_v18, %v259_v15 }
 0x3c5   :  { %v1451_v26 = vsel %vm215_vm10, %v1426_v30, %v1431_v8  ;;  %vm287_vm10 = vcmask 1040384  }
 0x3c6   :  { %v1452_v41 = vsel %vm217_vm9, %v1451_v26, %v1434_v63 }
 0x3c7   :  { %v1453_v61 = vsel %vm219_vm11, %v1452_v41, %v1437_v58 }
 0x3cb   :  { %v1443_v44 = vpop.permute.xlu0 %1442 }
 0x3cc   :  { %v1440_v38 = vpop.permute.xlu1 %1439 }
 0x3cd   :  { %v1454_v5 = vsel %vm221_vm12, %v1453_v61, %v1440_v38  ;;  %v290_v61 = vlaneseq }
 0x3ce   :  { %v1455_v59 = vsel %vm223_vm13, %v1454_v5, %v1443_v44 }
 0x3cf   :  { %vm3306_vm11 = vcmp.lt.s32.totalorder %v290_v61, 256 }
 0x3d3   :  { %v1694_v47 = vpop.permute.xlu0 %1693 }
 0x3d4   :  { %v1702_v0 = vsel %vm227_vm15, %v1701_v39, %v1694_v47  ;;  %v1446_v28 = vpop.permute.xlu1 %1445 }
 0x3d5   :  { %v1703_v29 = vmul.f32 %v3017_v16, %v1702_v0  ;;  %v1456_v9 = vsel %vm225_vm14, %v1455_v59, %v1446_v28 }
 0x3d6   :  { %v1457_v25 = vsel %vm227_vm15, %v1456_v9, %v1449_v34  ;;  %v508_v9 = vpop.permute.xlu2 %507 }
 0x3d7   :  { %v1704_v48 = vrot.slane %v1703_v29, 4  ;;  %v1458_v14 = vmul.f32 %v3017_v16, %v1457_v25 }
 0x3d9   :  { %v1705_v54 = vadd.f32 %v1704_v48, %v1703_v29  ;;  %v1459_v13 = vrot.slane %v1458_v14, 4 }
 0x3db   :  { %v1706_v42 = vrot.slane %v1705_v54, 2  ;;  %v1460_v33 = vadd.f32 %v1459_v13, %v1458_v14  ;;  %v262_v30 = vpop.permute.xlu0 %261 }
 0x3dc   :  { %v1939_v50 = vpop.permute.xlu1 %1938  ;;  %v268_v40 = vsel %vm221_vm12, %v267_v53, %v262_v30 }
 0x3dd   :  { %v1707_v2 = vadd.f32 %v1706_v42, %v1705_v54  ;;  %v1461_v43 = vrot.slane %v1460_v33, 2  ;;  %v1947_v46 = vsel %vm227_vm15, %v1946_v32, %v1939_v50 }
 0x3de   :  { %v1948_v11 = vmul.f32 %v3017_v16, %v1947_v46  ;;  %v3300_v16 = vld [vmem:[%s3431_s4 + $0x8] sm:$0xff]  ;;  %v1243_v45 = vpop.permute.xlu2 %1242  ;;  %s2119_s4 = smov [#allocation4]  }
 0x3df   :  { %v1708_v62 = vrot.slane %v1707_v2, 1  ;;  %v1462_v6 = vadd.f32 %v1461_v43, %v1460_v33  ;;  %s2016_s15 = sshll.u32 %s2119_s4, 4  ;;  %s2017_s15 = int_to_ptr.vmem [resolvable:$true] %s2016_s15 }
 0x3e0   :  { %v1949_v21 = vrot.slane %v1948_v11, 4 }
 0x3e1   :  { %v1709_v31 = vadd.f32 %v1708_v62, %v1707_v2  ;;  %v1463_v12 = vrot.slane %v1462_v6, 1 }
 0x3e2   :  { %v1950_v57 = vadd.f32 %v1949_v21, %v1948_v11  ;;  %v516_v21 = vsel %vm217_vm9, %v2794_v60, %v508_v9 }
 0x3e3   :  { %v1710_v19 = vmul.f32 %v1709_v31, %v1702_v0  ;;  %v1464_v55 = vadd.f32 %v1463_v12, %v1462_v6  ;;  %v753_v10 = vpop.permute.xlu0 %752 }
 0x3e4   :  { %v1951_v23 = vrot.slane %v1950_v57, 2  ;;  %v265_v4 = vpop.permute.xlu1 %264  ;;  %v761_v33 = vsel %vm217_vm9, %v3248_v17, %v753_v10 }
 0x3e5   :  { %v1465_v7 = vmul.f32 %v1464_v55, %v1457_v25  ;;  %1727 = vmatmul.f32.vlgmr.msrb.gmra.mxu0 %v1710_v19  ;;  %v269_v18 = vsel %vm225_vm14, %v268_v40, %v265_v4 }
 0x3e6   :  { %v1952_v35 = vadd.f32 %v1951_v23, %v1950_v57  ;;  %v270_v58 = vmul.f32 %v269_v18, %v3295_v49  ;;  %v271_v63 = vmul.f32 %v269_v18, %v3300_v16 }
 0x3e7   :  { %1482 = vmatmul.f32.vlgmr.msrb.gmra.mxu2 %v1465_v7 }
 0x3e8   :  { %v1953_v8 = vrot.slane %v1952_v35, 1  ;;  %v272_v20 = vrot.slane %v270_v58, 4  ;;  %v278_v26 = vrot.slane %v271_v63, 4 }
 0x3ea   :  { %v1954_v51 = vadd.f32 %v1953_v8, %v1952_v35  ;;  %v273_v44 = vadd.f32 %v272_v20, %v270_v58  ;;  %v279_v34 = vadd.f32 %v278_v26, %v271_v63 }
 0x3eb   :  { %v511_v48 = vpop.permute.xlu0 %510 }
 0x3ec   :  { %v1955_v36 = vmul.f32 %v1954_v51, %v1947_v46  ;;  %v274_v38 = vrot.slane %v273_v44, 2  ;;  %v280_v41 = vrot.slane %v279_v34, 2  ;;  %v998_v14 = vpop.permute.xlu1 %997 }
 0x3ed   :  { %v1006_v12 = vsel %vm217_vm9, %v3256_v37, %v998_v14 }
 0x3ee   :  { %v275_v24 = vadd.f32 %v274_v38, %v273_v44  ;;  %v281_v56 = vadd.f32 %v280_v41, %v279_v34  ;;  %1972 = vmatmul.f32.vlgmr.msrb.gmra.mxu1 %v1955_v36  ;;  %v1251_v38 = vsel %vm217_vm9, %v3232_v27, %v1243_v45 }
 0x3f0   :  { %v276_v5 = vrot.slane %v275_v24, 1  ;;  %v282_v22 = vrot.slane %v281_v56, 1 }
 0x3f2   :  { %v283_v3 = vadd.f32 %v282_v22, %v281_v56  ;;  %v277_v47 = vadd.f32 %v276_v5, %v275_v24 }
 0x3f3   :  { %v1246_v13 = vpop.permute.xlu0 %1245 }
 0x3f4   :  { %v286_v0 = vrot.slane %v283_v3, 7  ;;  %v1252_v61 = vsel %vm221_vm12, %v1251_v38, %v1246_v13 }
 0x3f6   :  { %v288_v59 = vsel %vm287_vm10, %v277_v47, %v286_v0 }
 0x3f7   :  { %294 = vst.msk [vmem:[#allocation4] ss:$8 sm:$0x3] %vm3306_vm11, %v288_v59 }
 0x462   :  { %v3313_v28 = vpop.f32.mrf.mxu0 }
 0x463   :  { %1732 = vrot.lane.b32.xlu1 %v3313_v28, %s2117_s18 }
 0x46a   :  { %v3331_v29 = vpop.f32.mrf.mxu2 }
 0x46b   :  { %755 = vrot.lane.b32.xlu1 %v3248_v17, %s2116_s17  ;;  %v3319_v1 = vpop.f32.mrf.mxu1 }
 0x46c   :  { %1980 = vrot.lane.b32.xlu0 %v3319_v1, %s2116_s17  ;;  %1977 = vrot.lane.b32.xlu2 %v3319_v1, %s2117_s18 }
 0x473   :  { %513 = vrot.lane.b32.xlu1 %v2794_v60, %s2115_s16 }
 0x474   :  { %1003 = vrot.lane.b32.xlu0 %v3256_v37, %s2115_s16  ;;  %1000 = vrot.lane.b32.xlu2 %v3256_v37, %s2116_s17 }
 0x47b   :  { %1248 = vrot.lane.b32.xlu1 %v3232_v27, %s2115_s16 }
 0x47c   :  { %1487 = vrot.lane.b32.xlu0 %v3331_v29, %s2117_s18  ;;  %1735 = vrot.lane.b32.xlu2 %v3313_v28, %s2116_s17  ;;  %s2018_s18 = sshll.u32 %s3432_s5, 4  ;;  %s2019_s18 = int_to_ptr.hbm [resolvable:$true] %s2018_s18 }
 0x483   :  { %1490 = vrot.lane.b32.xlu1 %v3331_v29, %s2116_s17 }
 0x484   :  { %1738 = vrot.lane.b32.xlu0 %v3313_v28, %s2115_s16  ;;  %758 = vrot.lane.b32.xlu2 %v3248_v17, %s2115_s16  ;;  %v517_v17 = vsel %vm221_vm12, %v516_v21, %v511_v48 }
 0x48b   :  { %1983 = vrot.lane.b32.xlu1 %v3319_v1, %s2115_s16 }
 0x48c   :  { %1493 = vrot.lane.b32.xlu2 %v3331_v29, %s2115_s16 }
 0x4c6   :  { %v3349_v25 = vpop.permute.xlu2 %1977 }
 0x4ce   :  { %v1001_v52 = vpop.permute.xlu2 %1000 }
 0x4cf   :  { %v1007_v53 = vsel %vm221_vm12, %v1006_v12, %v1001_v52 }
 0x4d5   :  { %v3351_v54 = vpop.permute.xlu1 %1732 }
 0x4d6   :  { %v3353_v42 = vpop.permute.xlu2 %1735 }
 0x4dd   :  { %v756_v32 = vpop.permute.xlu1 %755 }
 0x4de   :  { %v762_v50 = vsel %vm221_vm12, %v761_v33, %v756_v32  ;;  %v3358_v2 = vpop.permute.xlu0 %1980  ;;  %v759_v43 = vpop.permute.xlu2 %758 }
 0x4df   :  { %v763_v46 = vsel %vm225_vm14, %v762_v50, %v759_v43 }
 0x4e0   :  { %v764_v11 = vmul.f32 %v763_v46, %v3295_v49  ;;  %v765_v62 = vmul.f32 %v763_v46, %v3300_v16 }
 0x4e2   :  { %v766_v6 = vrot.slane %v764_v11, 4  ;;  %v772_v15 = vrot.slane %v765_v62, 4 }
 0x4e4   :  { %v767_v31 = vadd.f32 %v766_v6, %v764_v11  ;;  %v773_v30 = vadd.f32 %v772_v15, %v765_v62 }
 0x4e5   :  { %v514_v57 = vpop.permute.xlu1 %513 }
 0x4e6   :  { %v768_v19 = vrot.slane %v767_v31, 2  ;;  %v774_v55 = vrot.slane %v773_v30, 2  ;;  %v518_v40 = vsel %vm225_vm14, %v517_v17, %v514_v57  ;;  %v1004_v23 = vpop.permute.xlu0 %1003 }
 0x4e7   :  { %v519_v4 = vmul.f32 %v518_v40, %v3295_v49  ;;  %v520_v7 = vmul.f32 %v518_v40, %v3300_v16  ;;  %v1008_v60 = vsel %vm225_vm14, %v1007_v53, %v1004_v23 }
 0x4e8   :  { %v769_v18 = vadd.f32 %v768_v19, %v767_v31  ;;  %v775_v35 = vadd.f32 %v774_v55, %v773_v30  ;;  %v1009_v58 = vmul.f32 %v1008_v60, %v3295_v49  ;;  %v1010_v37 = vmul.f32 %v1008_v60, %v3300_v16 }
 0x4e9   :  { %v521_v63 = vrot.slane %v519_v4, 4  ;;  %v527_v8 = vrot.slane %v520_v7, 4  ;;  %v1741_v30 = vsel %vm217_vm9, %v3313_v28, %v3351_v54 }
 0x4ea   :  { %v770_v20 = vrot.slane %v769_v18, 1  ;;  %v776_v26 = vrot.slane %v775_v35, 1  ;;  %v1011_v51 = vrot.slane %v1009_v58, 4  ;;  %v1017_v44 = vrot.slane %v1010_v37, 4 }
 0x4eb   :  { %v522_v34 = vadd.f32 %v521_v63, %v519_v4  ;;  %v528_v36 = vadd.f32 %v527_v8, %v520_v7  ;;  %v1742_v57 = vsel %vm221_vm12, %v1741_v30, %v3353_v42  ;;  %v1494_v7 = vpop.permute.xlu2 %1493 }
 0x4ec   :  { %v777_v41 = vadd.f32 %v776_v26, %v775_v35  ;;  %v1012_v24 = vadd.f32 %v1011_v51, %v1009_v58  ;;  %v1018_v56 = vadd.f32 %v1017_v44, %v1010_v37  ;;  %v771_v5 = vadd.f32 %v770_v20, %v769_v18 }
 0x4ed   :  { %v523_v22 = vrot.slane %v522_v34, 2  ;;  %v529_v3 = vrot.slane %v528_v36, 2  ;;  %v1249_v47 = vpop.permute.xlu1 %1248 }
 0x4ee   :  { %v780_v0 = vrot.slane %v777_v41, 7  ;;  %v1013_v59 = vrot.slane %v1012_v24, 2  ;;  %v1019_v9 = vrot.slane %v1018_v56, 2  ;;  %v1253_v10 = vsel %vm225_vm14, %v1252_v61, %v1249_v47  ;;  %v1488_v48 = vpop.permute.xlu0 %1487 }
 0x4ef   :  { %v524_v14 = vadd.f32 %v523_v22, %v522_v34  ;;  %v530_v52 = vadd.f32 %v529_v3, %v528_v36  ;;  %v1254_v33 = vmul.f32 %v1253_v10, %v3295_v49  ;;  %v1255_v27 = vmul.f32 %v1253_v10, %v3300_v16 }
 0x4f0   :  { %v781_v45 = vsel %vm287_vm10, %v771_v5, %v780_v0  ;;  %v1014_v32 = vadd.f32 %v1013_v59, %v1012_v24  ;;  %v1020_v13 = vadd.f32 %v1019_v9, %v1018_v56  ;;  %v1496_v31 = vsel %vm217_vm9, %v3331_v29, %v1488_v48 }
 0x4f1   :  { %784 = vst.msk [vmem:[#allocation4 + $0x2] ss:$8 sm:$0x3] %vm3306_vm11, %v781_v45  ;;  %v525_v50 = vrot.slane %v524_v14, 1  ;;  %v531_v43 = vrot.slane %v530_v52, 1  ;;  %v1256_v46 = vrot.slane %v1254_v33, 4  ;;  %v1986_v24 = vsel %vm217_vm9, %v3319_v1, %v3349_v25 }
 0x4f2   :  { %v1015_v11 = vrot.slane %v1014_v32, 1  ;;  %v1021_v62 = vrot.slane %v1020_v13, 1  ;;  %v1262_v6 = vrot.slane %v1255_v27, 4  ;;  %v1987_v22 = vsel %vm221_vm12, %v1986_v24, %v3358_v2 }
 0x4f3   :  { %v532_v15 = vadd.f32 %v531_v43, %v530_v52  ;;  %v1257_v21 = vadd.f32 %v1256_v46, %v1254_v33  ;;  %v526_v53 = vadd.f32 %v525_v50, %v524_v14 }
 0x4f4   :  { %v1022_v17 = vadd.f32 %v1021_v62, %v1020_v13  ;;  %v1263_v12 = vadd.f32 %v1262_v6, %v1255_v27  ;;  %v1016_v23 = vadd.f32 %v1015_v11, %v1014_v32 }
 0x4f5   :  { %v535_v19 = vrot.slane %v532_v15, 7  ;;  %v1258_v55 = vrot.slane %v1257_v21, 2  ;;  %v1491_v40 = vpop.permute.xlu1 %1490 }
 0x4f6   :  { %v1025_v4 = vrot.slane %v1022_v17, 7  ;;  %v1264_v60 = vrot.slane %v1263_v12, 2  ;;  %v1497_v18 = vsel %vm221_vm12, %v1496_v31, %v1491_v40  ;;  %v1739_v29 = vpop.permute.xlu0 %1738 }
 0x4f7   :  { %v536_v35 = vsel %vm287_vm10, %v526_v53, %v535_v19  ;;  %v1259_v58 = vadd.f32 %v1258_v55, %v1257_v21  ;;  %v1498_v28 = vsel %vm225_vm14, %v1497_v18, %v1494_v7  ;;  %v1743_v54 = vsel %vm225_vm14, %v1742_v57, %v1739_v29 }
 0x4f8   :  { %539 = vst.msk [vmem:[#allocation4 + $0x1] ss:$8 sm:$0x3] %vm3306_vm11, %v536_v35  ;;  %v1026_v42 = vsel %vm287_vm10, %v1016_v23, %v1025_v4  ;;  %v1265_v37 = vadd.f32 %v1264_v60, %v1263_v12  ;;  %v1499_v63 = vmul.f32 %v1498_v28, %v3295_v49  ;;  %v1500_v8 = vmul.f32 %v1498_v28, %v3300_v16 }
 0x4f9   :  { %1029 = vst.msk [vmem:[#allocation4 + $0x3] ss:$8 sm:$0x3] %vm3306_vm11, %v1026_v42  ;;  %v1260_v20 = vrot.slane %v1259_v58, 1  ;;  %v1744_v26 = vmul.f32 %v1743_v54, %v3295_v49  ;;  %v1745_v51 = vmul.f32 %v1743_v54, %v3300_v16 }
 0x4fa   :  { %v1266_v44 = vrot.slane %v1265_v37, 1  ;;  %v1501_v34 = vrot.slane %v1499_v63, 4  ;;  %v1507_v36 = vrot.slane %v1500_v8, 4 }
 0x4fb   :  { %v1746_v38 = vrot.slane %v1744_v26, 4  ;;  %v1752_v41 = vrot.slane %v1745_v51, 4  ;;  %v1261_v3 = vadd.f32 %v1260_v20, %v1259_v58 }
 0x4fc   :  { %v1267_v56 = vadd.f32 %v1266_v44, %v1265_v37  ;;  %v1502_v61 = vadd.f32 %v1501_v34, %v1499_v63  ;;  %v1508_v5 = vadd.f32 %v1507_v36, %v1500_v8 }
 0x4fd   :  { %v1747_v47 = vadd.f32 %v1746_v38, %v1744_v26  ;;  %v1753_v0 = vadd.f32 %v1752_v41, %v1745_v51  ;;  %v1984_v59 = vpop.permute.xlu1 %1983 }
 0x4fe   :  { %v1270_v9 = vrot.slane %v1267_v56, 7  ;;  %v1503_v10 = vrot.slane %v1502_v61, 2  ;;  %v1509_v48 = vrot.slane %v1508_v5, 2  ;;  %v1988_v14 = vsel %vm225_vm14, %v1987_v22, %v1984_v59 }
 0x4ff   :  { %v1748_v52 = vrot.slane %v1747_v47, 2  ;;  %v1754_v33 = vrot.slane %v1753_v0, 2  ;;  %v1989_v27 = vmul.f32 %v1988_v14, %v3295_v49  ;;  %v1990_v1 = vmul.f32 %v1988_v14, %v3300_v16 }
 0x500   :  { %v1271_v25 = vsel %vm287_vm10, %v1261_v3, %v1270_v9  ;;  %v1504_v45 = vadd.f32 %v1503_v10, %v1502_v61  ;;  %v1510_v32 = vadd.f32 %v1509_v48, %v1508_v5 }
 0x501   :  { %1274 = vst.msk [vmem:[#allocation4 + $0x4] ss:$8 sm:$0x3] %vm3306_vm11, %v1271_v25  ;;  %v1749_v2 = vadd.f32 %v1748_v52, %v1747_v47  ;;  %v1755_v13 = vadd.f32 %v1754_v33, %v1753_v0  ;;  %v1991_v50 = vrot.slane %v1989_v27, 4  ;;  %v1997_v43 = vrot.slane %v1990_v1, 4 }
 0x502   :  { %v1505_v46 = vrot.slane %v1504_v45, 1  ;;  %v1511_v11 = vrot.slane %v1510_v32, 1 }
 0x503   :  { %v1750_v62 = vrot.slane %v1749_v2, 1  ;;  %v1756_v6 = vrot.slane %v1755_v13, 1  ;;  %v1992_v15 = vadd.f32 %v1991_v50, %v1989_v27  ;;  %v1998_v21 = vadd.f32 %v1997_v43, %v1990_v1 }
 0x504   :  { %v1512_v49 = vadd.f32 %v1511_v11, %v1510_v32  ;;  %v1506_v17 = vadd.f32 %v1505_v46, %v1504_v45 }
 0x505   :  { %v1757_v31 = vadd.f32 %v1756_v6, %v1755_v13  ;;  %v1993_v16 = vrot.slane %v1992_v15, 2  ;;  %v1999_v30 = vrot.slane %v1998_v21, 2  ;;  %v1751_v57 = vadd.f32 %v1750_v62, %v1749_v2 }
 0x506   :  { %v1515_v12 = vrot.slane %v1512_v49, 7 }
 0x507   :  { %v1760_v53 = vrot.slane %v1757_v31, 7  ;;  %v1994_v19 = vadd.f32 %v1993_v16, %v1992_v15  ;;  %v2000_v55 = vadd.f32 %v1999_v30, %v1998_v21 }
 0x508   :  { %v1516_v40 = vsel %vm287_vm10, %v1506_v17, %v1515_v12 }
 0x509   :  { %1519 = vst.msk [vmem:[#allocation4 + $0x5] ss:$8 sm:$0x3] %vm3306_vm11, %v1516_v40  ;;  %v1761_v23 = vsel %vm287_vm10, %v1751_v57, %v1760_v53  ;;  %v1995_v4 = vrot.slane %v1994_v19, 1  ;;  %v2001_v7 = vrot.slane %v2000_v55, 1 }
 0x50a   :  { %1764 = vst.msk [vmem:[#allocation4 + $0x6] ss:$8 sm:$0x3] %vm3306_vm11, %v1761_v23 }
 0x50b   :  { %v2002_v60 = vadd.f32 %v2001_v7, %v2000_v55  ;;  %v1996_v18 = vadd.f32 %v1995_v4, %v1994_v19 }
 0x50d   :  { %v2005_v29 = vrot.slane %v2002_v60, 7 }
 0x50f   :  { %v2006_v35 = vsel %vm287_vm10, %v1996_v18, %v2005_v29 }
 0x510   :  { %2009 = vst.msk [vmem:[#allocation4 + $0x7] ss:$8 sm:$0x3] %vm3306_vm11, %v2006_v35 }
 0x511   :  { %2021 = dma.vmem_to_hbm [thread:$0]  %s2017_s15, 256, %s2019_s18, [#allocation5]  }
 0x512   :  { %2109 = dma.done.wait [#allocation5], 256  }
 0x513   :  { %2110 = vsyncadd [#allocation5], 4294967040 }
 0x514   :  { %2026 = vsyncpa [#allocation5], 1 }

</bundles_post_ra>
